<compile_context>
chip_gen: v7x
topology: tpu7x:2x2x1
jax: 0.10.0
libtpu: 0.0.40
codegen_flags: <defaults>
</compile_context>

<pallas_src>
import functools

import jax
import jax.numpy as jnp
from jax.experimental import pallas as pl
from jax.experimental.pallas import tpu as pltpu

EPS = 1e-5


# ----------------------------------------------------------------------------
# Pallas kernels
# ----------------------------------------------------------------------------
def _conv_bn_relu_pool_kernel(x_ref, w_ref, b_ref, o_ref, *, Ho, Wo, Wq, Cout):
    """Fused 3x3 conv (stride 1, pad 1) + folded BN + ReLU + 2x2/2 max-pool, one image.

    x_ref: (1, 8, Hq*Wq, Cin)  bf16  zero-padded input split into the 8
           (row-parity a, col-parity b, col-shift dw) phases, each flattened
           row-major on a (Hq, Wq) grid with Wq a multiple of 8, so every slice
           below starts on a sublane-tile boundary.
    w_ref: (9, Cin, Cout)      bf16  conv weights with BN scale folded in, tap order (kh, kw).
    b_ref: (1, Cout)           f32   conv bias with BN shift folded in.
    o_ref: (1, Ho, Wo, Cout)   bf16  pooled NHWC output.
    """
    L = Ho * Wq
    m = None
    # (r, s) = position of the pre-pool pixel inside its 2x2 pooling window.
    for r in range(2):
        for s in range(2):
            acc = jnp.zeros((L, Cout), jnp.float32)
            for kh in range(3):
                for kw in range(3):
                    a, dh = (r + kh) % 2, (r + kh) // 2
                    b, dw = (s + kw) % 2, (s + kw) // 2
                    pidx = a * 4 + b * 2 + dw
                    start = dh * Wq                                  # multiple of 8
                    tap = x_ref[0, pidx, start:start + L, :]         # (L, Cin) bf16
                    acc = acc + jnp.dot(tap, w_ref[kh * 3 + kw],
                                        preferred_element_type=jnp.float32)
            m = acc if m is None else jnp.maximum(m, acc)
    # max-pool == max over the 4 (r, s) phases; ReLU commutes with max, and the
    # BN affine is already folded into w/b, so apply bias + ReLU once at the end.
    y = jnp.maximum(m + b_ref[...], 0.0)                             # (L, Cout) f32
    y = y.reshape(Ho, Wq, Cout)[:, :Wo, :]                           # drop pad columns
    o_ref[0] = y.astype(o_ref.dtype)


def _mlp_kernel(x_ref, w1_ref, b1_ref, w2_ref, b2_ref, w3_ref, b3_ref, o_ref):
    """Fused fc1+tanh -> fc2+tanh -> fc3+sigmoid; all weights resident in VMEM."""
    h = jnp.tanh(jnp.dot(x_ref[...], w1_ref[...],
                         preferred_element_type=jnp.float32) + b1_ref[...])
    h = jnp.tanh(jnp.dot(h.astype(jnp.bfloat16), w2_ref[...],
                         preferred_element_type=jnp.float32) + b2_ref[...])
    z = jnp.dot(h.astype(jnp.bfloat16), w3_ref[...],
                preferred_element_type=jnp.float32) + b3_ref[...]
    o_ref[...] = (1.0 / (1.0 + jnp.exp(-z))).astype(o_ref.dtype)


# ----------------------------------------------------------------------------
# Pallas wrappers
# ----------------------------------------------------------------------------
def conv_block(phases, w, b, Ho, Wo, Wq, Cout):
    """phases: (B, 8, Hq*Wq, Cin) -> pooled NHWC (B, Ho, Wo, Cout) bf16."""
    B, P, Lp, Cin = phases.shape
    kernel = functools.partial(_conv_bn_relu_pool_kernel, Ho=Ho, Wo=Wo, Wq=Wq, Cout=Cout)
    return pl.pallas_call(
        kernel,
        out_shape=jax.ShapeDtypeStruct((B, Ho, Wo, Cout), jnp.bfloat16),
        grid=(B,),
        in_specs=[
            pl.BlockSpec((1, P, Lp, Cin), lambda i: (i, 0, 0, 0)),
            pl.BlockSpec((9, Cin, Cout), lambda i: (0, 0, 0)),
            pl.BlockSpec((1, Cout), lambda i: (0, 0)),
        ],
        out_specs=pl.BlockSpec((1, Ho, Wo, Cout), lambda i: (i, 0, 0, 0)),
        compiler_params=pltpu.CompilerParams(dimension_semantics=("parallel",)),
    )(phases, w, b)


def mlp(x, w1, b1, w2, b2, w3, b3):
    B = x.shape[0]
    return pl.pallas_call(
        _mlp_kernel,
        out_shape=jax.ShapeDtypeStruct((B, w3.shape[1]), jnp.float32),
        in_specs=[pl.BlockSpec(memory_space=pltpu.MemorySpace.VMEM)] * 7,
        out_specs=pl.BlockSpec(memory_space=pltpu.MemorySpace.VMEM),
    )(x, w1, b1, w2, b2, w3, b3)


# ----------------------------------------------------------------------------
# Cheap XLA glue: phase decomposition of the zero-padded input (tiny tensors)
# ----------------------------------------------------------------------------
def make_phases(x_nhwc):
    """(B, H, W, C) -> (B, 8, Hq*Wq, C) flattened phases of the zero-padded input."""
    B, H, W, C = x_nhwc.shape
    Ho, Wo = H // 2, W // 2
    Hp, Wp = Ho + 1, Wo + 1                       # phase-grid extent of the padded input
    Hq = Ho + 2                                    # 1 extra zero row: keeps kernel slices in bounds
    Wq = ((Wp + 7) // 8) * 8                       # pad width to a sublane multiple
    xp = jnp.pad(x_nhwc, ((0, 0), (1, 1), (1, 1), (0, 0)))
    ph = xp.reshape(B, Hp, 2, Wp, 2, C).transpose(0, 2, 4, 1, 3, 5)       # (B,2,2,Hp,Wp,C)
    ph = jnp.pad(ph, ((0, 0), (0, 0), (0, 0), (0, Hq - Hp), (0, Wq - Wp), (0, 0)))
    ph_s = jnp.pad(ph[..., 1:, :], ((0, 0),) * 4 + ((0, 1), (0, 0)))      # col-shifted copy
    allp = jnp.stack([ph, ph_s], axis=3)                                  # (B,2,2,2,Hq,Wq,C)
    return allp.reshape(B, 8, Hq * Wq, C), Wq


# ----------------------------------------------------------------------------
# One-time parameter preparation (BN folding, GEMM layouts, fc1 permutation)
# ----------------------------------------------------------------------------
def prepare_params(p, pooled_h, pooled_w):
    def fold_conv(w_oihw, bias, gamma, beta, mean, var):
        scale = gamma / jnp.sqrt(var + EPS)                 # (Cout,)
        shift = beta - mean * scale
        cout, cin = w_oihw.shape[0], w_oihw.shape[1]
        w = jnp.transpose(w_oihw, (2, 3, 1, 0)).reshape(9, cin, cout)     # (kh*3+kw, Cin, Cout)
        w = w * scale[None, None, :]
        b = (bias * scale + shift).reshape(1, cout)
        return w.astype(jnp.bfloat16), b.astype(jnp.float32)

    w1c, b1c = fold_conv(p["conv1_w"], p["conv1_b"], p["bn1_gamma"], p["bn1_beta"],
                         p["bn1_mean"], p["bn1_var"])
    w2c, b2c = fold_conv(p["conv2_w"], p["conv2_b"], p["bn2_gamma"], p["bn2_beta"],
                         p["bn2_mean"], p["bn2_var"])

    # PyTorch flattens NCHW (c, h, w); our conv output is NHWC, so permute the
    # fc1 input dimension once here instead of transposing activations at runtime.
    c2 = p["conv2_w"].shape[0]
    assert c2 * pooled_h * pooled_w == p["fc1_w"].shape[1]
    fc1 = p["fc1_w"].reshape(p["fc1_w"].shape[0], c2, pooled_h, pooled_w)
    fc1 = jnp.transpose(fc1, (2, 3, 1, 0)).reshape(pooled_h * pooled_w * c2, -1)

    return {
        "w1c": w1c, "b1c": b1c, "w2c": w2c, "b2c": b2c,
        "fc1_w": fc1.astype(jnp.bfloat16),
        "fc1_b": p["fc1_b"].reshape(1, -1).astype(jnp.float32),
        "fc2_w": p["fc2_w"].T.astype(jnp.bfloat16),
        "fc2_b": p["fc2_b"].reshape(1, -1).astype(jnp.float32),
        "fc3_w": p["fc3_w"].T.astype(jnp.bfloat16),
        "fc3_b": p["fc3_b"].reshape(1, -1).astype(jnp.float32),
    }


def init_params(key):
    ks = jax.random.split(key, 18)
    u = lambda k, shape, s: s * jax.random.uniform(k, shape, jnp.float32, -1.0, 1.0)
    p = {}
    p["conv1_w"] = u(ks[0], (24, 3, 3, 3), 0.2)
    p["conv1_b"] = u(ks[1], (24,), 0.1)
    p["bn1_gamma"] = 1.0 + u(ks[2], (24,), 0.1)
    p["bn1_beta"] = u(ks[3], (24,), 0.1)
    p["bn1_mean"] = u(ks[4], (24,), 0.1)
    p["bn1_var"] = 1.0 + u(ks[5], (24,), 0.3)
    p["conv2_w"] = u(ks[6], (48, 24, 3, 3), 0.08)
    p["conv2_b"] = u(ks[7], (48,), 0.1)
    p["bn2_gamma"] = 1.0 + u(ks[8], (48,), 0.1)
    p["bn2_beta"] = u(ks[9], (48,), 0.1)
    p["bn2_mean"] = u(ks[10], (48,), 0.1)
    p["bn2_var"] = 1.0 + u(ks[11], (48,), 0.3)
    p["fc1_w"] = u(ks[12], (512, 1440), 0.02)
    p["fc1_b"] = u(ks[13], (512,), 0.02)
    p["fc2_w"] = u(ks[14], (1024, 512), 0.02)
    p["fc2_b"] = u(ks[15], (1024,), 0.02)
    p["fc3_w"] = u(ks[16], (2, 1024), 0.02)
    p["fc3_b"] = u(ks[17], (2,), 0.02)
    # NOTE: conv3 / pool3 / batch_normal3 exist in __init__ but are unused in forward().
    return p


# ----------------------------------------------------------------------------
# Forward pass (3 pallas_calls total)
# ----------------------------------------------------------------------------
def forward_pallas(prep, x_nchw):
    B, _, H, W = x_nchw.shape
    x = jnp.transpose(x_nchw, (0, 2, 3, 1)).astype(jnp.bfloat16)     # NHWC, bf16 for the MXU

    ph1, wq1 = make_phases(x)
    y1 = conv_block(ph1, prep["w1c"], prep["b1c"], H // 2, W // 2, wq1, 24)

    ph2, wq2 = make_phases(y1)
    y2 = conv_block(ph2, prep["w2c"], prep["b2c"], H // 4, W // 4, wq2, 48)

    flat = y2.reshape(B, -1)                 # NHWC flatten; fc1 columns were pre-permuted to match
    return mlp(flat, prep["fc1_w"], prep["fc1_b"], prep["fc2_w"], prep["fc2_b"],
               prep["fc3_w"], prep["fc3_b"])                         # (B, 2) f32


# ----------------------------------------------------------------------------
# Pure-JAX reference (independent of the Pallas path) for a sanity check
# ----------------------------------------------------------------------------
def forward_reference(params, x_nchw):
    hp = jax.lax.Precision.HIGHEST

    def conv(x, w, b):
        y = jax.lax.conv_general_dilated(
            x, w, (1, 1), ((1, 1), (1, 1)),
            dimension_numbers=("NCHW", "OIHW", "NCHW"), precision=hp)
        return y + b[None, :, None, None]

    def bn(x, g, bt, m, v):
        return (x - m[None, :, None, None]) / jnp.sqrt(v[None, :, None, None] + EPS) \
               * g[None, :, None, None] + bt[None, :, None, None]

    def pool(x):
        return jax.lax.reduce_window(x, -jnp.inf, jax.lax.max,
                                     (1, 1, 2, 2), (1, 1, 2, 2), "VALID")

    x = x_nchw.astype(jnp.float32)
    x = conv(x, params["conv1_w"], params["conv1_b"])
    x = jnp.maximum(bn(x, params["bn1_gamma"], params["bn1_beta"],
                       params["bn1_mean"], params["bn1_var"]), 0.0)
    x = pool(x)
    x = conv(x, params["conv2_w"], params["conv2_b"])
    x = jnp.maximum(bn(x, params["bn2_gamma"], params["bn2_beta"],
                       params["bn2_mean"], params["bn2_var"]), 0.0)
    x = pool(x)
    x = x.reshape(x.shape[0], -1)
    x = jnp.tanh(jnp.dot(x, params["fc1_w"].T, precision=hp) + params["fc1_b"])
    x = jnp.tanh(jnp.dot(x, params["fc2_w"].T, precision=hp) + params["fc2_b"])
    x = jax.nn.sigmoid(jnp.dot(x, params["fc3_w"].T, precision=hp) + params["fc3_b"])
    return x


# ----------------------------------------------------------------------------
if __name__ == "__main__":
    key = jax.random.PRNGKey(0)
    k_params, k_x = jax.random.split(key)
    params = init_params(k_params)

    # Input: NCHW. fc1 expects 1440 = 48 * (H/4) * (W/4)  ->  H=20, W=24.
    x = jax.random.normal(k_x, (2, 3, 20, 24), jnp.float32)

    prep = prepare_params(params, pooled_h=20 // 4, pooled_w=24 // 4)   # done once, GEMM-ready
    fwd = jax.jit(forward_pallas)

    out = jax.block_until_ready(fwd(prep, x))
    assert out.shape == (2, 2) and out.dtype == jnp.float32

    ref = jax.block_until_ready(forward_reference(params, x))
    max_err = float(jnp.max(jnp.abs(out - ref)))
    assert max_err < 5e-2, f"mismatch vs reference: {max_err}"

    print("KERNEL_OK")
</pallas_src>

<mosaic_0001>
module attributes {stable_mosaic.version = 11 : i64} {
  func.func @_conv_bn_relu_pool_kernel(%arg0: i32, %arg1: memref<1x8x192x3xbf16, #tpu.memory_space<vmem>>, %arg2: memref<9x3x24xbf16, #tpu.memory_space<vmem>>, %arg3: memref<1x24xf32, #tpu.memory_space<vmem>>, %arg4: memref<1x10x12x24xbf16, #tpu.memory_space<vmem>>) attributes {dimension_semantics = [#tpu.dimension_semantics<parallel>], iteration_bounds = array<i64: 2>, scalar_prefetch = 0 : i64, scratch_operands = 0 : i64, tpu.core_type = #tpu.core_type<tc>, window_params = [{transform_indices = @transform_0, window_bounds = array<i64: 1, 8, 192, 3>}, {pipeline_mode = #tpu.pipeline_mode<synchronous>, transform_indices = @transform_1, window_bounds = array<i64: 9, 3, 24>}, {pipeline_mode = #tpu.pipeline_mode<synchronous>, transform_indices = @transform_2, window_bounds = array<i64: 1, 24>}, {transform_indices = @transform_3, window_bounds = array<i64: 1, 10, 12, 24>}]} {
    %cst = arith.constant 0.000000e+00 : f32
    %0 = vector.broadcast %cst : f32 to vector<160x24xf32>
    %c0 = arith.constant 0 : index
    %c0_0 = arith.constant 0 : index
    %c0_1 = arith.constant 0 : index
    %c0_2 = arith.constant 0 : index
    %1 = vector.load %arg1[%c0, %c0_0, %c0_1, %c0_2] : memref<1x8x192x3xbf16, #tpu.memory_space<vmem>>, vector<1x1x160x3xbf16>
    %2 = vector.shape_cast %1 : vector<1x1x160x3xbf16> to vector<160x3xbf16>
    %c0_3 = arith.constant 0 : index
    %c0_4 = arith.constant 0 : index
    %c0_5 = arith.constant 0 : index
    %3 = vector.load %arg2[%c0_3, %c0_4, %c0_5] : memref<9x3x24xbf16, #tpu.memory_space<vmem>>, vector<1x3x24xbf16>
    %4 = vector.shape_cast %3 : vector<1x3x24xbf16> to vector<3x24xbf16>
    %cst_6 = arith.constant dense<0.000000e+00> : vector<160x24xf32>
    %5 = tpu.matmul %2, %4, %cst_6 {dimension_numbers = #tpu.dot_dimension_numbers<[1], [0], [0], [1], [0, 0, 1, 1], [], []>} : vector<160x3xbf16>, vector<3x24xbf16>, vector<160x24xf32> -> vector<160x24xf32>
    %6 = arith.addf %0, %5 : vector<160x24xf32>
    %c0_7 = arith.constant 0 : index
    %c2 = arith.constant 2 : index
    %c0_8 = arith.constant 0 : index
    %c0_9 = arith.constant 0 : index
    %7 = vector.load %arg1[%c0_7, %c2, %c0_8, %c0_9] : memref<1x8x192x3xbf16, #tpu.memory_space<vmem>>, vector<1x1x160x3xbf16>
    %8 = vector.shape_cast %7 : vector<1x1x160x3xbf16> to vector<160x3xbf16>
    %c1 = arith.constant 1 : index
    %c0_10 = arith.constant 0 : index
    %c0_11 = arith.constant 0 : index
    %9 = vector.load %arg2[%c1, %c0_10, %c0_11] : memref<9x3x24xbf16, #tpu.memory_space<vmem>>, vector<1x3x24xbf16>
    %10 = vector.shape_cast %9 : vector<1x3x24xbf16> to vector<3x24xbf16>
    %cst_12 = arith.constant dense<0.000000e+00> : vector<160x24xf32>
    %11 = tpu.matmul %8, %10, %cst_12 {dimension_numbers = #tpu.dot_dimension_numbers<[1], [0], [0], [1], [0, 0, 1, 1], [], []>} : vector<160x3xbf16>, vector<3x24xbf16>, vector<160x24xf32> -> vector<160x24xf32>
    %12 = arith.addf %6, %11 : vector<160x24xf32>
    %c0_13 = arith.constant 0 : index
    %c1_14 = arith.constant 1 : index
    %c0_15 = arith.constant 0 : index
    %c0_16 = arith.constant 0 : index
    %13 = vector.load %arg1[%c0_13, %c1_14, %c0_15, %c0_16] : memref<1x8x192x3xbf16, #tpu.memory_space<vmem>>, vector<1x1x160x3xbf16>
    %14 = vector.shape_cast %13 : vector<1x1x160x3xbf16> to vector<160x3xbf16>
    %c2_17 = arith.constant 2 : index
    %c0_18 = arith.constant 0 : index
    %c0_19 = arith.constant 0 : index
    %15 = vector.load %arg2[%c2_17, %c0_18, %c0_19] : memref<9x3x24xbf16, #tpu.memory_space<vmem>>, vector<1x3x24xbf16>
    %16 = vector.shape_cast %15 : vector<1x3x24xbf16> to vector<3x24xbf16>
    %cst_20 = arith.constant dense<0.000000e+00> : vector<160x24xf32>
    %17 = tpu.matmul %14, %16, %cst_20 {dimension_numbers = #tpu.dot_dimension_numbers<[1], [0], [0], [1], [0, 0, 1, 1], [], []>} : vector<160x3xbf16>, vector<3x24xbf16>, vector<160x24xf32> -> vector<160x24xf32>
    %18 = arith.addf %12, %17 : vector<160x24xf32>
    %c0_21 = arith.constant 0 : index
    %c4 = arith.constant 4 : index
    %c0_22 = arith.constant 0 : index
    %c0_23 = arith.constant 0 : index
    %19 = vector.load %arg1[%c0_21, %c4, %c0_22, %c0_23] : memref<1x8x192x3xbf16, #tpu.memory_space<vmem>>, vector<1x1x160x3xbf16>
    %20 = vector.shape_cast %19 : vector<1x1x160x3xbf16> to vector<160x3xbf16>
    %c3 = arith.constant 3 : index
    %c0_24 = arith.constant 0 : index
    %c0_25 = arith.constant 0 : index
    %21 = vector.load %arg2[%c3, %c0_24, %c0_25] : memref<9x3x24xbf16, #tpu.memory_space<vmem>>, vector<1x3x24xbf16>
    %22 = vector.shape_cast %21 : vector<1x3x24xbf16> to vector<3x24xbf16>
    %cst_26 = arith.constant dense<0.000000e+00> : vector<160x24xf32>
    %23 = tpu.matmul %20, %22, %cst_26 {dimension_numbers = #tpu.dot_dimension_numbers<[1], [0], [0], [1], [0, 0, 1, 1], [], []>} : vector<160x3xbf16>, vector<3x24xbf16>, vector<160x24xf32> -> vector<160x24xf32>
    %24 = arith.addf %18, %23 : vector<160x24xf32>
    %c0_27 = arith.constant 0 : index
    %c6 = arith.constant 6 : index
    %c0_28 = arith.constant 0 : index
    %c0_29 = arith.constant 0 : index
    %25 = vector.load %arg1[%c0_27, %c6, %c0_28, %c0_29] : memref<1x8x192x3xbf16, #tpu.memory_space<vmem>>, vector<1x1x160x3xbf16>
    %26 = vector.shape_cast %25 : vector<1x1x160x3xbf16> to vector<160x3xbf16>
    %c4_30 = arith.constant 4 : index
    %c0_31 = arith.constant 0 : index
    %c0_32 = arith.constant 0 : index
    %27 = vector.load %arg2[%c4_30, %c0_31, %c0_32] : memref<9x3x24xbf16, #tpu.memory_space<vmem>>, vector<1x3x24xbf16>
    %28 = vector.shape_cast %27 : vector<1x3x24xbf16> to vector<3x24xbf16>
    %cst_33 = arith.constant dense<0.000000e+00> : vector<160x24xf32>
    %29 = tpu.matmul %26, %28, %cst_33 {dimension_numbers = #tpu.dot_dimension_numbers<[1], [0], [0], [1], [0, 0, 1, 1], [], []>} : vector<160x3xbf16>, vector<3x24xbf16>, vector<160x24xf32> -> vector<160x24xf32>
    %30 = arith.addf %24, %29 : vector<160x24xf32>
    %c0_34 = arith.constant 0 : index
    %c5 = arith.constant 5 : index
    %c0_35 = arith.constant 0 : index
    %c0_36 = arith.constant 0 : index
    %31 = vector.load %arg1[%c0_34, %c5, %c0_35, %c0_36] : memref<1x8x192x3xbf16, #tpu.memory_space<vmem>>, vector<1x1x160x3xbf16>
    %32 = vector.shape_cast %31 : vector<1x1x160x3xbf16> to vector<160x3xbf16>
    %c5_37 = arith.constant 5 : index
    %c0_38 = arith.constant 0 : index
    %c0_39 = arith.constant 0 : index
    %33 = vector.load %arg2[%c5_37, %c0_38, %c0_39] : memref<9x3x24xbf16, #tpu.memory_space<vmem>>, vector<1x3x24xbf16>
    %34 = vector.shape_cast %33 : vector<1x3x24xbf16> to vector<3x24xbf16>
    %cst_40 = arith.constant dense<0.000000e+00> : vector<160x24xf32>
    %35 = tpu.matmul %32, %34, %cst_40 {dimension_numbers = #tpu.dot_dimension_numbers<[1], [0], [0], [1], [0, 0, 1, 1], [], []>} : vector<160x3xbf16>, vector<3x24xbf16>, vector<160x24xf32> -> vector<160x24xf32>
    %36 = arith.addf %30, %35 : vector<160x24xf32>
    %c0_41 = arith.constant 0 : index
    %c0_42 = arith.constant 0 : index
    %c16 = arith.constant 16 : index
    %c0_43 = arith.constant 0 : index
    %37 = vector.load %arg1[%c0_41, %c0_42, %c16, %c0_43] : memref<1x8x192x3xbf16, #tpu.memory_space<vmem>>, vector<1x1x160x3xbf16>
    %38 = vector.shape_cast %37 : vector<1x1x160x3xbf16> to vector<160x3xbf16>
    %c6_44 = arith.constant 6 : index
    %c0_45 = arith.constant 0 : index
    %c0_46 = arith.constant 0 : index
    %39 = vector.load %arg2[%c6_44, %c0_45, %c0_46] : memref<9x3x24xbf16, #tpu.memory_space<vmem>>, vector<1x3x24xbf16>
    %40 = vector.shape_cast %39 : vector<1x3x24xbf16> to vector<3x24xbf16>
    %cst_47 = arith.constant dense<0.000000e+00> : vector<160x24xf32>
    %41 = tpu.matmul %38, %40, %cst_47 {dimension_numbers = #tpu.dot_dimension_numbers<[1], [0], [0], [1], [0, 0, 1, 1], [], []>} : vector<160x3xbf16>, vector<3x24xbf16>, vector<160x24xf32> -> vector<160x24xf32>
    %42 = arith.addf %36, %41 : vector<160x24xf32>
    %c0_48 = arith.constant 0 : index
    %c2_49 = arith.constant 2 : index
    %c16_50 = arith.constant 16 : index
    %c0_51 = arith.constant 0 : index
    %43 = vector.load %arg1[%c0_48, %c2_49, %c16_50, %c0_51] : memref<1x8x192x3xbf16, #tpu.memory_space<vmem>>, vector<1x1x160x3xbf16>
    %44 = vector.shape_cast %43 : vector<1x1x160x3xbf16> to vector<160x3xbf16>
    %c7 = arith.constant 7 : index
    %c0_52 = arith.constant 0 : index
    %c0_53 = arith.constant 0 : index
    %45 = vector.load %arg2[%c7, %c0_52, %c0_53] : memref<9x3x24xbf16, #tpu.memory_space<vmem>>, vector<1x3x24xbf16>
    %46 = vector.shape_cast %45 : vector<1x3x24xbf16> to vector<3x24xbf16>
    %cst_54 = arith.constant dense<0.000000e+00> : vector<160x24xf32>
    %47 = tpu.matmul %44, %46, %cst_54 {dimension_numbers = #tpu.dot_dimension_numbers<[1], [0], [0], [1], [0, 0, 1, 1], [], []>} : vector<160x3xbf16>, vector<3x24xbf16>, vector<160x24xf32> -> vector<160x24xf32>
    %48 = arith.addf %42, %47 : vector<160x24xf32>
    %c0_55 = arith.constant 0 : index
    %c1_56 = arith.constant 1 : index
    %c16_57 = arith.constant 16 : index
    %c0_58 = arith.constant 0 : index
    %49 = vector.load %arg1[%c0_55, %c1_56, %c16_57, %c0_58] : memref<1x8x192x3xbf16, #tpu.memory_space<vmem>>, vector<1x1x160x3xbf16>
    %50 = vector.shape_cast %49 : vector<1x1x160x3xbf16> to vector<160x3xbf16>
    %c8 = arith.constant 8 : index
    %c0_59 = arith.constant 0 : index
    %c0_60 = arith.constant 0 : index
    %51 = vector.load %arg2[%c8, %c0_59, %c0_60] : memref<9x3x24xbf16, #tpu.memory_space<vmem>>, vector<1x3x24xbf16>
    %52 = vector.shape_cast %51 : vector<1x3x24xbf16> to vector<3x24xbf16>
    %cst_61 = arith.constant dense<0.000000e+00> : vector<160x24xf32>
    %53 = tpu.matmul %50, %52, %cst_61 {dimension_numbers = #tpu.dot_dimension_numbers<[1], [0], [0], [1], [0, 0, 1, 1], [], []>} : vector<160x3xbf16>, vector<3x24xbf16>, vector<160x24xf32> -> vector<160x24xf32>
    %54 = arith.addf %48, %53 : vector<160x24xf32>
    %cst_62 = arith.constant 0.000000e+00 : f32
    %55 = vector.broadcast %cst_62 : f32 to vector<160x24xf32>
    %c0_63 = arith.constant 0 : index
    %c2_64 = arith.constant 2 : index
    %c0_65 = arith.constant 0 : index
    %c0_66 = arith.constant 0 : index
    %56 = vector.load %arg1[%c0_63, %c2_64, %c0_65, %c0_66] : memref<1x8x192x3xbf16, #tpu.memory_space<vmem>>, vector<1x1x160x3xbf16>
    %57 = vector.shape_cast %56 : vector<1x1x160x3xbf16> to vector<160x3xbf16>
    %c0_67 = arith.constant 0 : index
    %c0_68 = arith.constant 0 : index
    %c0_69 = arith.constant 0 : index
    %58 = vector.load %arg2[%c0_67, %c0_68, %c0_69] : memref<9x3x24xbf16, #tpu.memory_space<vmem>>, vector<1x3x24xbf16>
    %59 = vector.shape_cast %58 : vector<1x3x24xbf16> to vector<3x24xbf16>
    %cst_70 = arith.constant dense<0.000000e+00> : vector<160x24xf32>
    %60 = tpu.matmul %57, %59, %cst_70 {dimension_numbers = #tpu.dot_dimension_numbers<[1], [0], [0], [1], [0, 0, 1, 1], [], []>} : vector<160x3xbf16>, vector<3x24xbf16>, vector<160x24xf32> -> vector<160x24xf32>
    %61 = arith.addf %55, %60 : vector<160x24xf32>
    %c0_71 = arith.constant 0 : index
    %c1_72 = arith.constant 1 : index
    %c0_73 = arith.constant 0 : index
    %c0_74 = arith.constant 0 : index
    %62 = vector.load %arg1[%c0_71, %c1_72, %c0_73, %c0_74] : memref<1x8x192x3xbf16, #tpu.memory_space<vmem>>, vector<1x1x160x3xbf16>
    %63 = vector.shape_cast %62 : vector<1x1x160x3xbf16> to vector<160x3xbf16>
    %c1_75 = arith.constant 1 : index
    %c0_76 = arith.constant 0 : index
    %c0_77 = arith.constant 0 : index
    %64 = vector.load %arg2[%c1_75, %c0_76, %c0_77] : memref<9x3x24xbf16, #tpu.memory_space<vmem>>, vector<1x3x24xbf16>
    %65 = vector.shape_cast %64 : vector<1x3x24xbf16> to vector<3x24xbf16>
    %cst_78 = arith.constant dense<0.000000e+00> : vector<160x24xf32>
    %66 = tpu.matmul %63, %65, %cst_78 {dimension_numbers = #tpu.dot_dimension_numbers<[1], [0], [0], [1], [0, 0, 1, 1], [], []>} : vector<160x3xbf16>, vector<3x24xbf16>, vector<160x24xf32> -> vector<160x24xf32>
    %67 = arith.addf %61, %66 : vector<160x24xf32>
    %c0_79 = arith.constant 0 : index
    %c3_80 = arith.constant 3 : index
    %c0_81 = arith.constant 0 : index
    %c0_82 = arith.constant 0 : index
    %68 = vector.load %arg1[%c0_79, %c3_80, %c0_81, %c0_82] : memref<1x8x192x3xbf16, #tpu.memory_space<vmem>>, vector<1x1x160x3xbf16>
    %69 = vector.shape_cast %68 : vector<1x1x160x3xbf16> to vector<160x3xbf16>
    %c2_83 = arith.constant 2 : index
    %c0_84 = arith.constant 0 : index
    %c0_85 = arith.constant 0 : index
    %70 = vector.load %arg2[%c2_83, %c0_84, %c0_85] : memref<9x3x24xbf16, #tpu.memory_space<vmem>>, vector<1x3x24xbf16>
    %71 = vector.shape_cast %70 : vector<1x3x24xbf16> to vector<3x24xbf16>
    %cst_86 = arith.constant dense<0.000000e+00> : vector<160x24xf32>
    %72 = tpu.matmul %69, %71, %cst_86 {dimension_numbers = #tpu.dot_dimension_numbers<[1], [0], [0], [1], [0, 0, 1, 1], [], []>} : vector<160x3xbf16>, vector<3x24xbf16>, vector<160x24xf32> -> vector<160x24xf32>
    %73 = arith.addf %67, %72 : vector<160x24xf32>
    %c0_87 = arith.constant 0 : index
    %c6_88 = arith.constant 6 : index
    %c0_89 = arith.constant 0 : index
    %c0_90 = arith.constant 0 : index
    %74 = vector.load %arg1[%c0_87, %c6_88, %c0_89, %c0_90] : memref<1x8x192x3xbf16, #tpu.memory_space<vmem>>, vector<1x1x160x3xbf16>
    %75 = vector.shape_cast %74 : vector<1x1x160x3xbf16> to vector<160x3xbf16>
    %c3_91 = arith.constant 3 : index
    %c0_92 = arith.constant 0 : index
    %c0_93 = arith.constant 0 : index
    %76 = vector.load %arg2[%c3_91, %c0_92, %c0_93] : memref<9x3x24xbf16, #tpu.memory_space<vmem>>, vector<1x3x24xbf16>
    %77 = vector.shape_cast %76 : vector<1x3x24xbf16> to vector<3x24xbf16>
    %cst_94 = arith.constant dense<0.000000e+00> : vector<160x24xf32>
    %78 = tpu.matmul %75, %77, %cst_94 {dimension_numbers = #tpu.dot_dimension_numbers<[1], [0], [0], [1], [0, 0, 1, 1], [], []>} : vector<160x3xbf16>, vector<3x24xbf16>, vector<160x24xf32> -> vector<160x24xf32>
    %79 = arith.addf %73, %78 : vector<160x24xf32>
    %c0_95 = arith.constant 0 : index
    %c5_96 = arith.constant 5 : index
    %c0_97 = arith.constant 0 : index
    %c0_98 = arith.constant 0 : index
    %80 = vector.load %arg1[%c0_95, %c5_96, %c0_97, %c0_98] : memref<1x8x192x3xbf16, #tpu.memory_space<vmem>>, vector<1x1x160x3xbf16>
    %81 = vector.shape_cast %80 : vector<1x1x160x3xbf16> to vector<160x3xbf16>
    %c4_99 = arith.constant 4 : index
    %c0_100 = arith.constant 0 : index
    %c0_101 = arith.constant 0 : index
    %82 = vector.load %arg2[%c4_99, %c0_100, %c0_101] : memref<9x3x24xbf16, #tpu.memory_space<vmem>>, vector<1x3x24xbf16>
    %83 = vector.shape_cast %82 : vector<1x3x24xbf16> to vector<3x24xbf16>
    %cst_102 = arith.constant dense<0.000000e+00> : vector<160x24xf32>
    %84 = tpu.matmul %81, %83, %cst_102 {dimension_numbers = #tpu.dot_dimension_numbers<[1], [0], [0], [1], [0, 0, 1, 1], [], []>} : vector<160x3xbf16>, vector<3x24xbf16>, vector<160x24xf32> -> vector<160x24xf32>
    %85 = arith.addf %79, %84 : vector<160x24xf32>
    %c0_103 = arith.constant 0 : index
    %c7_104 = arith.constant 7 : index
    %c0_105 = arith.constant 0 : index
    %c0_106 = arith.constant 0 : index
    %86 = vector.load %arg1[%c0_103, %c7_104, %c0_105, %c0_106] : memref<1x8x192x3xbf16, #tpu.memory_space<vmem>>, vector<1x1x160x3xbf16>
    %87 = vector.shape_cast %86 : vector<1x1x160x3xbf16> to vector<160x3xbf16>
    %c5_107 = arith.constant 5 : index
    %c0_108 = arith.constant 0 : index
    %c0_109 = arith.constant 0 : index
    %88 = vector.load %arg2[%c5_107, %c0_108, %c0_109] : memref<9x3x24xbf16, #tpu.memory_space<vmem>>, vector<1x3x24xbf16>
    %89 = vector.shape_cast %88 : vector<1x3x24xbf16> to vector<3x24xbf16>
    %cst_110 = arith.constant dense<0.000000e+00> : vector<160x24xf32>
    %90 = tpu.matmul %87, %89, %cst_110 {dimension_numbers = #tpu.dot_dimension_numbers<[1], [0], [0], [1], [0, 0, 1, 1], [], []>} : vector<160x3xbf16>, vector<3x24xbf16>, vector<160x24xf32> -> vector<160x24xf32>
    %91 = arith.addf %85, %90 : vector<160x24xf32>
    %c0_111 = arith.constant 0 : index
    %c2_112 = arith.constant 2 : index
    %c16_113 = arith.constant 16 : index
    %c0_114 = arith.constant 0 : index
    %92 = vector.load %arg1[%c0_111, %c2_112, %c16_113, %c0_114] : memref<1x8x192x3xbf16, #tpu.memory_space<vmem>>, vector<1x1x160x3xbf16>
    %93 = vector.shape_cast %92 : vector<1x1x160x3xbf16> to vector<160x3xbf16>
    %c6_115 = arith.constant 6 : index
    %c0_116 = arith.constant 0 : index
    %c0_117 = arith.constant 0 : index
    %94 = vector.load %arg2[%c6_115, %c0_116, %c0_117] : memref<9x3x24xbf16, #tpu.memory_space<vmem>>, vector<1x3x24xbf16>
    %95 = vector.shape_cast %94 : vector<1x3x24xbf16> to vector<3x24xbf16>
    %cst_118 = arith.constant dense<0.000000e+00> : vector<160x24xf32>
    %96 = tpu.matmul %93, %95, %cst_118 {dimension_numbers = #tpu.dot_dimension_numbers<[1], [0], [0], [1], [0, 0, 1, 1], [], []>} : vector<160x3xbf16>, vector<3x24xbf16>, vector<160x24xf32> -> vector<160x24xf32>
    %97 = arith.addf %91, %96 : vector<160x24xf32>
    %c0_119 = arith.constant 0 : index
    %c1_120 = arith.constant 1 : index
    %c16_121 = arith.constant 16 : index
    %c0_122 = arith.constant 0 : index
    %98 = vector.load %arg1[%c0_119, %c1_120, %c16_121, %c0_122] : memref<1x8x192x3xbf16, #tpu.memory_space<vmem>>, vector<1x1x160x3xbf16>
    %99 = vector.shape_cast %98 : vector<1x1x160x3xbf16> to vector<160x3xbf16>
    %c7_123 = arith.constant 7 : index
    %c0_124 = arith.constant 0 : index
    %c0_125 = arith.constant 0 : index
    %100 = vector.load %arg2[%c7_123, %c0_124, %c0_125] : memref<9x3x24xbf16, #tpu.memory_space<vmem>>, vector<1x3x24xbf16>
    %101 = vector.shape_cast %100 : vector<1x3x24xbf16> to vector<3x24xbf16>
    %cst_126 = arith.constant dense<0.000000e+00> : vector<160x24xf32>
    %102 = tpu.matmul %99, %101, %cst_126 {dimension_numbers = #tpu.dot_dimension_numbers<[1], [0], [0], [1], [0, 0, 1, 1], [], []>} : vector<160x3xbf16>, vector<3x24xbf16>, vector<160x24xf32> -> vector<160x24xf32>
    %103 = arith.addf %97, %102 : vector<160x24xf32>
    %c0_127 = arith.constant 0 : index
    %c3_128 = arith.constant 3 : index
    %c16_129 = arith.constant 16 : index
    %c0_130 = arith.constant 0 : index
    %104 = vector.load %arg1[%c0_127, %c3_128, %c16_129, %c0_130] : memref<1x8x192x3xbf16, #tpu.memory_space<vmem>>, vector<1x1x160x3xbf16>
    %105 = vector.shape_cast %104 : vector<1x1x160x3xbf16> to vector<160x3xbf16>
    %c8_131 = arith.constant 8 : index
    %c0_132 = arith.constant 0 : index
    %c0_133 = arith.constant 0 : index
    %106 = vector.load %arg2[%c8_131, %c0_132, %c0_133] : memref<9x3x24xbf16, #tpu.memory_space<vmem>>, vector<1x3x24xbf16>
    %107 = vector.shape_cast %106 : vector<1x3x24xbf16> to vector<3x24xbf16>
    %cst_134 = arith.constant dense<0.000000e+00> : vector<160x24xf32>
    %108 = tpu.matmul %105, %107, %cst_134 {dimension_numbers = #tpu.dot_dimension_numbers<[1], [0], [0], [1], [0, 0, 1, 1], [], []>} : vector<160x3xbf16>, vector<3x24xbf16>, vector<160x24xf32> -> vector<160x24xf32>
    %109 = arith.addf %103, %108 : vector<160x24xf32>
    %110 = arith.maximumf %54, %109 : vector<160x24xf32>
    %cst_135 = arith.constant 0.000000e+00 : f32
    %111 = vector.broadcast %cst_135 : f32 to vector<160x24xf32>
    %c0_136 = arith.constant 0 : index
    %c4_137 = arith.constant 4 : index
    %c0_138 = arith.constant 0 : index
    %c0_139 = arith.constant 0 : index
    %112 = vector.load %arg1[%c0_136, %c4_137, %c0_138, %c0_139] : memref<1x8x192x3xbf16, #tpu.memory_space<vmem>>, vector<1x1x160x3xbf16>
    %113 = vector.shape_cast %112 : vector<1x1x160x3xbf16> to vector<160x3xbf16>
    %c0_140 = arith.constant 0 : index
    %c0_141 = arith.constant 0 : index
    %c0_142 = arith.constant 0 : index
    %114 = vector.load %arg2[%c0_140, %c0_141, %c0_142] : memref<9x3x24xbf16, #tpu.memory_space<vmem>>, vector<1x3x24xbf16>
    %115 = vector.shape_cast %114 : vector<1x3x24xbf16> to vector<3x24xbf16>
    %cst_143 = arith.constant dense<0.000000e+00> : vector<160x24xf32>
    %116 = tpu.matmul %113, %115, %cst_143 {dimension_numbers = #tpu.dot_dimension_numbers<[1], [0], [0], [1], [0, 0, 1, 1], [], []>} : vector<160x3xbf16>, vector<3x24xbf16>, vector<160x24xf32> -> vector<160x24xf32>
    %117 = arith.addf %111, %116 : vector<160x24xf32>
    %c0_144 = arith.constant 0 : index
    %c6_145 = arith.constant 6 : index
    %c0_146 = arith.constant 0 : index
    %c0_147 = arith.constant 0 : index
    %118 = vector.load %arg1[%c0_144, %c6_145, %c0_146, %c0_147] : memref<1x8x192x3xbf16, #tpu.memory_space<vmem>>, vector<1x1x160x3xbf16>
    %119 = vector.shape_cast %118 : vector<1x1x160x3xbf16> to vector<160x3xbf16>
    %c1_148 = arith.constant 1 : index
    %c0_149 = arith.constant 0 : index
    %c0_150 = arith.constant 0 : index
    %120 = vector.load %arg2[%c1_148, %c0_149, %c0_150] : memref<9x3x24xbf16, #tpu.memory_space<vmem>>, vector<1x3x24xbf16>
    %121 = vector.shape_cast %120 : vector<1x3x24xbf16> to vector<3x24xbf16>
    %cst_151 = arith.constant dense<0.000000e+00> : vector<160x24xf32>
    %122 = tpu.matmul %119, %121, %cst_151 {dimension_numbers = #tpu.dot_dimension_numbers<[1], [0], [0], [1], [0, 0, 1, 1], [], []>} : vector<160x3xbf16>, vector<3x24xbf16>, vector<160x24xf32> -> vector<160x24xf32>
    %123 = arith.addf %117, %122 : vector<160x24xf32>
    %c0_152 = arith.constant 0 : index
    %c5_153 = arith.constant 5 : index
    %c0_154 = arith.constant 0 : index
    %c0_155 = arith.constant 0 : index
    %124 = vector.load %arg1[%c0_152, %c5_153, %c0_154, %c0_155] : memref<1x8x192x3xbf16, #tpu.memory_space<vmem>>, vector<1x1x160x3xbf16>
    %125 = vector.shape_cast %124 : vector<1x1x160x3xbf16> to vector<160x3xbf16>
    %c2_156 = arith.constant 2 : index
    %c0_157 = arith.constant 0 : index
    %c0_158 = arith.constant 0 : index
    %126 = vector.load %arg2[%c2_156, %c0_157, %c0_158] : memref<9x3x24xbf16, #tpu.memory_space<vmem>>, vector<1x3x24xbf16>
    %127 = vector.shape_cast %126 : vector<1x3x24xbf16> to vector<3x24xbf16>
    %cst_159 = arith.constant dense<0.000000e+00> : vector<160x24xf32>
    %128 = tpu.matmul %125, %127, %cst_159 {dimension_numbers = #tpu.dot_dimension_numbers<[1], [0], [0], [1], [0, 0, 1, 1], [], []>} : vector<160x3xbf16>, vector<3x24xbf16>, vector<160x24xf32> -> vector<160x24xf32>
    %129 = arith.addf %123, %128 : vector<160x24xf32>
    %c0_160 = arith.constant 0 : index
    %c0_161 = arith.constant 0 : index
    %c16_162 = arith.constant 16 : index
    %c0_163 = arith.constant 0 : index
    %130 = vector.load %arg1[%c0_160, %c0_161, %c16_162, %c0_163] : memref<1x8x192x3xbf16, #tpu.memory_space<vmem>>, vector<1x1x160x3xbf16>
    %131 = vector.shape_cast %130 : vector<1x1x160x3xbf16> to vector<160x3xbf16>
    %c3_164 = arith.constant 3 : index
    %c0_165 = arith.constant 0 : index
    %c0_166 = arith.constant 0 : index
    %132 = vector.load %arg2[%c3_164, %c0_165, %c0_166] : memref<9x3x24xbf16, #tpu.memory_space<vmem>>, vector<1x3x24xbf16>
    %133 = vector.shape_cast %132 : vector<1x3x24xbf16> to vector<3x24xbf16>
    %cst_167 = arith.constant dense<0.000000e+00> : vector<160x24xf32>
    %134 = tpu.matmul %131, %133, %cst_167 {dimension_numbers = #tpu.dot_dimension_numbers<[1], [0], [0], [1], [0, 0, 1, 1], [], []>} : vector<160x3xbf16>, vector<3x24xbf16>, vector<160x24xf32> -> vector<160x24xf32>
    %135 = arith.addf %129, %134 : vector<160x24xf32>
    %c0_168 = arith.constant 0 : index
    %c2_169 = arith.constant 2 : index
    %c16_170 = arith.constant 16 : index
    %c0_171 = arith.constant 0 : index
    %136 = vector.load %arg1[%c0_168, %c2_169, %c16_170, %c0_171] : memref<1x8x192x3xbf16, #tpu.memory_space<vmem>>, vector<1x1x160x3xbf16>
    %137 = vector.shape_cast %136 : vector<1x1x160x3xbf16> to vector<160x3xbf16>
    %c4_172 = arith.constant 4 : index
    %c0_173 = arith.constant 0 : index
    %c0_174 = arith.constant 0 : index
    %138 = vector.load %arg2[%c4_172, %c0_173, %c0_174] : memref<9x3x24xbf16, #tpu.memory_space<vmem>>, vector<1x3x24xbf16>
    %139 = vector.shape_cast %138 : vector<1x3x24xbf16> to vector<3x24xbf16>
    %cst_175 = arith.constant dense<0.000000e+00> : vector<160x24xf32>
    %140 = tpu.matmul %137, %139, %cst_175 {dimension_numbers = #tpu.dot_dimension_numbers<[1], [0], [0], [1], [0, 0, 1, 1], [], []>} : vector<160x3xbf16>, vector<3x24xbf16>, vector<160x24xf32> -> vector<160x24xf32>
    %141 = arith.addf %135, %140 : vector<160x24xf32>
    %c0_176 = arith.constant 0 : index
    %c1_177 = arith.constant 1 : index
    %c16_178 = arith.constant 16 : index
    %c0_179 = arith.constant 0 : index
    %142 = vector.load %arg1[%c0_176, %c1_177, %c16_178, %c0_179] : memref<1x8x192x3xbf16, #tpu.memory_space<vmem>>, vector<1x1x160x3xbf16>
    %143 = vector.shape_cast %142 : vector<1x1x160x3xbf16> to vector<160x3xbf16>
    %c5_180 = arith.constant 5 : index
    %c0_181 = arith.constant 0 : index
    %c0_182 = arith.constant 0 : index
    %144 = vector.load %arg2[%c5_180, %c0_181, %c0_182] : memref<9x3x24xbf16, #tpu.memory_space<vmem>>, vector<1x3x24xbf16>
    %145 = vector.shape_cast %144 : vector<1x3x24xbf16> to vector<3x24xbf16>
    %cst_183 = arith.constant dense<0.000000e+00> : vector<160x24xf32>
    %146 = tpu.matmul %143, %145, %cst_183 {dimension_numbers = #tpu.dot_dimension_numbers<[1], [0], [0], [1], [0, 0, 1, 1], [], []>} : vector<160x3xbf16>, vector<3x24xbf16>, vector<160x24xf32> -> vector<160x24xf32>
    %147 = arith.addf %141, %146 : vector<160x24xf32>
    %c0_184 = arith.constant 0 : index
    %c4_185 = arith.constant 4 : index
    %c16_186 = arith.constant 16 : index
    %c0_187 = arith.constant 0 : index
    %148 = vector.load %arg1[%c0_184, %c4_185, %c16_186, %c0_187] : memref<1x8x192x3xbf16, #tpu.memory_space<vmem>>, vector<1x1x160x3xbf16>
    %149 = vector.shape_cast %148 : vector<1x1x160x3xbf16> to vector<160x3xbf16>
    %c6_188 = arith.constant 6 : index
    %c0_189 = arith.constant 0 : index
    %c0_190 = arith.constant 0 : index
    %150 = vector.load %arg2[%c6_188, %c0_189, %c0_190] : memref<9x3x24xbf16, #tpu.memory_space<vmem>>, vector<1x3x24xbf16>
    %151 = vector.shape_cast %150 : vector<1x3x24xbf16> to vector<3x24xbf16>
    %cst_191 = arith.constant dense<0.000000e+00> : vector<160x24xf32>
    %152 = tpu.matmul %149, %151, %cst_191 {dimension_numbers = #tpu.dot_dimension_numbers<[1], [0], [0], [1], [0, 0, 1, 1], [], []>} : vector<160x3xbf16>, vector<3x24xbf16>, vector<160x24xf32> -> vector<160x24xf32>
    %153 = arith.addf %147, %152 : vector<160x24xf32>
    %c0_192 = arith.constant 0 : index
    %c6_193 = arith.constant 6 : index
    %c16_194 = arith.constant 16 : index
    %c0_195 = arith.constant 0 : index
    %154 = vector.load %arg1[%c0_192, %c6_193, %c16_194, %c0_195] : memref<1x8x192x3xbf16, #tpu.memory_space<vmem>>, vector<1x1x160x3xbf16>
    %155 = vector.shape_cast %154 : vector<1x1x160x3xbf16> to vector<160x3xbf16>
    %c7_196 = arith.constant 7 : index
    %c0_197 = arith.constant 0 : index
    %c0_198 = arith.constant 0 : index
    %156 = vector.load %arg2[%c7_196, %c0_197, %c0_198] : memref<9x3x24xbf16, #tpu.memory_space<vmem>>, vector<1x3x24xbf16>
    %157 = vector.shape_cast %156 : vector<1x3x24xbf16> to vector<3x24xbf16>
    %cst_199 = arith.constant dense<0.000000e+00> : vector<160x24xf32>
    %158 = tpu.matmul %155, %157, %cst_199 {dimension_numbers = #tpu.dot_dimension_numbers<[1], [0], [0], [1], [0, 0, 1, 1], [], []>} : vector<160x3xbf16>, vector<3x24xbf16>, vector<160x24xf32> -> vector<160x24xf32>
    %159 = arith.addf %153, %158 : vector<160x24xf32>
    %c0_200 = arith.constant 0 : index
    %c5_201 = arith.constant 5 : index
    %c16_202 = arith.constant 16 : index
    %c0_203 = arith.constant 0 : index
    %160 = vector.load %arg1[%c0_200, %c5_201, %c16_202, %c0_203] : memref<1x8x192x3xbf16, #tpu.memory_space<vmem>>, vector<1x1x160x3xbf16>
    %161 = vector.shape_cast %160 : vector<1x1x160x3xbf16> to vector<160x3xbf16>
    %c8_204 = arith.constant 8 : index
    %c0_205 = arith.constant 0 : index
    %c0_206 = arith.constant 0 : index
    %162 = vector.load %arg2[%c8_204, %c0_205, %c0_206] : memref<9x3x24xbf16, #tpu.memory_space<vmem>>, vector<1x3x24xbf16>
    %163 = vector.shape_cast %162 : vector<1x3x24xbf16> to vector<3x24xbf16>
    %cst_207 = arith.constant dense<0.000000e+00> : vector<160x24xf32>
    %164 = tpu.matmul %161, %163, %cst_207 {dimension_numbers = #tpu.dot_dimension_numbers<[1], [0], [0], [1], [0, 0, 1, 1], [], []>} : vector<160x3xbf16>, vector<3x24xbf16>, vector<160x24xf32> -> vector<160x24xf32>
    %165 = arith.addf %159, %164 : vector<160x24xf32>
    %166 = arith.maximumf %110, %165 : vector<160x24xf32>
    %cst_208 = arith.constant 0.000000e+00 : f32
    %167 = vector.broadcast %cst_208 : f32 to vector<160x24xf32>
    %c0_209 = arith.constant 0 : index
    %c6_210 = arith.constant 6 : index
    %c0_211 = arith.constant 0 : index
    %c0_212 = arith.constant 0 : index
    %168 = vector.load %arg1[%c0_209, %c6_210, %c0_211, %c0_212] : memref<1x8x192x3xbf16, #tpu.memory_space<vmem>>, vector<1x1x160x3xbf16>
    %169 = vector.shape_cast %168 : vector<1x1x160x3xbf16> to vector<160x3xbf16>
    %c0_213 = arith.constant 0 : index
    %c0_214 = arith.constant 0 : index
    %c0_215 = arith.constant 0 : index
    %170 = vector.load %arg2[%c0_213, %c0_214, %c0_215] : memref<9x3x24xbf16, #tpu.memory_space<vmem>>, vector<1x3x24xbf16>
    %171 = vector.shape_cast %170 : vector<1x3x24xbf16> to vector<3x24xbf16>
    %cst_216 = arith.constant dense<0.000000e+00> : vector<160x24xf32>
    %172 = tpu.matmul %169, %171, %cst_216 {dimension_numbers = #tpu.dot_dimension_numbers<[1], [0], [0], [1], [0, 0, 1, 1], [], []>} : vector<160x3xbf16>, vector<3x24xbf16>, vector<160x24xf32> -> vector<160x24xf32>
    %173 = arith.addf %167, %172 : vector<160x24xf32>
    %c0_217 = arith.constant 0 : index
    %c5_218 = arith.constant 5 : index
    %c0_219 = arith.constant 0 : index
    %c0_220 = arith.constant 0 : index
    %174 = vector.load %arg1[%c0_217, %c5_218, %c0_219, %c0_220] : memref<1x8x192x3xbf16, #tpu.memory_space<vmem>>, vector<1x1x160x3xbf16>
    %175 = vector.shape_cast %174 : vector<1x1x160x3xbf16> to vector<160x3xbf16>
    %c1_221 = arith.constant 1 : index
    %c0_222 = arith.constant 0 : index
    %c0_223 = arith.constant 0 : index
    %176 = vector.load %arg2[%c1_221, %c0_222, %c0_223] : memref<9x3x24xbf16, #tpu.memory_space<vmem>>, vector<1x3x24xbf16>
    %177 = vector.shape_cast %176 : vector<1x3x24xbf16> to vector<3x24xbf16>
    %cst_224 = arith.constant dense<0.000000e+00> : vector<160x24xf32>
    %178 = tpu.matmul %175, %177, %cst_224 {dimension_numbers = #tpu.dot_dimension_numbers<[1], [0], [0], [1], [0, 0, 1, 1], [], []>} : vector<160x3xbf16>, vector<3x24xbf16>, vector<160x24xf32> -> vector<160x24xf32>
    %179 = arith.addf %173, %178 : vector<160x24xf32>
    %c0_225 = arith.constant 0 : index
    %c7_226 = arith.constant 7 : index
    %c0_227 = arith.constant 0 : index
    %c0_228 = arith.constant 0 : index
    %180 = vector.load %arg1[%c0_225, %c7_226, %c0_227, %c0_228] : memref<1x8x192x3xbf16, #tpu.memory_space<vmem>>, vector<1x1x160x3xbf16>
    %181 = vector.shape_cast %180 : vector<1x1x160x3xbf16> to vector<160x3xbf16>
    %c2_229 = arith.constant 2 : index
    %c0_230 = arith.constant 0 : index
    %c0_231 = arith.constant 0 : index
    %182 = vector.load %arg2[%c2_229, %c0_230, %c0_231] : memref<9x3x24xbf16, #tpu.memory_space<vmem>>, vector<1x3x24xbf16>
    %183 = vector.shape_cast %182 : vector<1x3x24xbf16> to vector<3x24xbf16>
    %cst_232 = arith.constant dense<0.000000e+00> : vector<160x24xf32>
    %184 = tpu.matmul %181, %183, %cst_232 {dimension_numbers = #tpu.dot_dimension_numbers<[1], [0], [0], [1], [0, 0, 1, 1], [], []>} : vector<160x3xbf16>, vector<3x24xbf16>, vector<160x24xf32> -> vector<160x24xf32>
    %185 = arith.addf %179, %184 : vector<160x24xf32>
    %c0_233 = arith.constant 0 : index
    %c2_234 = arith.constant 2 : index
    %c16_235 = arith.constant 16 : index
    %c0_236 = arith.constant 0 : index
    %186 = vector.load %arg1[%c0_233, %c2_234, %c16_235, %c0_236] : memref<1x8x192x3xbf16, #tpu.memory_space<vmem>>, vector<1x1x160x3xbf16>
    %187 = vector.shape_cast %186 : vector<1x1x160x3xbf16> to vector<160x3xbf16>
    %c3_237 = arith.constant 3 : index
    %c0_238 = arith.constant 0 : index
    %c0_239 = arith.constant 0 : index
    %188 = vector.load %arg2[%c3_237, %c0_238, %c0_239] : memref<9x3x24xbf16, #tpu.memory_space<vmem>>, vector<1x3x24xbf16>
    %189 = vector.shape_cast %188 : vector<1x3x24xbf16> to vector<3x24xbf16>
    %cst_240 = arith.constant dense<0.000000e+00> : vector<160x24xf32>
    %190 = tpu.matmul %187, %189, %cst_240 {dimension_numbers = #tpu.dot_dimension_numbers<[1], [0], [0], [1], [0, 0, 1, 1], [], []>} : vector<160x3xbf16>, vector<3x24xbf16>, vector<160x24xf32> -> vector<160x24xf32>
    %191 = arith.addf %185, %190 : vector<160x24xf32>
    %c0_241 = arith.constant 0 : index
    %c1_242 = arith.constant 1 : index
    %c16_243 = arith.constant 16 : index
    %c0_244 = arith.constant 0 : index
    %192 = vector.load %arg1[%c0_241, %c1_242, %c16_243, %c0_244] : memref<1x8x192x3xbf16, #tpu.memory_space<vmem>>, vector<1x1x160x3xbf16>
    %193 = vector.shape_cast %192 : vector<1x1x160x3xbf16> to vector<160x3xbf16>
    %c4_245 = arith.constant 4 : index
    %c0_246 = arith.constant 0 : index
    %c0_247 = arith.constant 0 : index
    %194 = vector.load %arg2[%c4_245, %c0_246, %c0_247] : memref<9x3x24xbf16, #tpu.memory_space<vmem>>, vector<1x3x24xbf16>
    %195 = vector.shape_cast %194 : vector<1x3x24xbf16> to vector<3x24xbf16>
    %cst_248 = arith.constant dense<0.000000e+00> : vector<160x24xf32>
    %196 = tpu.matmul %193, %195, %cst_248 {dimension_numbers = #tpu.dot_dimension_numbers<[1], [0], [0], [1], [0, 0, 1, 1], [], []>} : vector<160x3xbf16>, vector<3x24xbf16>, vector<160x24xf32> -> vector<160x24xf32>
    %197 = arith.addf %191, %196 : vector<160x24xf32>
    %c0_249 = arith.constant 0 : index
    %c3_250 = arith.constant 3 : index
    %c16_251 = arith.constant 16 : index
    %c0_252 = arith.constant 0 : index
    %198 = vector.load %arg1[%c0_249, %c3_250, %c16_251, %c0_252] : memref<1x8x192x3xbf16, #tpu.memory_space<vmem>>, vector<1x1x160x3xbf16>
    %199 = vector.shape_cast %198 : vector<1x1x160x3xbf16> to vector<160x3xbf16>
    %c5_253 = arith.constant 5 : index
    %c0_254 = arith.constant 0 : index
    %c0_255 = arith.constant 0 : index
    %200 = vector.load %arg2[%c5_253, %c0_254, %c0_255] : memref<9x3x24xbf16, #tpu.memory_space<vmem>>, vector<1x3x24xbf16>
    %201 = vector.shape_cast %200 : vector<1x3x24xbf16> to vector<3x24xbf16>
    %cst_256 = arith.constant dense<0.000000e+00> : vector<160x24xf32>
    %202 = tpu.matmul %199, %201, %cst_256 {dimension_numbers = #tpu.dot_dimension_numbers<[1], [0], [0], [1], [0, 0, 1, 1], [], []>} : vector<160x3xbf16>, vector<3x24xbf16>, vector<160x24xf32> -> vector<160x24xf32>
    %203 = arith.addf %197, %202 : vector<160x24xf32>
    %c0_257 = arith.constant 0 : index
    %c6_258 = arith.constant 6 : index
    %c16_259 = arith.constant 16 : index
    %c0_260 = arith.constant 0 : index
    %204 = vector.load %arg1[%c0_257, %c6_258, %c16_259, %c0_260] : memref<1x8x192x3xbf16, #tpu.memory_space<vmem>>, vector<1x1x160x3xbf16>
    %205 = vector.shape_cast %204 : vector<1x1x160x3xbf16> to vector<160x3xbf16>
    %c6_261 = arith.constant 6 : index
    %c0_262 = arith.constant 0 : index
    %c0_263 = arith.constant 0 : index
    %206 = vector.load %arg2[%c6_261, %c0_262, %c0_263] : memref<9x3x24xbf16, #tpu.memory_space<vmem>>, vector<1x3x24xbf16>
    %207 = vector.shape_cast %206 : vector<1x3x24xbf16> to vector<3x24xbf16>
    %cst_264 = arith.constant dense<0.000000e+00> : vector<160x24xf32>
    %208 = tpu.matmul %205, %207, %cst_264 {dimension_numbers = #tpu.dot_dimension_numbers<[1], [0], [0], [1], [0, 0, 1, 1], [], []>} : vector<160x3xbf16>, vector<3x24xbf16>, vector<160x24xf32> -> vector<160x24xf32>
    %209 = arith.addf %203, %208 : vector<160x24xf32>
    %c0_265 = arith.constant 0 : index
    %c5_266 = arith.constant 5 : index
    %c16_267 = arith.constant 16 : index
    %c0_268 = arith.constant 0 : index
    %210 = vector.load %arg1[%c0_265, %c5_266, %c16_267, %c0_268] : memref<1x8x192x3xbf16, #tpu.memory_space<vmem>>, vector<1x1x160x3xbf16>
    %211 = vector.shape_cast %210 : vector<1x1x160x3xbf16> to vector<160x3xbf16>
    %c7_269 = arith.constant 7 : index
    %c0_270 = arith.constant 0 : index
    %c0_271 = arith.constant 0 : index
    %212 = vector.load %arg2[%c7_269, %c0_270, %c0_271] : memref<9x3x24xbf16, #tpu.memory_space<vmem>>, vector<1x3x24xbf16>
    %213 = vector.shape_cast %212 : vector<1x3x24xbf16> to vector<3x24xbf16>
    %cst_272 = arith.constant dense<0.000000e+00> : vector<160x24xf32>
    %214 = tpu.matmul %211, %213, %cst_272 {dimension_numbers = #tpu.dot_dimension_numbers<[1], [0], [0], [1], [0, 0, 1, 1], [], []>} : vector<160x3xbf16>, vector<3x24xbf16>, vector<160x24xf32> -> vector<160x24xf32>
    %215 = arith.addf %209, %214 : vector<160x24xf32>
    %c0_273 = arith.constant 0 : index
    %c7_274 = arith.constant 7 : index
    %c16_275 = arith.constant 16 : index
    %c0_276 = arith.constant 0 : index
    %216 = vector.load %arg1[%c0_273, %c7_274, %c16_275, %c0_276] : memref<1x8x192x3xbf16, #tpu.memory_space<vmem>>, vector<1x1x160x3xbf16>
    %217 = vector.shape_cast %216 : vector<1x1x160x3xbf16> to vector<160x3xbf16>
    %c8_277 = arith.constant 8 : index
    %c0_278 = arith.constant 0 : index
    %c0_279 = arith.constant 0 : index
    %218 = vector.load %arg2[%c8_277, %c0_278, %c0_279] : memref<9x3x24xbf16, #tpu.memory_space<vmem>>, vector<1x3x24xbf16>
    %219 = vector.shape_cast %218 : vector<1x3x24xbf16> to vector<3x24xbf16>
    %cst_280 = arith.constant dense<0.000000e+00> : vector<160x24xf32>
    %220 = tpu.matmul %217, %219, %cst_280 {dimension_numbers = #tpu.dot_dimension_numbers<[1], [0], [0], [1], [0, 0, 1, 1], [], []>} : vector<160x3xbf16>, vector<3x24xbf16>, vector<160x24xf32> -> vector<160x24xf32>
    %221 = arith.addf %215, %220 : vector<160x24xf32>
    %222 = arith.maximumf %166, %221 : vector<160x24xf32>
    %c0_281 = arith.constant 0 : index
    %c0_282 = arith.constant 0 : index
    %223 = vector.load %arg3[%c0_281, %c0_282] : memref<1x24xf32, #tpu.memory_space<vmem>>, vector<1x24xf32>
    %224 = vector.broadcast %223 : vector<1x24xf32> to vector<160x24xf32>
    %225 = arith.addf %222, %224 : vector<160x24xf32>
    %cst_283 = arith.constant 0.000000e+00 : f32
    %226 = vector.broadcast %cst_283 : f32 to vector<160x24xf32>
    %227 = arith.maximumf %225, %226 : vector<160x24xf32>
    %228 = vector.shape_cast %227 : vector<160x24xf32> to vector<10x16x24xf32>
    %229 = vector.extract_strided_slice %228 {offsets = [0, 0, 0], sizes = [10, 12, 24], strides = [1, 1, 1]} : vector<10x16x24xf32> to vector<10x12x24xf32>
    %230 = arith.truncf %229 : vector<10x12x24xf32> to vector<10x12x24xbf16>
    %c0_284 = arith.constant 0 : index
    %c0_285 = arith.constant 0 : index
    %c0_286 = arith.constant 0 : index
    %c0_287 = arith.constant 0 : index
    %231 = vector.load %arg4[%c0_284, %c0_285, %c0_286, %c0_287] : memref<1x10x12x24xbf16, #tpu.memory_space<vmem>>, vector<1x10x12x24xbf16>
    %232 = vector.shape_cast %231 : vector<1x10x12x24xbf16> to vector<10x12x24xbf16>
    %233 = vector.shape_cast %230 : vector<10x12x24xbf16> to vector<1x10x12x24xbf16>
    tpu.vector_store %arg4[%c0_284, %c0_285, %c0_286, %c0_287], %233 {strides = array<i32>} : memref<1x10x12x24xbf16, #tpu.memory_space<vmem>>, vector<1x10x12x24xbf16>,
    return
  }
  func.func @transform_0(%arg0: i32) -> (i32, i32, i32, i32) {
    %c0_i32 = arith.constant 0 : i32
    %c0_i32_0 = arith.constant 0 : i32
    %c0_i32_1 = arith.constant 0 : i32
    %c0_i32_2 = arith.constant 0 : i32
    return %arg0, %c0_i32, %c0_i32_0, %c0_i32_1 : i32, i32, i32, i32
  }
  func.func @transform_1(%arg0: i32) -> (i32, i32, i32) {
    %c0_i32 = arith.constant 0 : i32
    %c0_i32_0 = arith.constant 0 : i32
    %c0_i32_1 = arith.constant 0 : i32
    %c0_i32_2 = arith.constant 0 : i32
    return %c0_i32, %c0_i32_0, %c0_i32_1 : i32, i32, i32
  }
  func.func @transform_2(%arg0: i32) -> (i32, i32) {
    %c0_i32 = arith.constant 0 : i32
    %c0_i32_0 = arith.constant 0 : i32
    %c0_i32_1 = arith.constant 0 : i32
    return %c0_i32, %c0_i32_0 : i32, i32
  }
  func.func @transform_3(%arg0: i32) -> (i32, i32, i32, i32) {
    %c0_i32 = arith.constant 0 : i32
    %c0_i32_0 = arith.constant 0 : i32
    %c0_i32_1 = arith.constant 0 : i32
    %c0_i32_2 = arith.constant 0 : i32
    return %arg0, %c0_i32, %c0_i32_0, %c0_i32_1 : i32, i32, i32, i32
  }
}

module attributes {stable_mosaic.version = 11 : i64} {
  func.func @_conv_bn_relu_pool_kernel(%arg0: i32, %arg1: memref<1x8x56x24xbf16, #tpu.memory_space<vmem>>, %arg2: memref<9x24x48xbf16, #tpu.memory_space<vmem>>, %arg3: memref<1x48xf32, #tpu.memory_space<vmem>>, %arg4: memref<1x5x6x48xbf16, #tpu.memory_space<vmem>>) attributes {dimension_semantics = [#tpu.dimension_semantics<parallel>], iteration_bounds = array<i64: 2>, scalar_prefetch = 0 : i64, scratch_operands = 0 : i64, tpu.core_type = #tpu.core_type<tc>, window_params = [{transform_indices = @transform_0, window_bounds = array<i64: 1, 8, 56, 24>}, {pipeline_mode = #tpu.pipeline_mode<synchronous>, transform_indices = @transform_1, window_bounds = array<i64: 9, 24, 48>}, {pipeline_mode = #tpu.pipeline_mode<synchronous>, transform_indices = @transform_2, window_bounds = array<i64: 1, 48>}, {transform_indices = @transform_3, window_bounds = array<i64: 1, 5, 6, 48>}]} {
    %cst = arith.constant 0.000000e+00 : f32
    %0 = vector.broadcast %cst : f32 to vector<40x48xf32>
    %c0 = arith.constant 0 : index
    %c0_0 = arith.constant 0 : index
    %c0_1 = arith.constant 0 : index
    %c0_2 = arith.constant 0 : index
    %1 = vector.load %arg1[%c0, %c0_0, %c0_1, %c0_2] : memref<1x8x56x24xbf16, #tpu.memory_space<vmem>>, vector<1x1x40x24xbf16>
    %2 = vector.shape_cast %1 : vector<1x1x40x24xbf16> to vector<40x24xbf16>
    %c0_3 = arith.constant 0 : index
    %c0_4 = arith.constant 0 : index
    %c0_5 = arith.constant 0 : index
    %3 = vector.load %arg2[%c0_3, %c0_4, %c0_5] : memref<9x24x48xbf16, #tpu.memory_space<vmem>>, vector<1x24x48xbf16>
    %4 = vector.shape_cast %3 : vector<1x24x48xbf16> to vector<24x48xbf16>
    %cst_6 = arith.constant dense<0.000000e+00> : vector<40x48xf32>
    %5 = tpu.matmul %2, %4, %cst_6 {dimension_numbers = #tpu.dot_dimension_numbers<[1], [0], [0], [1], [0, 0, 1, 1], [], []>} : vector<40x24xbf16>, vector<24x48xbf16>, vector<40x48xf32> -> vector<40x48xf32>
    %6 = arith.addf %0, %5 : vector<40x48xf32>
    %c0_7 = arith.constant 0 : index
    %c2 = arith.constant 2 : index
    %c0_8 = arith.constant 0 : index
    %c0_9 = arith.constant 0 : index
    %7 = vector.load %arg1[%c0_7, %c2, %c0_8, %c0_9] : memref<1x8x56x24xbf16, #tpu.memory_space<vmem>>, vector<1x1x40x24xbf16>
    %8 = vector.shape_cast %7 : vector<1x1x40x24xbf16> to vector<40x24xbf16>
    %c1 = arith.constant 1 : index
    %c0_10 = arith.constant 0 : index
    %c0_11 = arith.constant 0 : index
    %9 = vector.load %arg2[%c1, %c0_10, %c0_11] : memref<9x24x48xbf16, #tpu.memory_space<vmem>>, vector<1x24x48xbf16>
    %10 = vector.shape_cast %9 : vector<1x24x48xbf16> to vector<24x48xbf16>
    %cst_12 = arith.constant dense<0.000000e+00> : vector<40x48xf32>
    %11 = tpu.matmul %8, %10, %cst_12 {dimension_numbers = #tpu.dot_dimension_numbers<[1], [0], [0], [1], [0, 0, 1, 1], [], []>} : vector<40x24xbf16>, vector<24x48xbf16>, vector<40x48xf32> -> vector<40x48xf32>
    %12 = arith.addf %6, %11 : vector<40x48xf32>
    %c0_13 = arith.constant 0 : index
    %c1_14 = arith.constant 1 : index
    %c0_15 = arith.constant 0 : index
    %c0_16 = arith.constant 0 : index
    %13 = vector.load %arg1[%c0_13, %c1_14, %c0_15, %c0_16] : memref<1x8x56x24xbf16, #tpu.memory_space<vmem>>, vector<1x1x40x24xbf16>
    %14 = vector.shape_cast %13 : vector<1x1x40x24xbf16> to vector<40x24xbf16>
    %c2_17 = arith.constant 2 : index
    %c0_18 = arith.constant 0 : index
    %c0_19 = arith.constant 0 : index
    %15 = vector.load %arg2[%c2_17, %c0_18, %c0_19] : memref<9x24x48xbf16, #tpu.memory_space<vmem>>, vector<1x24x48xbf16>
    %16 = vector.shape_cast %15 : vector<1x24x48xbf16> to vector<24x48xbf16>
    %cst_20 = arith.constant dense<0.000000e+00> : vector<40x48xf32>
    %17 = tpu.matmul %14, %16, %cst_20 {dimension_numbers = #tpu.dot_dimension_numbers<[1], [0], [0], [1], [0, 0, 1, 1], [], []>} : vector<40x24xbf16>, vector<24x48xbf16>, vector<40x48xf32> -> vector<40x48xf32>
    %18 = arith.addf %12, %17 : vector<40x48xf32>
    %c0_21 = arith.constant 0 : index
    %c4 = arith.constant 4 : index
    %c0_22 = arith.constant 0 : index
    %c0_23 = arith.constant 0 : index
    %19 = vector.load %arg1[%c0_21, %c4, %c0_22, %c0_23] : memref<1x8x56x24xbf16, #tpu.memory_space<vmem>>, vector<1x1x40x24xbf16>
    %20 = vector.shape_cast %19 : vector<1x1x40x24xbf16> to vector<40x24xbf16>
    %c3 = arith.constant 3 : index
    %c0_24 = arith.constant 0 : index
    %c0_25 = arith.constant 0 : index
    %21 = vector.load %arg2[%c3, %c0_24, %c0_25] : memref<9x24x48xbf16, #tpu.memory_space<vmem>>, vector<1x24x48xbf16>
    %22 = vector.shape_cast %21 : vector<1x24x48xbf16> to vector<24x48xbf16>
    %cst_26 = arith.constant dense<0.000000e+00> : vector<40x48xf32>
    %23 = tpu.matmul %20, %22, %cst_26 {dimension_numbers = #tpu.dot_dimension_numbers<[1], [0], [0], [1], [0, 0, 1, 1], [], []>} : vector<40x24xbf16>, vector<24x48xbf16>, vector<40x48xf32> -> vector<40x48xf32>
    %24 = arith.addf %18, %23 : vector<40x48xf32>
    %c0_27 = arith.constant 0 : index
    %c6 = arith.constant 6 : index
    %c0_28 = arith.constant 0 : index
    %c0_29 = arith.constant 0 : index
    %25 = vector.load %arg1[%c0_27, %c6, %c0_28, %c0_29] : memref<1x8x56x24xbf16, #tpu.memory_space<vmem>>, vector<1x1x40x24xbf16>
    %26 = vector.shape_cast %25 : vector<1x1x40x24xbf16> to vector<40x24xbf16>
    %c4_30 = arith.constant 4 : index
    %c0_31 = arith.constant 0 : index
    %c0_32 = arith.constant 0 : index
    %27 = vector.load %arg2[%c4_30, %c0_31, %c0_32] : memref<9x24x48xbf16, #tpu.memory_space<vmem>>, vector<1x24x48xbf16>
    %28 = vector.shape_cast %27 : vector<1x24x48xbf16> to vector<24x48xbf16>
    %cst_33 = arith.constant dense<0.000000e+00> : vector<40x48xf32>
    %29 = tpu.matmul %26, %28, %cst_33 {dimension_numbers = #tpu.dot_dimension_numbers<[1], [0], [0], [1], [0, 0, 1, 1], [], []>} : vector<40x24xbf16>, vector<24x48xbf16>, vector<40x48xf32> -> vector<40x48xf32>
    %30 = arith.addf %24, %29 : vector<40x48xf32>
    %c0_34 = arith.constant 0 : index
    %c5 = arith.constant 5 : index
    %c0_35 = arith.constant 0 : index
    %c0_36 = arith.constant 0 : index
    %31 = vector.load %arg1[%c0_34, %c5, %c0_35, %c0_36] : memref<1x8x56x24xbf16, #tpu.memory_space<vmem>>, vector<1x1x40x24xbf16>
    %32 = vector.shape_cast %31 : vector<1x1x40x24xbf16> to vector<40x24xbf16>
    %c5_37 = arith.constant 5 : index
    %c0_38 = arith.constant 0 : index
    %c0_39 = arith.constant 0 : index
    %33 = vector.load %arg2[%c5_37, %c0_38, %c0_39] : memref<9x24x48xbf16, #tpu.memory_space<vmem>>, vector<1x24x48xbf16>
    %34 = vector.shape_cast %33 : vector<1x24x48xbf16> to vector<24x48xbf16>
    %cst_40 = arith.constant dense<0.000000e+00> : vector<40x48xf32>
    %35 = tpu.matmul %32, %34, %cst_40 {dimension_numbers = #tpu.dot_dimension_numbers<[1], [0], [0], [1], [0, 0, 1, 1], [], []>} : vector<40x24xbf16>, vector<24x48xbf16>, vector<40x48xf32> -> vector<40x48xf32>
    %36 = arith.addf %30, %35 : vector<40x48xf32>
    %c0_41 = arith.constant 0 : index
    %c0_42 = arith.constant 0 : index
    %c8 = arith.constant 8 : index
    %c0_43 = arith.constant 0 : index
    %37 = vector.load %arg1[%c0_41, %c0_42, %c8, %c0_43] : memref<1x8x56x24xbf16, #tpu.memory_space<vmem>>, vector<1x1x40x24xbf16>
    %38 = vector.shape_cast %37 : vector<1x1x40x24xbf16> to vector<40x24xbf16>
    %c6_44 = arith.constant 6 : index
    %c0_45 = arith.constant 0 : index
    %c0_46 = arith.constant 0 : index
    %39 = vector.load %arg2[%c6_44, %c0_45, %c0_46] : memref<9x24x48xbf16, #tpu.memory_space<vmem>>, vector<1x24x48xbf16>
    %40 = vector.shape_cast %39 : vector<1x24x48xbf16> to vector<24x48xbf16>
    %cst_47 = arith.constant dense<0.000000e+00> : vector<40x48xf32>
    %41 = tpu.matmul %38, %40, %cst_47 {dimension_numbers = #tpu.dot_dimension_numbers<[1], [0], [0], [1], [0, 0, 1, 1], [], []>} : vector<40x24xbf16>, vector<24x48xbf16>, vector<40x48xf32> -> vector<40x48xf32>
    %42 = arith.addf %36, %41 : vector<40x48xf32>
    %c0_48 = arith.constant 0 : index
    %c2_49 = arith.constant 2 : index
    %c8_50 = arith.constant 8 : index
    %c0_51 = arith.constant 0 : index
    %43 = vector.load %arg1[%c0_48, %c2_49, %c8_50, %c0_51] : memref<1x8x56x24xbf16, #tpu.memory_space<vmem>>, vector<1x1x40x24xbf16>
    %44 = vector.shape_cast %43 : vector<1x1x40x24xbf16> to vector<40x24xbf16>
    %c7 = arith.constant 7 : index
    %c0_52 = arith.constant 0 : index
    %c0_53 = arith.constant 0 : index
    %45 = vector.load %arg2[%c7, %c0_52, %c0_53] : memref<9x24x48xbf16, #tpu.memory_space<vmem>>, vector<1x24x48xbf16>
    %46 = vector.shape_cast %45 : vector<1x24x48xbf16> to vector<24x48xbf16>
    %cst_54 = arith.constant dense<0.000000e+00> : vector<40x48xf32>
    %47 = tpu.matmul %44, %46, %cst_54 {dimension_numbers = #tpu.dot_dimension_numbers<[1], [0], [0], [1], [0, 0, 1, 1], [], []>} : vector<40x24xbf16>, vector<24x48xbf16>, vector<40x48xf32> -> vector<40x48xf32>
    %48 = arith.addf %42, %47 : vector<40x48xf32>
    %c0_55 = arith.constant 0 : index
    %c1_56 = arith.constant 1 : index
    %c8_57 = arith.constant 8 : index
    %c0_58 = arith.constant 0 : index
    %49 = vector.load %arg1[%c0_55, %c1_56, %c8_57, %c0_58] : memref<1x8x56x24xbf16, #tpu.memory_space<vmem>>, vector<1x1x40x24xbf16>
    %50 = vector.shape_cast %49 : vector<1x1x40x24xbf16> to vector<40x24xbf16>
    %c8_59 = arith.constant 8 : index
    %c0_60 = arith.constant 0 : index
    %c0_61 = arith.constant 0 : index
    %51 = vector.load %arg2[%c8_59, %c0_60, %c0_61] : memref<9x24x48xbf16, #tpu.memory_space<vmem>>, vector<1x24x48xbf16>
    %52 = vector.shape_cast %51 : vector<1x24x48xbf16> to vector<24x48xbf16>
    %cst_62 = arith.constant dense<0.000000e+00> : vector<40x48xf32>
    %53 = tpu.matmul %50, %52, %cst_62 {dimension_numbers = #tpu.dot_dimension_numbers<[1], [0], [0], [1], [0, 0, 1, 1], [], []>} : vector<40x24xbf16>, vector<24x48xbf16>, vector<40x48xf32> -> vector<40x48xf32>
    %54 = arith.addf %48, %53 : vector<40x48xf32>
    %cst_63 = arith.constant 0.000000e+00 : f32
    %55 = vector.broadcast %cst_63 : f32 to vector<40x48xf32>
    %c0_64 = arith.constant 0 : index
    %c2_65 = arith.constant 2 : index
    %c0_66 = arith.constant 0 : index
    %c0_67 = arith.constant 0 : index
    %56 = vector.load %arg1[%c0_64, %c2_65, %c0_66, %c0_67] : memref<1x8x56x24xbf16, #tpu.memory_space<vmem>>, vector<1x1x40x24xbf16>
    %57 = vector.shape_cast %56 : vector<1x1x40x24xbf16> to vector<40x24xbf16>
    %c0_68 = arith.constant 0 : index
    %c0_69 = arith.constant 0 : index
    %c0_70 = arith.constant 0 : index
    %58 = vector.load %arg2[%c0_68, %c0_69, %c0_70] : memref<9x24x48xbf16, #tpu.memory_space<vmem>>, vector<1x24x48xbf16>
    %59 = vector.shape_cast %58 : vector<1x24x48xbf16> to vector<24x48xbf16>
    %cst_71 = arith.constant dense<0.000000e+00> : vector<40x48xf32>
    %60 = tpu.matmul %57, %59, %cst_71 {dimension_numbers = #tpu.dot_dimension_numbers<[1], [0], [0], [1], [0, 0, 1, 1], [], []>} : vector<40x24xbf16>, vector<24x48xbf16>, vector<40x48xf32> -> vector<40x48xf32>
    %61 = arith.addf %55, %60 : vector<40x48xf32>
    %c0_72 = arith.constant 0 : index
    %c1_73 = arith.constant 1 : index
    %c0_74 = arith.constant 0 : index
    %c0_75 = arith.constant 0 : index
    %62 = vector.load %arg1[%c0_72, %c1_73, %c0_74, %c0_75] : memref<1x8x56x24xbf16, #tpu.memory_space<vmem>>, vector<1x1x40x24xbf16>
    %63 = vector.shape_cast %62 : vector<1x1x40x24xbf16> to vector<40x24xbf16>
    %c1_76 = arith.constant 1 : index
    %c0_77 = arith.constant 0 : index
    %c0_78 = arith.constant 0 : index
    %64 = vector.load %arg2[%c1_76, %c0_77, %c0_78] : memref<9x24x48xbf16, #tpu.memory_space<vmem>>, vector<1x24x48xbf16>
    %65 = vector.shape_cast %64 : vector<1x24x48xbf16> to vector<24x48xbf16>
    %cst_79 = arith.constant dense<0.000000e+00> : vector<40x48xf32>
    %66 = tpu.matmul %63, %65, %cst_79 {dimension_numbers = #tpu.dot_dimension_numbers<[1], [0], [0], [1], [0, 0, 1, 1], [], []>} : vector<40x24xbf16>, vector<24x48xbf16>, vector<40x48xf32> -> vector<40x48xf32>
    %67 = arith.addf %61, %66 : vector<40x48xf32>
    %c0_80 = arith.constant 0 : index
    %c3_81 = arith.constant 3 : index
    %c0_82 = arith.constant 0 : index
    %c0_83 = arith.constant 0 : index
    %68 = vector.load %arg1[%c0_80, %c3_81, %c0_82, %c0_83] : memref<1x8x56x24xbf16, #tpu.memory_space<vmem>>, vector<1x1x40x24xbf16>
    %69 = vector.shape_cast %68 : vector<1x1x40x24xbf16> to vector<40x24xbf16>
    %c2_84 = arith.constant 2 : index
    %c0_85 = arith.constant 0 : index
    %c0_86 = arith.constant 0 : index
    %70 = vector.load %arg2[%c2_84, %c0_85, %c0_86] : memref<9x24x48xbf16, #tpu.memory_space<vmem>>, vector<1x24x48xbf16>
    %71 = vector.shape_cast %70 : vector<1x24x48xbf16> to vector<24x48xbf16>
    %cst_87 = arith.constant dense<0.000000e+00> : vector<40x48xf32>
    %72 = tpu.matmul %69, %71, %cst_87 {dimension_numbers = #tpu.dot_dimension_numbers<[1], [0], [0], [1], [0, 0, 1, 1], [], []>} : vector<40x24xbf16>, vector<24x48xbf16>, vector<40x48xf32> -> vector<40x48xf32>
    %73 = arith.addf %67, %72 : vector<40x48xf32>
    %c0_88 = arith.constant 0 : index
    %c6_89 = arith.constant 6 : index
    %c0_90 = arith.constant 0 : index
    %c0_91 = arith.constant 0 : index
    %74 = vector.load %arg1[%c0_88, %c6_89, %c0_90, %c0_91] : memref<1x8x56x24xbf16, #tpu.memory_space<vmem>>, vector<1x1x40x24xbf16>
    %75 = vector.shape_cast %74 : vector<1x1x40x24xbf16> to vector<40x24xbf16>
    %c3_92 = arith.constant 3 : index
    %c0_93 = arith.constant 0 : index
    %c0_94 = arith.constant 0 : index
    %76 = vector.load %arg2[%c3_92, %c0_93, %c0_94] : memref<9x24x48xbf16, #tpu.memory_space<vmem>>, vector<1x24x48xbf16>
    %77 = vector.shape_cast %76 : vector<1x24x48xbf16> to vector<24x48xbf16>
    %cst_95 = arith.constant dense<0.000000e+00> : vector<40x48xf32>
    %78 = tpu.matmul %75, %77, %cst_95 {dimension_numbers = #tpu.dot_dimension_numbers<[1], [0], [0], [1], [0, 0, 1, 1], [], []>} : vector<40x24xbf16>, vector<24x48xbf16>, vector<40x48xf32> -> vector<40x48xf32>
    %79 = arith.addf %73, %78 : vector<40x48xf32>
    %c0_96 = arith.constant 0 : index
    %c5_97 = arith.constant 5 : index
    %c0_98 = arith.constant 0 : index
    %c0_99 = arith.constant 0 : index
    %80 = vector.load %arg1[%c0_96, %c5_97, %c0_98, %c0_99] : memref<1x8x56x24xbf16, #tpu.memory_space<vmem>>, vector<1x1x40x24xbf16>
    %81 = vector.shape_cast %80 : vector<1x1x40x24xbf16> to vector<40x24xbf16>
    %c4_100 = arith.constant 4 : index
    %c0_101 = arith.constant 0 : index
    %c0_102 = arith.constant 0 : index
    %82 = vector.load %arg2[%c4_100, %c0_101, %c0_102] : memref<9x24x48xbf16, #tpu.memory_space<vmem>>, vector<1x24x48xbf16>
    %83 = vector.shape_cast %82 : vector<1x24x48xbf16> to vector<24x48xbf16>
    %cst_103 = arith.constant dense<0.000000e+00> : vector<40x48xf32>
    %84 = tpu.matmul %81, %83, %cst_103 {dimension_numbers = #tpu.dot_dimension_numbers<[1], [0], [0], [1], [0, 0, 1, 1], [], []>} : vector<40x24xbf16>, vector<24x48xbf16>, vector<40x48xf32> -> vector<40x48xf32>
    %85 = arith.addf %79, %84 : vector<40x48xf32>
    %c0_104 = arith.constant 0 : index
    %c7_105 = arith.constant 7 : index
    %c0_106 = arith.constant 0 : index
    %c0_107 = arith.constant 0 : index
    %86 = vector.load %arg1[%c0_104, %c7_105, %c0_106, %c0_107] : memref<1x8x56x24xbf16, #tpu.memory_space<vmem>>, vector<1x1x40x24xbf16>
    %87 = vector.shape_cast %86 : vector<1x1x40x24xbf16> to vector<40x24xbf16>
    %c5_108 = arith.constant 5 : index
    %c0_109 = arith.constant 0 : index
    %c0_110 = arith.constant 0 : index
    %88 = vector.load %arg2[%c5_108, %c0_109, %c0_110] : memref<9x24x48xbf16, #tpu.memory_space<vmem>>, vector<1x24x48xbf16>
    %89 = vector.shape_cast %88 : vector<1x24x48xbf16> to vector<24x48xbf16>
    %cst_111 = arith.constant dense<0.000000e+00> : vector<40x48xf32>
    %90 = tpu.matmul %87, %89, %cst_111 {dimension_numbers = #tpu.dot_dimension_numbers<[1], [0], [0], [1], [0, 0, 1, 1], [], []>} : vector<40x24xbf16>, vector<24x48xbf16>, vector<40x48xf32> -> vector<40x48xf32>
    %91 = arith.addf %85, %90 : vector<40x48xf32>
    %c0_112 = arith.constant 0 : index
    %c2_113 = arith.constant 2 : index
    %c8_114 = arith.constant 8 : index
    %c0_115 = arith.constant 0 : index
    %92 = vector.load %arg1[%c0_112, %c2_113, %c8_114, %c0_115] : memref<1x8x56x24xbf16, #tpu.memory_space<vmem>>, vector<1x1x40x24xbf16>
    %93 = vector.shape_cast %92 : vector<1x1x40x24xbf16> to vector<40x24xbf16>
    %c6_116 = arith.constant 6 : index
    %c0_117 = arith.constant 0 : index
    %c0_118 = arith.constant 0 : index
    %94 = vector.load %arg2[%c6_116, %c0_117, %c0_118] : memref<9x24x48xbf16, #tpu.memory_space<vmem>>, vector<1x24x48xbf16>
    %95 = vector.shape_cast %94 : vector<1x24x48xbf16> to vector<24x48xbf16>
    %cst_119 = arith.constant dense<0.000000e+00> : vector<40x48xf32>
    %96 = tpu.matmul %93, %95, %cst_119 {dimension_numbers = #tpu.dot_dimension_numbers<[1], [0], [0], [1], [0, 0, 1, 1], [], []>} : vector<40x24xbf16>, vector<24x48xbf16>, vector<40x48xf32> -> vector<40x48xf32>
    %97 = arith.addf %91, %96 : vector<40x48xf32>
    %c0_120 = arith.constant 0 : index
    %c1_121 = arith.constant 1 : index
    %c8_122 = arith.constant 8 : index
    %c0_123 = arith.constant 0 : index
    %98 = vector.load %arg1[%c0_120, %c1_121, %c8_122, %c0_123] : memref<1x8x56x24xbf16, #tpu.memory_space<vmem>>, vector<1x1x40x24xbf16>
    %99 = vector.shape_cast %98 : vector<1x1x40x24xbf16> to vector<40x24xbf16>
    %c7_124 = arith.constant 7 : index
    %c0_125 = arith.constant 0 : index
    %c0_126 = arith.constant 0 : index
    %100 = vector.load %arg2[%c7_124, %c0_125, %c0_126] : memref<9x24x48xbf16, #tpu.memory_space<vmem>>, vector<1x24x48xbf16>
    %101 = vector.shape_cast %100 : vector<1x24x48xbf16> to vector<24x48xbf16>
    %cst_127 = arith.constant dense<0.000000e+00> : vector<40x48xf32>
    %102 = tpu.matmul %99, %101, %cst_127 {dimension_numbers = #tpu.dot_dimension_numbers<[1], [0], [0], [1], [0, 0, 1, 1], [], []>} : vector<40x24xbf16>, vector<24x48xbf16>, vector<40x48xf32> -> vector<40x48xf32>
    %103 = arith.addf %97, %102 : vector<40x48xf32>
    %c0_128 = arith.constant 0 : index
    %c3_129 = arith.constant 3 : index
    %c8_130 = arith.constant 8 : index
    %c0_131 = arith.constant 0 : index
    %104 = vector.load %arg1[%c0_128, %c3_129, %c8_130, %c0_131] : memref<1x8x56x24xbf16, #tpu.memory_space<vmem>>, vector<1x1x40x24xbf16>
    %105 = vector.shape_cast %104 : vector<1x1x40x24xbf16> to vector<40x24xbf16>
    %c8_132 = arith.constant 8 : index
    %c0_133 = arith.constant 0 : index
    %c0_134 = arith.constant 0 : index
    %106 = vector.load %arg2[%c8_132, %c0_133, %c0_134] : memref<9x24x48xbf16, #tpu.memory_space<vmem>>, vector<1x24x48xbf16>
    %107 = vector.shape_cast %106 : vector<1x24x48xbf16> to vector<24x48xbf16>
    %cst_135 = arith.constant dense<0.000000e+00> : vector<40x48xf32>
    %108 = tpu.matmul %105, %107, %cst_135 {dimension_numbers = #tpu.dot_dimension_numbers<[1], [0], [0], [1], [0, 0, 1, 1], [], []>} : vector<40x24xbf16>, vector<24x48xbf16>, vector<40x48xf32> -> vector<40x48xf32>
    %109 = arith.addf %103, %108 : vector<40x48xf32>
    %110 = arith.maximumf %54, %109 : vector<40x48xf32>
    %cst_136 = arith.constant 0.000000e+00 : f32
    %111 = vector.broadcast %cst_136 : f32 to vector<40x48xf32>
    %c0_137 = arith.constant 0 : index
    %c4_138 = arith.constant 4 : index
    %c0_139 = arith.constant 0 : index
    %c0_140 = arith.constant 0 : index
    %112 = vector.load %arg1[%c0_137, %c4_138, %c0_139, %c0_140] : memref<1x8x56x24xbf16, #tpu.memory_space<vmem>>, vector<1x1x40x24xbf16>
    %113 = vector.shape_cast %112 : vector<1x1x40x24xbf16> to vector<40x24xbf16>
    %c0_141 = arith.constant 0 : index
    %c0_142 = arith.constant 0 : index
    %c0_143 = arith.constant 0 : index
    %114 = vector.load %arg2[%c0_141, %c0_142, %c0_143] : memref<9x24x48xbf16, #tpu.memory_space<vmem>>, vector<1x24x48xbf16>
    %115 = vector.shape_cast %114 : vector<1x24x48xbf16> to vector<24x48xbf16>
    %cst_144 = arith.constant dense<0.000000e+00> : vector<40x48xf32>
    %116 = tpu.matmul %113, %115, %cst_144 {dimension_numbers = #tpu.dot_dimension_numbers<[1], [0], [0], [1], [0, 0, 1, 1], [], []>} : vector<40x24xbf16>, vector<24x48xbf16>, vector<40x48xf32> -> vector<40x48xf32>
    %117 = arith.addf %111, %116 : vector<40x48xf32>
    %c0_145 = arith.constant 0 : index
    %c6_146 = arith.constant 6 : index
    %c0_147 = arith.constant 0 : index
    %c0_148 = arith.constant 0 : index
    %118 = vector.load %arg1[%c0_145, %c6_146, %c0_147, %c0_148] : memref<1x8x56x24xbf16, #tpu.memory_space<vmem>>, vector<1x1x40x24xbf16>
    %119 = vector.shape_cast %118 : vector<1x1x40x24xbf16> to vector<40x24xbf16>
    %c1_149 = arith.constant 1 : index
    %c0_150 = arith.constant 0 : index
    %c0_151 = arith.constant 0 : index
    %120 = vector.load %arg2[%c1_149, %c0_150, %c0_151] : memref<9x24x48xbf16, #tpu.memory_space<vmem>>, vector<1x24x48xbf16>
    %121 = vector.shape_cast %120 : vector<1x24x48xbf16> to vector<24x48xbf16>
    %cst_152 = arith.constant dense<0.000000e+00> : vector<40x48xf32>
    %122 = tpu.matmul %119, %121, %cst_152 {dimension_numbers = #tpu.dot_dimension_numbers<[1], [0], [0], [1], [0, 0, 1, 1], [], []>} : vector<40x24xbf16>, vector<24x48xbf16>, vector<40x48xf32> -> vector<40x48xf32>
    %123 = arith.addf %117, %122 : vector<40x48xf32>
    %c0_153 = arith.constant 0 : index
    %c5_154 = arith.constant 5 : index
    %c0_155 = arith.constant 0 : index
    %c0_156 = arith.constant 0 : index
    %124 = vector.load %arg1[%c0_153, %c5_154, %c0_155, %c0_156] : memref<1x8x56x24xbf16, #tpu.memory_space<vmem>>, vector<1x1x40x24xbf16>
    %125 = vector.shape_cast %124 : vector<1x1x40x24xbf16> to vector<40x24xbf16>
    %c2_157 = arith.constant 2 : index
    %c0_158 = arith.constant 0 : index
    %c0_159 = arith.constant 0 : index
    %126 = vector.load %arg2[%c2_157, %c0_158, %c0_159] : memref<9x24x48xbf16, #tpu.memory_space<vmem>>, vector<1x24x48xbf16>
    %127 = vector.shape_cast %126 : vector<1x24x48xbf16> to vector<24x48xbf16>
    %cst_160 = arith.constant dense<0.000000e+00> : vector<40x48xf32>
    %128 = tpu.matmul %125, %127, %cst_160 {dimension_numbers = #tpu.dot_dimension_numbers<[1], [0], [0], [1], [0, 0, 1, 1], [], []>} : vector<40x24xbf16>, vector<24x48xbf16>, vector<40x48xf32> -> vector<40x48xf32>
    %129 = arith.addf %123, %128 : vector<40x48xf32>
    %c0_161 = arith.constant 0 : index
    %c0_162 = arith.constant 0 : index
    %c8_163 = arith.constant 8 : index
    %c0_164 = arith.constant 0 : index
    %130 = vector.load %arg1[%c0_161, %c0_162, %c8_163, %c0_164] : memref<1x8x56x24xbf16, #tpu.memory_space<vmem>>, vector<1x1x40x24xbf16>
    %131 = vector.shape_cast %130 : vector<1x1x40x24xbf16> to vector<40x24xbf16>
    %c3_165 = arith.constant 3 : index
    %c0_166 = arith.constant 0 : index
    %c0_167 = arith.constant 0 : index
    %132 = vector.load %arg2[%c3_165, %c0_166, %c0_167] : memref<9x24x48xbf16, #tpu.memory_space<vmem>>, vector<1x24x48xbf16>
    %133 = vector.shape_cast %132 : vector<1x24x48xbf16> to vector<24x48xbf16>
    %cst_168 = arith.constant dense<0.000000e+00> : vector<40x48xf32>
    %134 = tpu.matmul %131, %133, %cst_168 {dimension_numbers = #tpu.dot_dimension_numbers<[1], [0], [0], [1], [0, 0, 1, 1], [], []>} : vector<40x24xbf16>, vector<24x48xbf16>, vector<40x48xf32> -> vector<40x48xf32>
    %135 = arith.addf %129, %134 : vector<40x48xf32>
    %c0_169 = arith.constant 0 : index
    %c2_170 = arith.constant 2 : index
    %c8_171 = arith.constant 8 : index
    %c0_172 = arith.constant 0 : index
    %136 = vector.load %arg1[%c0_169, %c2_170, %c8_171, %c0_172] : memref<1x8x56x24xbf16, #tpu.memory_space<vmem>>, vector<1x1x40x24xbf16>
    %137 = vector.shape_cast %136 : vector<1x1x40x24xbf16> to vector<40x24xbf16>
    %c4_173 = arith.constant 4 : index
    %c0_174 = arith.constant 0 : index
    %c0_175 = arith.constant 0 : index
    %138 = vector.load %arg2[%c4_173, %c0_174, %c0_175] : memref<9x24x48xbf16, #tpu.memory_space<vmem>>, vector<1x24x48xbf16>
    %139 = vector.shape_cast %138 : vector<1x24x48xbf16> to vector<24x48xbf16>
    %cst_176 = arith.constant dense<0.000000e+00> : vector<40x48xf32>
    %140 = tpu.matmul %137, %139, %cst_176 {dimension_numbers = #tpu.dot_dimension_numbers<[1], [0], [0], [1], [0, 0, 1, 1], [], []>} : vector<40x24xbf16>, vector<24x48xbf16>, vector<40x48xf32> -> vector<40x48xf32>
    %141 = arith.addf %135, %140 : vector<40x48xf32>
    %c0_177 = arith.constant 0 : index
    %c1_178 = arith.constant 1 : index
    %c8_179 = arith.constant 8 : index
    %c0_180 = arith.constant 0 : index
    %142 = vector.load %arg1[%c0_177, %c1_178, %c8_179, %c0_180] : memref<1x8x56x24xbf16, #tpu.memory_space<vmem>>, vector<1x1x40x24xbf16>
    %143 = vector.shape_cast %142 : vector<1x1x40x24xbf16> to vector<40x24xbf16>
    %c5_181 = arith.constant 5 : index
    %c0_182 = arith.constant 0 : index
    %c0_183 = arith.constant 0 : index
    %144 = vector.load %arg2[%c5_181, %c0_182, %c0_183] : memref<9x24x48xbf16, #tpu.memory_space<vmem>>, vector<1x24x48xbf16>
    %145 = vector.shape_cast %144 : vector<1x24x48xbf16> to vector<24x48xbf16>
    %cst_184 = arith.constant dense<0.000000e+00> : vector<40x48xf32>
    %146 = tpu.matmul %143, %145, %cst_184 {dimension_numbers = #tpu.dot_dimension_numbers<[1], [0], [0], [1], [0, 0, 1, 1], [], []>} : vector<40x24xbf16>, vector<24x48xbf16>, vector<40x48xf32> -> vector<40x48xf32>
    %147 = arith.addf %141, %146 : vector<40x48xf32>
    %c0_185 = arith.constant 0 : index
    %c4_186 = arith.constant 4 : index
    %c8_187 = arith.constant 8 : index
    %c0_188 = arith.constant 0 : index
    %148 = vector.load %arg1[%c0_185, %c4_186, %c8_187, %c0_188] : memref<1x8x56x24xbf16, #tpu.memory_space<vmem>>, vector<1x1x40x24xbf16>
    %149 = vector.shape_cast %148 : vector<1x1x40x24xbf16> to vector<40x24xbf16>
    %c6_189 = arith.constant 6 : index
    %c0_190 = arith.constant 0 : index
    %c0_191 = arith.constant 0 : index
    %150 = vector.load %arg2[%c6_189, %c0_190, %c0_191] : memref<9x24x48xbf16, #tpu.memory_space<vmem>>, vector<1x24x48xbf16>
    %151 = vector.shape_cast %150 : vector<1x24x48xbf16> to vector<24x48xbf16>
    %cst_192 = arith.constant dense<0.000000e+00> : vector<40x48xf32>
    %152 = tpu.matmul %149, %151, %cst_192 {dimension_numbers = #tpu.dot_dimension_numbers<[1], [0], [0], [1], [0, 0, 1, 1], [], []>} : vector<40x24xbf16>, vector<24x48xbf16>, vector<40x48xf32> -> vector<40x48xf32>
    %153 = arith.addf %147, %152 : vector<40x48xf32>
    %c0_193 = arith.constant 0 : index
    %c6_194 = arith.constant 6 : index
    %c8_195 = arith.constant 8 : index
    %c0_196 = arith.constant 0 : index
    %154 = vector.load %arg1[%c0_193, %c6_194, %c8_195, %c0_196] : memref<1x8x56x24xbf16, #tpu.memory_space<vmem>>, vector<1x1x40x24xbf16>
    %155 = vector.shape_cast %154 : vector<1x1x40x24xbf16> to vector<40x24xbf16>
    %c7_197 = arith.constant 7 : index
    %c0_198 = arith.constant 0 : index
    %c0_199 = arith.constant 0 : index
    %156 = vector.load %arg2[%c7_197, %c0_198, %c0_199] : memref<9x24x48xbf16, #tpu.memory_space<vmem>>, vector<1x24x48xbf16>
    %157 = vector.shape_cast %156 : vector<1x24x48xbf16> to vector<24x48xbf16>
    %cst_200 = arith.constant dense<0.000000e+00> : vector<40x48xf32>
    %158 = tpu.matmul %155, %157, %cst_200 {dimension_numbers = #tpu.dot_dimension_numbers<[1], [0], [0], [1], [0, 0, 1, 1], [], []>} : vector<40x24xbf16>, vector<24x48xbf16>, vector<40x48xf32> -> vector<40x48xf32>
    %159 = arith.addf %153, %158 : vector<40x48xf32>
    %c0_201 = arith.constant 0 : index
    %c5_202 = arith.constant 5 : index
    %c8_203 = arith.constant 8 : index
    %c0_204 = arith.constant 0 : index
    %160 = vector.load %arg1[%c0_201, %c5_202, %c8_203, %c0_204] : memref<1x8x56x24xbf16, #tpu.memory_space<vmem>>, vector<1x1x40x24xbf16>
    %161 = vector.shape_cast %160 : vector<1x1x40x24xbf16> to vector<40x24xbf16>
    %c8_205 = arith.constant 8 : index
    %c0_206 = arith.constant 0 : index
    %c0_207 = arith.constant 0 : index
    %162 = vector.load %arg2[%c8_205, %c0_206, %c0_207] : memref<9x24x48xbf16, #tpu.memory_space<vmem>>, vector<1x24x48xbf16>
    %163 = vector.shape_cast %162 : vector<1x24x48xbf16> to vector<24x48xbf16>
    %cst_208 = arith.constant dense<0.000000e+00> : vector<40x48xf32>
    %164 = tpu.matmul %161, %163, %cst_208 {dimension_numbers = #tpu.dot_dimension_numbers<[1], [0], [0], [1], [0, 0, 1, 1], [], []>} : vector<40x24xbf16>, vector<24x48xbf16>, vector<40x48xf32> -> vector<40x48xf32>
    %165 = arith.addf %159, %164 : vector<40x48xf32>
    %166 = arith.maximumf %110, %165 : vector<40x48xf32>
    %cst_209 = arith.constant 0.000000e+00 : f32
    %167 = vector.broadcast %cst_209 : f32 to vector<40x48xf32>
    %c0_210 = arith.constant 0 : index
    %c6_211 = arith.constant 6 : index
    %c0_212 = arith.constant 0 : index
    %c0_213 = arith.constant 0 : index
    %168 = vector.load %arg1[%c0_210, %c6_211, %c0_212, %c0_213] : memref<1x8x56x24xbf16, #tpu.memory_space<vmem>>, vector<1x1x40x24xbf16>
    %169 = vector.shape_cast %168 : vector<1x1x40x24xbf16> to vector<40x24xbf16>
    %c0_214 = arith.constant 0 : index
    %c0_215 = arith.constant 0 : index
    %c0_216 = arith.constant 0 : index
    %170 = vector.load %arg2[%c0_214, %c0_215, %c0_216] : memref<9x24x48xbf16, #tpu.memory_space<vmem>>, vector<1x24x48xbf16>
    %171 = vector.shape_cast %170 : vector<1x24x48xbf16> to vector<24x48xbf16>
    %cst_217 = arith.constant dense<0.000000e+00> : vector<40x48xf32>
    %172 = tpu.matmul %169, %171, %cst_217 {dimension_numbers = #tpu.dot_dimension_numbers<[1], [0], [0], [1], [0, 0, 1, 1], [], []>} : vector<40x24xbf16>, vector<24x48xbf16>, vector<40x48xf32> -> vector<40x48xf32>
    %173 = arith.addf %167, %172 : vector<40x48xf32>
    %c0_218 = arith.constant 0 : index
    %c5_219 = arith.constant 5 : index
    %c0_220 = arith.constant 0 : index
    %c0_221 = arith.constant 0 : index
    %174 = vector.load %arg1[%c0_218, %c5_219, %c0_220, %c0_221] : memref<1x8x56x24xbf16, #tpu.memory_space<vmem>>, vector<1x1x40x24xbf16>
    %175 = vector.shape_cast %174 : vector<1x1x40x24xbf16> to vector<40x24xbf16>
    %c1_222 = arith.constant 1 : index
    %c0_223 = arith.constant 0 : index
    %c0_224 = arith.constant 0 : index
    %176 = vector.load %arg2[%c1_222, %c0_223, %c0_224] : memref<9x24x48xbf16, #tpu.memory_space<vmem>>, vector<1x24x48xbf16>
    %177 = vector.shape_cast %176 : vector<1x24x48xbf16> to vector<24x48xbf16>
    %cst_225 = arith.constant dense<0.000000e+00> : vector<40x48xf32>
    %178 = tpu.matmul %175, %177, %cst_225 {dimension_numbers = #tpu.dot_dimension_numbers<[1], [0], [0], [1], [0, 0, 1, 1], [], []>} : vector<40x24xbf16>, vector<24x48xbf16>, vector<40x48xf32> -> vector<40x48xf32>
    %179 = arith.addf %173, %178 : vector<40x48xf32>
    %c0_226 = arith.constant 0 : index
    %c7_227 = arith.constant 7 : index
    %c0_228 = arith.constant 0 : index
    %c0_229 = arith.constant 0 : index
    %180 = vector.load %arg1[%c0_226, %c7_227, %c0_228, %c0_229] : memref<1x8x56x24xbf16, #tpu.memory_space<vmem>>, vector<1x1x40x24xbf16>
    %181 = vector.shape_cast %180 : vector<1x1x40x24xbf16> to vector<40x24xbf16>
    %c2_230 = arith.constant 2 : index
    %c0_231 = arith.constant 0 : index
    %c0_232 = arith.constant 0 : index
    %182 = vector.load %arg2[%c2_230, %c0_231, %c0_232] : memref<9x24x48xbf16, #tpu.memory_space<vmem>>, vector<1x24x48xbf16>
    %183 = vector.shape_cast %182 : vector<1x24x48xbf16> to vector<24x48xbf16>
    %cst_233 = arith.constant dense<0.000000e+00> : vector<40x48xf32>
    %184 = tpu.matmul %181, %183, %cst_233 {dimension_numbers = #tpu.dot_dimension_numbers<[1], [0], [0], [1], [0, 0, 1, 1], [], []>} : vector<40x24xbf16>, vector<24x48xbf16>, vector<40x48xf32> -> vector<40x48xf32>
    %185 = arith.addf %179, %184 : vector<40x48xf32>
    %c0_234 = arith.constant 0 : index
    %c2_235 = arith.constant 2 : index
    %c8_236 = arith.constant 8 : index
    %c0_237 = arith.constant 0 : index
    %186 = vector.load %arg1[%c0_234, %c2_235, %c8_236, %c0_237] : memref<1x8x56x24xbf16, #tpu.memory_space<vmem>>, vector<1x1x40x24xbf16>
    %187 = vector.shape_cast %186 : vector<1x1x40x24xbf16> to vector<40x24xbf16>
    %c3_238 = arith.constant 3 : index
    %c0_239 = arith.constant 0 : index
    %c0_240 = arith.constant 0 : index
    %188 = vector.load %arg2[%c3_238, %c0_239, %c0_240] : memref<9x24x48xbf16, #tpu.memory_space<vmem>>, vector<1x24x48xbf16>
    %189 = vector.shape_cast %188 : vector<1x24x48xbf16> to vector<24x48xbf16>
    %cst_241 = arith.constant dense<0.000000e+00> : vector<40x48xf32>
    %190 = tpu.matmul %187, %189, %cst_241 {dimension_numbers = #tpu.dot_dimension_numbers<[1], [0], [0], [1], [0, 0, 1, 1], [], []>} : vector<40x24xbf16>, vector<24x48xbf16>, vector<40x48xf32> -> vector<40x48xf32>
    %191 = arith.addf %185, %190 : vector<40x48xf32>
    %c0_242 = arith.constant 0 : index
    %c1_243 = arith.constant 1 : index
    %c8_244 = arith.constant 8 : index
    %c0_245 = arith.constant 0 : index
    %192 = vector.load %arg1[%c0_242, %c1_243, %c8_244, %c0_245] : memref<1x8x56x24xbf16, #tpu.memory_space<vmem>>, vector<1x1x40x24xbf16>
    %193 = vector.shape_cast %192 : vector<1x1x40x24xbf16> to vector<40x24xbf16>
    %c4_246 = arith.constant 4 : index
    %c0_247 = arith.constant 0 : index
    %c0_248 = arith.constant 0 : index
    %194 = vector.load %arg2[%c4_246, %c0_247, %c0_248] : memref<9x24x48xbf16, #tpu.memory_space<vmem>>, vector<1x24x48xbf16>
    %195 = vector.shape_cast %194 : vector<1x24x48xbf16> to vector<24x48xbf16>
    %cst_249 = arith.constant dense<0.000000e+00> : vector<40x48xf32>
    %196 = tpu.matmul %193, %195, %cst_249 {dimension_numbers = #tpu.dot_dimension_numbers<[1], [0], [0], [1], [0, 0, 1, 1], [], []>} : vector<40x24xbf16>, vector<24x48xbf16>, vector<40x48xf32> -> vector<40x48xf32>
    %197 = arith.addf %191, %196 : vector<40x48xf32>
    %c0_250 = arith.constant 0 : index
    %c3_251 = arith.constant 3 : index
    %c8_252 = arith.constant 8 : index
    %c0_253 = arith.constant 0 : index
    %198 = vector.load %arg1[%c0_250, %c3_251, %c8_252, %c0_253] : memref<1x8x56x24xbf16, #tpu.memory_space<vmem>>, vector<1x1x40x24xbf16>
    %199 = vector.shape_cast %198 : vector<1x1x40x24xbf16> to vector<40x24xbf16>
    %c5_254 = arith.constant 5 : index
    %c0_255 = arith.constant 0 : index
    %c0_256 = arith.constant 0 : index
    %200 = vector.load %arg2[%c5_254, %c0_255, %c0_256] : memref<9x24x48xbf16, #tpu.memory_space<vmem>>, vector<1x24x48xbf16>
    %201 = vector.shape_cast %200 : vector<1x24x48xbf16> to vector<24x48xbf16>
    %cst_257 = arith.constant dense<0.000000e+00> : vector<40x48xf32>
    %202 = tpu.matmul %199, %201, %cst_257 {dimension_numbers = #tpu.dot_dimension_numbers<[1], [0], [0], [1], [0, 0, 1, 1], [], []>} : vector<40x24xbf16>, vector<24x48xbf16>, vector<40x48xf32> -> vector<40x48xf32>
    %203 = arith.addf %197, %202 : vector<40x48xf32>
    %c0_258 = arith.constant 0 : index
    %c6_259 = arith.constant 6 : index
    %c8_260 = arith.constant 8 : index
    %c0_261 = arith.constant 0 : index
    %204 = vector.load %arg1[%c0_258, %c6_259, %c8_260, %c0_261] : memref<1x8x56x24xbf16, #tpu.memory_space<vmem>>, vector<1x1x40x24xbf16>
    %205 = vector.shape_cast %204 : vector<1x1x40x24xbf16> to vector<40x24xbf16>
    %c6_262 = arith.constant 6 : index
    %c0_263 = arith.constant 0 : index
    %c0_264 = arith.constant 0 : index
    %206 = vector.load %arg2[%c6_262, %c0_263, %c0_264] : memref<9x24x48xbf16, #tpu.memory_space<vmem>>, vector<1x24x48xbf16>
    %207 = vector.shape_cast %206 : vector<1x24x48xbf16> to vector<24x48xbf16>
    %cst_265 = arith.constant dense<0.000000e+00> : vector<40x48xf32>
    %208 = tpu.matmul %205, %207, %cst_265 {dimension_numbers = #tpu.dot_dimension_numbers<[1], [0], [0], [1], [0, 0, 1, 1], [], []>} : vector<40x24xbf16>, vector<24x48xbf16>, vector<40x48xf32> -> vector<40x48xf32>
    %209 = arith.addf %203, %208 : vector<40x48xf32>
    %c0_266 = arith.constant 0 : index
    %c5_267 = arith.constant 5 : index
    %c8_268 = arith.constant 8 : index
    %c0_269 = arith.constant 0 : index
    %210 = vector.load %arg1[%c0_266, %c5_267, %c8_268, %c0_269] : memref<1x8x56x24xbf16, #tpu.memory_space<vmem>>, vector<1x1x40x24xbf16>
    %211 = vector.shape_cast %210 : vector<1x1x40x24xbf16> to vector<40x24xbf16>
    %c7_270 = arith.constant 7 : index
    %c0_271 = arith.constant 0 : index
    %c0_272 = arith.constant 0 : index
    %212 = vector.load %arg2[%c7_270, %c0_271, %c0_272] : memref<9x24x48xbf16, #tpu.memory_space<vmem>>, vector<1x24x48xbf16>
    %213 = vector.shape_cast %212 : vector<1x24x48xbf16> to vector<24x48xbf16>
    %cst_273 = arith.constant dense<0.000000e+00> : vector<40x48xf32>
    %214 = tpu.matmul %211, %213, %cst_273 {dimension_numbers = #tpu.dot_dimension_numbers<[1], [0], [0], [1], [0, 0, 1, 1], [], []>} : vector<40x24xbf16>, vector<24x48xbf16>, vector<40x48xf32> -> vector<40x48xf32>
    %215 = arith.addf %209, %214 : vector<40x48xf32>
    %c0_274 = arith.constant 0 : index
    %c7_275 = arith.constant 7 : index
    %c8_276 = arith.constant 8 : index
    %c0_277 = arith.constant 0 : index
    %216 = vector.load %arg1[%c0_274, %c7_275, %c8_276, %c0_277] : memref<1x8x56x24xbf16, #tpu.memory_space<vmem>>, vector<1x1x40x24xbf16>
    %217 = vector.shape_cast %216 : vector<1x1x40x24xbf16> to vector<40x24xbf16>
    %c8_278 = arith.constant 8 : index
    %c0_279 = arith.constant 0 : index
    %c0_280 = arith.constant 0 : index
    %218 = vector.load %arg2[%c8_278, %c0_279, %c0_280] : memref<9x24x48xbf16, #tpu.memory_space<vmem>>, vector<1x24x48xbf16>
    %219 = vector.shape_cast %218 : vector<1x24x48xbf16> to vector<24x48xbf16>
    %cst_281 = arith.constant dense<0.000000e+00> : vector<40x48xf32>
    %220 = tpu.matmul %217, %219, %cst_281 {dimension_numbers = #tpu.dot_dimension_numbers<[1], [0], [0], [1], [0, 0, 1, 1], [], []>} : vector<40x24xbf16>, vector<24x48xbf16>, vector<40x48xf32> -> vector<40x48xf32>
    %221 = arith.addf %215, %220 : vector<40x48xf32>
    %222 = arith.maximumf %166, %221 : vector<40x48xf32>
    %c0_282 = arith.constant 0 : index
    %c0_283 = arith.constant 0 : index
    %223 = vector.load %arg3[%c0_282, %c0_283] : memref<1x48xf32, #tpu.memory_space<vmem>>, vector<1x48xf32>
    %224 = vector.broadcast %223 : vector<1x48xf32> to vector<40x48xf32>
    %225 = arith.addf %222, %224 : vector<40x48xf32>
    %cst_284 = arith.constant 0.000000e+00 : f32
    %226 = vector.broadcast %cst_284 : f32 to vector<40x48xf32>
    %227 = arith.maximumf %225, %226 : vector<40x48xf32>
    %228 = vector.shape_cast %227 : vector<40x48xf32> to vector<5x8x48xf32>
    %229 = vector.extract_strided_slice %228 {offsets = [0, 0, 0], sizes = [5, 6, 48], strides = [1, 1, 1]} : vector<5x8x48xf32> to vector<5x6x48xf32>
    %230 = arith.truncf %229 : vector<5x6x48xf32> to vector<5x6x48xbf16>
    %c0_285 = arith.constant 0 : index
    %c0_286 = arith.constant 0 : index
    %c0_287 = arith.constant 0 : index
    %c0_288 = arith.constant 0 : index
    %231 = vector.load %arg4[%c0_285, %c0_286, %c0_287, %c0_288] : memref<1x5x6x48xbf16, #tpu.memory_space<vmem>>, vector<1x5x6x48xbf16>
    %232 = vector.shape_cast %231 : vector<1x5x6x48xbf16> to vector<5x6x48xbf16>
    %233 = vector.shape_cast %230 : vector<5x6x48xbf16> to vector<1x5x6x48xbf16>
    tpu.vector_store %arg4[%c0_285, %c0_286, %c0_287, %c0_288], %233 {strides = array<i32>} : memref<1x5x6x48xbf16, #tpu.memory_space<vmem>>, vector<1x5x6x48xbf16>,
    return
  }
  func.func @transform_0(%arg0: i32) -> (i32, i32, i32, i32) {
    %c0_i32 = arith.constant 0 : i32
    %c0_i32_0 = arith.constant 0 : i32
    %c0_i32_1 = arith.constant 0 : i32
    %c0_i32_2 = arith.constant 0 : i32
    return %arg0, %c0_i32, %c0_i32_0, %c0_i32_1 : i32, i32, i32, i32
  }
  func.func @transform_1(%arg0: i32) -> (i32, i32, i32) {
    %c0_i32 = arith.constant 0 : i32
    %c0_i32_0 = arith.constant 0 : i32
    %c0_i32_1 = arith.constant 0 : i32
    %c0_i32_2 = arith.constant 0 : i32
    return %c0_i32, %c0_i32_0, %c0_i32_1 : i32, i32, i32
  }
  func.func @transform_2(%arg0: i32) -> (i32, i32) {
    %c0_i32 = arith.constant 0 : i32
    %c0_i32_0 = arith.constant 0 : i32
    %c0_i32_1 = arith.constant 0 : i32
    return %c0_i32, %c0_i32_0 : i32, i32
  }
  func.func @transform_3(%arg0: i32) -> (i32, i32, i32, i32) {
    %c0_i32 = arith.constant 0 : i32
    %c0_i32_0 = arith.constant 0 : i32
    %c0_i32_1 = arith.constant 0 : i32
    %c0_i32_2 = arith.constant 0 : i32
    return %arg0, %c0_i32, %c0_i32_0, %c0_i32_1 : i32, i32, i32, i32
  }
}

module attributes {stable_mosaic.version = 11 : i64} {
  func.func @_mlp_kernel(%arg0: memref<2x1440xbf16, #tpu.memory_space<vmem>>, %arg1: memref<1440x512xbf16, #tpu.memory_space<vmem>>, %arg2: memref<1x512xf32, #tpu.memory_space<vmem>>, %arg3: memref<512x1024xbf16, #tpu.memory_space<vmem>>, %arg4: memref<1x1024xf32, #tpu.memory_space<vmem>>, %arg5: memref<1024x2xbf16, #tpu.memory_space<vmem>>, %arg6: memref<1x2xf32, #tpu.memory_space<vmem>>, %arg7: memref<2x2xf32, #tpu.memory_space<vmem>>) attributes {dimension_semantics = [], scalar_prefetch = 0 : i64, scratch_operands = 0 : i64, tpu.core_type = #tpu.core_type<tc>} {
    %c0 = arith.constant 0 : index
    %c0_0 = arith.constant 0 : index
    %0 = vector.load %arg0[%c0, %c0_0] : memref<2x1440xbf16, #tpu.memory_space<vmem>>, vector<2x1440xbf16>
    %c0_1 = arith.constant 0 : index
    %c0_2 = arith.constant 0 : index
    %1 = vector.load %arg1[%c0_1, %c0_2] : memref<1440x512xbf16, #tpu.memory_space<vmem>>, vector<1440x512xbf16>
    %cst = arith.constant dense<0.000000e+00> : vector<2x512xf32>
    %2 = tpu.matmul %0, %1, %cst {dimension_numbers = #tpu.dot_dimension_numbers<[1], [0], [0], [1], [0, 0, 1, 1], [], []>} : vector<2x1440xbf16>, vector<1440x512xbf16>, vector<2x512xf32> -> vector<2x512xf32>
    %c0_3 = arith.constant 0 : index
    %c0_4 = arith.constant 0 : index
    %3 = vector.load %arg2[%c0_3, %c0_4] : memref<1x512xf32, #tpu.memory_space<vmem>>, vector<1x512xf32>
    %4 = vector.broadcast %3 : vector<1x512xf32> to vector<2x512xf32>
    %5 = arith.addf %2, %4 : vector<2x512xf32>
    %6 = math.tanh %5 : vector<2x512xf32>
    %7 = arith.truncf %6 : vector<2x512xf32> to vector<2x512xbf16>
    %c0_5 = arith.constant 0 : index
    %c0_6 = arith.constant 0 : index
    %8 = vector.load %arg3[%c0_5, %c0_6] : memref<512x1024xbf16, #tpu.memory_space<vmem>>, vector<512x1024xbf16>
    %cst_7 = arith.constant dense<0.000000e+00> : vector<2x1024xf32>
    %9 = tpu.matmul %7, %8, %cst_7 {dimension_numbers = #tpu.dot_dimension_numbers<[1], [0], [0], [1], [0, 0, 1, 1], [], []>} : vector<2x512xbf16>, vector<512x1024xbf16>, vector<2x1024xf32> -> vector<2x1024xf32>
    %c0_8 = arith.constant 0 : index
    %c0_9 = arith.constant 0 : index
    %10 = vector.load %arg4[%c0_8, %c0_9] : memref<1x1024xf32, #tpu.memory_space<vmem>>, vector<1x1024xf32>
    %11 = vector.broadcast %10 : vector<1x1024xf32> to vector<2x1024xf32>
    %12 = arith.addf %9, %11 : vector<2x1024xf32>
    %13 = math.tanh %12 : vector<2x1024xf32>
    %14 = arith.truncf %13 : vector<2x1024xf32> to vector<2x1024xbf16>
    %c0_10 = arith.constant 0 : index
    %c0_11 = arith.constant 0 : index
    %15 = vector.load %arg5[%c0_10, %c0_11] : memref<1024x2xbf16, #tpu.memory_space<vmem>>, vector<1024x2xbf16>
    %cst_12 = arith.constant dense<0.000000e+00> : vector<2x2xf32>
    %16 = tpu.matmul %14, %15, %cst_12 {dimension_numbers = #tpu.dot_dimension_numbers<[1], [0], [0], [1], [0, 0, 1, 1], [], []>} : vector<2x1024xbf16>, vector<1024x2xbf16>, vector<2x2xf32> -> vector<2x2xf32>
    %c0_13 = arith.constant 0 : index
    %c0_14 = arith.constant 0 : index
    %17 = vector.load %arg6[%c0_13, %c0_14] : memref<1x2xf32, #tpu.memory_space<vmem>>, vector<1x2xf32>
    %18 = vector.broadcast %17 : vector<1x2xf32> to vector<2x2xf32>
    %19 = arith.addf %16, %18 : vector<2x2xf32>
    %cst_15 = arith.constant 0.000000e+00 : f32
    %20 = vector.broadcast %cst_15 : f32 to vector<2x2xf32>
    %21 = arith.subf %20, %19 : vector<2x2xf32>
    %22 = math.exp %21 : vector<2x2xf32>
    %cst_16 = arith.constant 1.000000e+00 : f32
    %23 = vector.broadcast %cst_16 : f32 to vector<2x2xf32>
    %24 = arith.addf %23, %22 : vector<2x2xf32>
    %cst_17 = arith.constant 1.000000e+00 : f32
    %25 = vector.broadcast %cst_17 : f32 to vector<2x2xf32>
    %26 = arith.divf %25, %24 : vector<2x2xf32>
    %c0_18 = arith.constant 0 : index
    %c0_19 = arith.constant 0 : index
    %27 = vector.load %arg7[%c0_18, %c0_19] : memref<2x2xf32, #tpu.memory_space<vmem>>, vector<2x2xf32>
    tpu.vector_store %arg7[%c0_18, %c0_19], %26 {strides = array<i32>} : memref<2x2xf32, #tpu.memory_space<vmem>>, vector<2x2xf32>,
    return
  }
}

</mosaic_0001>

<bundles_post_ra>
// kernel: forward_pallas.3
= control target key start
LH: loop header
LB: loop body
LE: loop exit
PB: predicated region body
PF: predicated region fallthrough
CT: control target
= control target key end

     0   :  { %s9606_s12 = smov 0   ;;  %s10964_s0 = inlined_call_operand.vmem [shape: bf16[2,8,192,3], index: 0, kind: input, shape index: {}]   ;;  %s10965_s1 = inlined_call_operand.vmem [shape: bf16[9,3,24], index: 1, kind: input, shape index: {}]   ;;  %s10966_s2 = inlined_call_operand.vmem [shape: f32[1,24], index: 2, kind: input, shape index: {}]   ;;  %s10967_s3 = inlined_call_operand.vmem [shape: bf16[2,10,12,24], index: 3, kind: output, shape index: {}]  }
   0x1 LB: > { %s6720_s13 = sadd.s32 4294967295, %s9583_s12   ;;  %p6724_p0 = scmp.ge.s32.totalorder %s9583_s12, 1  ;;  %s9583_s12 = sphi %s9606_s12, %s13_s12  }
   0x2   : > { %p137_p1 = scmp.lt.s32.totalorder %s9583_s12, 3 }
   0x4   : > { %p138_p2 = pnand %p6724_p0, %p137_p1 }
   0x6   : > { %141 = sbr.rel (%p138_p2) target bundleno = 960 (0x3c0), region = 32 }
   0xd   : > { %v6747_v0 = vld [vmem:[%s10965_s1 + $0x2] sm:$0x3]  ;;  %vm297_vm0 = vcmask 1040384   ;;  %vm298_vm1 = vcmask 1041408   ;;  %p161_p3 = scmp.lt.s32.totalorder %s6720_s13, 1  ;;  %v9585_v1 = vmov 65535  }
   0xe   : > { %v299_v2 = vsel %vm297_vm0, 4294967295, %v9585_v1  ;;  %v192_v3 = vld [vmem:[%s10965_s1] sm:$0x3]  ;;  %vm266_vm2 = vcmask 23552   ;;  %v6808_v7 = vld [vmem:[%s10965_s1 + $0x4] sm:$0x3] }
   0xf   : > { %v9620_v4 = vsel %vm298_vm1, %v299_v2, 0  ;;  %s11065_s13 = smov (!%p161_p3, %s6720_s13), 1  ;;  %v6849_v30 = vld [vmem:[%s10965_s1 + $0x6] sm:$0x3]  ;;  %v6890_v42 = vld [vmem:[%s10965_s1 + $0x8] sm:$0x3] }
  0x10   : > { %v9625_v5 = vand.u32 %v6747_v0, %v9620_v4  ;;  %v9628_v6 = vand.u32 %v9620_v4, %v192_v3  ;;  %s9406_s18 = smul.u32 768, %s11065_s13  ;;  %v9657_v12 = vand.u32 %v6808_v7, %v9620_v4  ;;  %v9731_v33 = vand.u32 %v6849_v30, %v9620_v4  ;;  %v6931_v57 = vld [vmem:[%s10965_s1 + $0xa] sm:$0x3] }
  0x11   : > { %v9772_v45 = vand.u32 %v6890_v42, %v9620_v4  ;;  %v9838_v60 = vand.u32 %v6931_v57, %v9620_v4  ;;  %s9407_s11 = smul.u32 80, %s11065_s13  ;;  %vm6643_vm3 = vcmask 191488   ;;  %vm6645_vm4 = vcmask 189440  }
  0x12   : > { %7974 = vmatprep.subr.bf16.mxu0 %v9625_v5  ;;  %8172 = vmatprep.subr.bf16.mxu1 %v9625_v5  ;;  %s9638_s21 = scalar_lea.vmem %s10964_s0, %s9406_s18 }
  0x13   : > { %7975 = vmatpush3.bf16.msra.mxu0 %v9625_v5  ;;  %8173 = vmatpush3.bf16.msra.mxu1 %v9625_v5  ;;  %v9417_v8 = vld [vmem:[%s9638_s21 + $0xc0] sm:$0xff]   ;;  %v9419_v10 = vld [vmem:[%s9638_s21 + $0xc8] sm:$0xff]   ;;  %v9421_v13 = vld [vmem:[%s9638_s21 + $0xd0] sm:$0xff]   ;;  %11004 = vst [vmem:[#allocation2_spill] sm:$0xff] %v9838_v60  ;;  %s10854_s16 = scalar_lea.vmem %s10967_s3, %s9407_s11 }
  0x14   : > { %7996 = vmatprep.subr.bf16.mxu0 %v9628_v6  ;;  %8194 = vmatprep.subr.bf16.mxu1 %v9628_v6  ;;  %v9647_v9 = vld [vmem:[%s9638_s21 + $0x60] sm:$0xff]   ;;  %v9654_v11 = vld [vmem:[%s9638_s21 + $0x68] sm:$0xff]   ;;  %v9665_v14 = vld [vmem:[%s9638_s21 + $0x70] sm:$0xff]  }
  0x15   : > { %7976 = vmatprep.mubr.msk.bf16.mxu0 %vm266_vm2, %v9417_v8  ;;  %8174 = vmatprep.mubr.msk.bf16.mxu1 %vm266_vm2, %v9647_v9  ;;  %v9423_v15 = vld [vmem:[%s9638_s21 + $0xd8] sm:$0xff]   ;;  %v9425_v17 = vld [vmem:[%s9638_s21 + $0xe0] sm:$0xff]   ;;  %v9427_v19 = vld [vmem:[%s9638_s21 + $0xe8] sm:$0xff]  }
  0x16   : > { %7977 = vmatmul.mubr.msk.bf16.vlgmr.msra.gmra.mrb[0].mxu0 %vm266_vm2, %v9419_v10  ;;  %8175 = vmatmul.mubr.msk.bf16.vlgmr.msra.gmra.mrb[0].mxu1 %vm266_vm2, %v9654_v11  ;;  %v9674_v16 = vld [vmem:[%s9638_s21 + $0x78] sm:$0xff]   ;;  %v9679_v18 = vld [vmem:[%s9638_s21 + $0x80] sm:$0xff]   ;;  %v9689_v20 = vld [vmem:[%s9638_s21 + $0x88] sm:$0xff]  }
  0x17   : > { %7997 = vmatpush3.bf16.msra.mxu0 %v9628_v6  ;;  %8195 = vmatpush3.bf16.msra.mxu1 %v9628_v6  ;;  %v9429_v21 = vld [vmem:[%s9638_s21 + $0xf0] sm:$0xff]   ;;  %v9431_v23 = vld [vmem:[%s9638_s21 + $0xf8] sm:$0xff]   ;;  %v9433_v25 = vld [vmem:[%s9638_s21 + $0x100] sm:$0xff]  }
  0x18   : > { %7980 = vmatprep.mubr.msk.bf16.mxu0 %vm266_vm2, %v9421_v13  ;;  %8178 = vmatprep.mubr.msk.bf16.mxu1 %vm266_vm2, %v9665_v14  ;;  %v9693_v22 = vld [vmem:[%s9638_s21 + $0x90] sm:$0xff]   ;;  %v9703_v24 = vld [vmem:[%s9638_s21 + $0x98] sm:$0xff]   ;;  %v9707_v26 = vld [vmem:[%s9638_s21 + $0xa0] sm:$0xff]  }
  0x19   : > { %8018 = vmatprep.subr.bf16.mxu0 %v9657_v12  ;;  %8216 = vmatprep.subr.bf16.mxu1 %v9657_v12  ;;  %v9435_v27 = vld [vmem:[%s9638_s21 + $0x108] sm:$0xff]   ;;  %v9437_v29 = vld [vmem:[%s9638_s21] sm:$0xff]   ;;  %v9439_v32 = vld [vmem:[%s9638_s21 + $0x10] sm:$0xff]  }
  0x1a   : > { %v9717_v28 = vld [vmem:[%s9638_s21 + $0xa8] sm:$0xff]   ;;  %v9440_v34 = vld [vmem:[%s9638_s21 + $0x18] sm:$0xff]   ;;  %v9441_v35 = vld [vmem:[%s9638_s21 + $0x20] sm:$0xff]  }
  0x1b   : > { %v9438_v31 = vld [vmem:[%s9638_s21 + $0x8] sm:$0xff]   ;;  %v9443_v37 = vld [vmem:[%s9638_s21 + $0x30] sm:$0xff]   ;;  %v9444_v38 = vld [vmem:[%s9638_s21 + $0x38] sm:$0xff]  }
  0x1c   : > { %v9442_v36 = vld [vmem:[%s9638_s21 + $0x28] sm:$0xff]   ;;  %v9445_v39 = vld [vmem:[%s9638_s21 + $0x40] sm:$0xff]   ;;  %v9449_v44 = vld [vmem:[%s9638_s21 + $0x130] sm:$0xff]  }
  0x1d   : > { %v9446_v40 = vld [vmem:[%s9638_s21 + $0x48] sm:$0xff]   ;;  %v9447_v41 = vld [vmem:[%s9638_s21 + $0x120] sm:$0xff]   ;;  %v9450_v46 = vld [vmem:[%s9638_s21 + $0x138] sm:$0xff]  }
  0x1e   : > { %7981 = vmatmul.mubr.msk.bf16.gmra.mrb[4].mxu0 %vm266_vm2, %v9423_v15  ;;  %8179 = vmatmul.mubr.msk.bf16.gmra.mrb[4].mxu1 %vm266_vm2, %v9674_v16  ;;  %v9448_v43 = vld [vmem:[%s9638_s21 + $0x128] sm:$0xff]   ;;  %v9451_v47 = vld [vmem:[%s9638_s21 + $0x140] sm:$0xff]   ;;  %v9453_v49 = vld [vmem:[%s9638_s21 + $0x150] sm:$0xff]  }
  0x1f   : > { %7984 = vmatprep.mubr.msk.bf16.mxu0 %vm266_vm2, %v9425_v17  ;;  %8182 = vmatprep.mubr.msk.bf16.mxu1 %vm266_vm2, %v9679_v18  ;;  %v9452_v48 = vld [vmem:[%s9638_s21 + $0x148] sm:$0xff]   ;;  %v9454_v50 = vld [vmem:[%s9638_s21 + $0x158] sm:$0xff]   ;;  %v9455_v51 = vld [vmem:[%s9638_s21 + $0x160] sm:$0xff]  }
  0x20   : > { %v9456_v52 = vld [vmem:[%s9638_s21 + $0x168] sm:$0xff]   ;;  %v9810_v53 = vld [vmem:[%s9638_s21 + $0x180] sm:$0xff]   ;;  %v9832_v58 = vld [vmem:[%s9638_s21 + $0x190] sm:$0xff]  }
  0x21   : > { %v9813_v54 = vld [vmem:[%s9638_s21 + $0x240] sm:$0xff]   ;;  %v9823_v55 = vld [vmem:[%s9638_s21 + $0x188] sm:$0xff]   ;;  %v9835_v59 = vld [vmem:[%s9638_s21 + $0x250] sm:$0xff]  }
  0x22   : > { %v9826_v56 = vld [vmem:[%s9638_s21 + $0x248] sm:$0xff]   ;;  %v9849_v61 = vld [vmem:[%s9638_s21 + $0x198] sm:$0xff]   ;;  %v9857_v63 = vld [vmem:[%s9638_s21 + $0x1a0] sm:$0xff]  }
  0x23   : > { %v9854_v62 = vld [vmem:[%s9638_s21 + $0x258] sm:$0xff]   ;;  %v9861_v0 = vld [vmem:[%s9638_s21 + $0x260] sm:$0xff]   ;;  %v9873_v1 = vld [vmem:[%s9638_s21 + $0x1a8] sm:$0xff]  }
  0x24   : > { %v9876_v2 = vld [vmem:[%s9638_s21 + $0x268] sm:$0xff]   ;;  %v9879_v3 = vld [vmem:[%s9638_s21 + $0x1b0] sm:$0xff]  }
  0x25   : > { %v9882_v7 = vld [vmem:[%s9638_s21 + $0x270] sm:$0xff]  }
  0x26   : > { %7985 = vmatmul.mubr.msk.bf16.gmra.mrb[8].mxu0 %vm266_vm2, %v9427_v19  ;;  %8183 = vmatmul.mubr.msk.bf16.gmra.mrb[8].mxu1 %vm266_vm2, %v9689_v20  ;;  %v10016_v30 = vld [vmem:[%s9638_s21 + $0x2b0] sm:$0xff]  }
  0x27   : > { %7988 = vmatprep.mubr.msk.bf16.mxu0 %vm266_vm2, %v9429_v21  ;;  %8186 = vmatprep.mubr.msk.bf16.mxu1 %vm266_vm2, %v9693_v22  ;;  %v10093_v42 = vld [vmem:[%s9638_s21 + $0x10] sm:$0xff]  }
  0x28   : > { %v10146_v57 = vld [vmem:[%s9638_s21 + $0xf0] sm:$0xff]  }
  0x29   : > { %11014 = vst [vmem:[#allocation12_spill] sm:$0xff] %v10146_v57 }
  0x2e   : > { %7989 = vmatmul.mubr.msk.bf16.gmra.mrb[12].mxu0 %vm266_vm2, %v9431_v23  ;;  %8187 = vmatmul.mubr.msk.bf16.gmra.mrb[12].mxu1 %vm266_vm2, %v9703_v24 }
  0x2f   : > { %7992 = vmatprep.mubr.msk.bf16.mxu0 %vm266_vm2, %v9433_v25  ;;  %8190 = vmatprep.mubr.msk.bf16.mxu1 %vm266_vm2, %v9707_v26 }
  0x36   : > { %7993 = vmatmul.mubr.msk.bf16.gmra.mrb[16].mxu0 %vm266_vm2, %v9435_v27  ;;  %8191 = vmatmul.mubr.msk.bf16.gmra.mrb[16].mxu1 %vm266_vm2, %v9717_v28 }
  0x37   : > { %7998 = vmatprep.mubr.msk.bf16.mxu0 %vm266_vm2, %v9437_v29  ;;  %8196 = vmatprep.mubr.msk.bf16.mxu1 %vm266_vm2, %v9417_v8  ;;  %v9893_v8 = vld [vmem:[%s9638_s21 + $0x1b8] sm:$0xff]   ;;  %v10013_v29 = vld [vmem:[%s9638_s21 + $0x2a8] sm:$0xff]  }
  0x3e   : > { %7999 = vmatmul.mubr.msk.bf16.vlgmr.msra.gmra.mrb[0].mxu0 %vm266_vm2, %v9438_v31  ;;  %8197 = vmatmul.mubr.msk.bf16.vlgmr.msra.gmra.mrb[0].mxu1 %vm266_vm2, %v9419_v10  ;;  %v9899_v10 = vld [vmem:[%s9638_s21 + $0x1c0] sm:$0xff]  }
  0x3f   : > { %8019 = vmatpush3.bf16.msra.mxu0 %v9657_v12  ;;  %8217 = vmatpush3.bf16.msra.mxu1 %v9657_v12 }
  0x40   : > { %8002 = vmatprep.mubr.msk.bf16.mxu0 %vm266_vm2, %v9439_v32  ;;  %8200 = vmatprep.mubr.msk.bf16.mxu1 %vm266_vm2, %v9421_v13  ;;  %v9913_v13 = vld [vmem:[%s9638_s21 + $0x1c8] sm:$0xff]   ;;  %v10034_v32 = vld [vmem:[%s9638_s21 + $0x2b8] sm:$0xff]  }
  0x41   : > { %8040 = vmatprep.subr.bf16.mxu0 %v9731_v33  ;;  %8238 = vmatprep.subr.bf16.mxu1 %v9731_v33 }
  0x46   : > { %8003 = vmatmul.mubr.msk.bf16.gmra.mrb[4].mxu0 %vm266_vm2, %v9440_v34  ;;  %8201 = vmatmul.mubr.msk.bf16.gmra.mrb[4].mxu1 %vm266_vm2, %v9423_v15  ;;  %v9919_v15 = vld [vmem:[%s9638_s21 + $0x1e0] sm:$0xff]  }
  0x47   : > { %8006 = vmatprep.mubr.msk.bf16.mxu0 %vm266_vm2, %v9441_v35  ;;  %8204 = vmatprep.mubr.msk.bf16.mxu1 %vm266_vm2, %v9425_v17  ;;  %v9933_v17 = vld [vmem:[%s9638_s21 + $0x1e8] sm:$0xff]   ;;  %v10037_v34 = vld [vmem:[%s9638_s21 + $0x2c0] sm:$0xff]  }
  0x48   : > { %v10048_v35 = vld [vmem:[%s9638_s21 + $0x2c8] sm:$0xff]  }
  0x4e   : > { %8007 = vmatmul.mubr.msk.bf16.gmra.mrb[8].mxu0 %vm266_vm2, %v9442_v36  ;;  %8205 = vmatmul.mubr.msk.bf16.gmra.mrb[8].mxu1 %vm266_vm2, %v9427_v19  ;;  %v10051_v36 = vld [vmem:[%s9638_s21 + $0x2d0] sm:$0xff]  }
  0x4f   : > { %8010 = vmatprep.mubr.msk.bf16.mxu0 %vm266_vm2, %v9443_v37  ;;  %8208 = vmatprep.mubr.msk.bf16.mxu1 %vm266_vm2, %v9429_v21  ;;  %v9957_v21 = vld [vmem:[%s9638_s21 + $0x200] sm:$0xff]   ;;  %v10062_v37 = vld [vmem:[%s9638_s21 + $0x2d8] sm:$0xff]  }
  0x56   : > { %8011 = vmatmul.mubr.msk.bf16.gmra.mrb[12].mxu0 %vm266_vm2, %v9444_v38  ;;  %8209 = vmatmul.mubr.msk.bf16.gmra.mrb[12].mxu1 %vm266_vm2, %v9431_v23  ;;  %v9971_v23 = vld [vmem:[%s9638_s21 + $0x210] sm:$0xff]   ;;  %v10065_v38 = vld [vmem:[%s9638_s21 + $0x2e0] sm:$0xff]  }
  0x57   : > { %8014 = vmatprep.mubr.msk.bf16.mxu0 %vm266_vm2, %v9445_v39  ;;  %8212 = vmatprep.mubr.msk.bf16.mxu1 %vm266_vm2, %v9433_v25  ;;  %v9985_v25 = vld [vmem:[%s9638_s21 + $0x220] sm:$0xff]   ;;  %v10076_v39 = vld [vmem:[%s9638_s21 + $0x2e8] sm:$0xff]  }
  0x5e   : > { %8015 = vmatmul.mubr.msk.bf16.gmra.mrb[16].mxu0 %vm266_vm2, %v9446_v40  ;;  %8213 = vmatmul.mubr.msk.bf16.gmra.mrb[16].mxu1 %vm266_vm2, %v9435_v27  ;;  %v9999_v27 = vld [vmem:[%s9638_s21 + $0x2a0] sm:$0xff]   ;;  %v10079_v40 = vld [vmem:[%s9638_s21 + $0x8] sm:$0xff]  }
  0x5f   : > { %8020 = vmatprep.mubr.msk.bf16.mxu0 %vm266_vm2, %v9647_v9  ;;  %8218 = vmatprep.mubr.msk.bf16.mxu1 %vm266_vm2, %v9447_v41  ;;  %v9896_v9 = vld [vmem:[%s9638_s21 + $0x278] sm:$0xff]   ;;  %v10082_v41 = vld [vmem:[%s9638_s21 + $0xc8] sm:$0xff]  }
  0x66   : > { %8021 = vmatmul.mubr.msk.bf16.vlgmr.msra.gmra.mrb[0].mxu0 %vm266_vm2, %v9654_v11  ;;  %8219 = vmatmul.mubr.msk.bf16.vlgmr.msra.gmra.mrb[0].mxu1 %vm266_vm2, %v9448_v43  ;;  %v9902_v11 = vld [vmem:[%s9638_s21 + $0x280] sm:$0xff]   ;;  %v7034_v43 = vld [vmem:[%s10965_s1 + $0x10] sm:$0x3] }
  0x67   : > { %8041 = vmatpush3.bf16.msra.mxu0 %v9731_v33  ;;  %8239 = vmatpush3.bf16.msra.mxu1 %v9731_v33 }
  0x68   : > { %8024 = vmatprep.mubr.msk.bf16.mxu0 %vm266_vm2, %v9665_v14  ;;  %8222 = vmatprep.mubr.msk.bf16.mxu1 %vm266_vm2, %v9449_v44  ;;  %v9916_v14 = vld [vmem:[%s9638_s21 + $0x288] sm:$0xff]   ;;  %v10099_v44 = vld [vmem:[%s9638_s21 + $0xd0] sm:$0xff]  }
  0x69   : > { %8062 = vmatprep.subr.bf16.mxu0 %v9772_v45  ;;  %8260 = vmatprep.subr.bf16.mxu1 %v9772_v45 }
  0x6e   : > { %8025 = vmatmul.mubr.msk.bf16.gmra.mrb[4].mxu0 %vm266_vm2, %v9674_v16  ;;  %8223 = vmatmul.mubr.msk.bf16.gmra.mrb[4].mxu1 %vm266_vm2, %v9450_v46  ;;  %v6952_v16 = vld [vmem:[%s10965_s1 + $0xc] sm:$0x3]  ;;  %v10102_v46 = vld [vmem:[%s9638_s21 + $0x18] sm:$0xff]  }
  0x6f   : > { %8028 = vmatprep.mubr.msk.bf16.mxu0 %vm266_vm2, %v9679_v18  ;;  %8226 = vmatprep.mubr.msk.bf16.mxu1 %vm266_vm2, %v9451_v47  ;;  %v9936_v18 = vld [vmem:[%s9638_s21 + $0x1f0] sm:$0xff]   ;;  %v9939_v19 = vand.u32 %v6952_v16, %v9620_v4  ;;  %v10105_v47 = vld [vmem:[%s9638_s21 + $0xd8] sm:$0xff]  }
  0x70   : > { %11007 = vst [vmem:[#allocation5_spill] sm:$0xff] %v10105_v47  ;;  %v10149_v16 = vld [vmem:[%s9638_s21 + $0x38] sm:$0xff]  }
  0x71   : > { %11005 = vst [vmem:[#allocation3_spill] sm:$0xff] %v9939_v19  ;;  %11015 = vst [vmem:[#allocation13_spill] sm:$0xff] %v10149_v16 }
  0x76   : > { %8029 = vmatmul.mubr.msk.bf16.gmra.mrb[8].mxu0 %vm266_vm2, %v9689_v20  ;;  %8227 = vmatmul.mubr.msk.bf16.gmra.mrb[8].mxu1 %vm266_vm2, %v9452_v48  ;;  %v9954_v20 = vld [vmem:[%s9638_s21 + $0x1f8] sm:$0xff]   ;;  %v10108_v48 = vand.u32 %v7034_v43, %v9620_v4  ;;  %v10163_v43 = vld [vmem:[%s9638_s21 + $0x40] sm:$0xff]  }
  0x77   : > { %8032 = vmatprep.mubr.msk.bf16.mxu0 %vm266_vm2, %v9693_v22  ;;  %8230 = vmatprep.mubr.msk.bf16.mxu1 %vm266_vm2, %v9453_v49  ;;  %v9968_v22 = vld [vmem:[%s9638_s21 + $0x208] sm:$0xff]   ;;  %v10126_v49 = vld [vmem:[%s9638_s21 + $0xe0] sm:$0xff]   ;;  %11017 = vst [vmem:[#allocation15_spill] sm:$0xff] %v10163_v43 }
  0x78   : > { %11008 = vst [vmem:[#allocation6_spill] sm:$0xff] %v10108_v48  ;;  %11010 = vst [vmem:[#allocation8_spill] sm:$0xff] %v10126_v49 }
  0x7e   : > { %8033 = vmatmul.mubr.msk.bf16.gmra.mrb[12].mxu0 %vm266_vm2, %v9703_v24  ;;  %8231 = vmatmul.mubr.msk.bf16.gmra.mrb[12].mxu1 %vm266_vm2, %v9454_v50  ;;  %v9982_v24 = vld [vmem:[%s9638_s21 + $0x218] sm:$0xff]   ;;  %v10129_v50 = vld [vmem:[%s9638_s21 + $0x28] sm:$0xff]  }
  0x7f   : > { %8036 = vmatprep.mubr.msk.bf16.mxu0 %vm266_vm2, %v9707_v26  ;;  %8234 = vmatprep.mubr.msk.bf16.mxu1 %vm266_vm2, %v9455_v51  ;;  %v9996_v26 = vld [vmem:[%s9638_s21 + $0x228] sm:$0xff]   ;;  %11011 = vst [vmem:[#allocation9_spill] sm:$0xff] %v10129_v50 }
  0x80   : > { %v10132_v51 = vld [vmem:[%s9638_s21 + $0xe8] sm:$0xff]  }
  0x81   : > { %11012 = vst [vmem:[#allocation10_spill] sm:$0xff] %v10132_v51 }
  0x86   : > { %8037 = vmatmul.mubr.msk.bf16.gmra.mrb[16].mxu0 %vm266_vm2, %v9717_v28  ;;  %8235 = vmatmul.mubr.msk.bf16.gmra.mrb[16].mxu1 %vm266_vm2, %v9456_v52  ;;  %v6993_v28 = vld [vmem:[%s10965_s1 + $0xe] sm:$0x3]  ;;  %v10143_v52 = vld [vmem:[%s9638_s21 + $0x30] sm:$0xff]  }
  0x87   : > { %8042 = vmatprep.mubr.msk.bf16.mxu0 %vm266_vm2, %v9810_v53  ;;  %8240 = vmatprep.mubr.msk.bf16.mxu1 %vm266_vm2, %v9813_v54  ;;  %v10019_v31 = vand.u32 %v6993_v28, %v9620_v4  ;;  %v10122_v4 = vld [vmem:[%s9638_s21 + $0x20] sm:$0xff]   ;;  %11013 = vst [vmem:[#allocation11_spill] sm:$0xff] %v10143_v52  ;;  %v10152_v28 = vld [vmem:[%s9638_s21 + $0xf8] sm:$0xff]  }
  0x88   : > { %11009 = vst [vmem:[#allocation7_spill] sm:$0xff] %v10122_v4  ;;  %11016 = vst [vmem:[#allocation14_spill] sm:$0xff] %v10152_v28 }
  0x89   : > { %11006 = vst [vmem:[#allocation4_spill] sm:$0xff] %v10019_v31 }
  0x8e   : > { %8043 = vmatmul.mubr.msk.bf16.vlgmr.msra.gmra.mrb[0].mxu0 %vm266_vm2, %v9823_v55  ;;  %8241 = vmatmul.mubr.msk.bf16.vlgmr.msra.gmra.mrb[0].mxu1 %vm266_vm2, %v9826_v56 }
  0x8f   : > { %8063 = vmatpush3.bf16.msra.mxu0 %v9772_v45  ;;  %8261 = vmatpush3.bf16.msra.mxu1 %v9772_v45 }
  0x90   : > { %8046 = vmatprep.mubr.msk.bf16.mxu0 %vm266_vm2, %v9832_v58  ;;  %8244 = vmatprep.mubr.msk.bf16.mxu1 %vm266_vm2, %v9835_v59 }
  0x91   : > { %8084 = vmatprep.subr.bf16.mxu0 %v9838_v60  ;;  %8282 = vmatprep.subr.bf16.mxu1 %v9838_v60 }
  0x96   : > { %8047 = vmatmul.mubr.msk.bf16.gmra.mrb[4].mxu0 %vm266_vm2, %v9849_v61  ;;  %8245 = vmatmul.mubr.msk.bf16.gmra.mrb[4].mxu1 %vm266_vm2, %v9854_v62 }
  0x97   : > { %8050 = vmatprep.mubr.msk.bf16.mxu0 %vm266_vm2, %v9857_v63  ;;  %8248 = vmatprep.mubr.msk.bf16.mxu1 %vm266_vm2, %v9861_v0 }
  0x9e   : > { %8051 = vmatmul.mubr.msk.bf16.gmra.mrb[8].mxu0 %vm266_vm2, %v9873_v1  ;;  %8249 = vmatmul.mubr.msk.bf16.gmra.mrb[8].mxu1 %vm266_vm2, %v9876_v2 }
  0x9f   : > { %8054 = vmatprep.mubr.msk.bf16.mxu0 %vm266_vm2, %v9879_v3  ;;  %8252 = vmatprep.mubr.msk.bf16.mxu1 %vm266_vm2, %v9882_v7 }
  0xa6   : > { %8055 = vmatmul.mubr.msk.bf16.gmra.mrb[12].mxu0 %vm266_vm2, %v9893_v8  ;;  %8253 = vmatmul.mubr.msk.bf16.gmra.mrb[12].mxu1 %vm266_vm2, %v9896_v9 }
  0xa7   : > { %8058 = vmatprep.mubr.msk.bf16.mxu0 %vm266_vm2, %v9899_v10  ;;  %8256 = vmatprep.mubr.msk.bf16.mxu1 %vm266_vm2, %v9902_v11 }
  0xae   : > { %8059 = vmatmul.mubr.msk.bf16.gmra.mrb[16].mxu0 %vm266_vm2, %v9913_v13  ;;  %8257 = vmatmul.mubr.msk.bf16.gmra.mrb[16].mxu1 %vm266_vm2, %v9916_v14 }
  0xaf   : > { %8064 = vmatprep.mubr.msk.bf16.mxu0 %vm266_vm2, %v9813_v54  ;;  %8262 = vmatprep.mubr.msk.bf16.mxu1 %vm266_vm2, %v9919_v15 }
  0xb6   : > { %8065 = vmatmul.mubr.msk.bf16.vlgmr.msra.gmra.mrb[0].mxu0 %vm266_vm2, %v9826_v56  ;;  %8263 = vmatmul.mubr.msk.bf16.vlgmr.msra.gmra.mrb[0].mxu1 %vm266_vm2, %v9933_v17 }
  0xb7   : > { %8085 = vmatpush3.bf16.msra.mxu0 %v9838_v60  ;;  %8283 = vmatpush3.bf16.msra.mxu1 %v9838_v60  ;;  %v10221_v60 = vld [vmem:[%s9638_s21 + $0x88] sm:$0xff]  }
  0xb8   : > { %8068 = vmatprep.mubr.msk.bf16.mxu0 %vm266_vm2, %v9835_v59  ;;  %8266 = vmatprep.mubr.msk.bf16.mxu1 %vm266_vm2, %v9936_v18 }
  0xb9   : > { %8106 = vmatprep.subr.bf16.mxu0 %v9939_v19  ;;  %8304 = vmatprep.subr.bf16.mxu1 %v9939_v19 }
  0xbe   : > { %8069 = vmatmul.mubr.msk.bf16.gmra.mrb[4].mxu0 %vm266_vm2, %v9854_v62  ;;  %8267 = vmatmul.mubr.msk.bf16.gmra.mrb[4].mxu1 %vm266_vm2, %v9954_v20 }
  0xbf   : > { %8072 = vmatprep.mubr.msk.bf16.mxu0 %vm266_vm2, %v9861_v0  ;;  %8270 = vmatprep.mubr.msk.bf16.mxu1 %vm266_vm2, %v9957_v21 }
  0xc6   : > { %8073 = vmatmul.mubr.msk.bf16.gmra.mrb[8].mxu0 %vm266_vm2, %v9876_v2  ;;  %8271 = vmatmul.mubr.msk.bf16.gmra.mrb[8].mxu1 %vm266_vm2, %v9968_v22 }
  0xc7   : > { %8076 = vmatprep.mubr.msk.bf16.mxu0 %vm266_vm2, %v9882_v7  ;;  %8274 = vmatprep.mubr.msk.bf16.mxu1 %vm266_vm2, %v9971_v23 }
  0xce   : > { %8077 = vmatmul.mubr.msk.bf16.gmra.mrb[12].mxu0 %vm266_vm2, %v9896_v9  ;;  %8275 = vmatmul.mubr.msk.bf16.gmra.mrb[12].mxu1 %vm266_vm2, %v9982_v24 }
  0xcf   : > { %8080 = vmatprep.mubr.msk.bf16.mxu0 %vm266_vm2, %v9902_v11  ;;  %8278 = vmatprep.mubr.msk.bf16.mxu1 %vm266_vm2, %v9985_v25 }
  0xd6   : > { %8081 = vmatmul.mubr.msk.bf16.gmra.mrb[16].mxu0 %vm266_vm2, %v9916_v14  ;;  %8279 = vmatmul.mubr.msk.bf16.gmra.mrb[16].mxu1 %vm266_vm2, %v9996_v26 }
  0xd7   : > { %8086 = vmatprep.mubr.msk.bf16.mxu0 %vm266_vm2, %v9919_v15  ;;  %8284 = vmatprep.mubr.msk.bf16.mxu1 %vm266_vm2, %v9999_v27 }
  0xde   : > { %8087 = vmatmul.mubr.msk.bf16.vlgmr.msra.gmra.mrb[0].mxu0 %vm266_vm2, %v9933_v17  ;;  %8285 = vmatmul.mubr.msk.bf16.vlgmr.msra.gmra.mrb[0].mxu1 %vm266_vm2, %v10013_v29 }
  0xdf   : > { %8107 = vmatpush3.bf16.msra.mxu0 %v9939_v19  ;;  %8305 = vmatpush3.bf16.msra.mxu1 %v9939_v19  ;;  %v10169_v19 = vld [vmem:[%s9638_s21 + $0x48] sm:$0xff]  }
  0xe0   : > { %8090 = vmatprep.mubr.msk.bf16.mxu0 %vm266_vm2, %v9936_v18  ;;  %8288 = vmatprep.mubr.msk.bf16.mxu1 %vm266_vm2, %v10016_v30  ;;  %11019 = vst [vmem:[#allocation17_spill] sm:$0xff] %v10169_v19 }
  0xe1   : > { %8128 = vmatprep.subr.bf16.mxu0 %v10019_v31  ;;  %8326 = vmatprep.subr.bf16.mxu1 %v10019_v31 }
  0xe6   : > { %8091 = vmatmul.mubr.msk.bf16.gmra.mrb[4].mxu0 %vm266_vm2, %v9954_v20  ;;  %8289 = vmatmul.mubr.msk.bf16.gmra.mrb[4].mxu1 %vm266_vm2, %v10034_v32 }
  0xe7   : > { %8094 = vmatprep.mubr.msk.bf16.mxu0 %vm266_vm2, %v9957_v21  ;;  %8292 = vmatprep.mubr.msk.bf16.mxu1 %vm266_vm2, %v10037_v34 }
  0xee   : > { %8095 = vmatmul.mubr.msk.bf16.gmra.mrb[8].mxu0 %vm266_vm2, %v9968_v22  ;;  %8293 = vmatmul.mubr.msk.bf16.gmra.mrb[8].mxu1 %vm266_vm2, %v10048_v35 }
  0xef   : > { %8098 = vmatprep.mubr.msk.bf16.mxu0 %vm266_vm2, %v9971_v23  ;;  %8296 = vmatprep.mubr.msk.bf16.mxu1 %vm266_vm2, %v10051_v36 }
  0xf6   : > { %8099 = vmatmul.mubr.msk.bf16.gmra.mrb[12].mxu0 %vm266_vm2, %v9982_v24  ;;  %8297 = vmatmul.mubr.msk.bf16.gmra.mrb[12].mxu1 %vm266_vm2, %v10062_v37 }
  0xf7   : > { %8102 = vmatprep.mubr.msk.bf16.mxu0 %vm266_vm2, %v9985_v25  ;;  %8300 = vmatprep.mubr.msk.bf16.mxu1 %vm266_vm2, %v10065_v38 }
  0xfe   : > { %8103 = vmatmul.mubr.msk.bf16.gmra.mrb[16].mxu0 %vm266_vm2, %v9996_v26  ;;  %8301 = vmatmul.mubr.msk.bf16.gmra.mrb[16].mxu1 %vm266_vm2, %v10076_v39 }
  0xff   : > { %8108 = vmatprep.mubr.msk.bf16.mxu0 %vm266_vm2, %v10079_v40  ;;  %8306 = vmatprep.mubr.msk.bf16.mxu1 %vm266_vm2, %v10082_v41 }
 0x106   : > { %8109 = vmatmul.mubr.msk.bf16.vlgmr.msra.gmra.mrb[0].mxu0 %vm266_vm2, %v10093_v42  ;;  %8307 = vmatmul.mubr.msk.bf16.vlgmr.msra.gmra.mrb[0].mxu1 %vm266_vm2, %v10099_v44 }
 0x107   : > { %8129 = vmatpush3.bf16.msra.mxu0 %v10019_v31  ;;  %8327 = vmatpush3.bf16.msra.mxu1 %v10019_v31  ;;  %v10166_v31 = vld [vmem:[%s9638_s21 + $0x100] sm:$0xff]  }
 0x108   : > { %8112 = vmatprep.mubr.msk.bf16.mxu0 %vm266_vm2, %v10102_v46  ;;  %8310 = vmatprep.mubr.msk.bf16.mxu1 %vm266_vm2, %v10105_v47  ;;  %11018 = vst [vmem:[#allocation16_spill] sm:$0xff] %v10166_v31 }
 0x109   : > { %8150 = vmatprep.subr.bf16.mxu0 %v10108_v48  ;;  %8348 = vmatprep.subr.bf16.mxu1 %v10108_v48 }
 0x10e   : > { %8113 = vmatmul.mubr.msk.bf16.gmra.mrb[4].mxu0 %vm266_vm2, %v10122_v4  ;;  %8311 = vmatmul.mubr.msk.bf16.gmra.mrb[4].mxu1 %vm266_vm2, %v10126_v49  ;;  %v10189_v4 = vld [vmem:[%s9638_s21 + $0x68] sm:$0xff]  }
 0x10f   : > { %8116 = vmatprep.mubr.msk.bf16.mxu0 %vm266_vm2, %v10129_v50  ;;  %8314 = vmatprep.mubr.msk.bf16.mxu1 %vm266_vm2, %v10132_v51  ;;  %v10172_v50 = vld [vmem:[%s9638_s21 + $0x108] sm:$0xff]  }
 0x110   : > { %11020 = vst [vmem:[#allocation18_spill] sm:$0xff] %v10172_v50 }
 0x116   : > { %8117 = vmatmul.mubr.msk.bf16.gmra.mrb[8].mxu0 %vm266_vm2, %v10143_v52  ;;  %8315 = vmatmul.mubr.msk.bf16.gmra.mrb[8].mxu1 %vm266_vm2, %v10146_v57  ;;  %v10186_v52 = vld [vmem:[%s9638_s21 + $0x110] sm:$0xff]  }
 0x117   : > { %8120 = vmatprep.mubr.msk.bf16.mxu0 %vm266_vm2, %v10149_v16  ;;  %8318 = vmatprep.mubr.msk.bf16.mxu1 %vm266_vm2, %v10152_v28  ;;  %v10183_v16 = vld [vmem:[%s9638_s21 + $0x50] sm:$0xff]  }
 0x118   : > { %11021 = vst [vmem:[#allocation19_spill] sm:$0xff] %v10183_v16 }
 0x11e   : > { %8121 = vmatmul.mubr.msk.bf16.gmra.mrb[12].mxu0 %vm266_vm2, %v10163_v43  ;;  %8319 = vmatmul.mubr.msk.bf16.gmra.mrb[12].mxu1 %vm266_vm2, %v10166_v31  ;;  %v10203_v43 = vld [vmem:[%s9638_s21 + $0x78] sm:$0xff]  }
 0x11f   : > { %8124 = vmatprep.mubr.msk.bf16.mxu0 %vm266_vm2, %v10169_v19  ;;  %8322 = vmatprep.mubr.msk.bf16.mxu1 %vm266_vm2, %v10172_v50  ;;  %v10200_v19 = vld [vmem:[%s9638_s21 + $0x70] sm:$0xff]  }
 0x120   : > { %11022 = vst [vmem:[#allocation20_spill] sm:$0xff] %v10200_v19 }
 0x126   : > { %8125 = vmatmul.mubr.msk.bf16.gmra.mrb[16].mxu0 %vm266_vm2, %v10183_v16  ;;  %8323 = vmatmul.mubr.msk.bf16.gmra.mrb[16].mxu1 %vm266_vm2, %v10186_v52  ;;  %v10218_v16 = vld [vmem:[%s9638_s21 + $0x80] sm:$0xff]  }
 0x127   : > { %8130 = vmatprep.mubr.msk.bf16.mxu0 %vm266_vm2, %v10082_v41  ;;  %8328 = vmatprep.mubr.msk.bf16.mxu1 %vm266_vm2, %v10189_v4 }
 0x12e   : > { %8131 = vmatmul.mubr.msk.bf16.vlgmr.msra.gmra.mrb[0].mxu0 %vm266_vm2, %v10099_v44  ;;  %8329 = vmatmul.mubr.msk.bf16.vlgmr.msra.gmra.mrb[0].mxu1 %vm266_vm2, %v10200_v19 }
 0x12f   : > { %8151 = vmatpush3.bf16.msra.mxu0 %v10108_v48  ;;  %8349 = vmatpush3.bf16.msra.mxu1 %v10108_v48  ;;  %v10232_v48 = vld [vmem:[%s9638_s21 + $0x90] sm:$0xff]  }
 0x130   : > { %8134 = vmatprep.mubr.msk.bf16.mxu0 %vm266_vm2, %v10105_v47  ;;  %8332 = vmatprep.mubr.msk.bf16.mxu1 %vm266_vm2, %v10203_v43  ;;  %v10235_v47 = vld [vmem:[%s9638_s21 + $0x98] sm:$0xff]  }
 0x131   : > { %8370 = vmatprep.subr.bf16.mxu0 %v9625_v5  ;;  %8568 = vmatprep.subr.bf16.mxu1 %v9625_v5 }
 0x136   : > { %8135 = vmatmul.mubr.msk.bf16.gmra.mrb[4].mxu0 %vm266_vm2, %v10126_v49  ;;  %8333 = vmatmul.mubr.msk.bf16.gmra.mrb[4].mxu1 %vm266_vm2, %v10218_v16  ;;  %v10249_v49 = vld [vmem:[%s9638_s21 + $0xa8] sm:$0xff]  }
 0x137   : > { %8138 = vmatprep.mubr.msk.bf16.mxu0 %vm266_vm2, %v10132_v51  ;;  %8336 = vmatprep.mubr.msk.bf16.mxu1 %vm266_vm2, %v10221_v60  ;;  %v10246_v51 = vld [vmem:[%s9638_s21 + $0xa0] sm:$0xff]  }
 0x13e   : > { %8139 = vmatmul.mubr.msk.bf16.gmra.mrb[8].mxu0 %vm266_vm2, %v10146_v57  ;;  %8337 = vmatmul.mubr.msk.bf16.gmra.mrb[8].mxu1 %vm266_vm2, %v10232_v48  ;;  %v10263_v57 = vld [vmem:[%s9638_s21 + $0x128] sm:$0xff]  }
 0x13f   : > { %8142 = vmatprep.mubr.msk.bf16.mxu0 %vm266_vm2, %v10152_v28  ;;  %8340 = vmatprep.mubr.msk.bf16.mxu1 %vm266_vm2, %v10235_v47  ;;  %v10260_v28 = vld [vmem:[%s9638_s21 + $0xb0] sm:$0xff]   ;;  %11023 = vst [vmem:[#allocation21_spill] sm:$0xff] %v10263_v57 }
 0x146   : > { %8143 = vmatmul.mubr.msk.bf16.gmra.mrb[12].mxu0 %vm266_vm2, %v10166_v31  ;;  %8341 = vmatmul.mubr.msk.bf16.gmra.mrb[12].mxu1 %vm266_vm2, %v10246_v51  ;;  %v10277_v31 = vld [vmem:[%s9638_s21 + $0x138] sm:$0xff]  }
 0x147   : > { %8146 = vmatprep.mubr.msk.bf16.mxu0 %vm266_vm2, %v10172_v50  ;;  %8344 = vmatprep.mubr.msk.bf16.mxu1 %vm266_vm2, %v10249_v49  ;;  %v10274_v50 = vld [vmem:[%s9638_s21 + $0x130] sm:$0xff]   ;;  %11025 = vst [vmem:[#allocation23_spill] sm:$0xff] %v10277_v31 }
 0x148   : > { %11024 = vst [vmem:[#allocation22_spill] sm:$0xff] %v10274_v50 }
 0x14e   : > { %8147 = vmatmul.mubr.msk.bf16.gmra.mrb[16].mxu0 %vm266_vm2, %v10186_v52  ;;  %8345 = vmatmul.mubr.msk.bf16.gmra.mrb[16].mxu1 %vm266_vm2, %v10260_v28 }
 0x14f   : > { %8152 = vmatprep.mubr.msk.bf16.mxu0 %vm266_vm2, %v10189_v4  ;;  %8350 = vmatprep.mubr.msk.bf16.mxu1 %vm266_vm2, %v10263_v57  ;;  %v10292_v57 = vld [vmem:[%s9638_s21 + $0x140] sm:$0xff]  }
 0x150   : > { %11026 = vst [vmem:[#allocation24_spill] sm:$0xff] %v10292_v57 }
 0x156   : > { %8153 = vmatmul.mubr.msk.bf16.vlgmr.msra.gmra.mrb[0].mxu0 %vm266_vm2, %v10200_v19  ;;  %8351 = vmatmul.mubr.msk.bf16.vlgmr.msra.gmra.mrb[0].mxu1 %vm266_vm2, %v10274_v50  ;;  %v10295_v19 = vld [vmem:[%s9638_s21 + $0x148] sm:$0xff]  }
 0x157   : > { %8371 = vmatpush3.bf16.msra.mxu0 %v9625_v5  ;;  %8569 = vmatpush3.bf16.msra.mxu1 %v9625_v5  ;;  %v10306_v5 = vld [vmem:[%s9638_s21 + $0x150] sm:$0xff]   ;;  %v10323_v50 = vld [vmem:[%s9638_s21 + $0x168] sm:$0xff]  }
 0x158   : > { %8156 = vmatprep.mubr.msk.bf16.mxu0 %vm266_vm2, %v10203_v43  ;;  %8354 = vmatprep.mubr.msk.bf16.mxu1 %vm266_vm2, %v10277_v31  ;;  %11027 = vst [vmem:[#allocation25_spill] sm:$0xff] %v10306_v5  ;;  %v10309_v31 = vld [vmem:[%s9638_s21 + $0x158] sm:$0xff]  }
 0x159   : > { %8392 = vmatprep.subr.bf16.mxu0 %v9628_v6  ;;  %8590 = vmatprep.subr.bf16.mxu1 %v9628_v6 }
 0x15e   : > { %8157 = vmatmul.mubr.msk.bf16.gmra.mrb[4].mxu0 %vm266_vm2, %v10218_v16  ;;  %8355 = vmatmul.mubr.msk.bf16.gmra.mrb[4].mxu1 %vm266_vm2, %v10292_v57  ;;  %v10320_v57 = vld [vmem:[%s9638_s21 + $0x160] sm:$0xff]  }
 0x15f   : > { %8160 = vmatprep.mubr.msk.bf16.mxu0 %vm266_vm2, %v10221_v60  ;;  %8358 = vmatprep.mubr.msk.bf16.mxu1 %vm266_vm2, %v10295_v19 }
 0x166   : > { %8161 = vmatmul.mubr.msk.bf16.gmra.mrb[8].mxu0 %vm266_vm2, %v10232_v48  ;;  %8359 = vmatmul.mubr.msk.bf16.gmra.mrb[8].mxu1 %vm266_vm2, %v10306_v5  ;;  %v10334_v5 = vld [vmem:[%s9638_s21 + $0x170] sm:$0xff]  }
 0x167   : > { %8164 = vmatprep.mubr.msk.bf16.mxu0 %vm266_vm2, %v10235_v47  ;;  %8362 = vmatprep.mubr.msk.bf16.mxu1 %vm266_vm2, %v10309_v31 }
 0x16e   : > { %8165 = vmatmul.mubr.msk.bf16.gmra.mrb[12].mxu0 %vm266_vm2, %v10246_v51  ;;  %8363 = vmatmul.mubr.msk.bf16.gmra.mrb[12].mxu1 %vm266_vm2, %v10320_v57 }
 0x16f   : > { %8168 = vmatprep.mubr.msk.bf16.mxu0 %vm266_vm2, %v10249_v49  ;;  %8366 = vmatprep.mubr.msk.bf16.mxu1 %vm266_vm2, %v10323_v50 }
 0x176   : > { %8169 = vmatmul.mubr.msk.bf16.gmra.mrb[16].mxu0 %vm266_vm2, %v10260_v28  ;;  %8367 = vmatmul.mubr.msk.bf16.gmra.mrb[16].mxu1 %vm266_vm2, %v10334_v5 }
 0x177   : > { %8372 = vmatprep.mubr.msk.bf16.mxu0 %vm266_vm2, %v9813_v54  ;;  %8570 = vmatprep.mubr.msk.bf16.mxu1 %vm266_vm2, %v9919_v15 }
 0x17e   : > { %8373 = vmatmul.mubr.msk.bf16.vlgmr.msra.gmra.mrb[20].mxu0 %vm266_vm2, %v9826_v56  ;;  %8571 = vmatmul.mubr.msk.bf16.vlgmr.msra.gmra.mrb[20].mxu1 %vm266_vm2, %v9933_v17 }
 0x17f   : > { %8393 = vmatpush3.bf16.msra.mxu0 %v9628_v6  ;;  %8591 = vmatpush3.bf16.msra.mxu1 %v9628_v6  ;;  %v11028_v6 = vld [vmem:[#allocation5_spill] sm:$0xff] }
 0x180   : > { %8376 = vmatprep.mubr.msk.bf16.mxu0 %vm266_vm2, %v9835_v59  ;;  %8574 = vmatprep.mubr.msk.bf16.mxu1 %vm266_vm2, %v9936_v18 }
 0x181   : > { %8414 = vmatprep.subr.bf16.mxu0 %v9657_v12  ;;  %8612 = vmatprep.subr.bf16.mxu1 %v9657_v12 }
 0x186   : > { %8377 = vmatmul.mubr.msk.bf16.gmra.mrb[24].mxu0 %vm266_vm2, %v9854_v62  ;;  %8575 = vmatmul.mubr.msk.bf16.gmra.mrb[24].mxu1 %vm266_vm2, %v9954_v20 }
 0x187   : > { %8380 = vmatprep.mubr.msk.bf16.mxu0 %vm266_vm2, %v9861_v0  ;;  %8578 = vmatprep.mubr.msk.bf16.mxu1 %vm266_vm2, %v9957_v21 }
 0x18e   : > { %8381 = vmatmul.mubr.msk.bf16.gmra.mrb[28].mxu0 %vm266_vm2, %v9876_v2  ;;  %8579 = vmatmul.mubr.msk.bf16.gmra.mrb[28].mxu1 %vm266_vm2, %v9968_v22 }
 0x18f   : > { %8384 = vmatprep.mubr.msk.bf16.mxu0 %vm266_vm2, %v9882_v7  ;;  %8582 = vmatprep.mubr.msk.bf16.mxu1 %vm266_vm2, %v9971_v23 }
 0x196   : > { %8385 = vmatmul.mubr.msk.bf16.gmra.mrb[32].mxu0 %vm266_vm2, %v9896_v9  ;;  %8583 = vmatmul.mubr.msk.bf16.gmra.mrb[32].mxu1 %vm266_vm2, %v9982_v24 }
 0x197   : > { %8388 = vmatprep.mubr.msk.bf16.mxu0 %vm266_vm2, %v9902_v11  ;;  %8586 = vmatprep.mubr.msk.bf16.mxu1 %vm266_vm2, %v9985_v25 }
 0x19e   : > { %8389 = vmatmul.mubr.msk.bf16.gmra.mrb[36].mxu0 %vm266_vm2, %v9916_v14  ;;  %8587 = vmatmul.mubr.msk.bf16.gmra.mrb[36].mxu1 %vm266_vm2, %v9996_v26 }
 0x19f   : > { %8394 = vmatprep.mubr.msk.bf16.mxu0 %vm266_vm2, %v9810_v53  ;;  %8592 = vmatprep.mubr.msk.bf16.mxu1 %vm266_vm2, %v9813_v54  ;;  %v11031_v53 = vld [vmem:[#allocation8_spill] sm:$0xff]  ;;  %v11032_v54 = vld [vmem:[#allocation9_spill] sm:$0xff] }
 0x1a6   : > { %8395 = vmatmul.mubr.msk.bf16.vlgmr.msra.gmra.mrb[20].mxu0 %vm266_vm2, %v9823_v55  ;;  %8593 = vmatmul.mubr.msk.bf16.vlgmr.msra.gmra.mrb[20].mxu1 %vm266_vm2, %v9826_v56  ;;  %v11034_v55 = vld [vmem:[#allocation11_spill] sm:$0xff]  ;;  %v11035_v56 = vld [vmem:[#allocation12_spill] sm:$0xff] }
 0x1a7   : > { %8415 = vmatpush3.bf16.msra.mxu0 %v9657_v12  ;;  %8613 = vmatpush3.bf16.msra.mxu1 %v9657_v12  ;;  %v11029_v12 = vld [vmem:[#allocation2_spill] sm:$0xff] }
 0x1a8   : > { %8398 = vmatprep.mubr.msk.bf16.mxu0 %vm266_vm2, %v9832_v58  ;;  %8596 = vmatprep.mubr.msk.bf16.mxu1 %vm266_vm2, %v9835_v59  ;;  %v11036_v58 = vld [vmem:[#allocation13_spill] sm:$0xff]  ;;  %v11037_v59 = vld [vmem:[#allocation14_spill] sm:$0xff] }
 0x1a9   : > { %8436 = vmatprep.subr.bf16.mxu0 %v9731_v33  ;;  %8634 = vmatprep.subr.bf16.mxu1 %v9731_v33 }
 0x1ae   : > { %8399 = vmatmul.mubr.msk.bf16.gmra.mrb[24].mxu0 %vm266_vm2, %v9849_v61  ;;  %8597 = vmatmul.mubr.msk.bf16.gmra.mrb[24].mxu1 %vm266_vm2, %v9854_v62  ;;  %v11038_v61 = vld [vmem:[#allocation15_spill] sm:$0xff]  ;;  %v11039_v62 = vld [vmem:[#allocation16_spill] sm:$0xff] }
 0x1af   : > { %8402 = vmatprep.mubr.msk.bf16.mxu0 %vm266_vm2, %v9857_v63  ;;  %8600 = vmatprep.mubr.msk.bf16.mxu1 %vm266_vm2, %v9861_v0  ;;  %v11040_v63 = vld [vmem:[#allocation17_spill] sm:$0xff]  ;;  %v11041_v0 = vld [vmem:[#allocation18_spill] sm:$0xff] }
 0x1b6   : > { %8403 = vmatmul.mubr.msk.bf16.gmra.mrb[28].mxu0 %vm266_vm2, %v9873_v1  ;;  %8601 = vmatmul.mubr.msk.bf16.gmra.mrb[28].mxu1 %vm266_vm2, %v9876_v2  ;;  %v11042_v1 = vld [vmem:[#allocation19_spill] sm:$0xff]  ;;  %v11043_v2 = vld [vmem:[#allocation20_spill] sm:$0xff] }
 0x1b7   : > { %8406 = vmatprep.mubr.msk.bf16.mxu0 %vm266_vm2, %v9879_v3  ;;  %8604 = vmatprep.mubr.msk.bf16.mxu1 %vm266_vm2, %v9882_v7  ;;  %v11044_v3 = vld [vmem:[#allocation3_spill] sm:$0xff] }
 0x1be   : > { %8407 = vmatmul.mubr.msk.bf16.gmra.mrb[32].mxu0 %vm266_vm2, %v9893_v8  ;;  %8605 = vmatmul.mubr.msk.bf16.gmra.mrb[32].mxu1 %vm266_vm2, %v9896_v9 }
 0x1bf   : > { %8410 = vmatprep.mubr.msk.bf16.mxu0 %vm266_vm2, %v9899_v10  ;;  %8608 = vmatprep.mubr.msk.bf16.mxu1 %vm266_vm2, %v9902_v11 }
 0x1c6   : > { %8411 = vmatmul.mubr.msk.bf16.gmra.mrb[36].mxu0 %vm266_vm2, %v9913_v13  ;;  %8609 = vmatmul.mubr.msk.bf16.gmra.mrb[36].mxu1 %vm266_vm2, %v9916_v14 }
 0x1c7   : > { %8416 = vmatprep.mubr.msk.bf16.mxu0 %vm266_vm2, %v9919_v15  ;;  %8614 = vmatprep.mubr.msk.bf16.mxu1 %vm266_vm2, %v9999_v27 }
 0x1ce   : > { %8417 = vmatmul.mubr.msk.bf16.vlgmr.msra.gmra.mrb[20].mxu0 %vm266_vm2, %v9933_v17  ;;  %8615 = vmatmul.mubr.msk.bf16.vlgmr.msra.gmra.mrb[20].mxu1 %vm266_vm2, %v10013_v29 }
 0x1cf   : > { %8437 = vmatpush3.bf16.msra.mxu0 %v9731_v33  ;;  %8635 = vmatpush3.bf16.msra.mxu1 %v9731_v33  ;;  %v11030_v33 = vld [vmem:[#allocation7_spill] sm:$0xff] }
 0x1d0   : > { %8420 = vmatprep.mubr.msk.bf16.mxu0 %vm266_vm2, %v9936_v18  ;;  %8618 = vmatprep.mubr.msk.bf16.mxu1 %vm266_vm2, %v10016_v30 }
 0x1d1   : > { %8458 = vmatprep.subr.bf16.mxu0 %v9772_v45  ;;  %8656 = vmatprep.subr.bf16.mxu1 %v9772_v45 }
 0x1d6   : > { %8421 = vmatmul.mubr.msk.bf16.gmra.mrb[24].mxu0 %vm266_vm2, %v9954_v20  ;;  %8619 = vmatmul.mubr.msk.bf16.gmra.mrb[24].mxu1 %vm266_vm2, %v10034_v32 }
 0x1d7   : > { %8424 = vmatprep.mubr.msk.bf16.mxu0 %vm266_vm2, %v9957_v21  ;;  %8622 = vmatprep.mubr.msk.bf16.mxu1 %vm266_vm2, %v10037_v34 }
 0x1de   : > { %8425 = vmatmul.mubr.msk.bf16.gmra.mrb[28].mxu0 %vm266_vm2, %v9968_v22  ;;  %8623 = vmatmul.mubr.msk.bf16.gmra.mrb[28].mxu1 %vm266_vm2, %v10048_v35 }
 0x1df   : > { %8428 = vmatprep.mubr.msk.bf16.mxu0 %vm266_vm2, %v9971_v23  ;;  %8626 = vmatprep.mubr.msk.bf16.mxu1 %vm266_vm2, %v10051_v36  ;;  %v11049_v36 = vld [vmem:[#allocation24_spill] sm:$0xff] }
 0x1e6   : > { %8429 = vmatmul.mubr.msk.bf16.gmra.mrb[32].mxu0 %vm266_vm2, %v9982_v24  ;;  %8627 = vmatmul.mubr.msk.bf16.gmra.mrb[32].mxu1 %vm266_vm2, %v10062_v37 }
 0x1e7   : > { %8432 = vmatprep.mubr.msk.bf16.mxu0 %vm266_vm2, %v9985_v25  ;;  %8630 = vmatprep.mubr.msk.bf16.mxu1 %vm266_vm2, %v10065_v38 }
 0x1ee   : > { %8433 = vmatmul.mubr.msk.bf16.gmra.mrb[36].mxu0 %vm266_vm2, %v9996_v26  ;;  %8631 = vmatmul.mubr.msk.bf16.gmra.mrb[36].mxu1 %vm266_vm2, %v10076_v39 }
 0x1ef   : > { %8438 = vmatprep.mubr.msk.bf16.mxu0 %vm266_vm2, %v10079_v40  ;;  %8636 = vmatprep.mubr.msk.bf16.mxu1 %vm266_vm2, %v10082_v41 }
 0x1f6   : > { %8439 = vmatmul.mubr.msk.bf16.vlgmr.msra.gmra.mrb[20].mxu0 %vm266_vm2, %v10093_v42  ;;  %8637 = vmatmul.mubr.msk.bf16.vlgmr.msra.gmra.mrb[20].mxu1 %vm266_vm2, %v10099_v44 }
 0x1f7   : > { %8459 = vmatpush3.bf16.msra.mxu0 %v9772_v45  ;;  %8657 = vmatpush3.bf16.msra.mxu1 %v9772_v45  ;;  %v11033_v45 = vld [vmem:[#allocation10_spill] sm:$0xff] }
 0x1f8   : > { %8442 = vmatprep.mubr.msk.bf16.mxu0 %vm266_vm2, %v10102_v46  ;;  %8640 = vmatprep.mubr.msk.bf16.mxu1 %vm266_vm2, %v11028_v6 }
 0x1f9   : > { %8480 = vmatprep.subr.bf16.mxu0 %v11029_v12  ;;  %8678 = vmatprep.subr.bf16.mxu1 %v11029_v12 }
 0x1fe   : > { %8443 = vmatmul.mubr.msk.bf16.gmra.mrb[24].mxu0 %vm266_vm2, %v11030_v33  ;;  %8641 = vmatmul.mubr.msk.bf16.gmra.mrb[24].mxu1 %vm266_vm2, %v11031_v53 }
 0x1ff   : > { %8446 = vmatprep.mubr.msk.bf16.mxu0 %vm266_vm2, %v11032_v54  ;;  %8644 = vmatprep.mubr.msk.bf16.mxu1 %vm266_vm2, %v11033_v45  ;;  %v11045_v54 = vld [vmem:[#allocation21_spill] sm:$0xff] }
 0x206   : > { %8447 = vmatmul.mubr.msk.bf16.gmra.mrb[28].mxu0 %vm266_vm2, %v11034_v55  ;;  %8645 = vmatmul.mubr.msk.bf16.gmra.mrb[28].mxu1 %vm266_vm2, %v11035_v56 }
 0x207   : > { %8450 = vmatprep.mubr.msk.bf16.mxu0 %vm266_vm2, %v11036_v58  ;;  %8648 = vmatprep.mubr.msk.bf16.mxu1 %vm266_vm2, %v11037_v59  ;;  %v11048_v58 = vld [vmem:[#allocation4_spill] sm:$0xff] }
 0x20e   : > { %8451 = vmatmul.mubr.msk.bf16.gmra.mrb[32].mxu0 %vm266_vm2, %v11038_v61  ;;  %8649 = vmatmul.mubr.msk.bf16.gmra.mrb[32].mxu1 %vm266_vm2, %v11039_v62 }
 0x20f   : > { %8454 = vmatprep.mubr.msk.bf16.mxu0 %vm266_vm2, %v11040_v63  ;;  %8652 = vmatprep.mubr.msk.bf16.mxu1 %vm266_vm2, %v11041_v0  ;;  %v11047_v63 = vld [vmem:[#allocation23_spill] sm:$0xff] }
 0x216   : > { %8455 = vmatmul.mubr.msk.bf16.gmra.mrb[36].mxu0 %vm266_vm2, %v11042_v1  ;;  %8653 = vmatmul.mubr.msk.bf16.gmra.mrb[36].mxu1 %vm266_vm2, %v10186_v52 }
 0x217   : > { %8460 = vmatprep.mubr.msk.bf16.mxu0 %vm266_vm2, %v10082_v41  ;;  %8658 = vmatprep.mubr.msk.bf16.mxu1 %vm266_vm2, %v10189_v4 }
 0x21e   : > { %8461 = vmatmul.mubr.msk.bf16.vlgmr.msra.gmra.mrb[20].mxu0 %vm266_vm2, %v10099_v44  ;;  %8659 = vmatmul.mubr.msk.bf16.vlgmr.msra.gmra.mrb[20].mxu1 %vm266_vm2, %v11043_v2  ;;  %v11050_v44 = vld [vmem:[#allocation25_spill] sm:$0xff] }
 0x21f   : > { %8481 = vmatpush3.bf16.msra.mxu0 %v11029_v12  ;;  %8679 = vmatpush3.bf16.msra.mxu1 %v11029_v12 }
 0x220   : > { %8464 = vmatprep.mubr.msk.bf16.mxu0 %vm266_vm2, %v11028_v6  ;;  %8662 = vmatprep.mubr.msk.bf16.mxu1 %vm266_vm2, %v10203_v43 }
 0x221   : > { %8502 = vmatprep.subr.bf16.mxu0 %v11044_v3  ;;  %8700 = vmatprep.subr.bf16.mxu1 %v11044_v3 }
 0x226   : > { %8465 = vmatmul.mubr.msk.bf16.gmra.mrb[24].mxu0 %vm266_vm2, %v11031_v53  ;;  %8663 = vmatmul.mubr.msk.bf16.gmra.mrb[24].mxu1 %vm266_vm2, %v10218_v16 }
 0x227   : > { %8468 = vmatprep.mubr.msk.bf16.mxu0 %vm266_vm2, %v11033_v45  ;;  %8666 = vmatprep.mubr.msk.bf16.mxu1 %vm266_vm2, %v10221_v60 }
 0x229   : > { %v10540_v7 = vpop.f32.mrb[0].mxu0  ;;  %v10542_v8 = vpop.f32.mrb[0].mxu1 }
 0x22a   : > { %v10544_v9 = vpop.f32.mrb[1].mxu0  ;;  %v3744_v10 = vmax.f32 %v10540_v7, %v10542_v8  ;;  %v10548_v11 = vpop.f32.mrb[1].mxu1 }
 0x22b   : > { %v10550_v13 = vpop.f32.mrb[2].mxu0  ;;  %v3742_v14 = vmax.f32 %v10544_v9, %v10548_v11  ;;  %v10554_v15 = vpop.f32.mrb[2].mxu1 }
 0x22c   : > { %v10556_v17 = vpop.f32.mrb[3].mxu0  ;;  %v3745_v18 = vmax.f32 %v10550_v13, %v10554_v15  ;;  %v10560_v20 = vpop.f32.mrb[3].mxu1 }
 0x22d   : > { %v3743_v21 = vmax.f32 %v10556_v17, %v10560_v20 }
 0x22e   : > { %8469 = vmatmul.mubr.msk.bf16.gmra.mrb[28].mxu0 %vm266_vm2, %v11035_v56  ;;  %8667 = vmatmul.mubr.msk.bf16.gmra.mrb[28].mxu1 %vm266_vm2, %v10232_v48 }
 0x22f   : > { %8472 = vmatprep.mubr.msk.bf16.mxu0 %vm266_vm2, %v11037_v59  ;;  %8670 = vmatprep.mubr.msk.bf16.mxu1 %vm266_vm2, %v10235_v47 }
 0x231   : > { %v10572_v22 = vpop.f32.mrb[4].mxu0  ;;  %v10574_v23 = vpop.f32.mrb[4].mxu1 }
 0x232   : > { %v10576_v24 = vpop.f32.mrb[5].mxu0  ;;  %v3748_v25 = vmax.f32 %v10572_v22, %v10574_v23  ;;  %v10580_v26 = vpop.f32.mrb[5].mxu1 }
 0x233   : > { %v10582_v27 = vpop.f32.mrb[6].mxu0  ;;  %v3746_v29 = vmax.f32 %v10576_v24, %v10580_v26  ;;  %v10586_v30 = vpop.f32.mrb[6].mxu1 }
 0x234   : > { %v10588_v32 = vpop.f32.mrb[7].mxu0  ;;  %v3749_v34 = vmax.f32 %v10582_v27, %v10586_v30  ;;  %v10592_v35 = vpop.f32.mrb[7].mxu1 }
 0x235   : > { %v11052_v24 = vmax.f32 %v10588_v32, %v10592_v35 }
 0x236   : > { %8473 = vmatmul.mubr.msk.bf16.gmra.mrb[32].mxu0 %vm266_vm2, %v11039_v62  ;;  %8671 = vmatmul.mubr.msk.bf16.gmra.mrb[32].mxu1 %vm266_vm2, %v10246_v51 }
 0x237   : > { %8476 = vmatprep.mubr.msk.bf16.mxu0 %vm266_vm2, %v11041_v0  ;;  %8674 = vmatprep.mubr.msk.bf16.mxu1 %vm266_vm2, %v10249_v49 }
 0x239   : > { %v10604_v37 = vpop.f32.mrb[8].mxu0  ;;  %v10606_v38 = vpop.f32.mrb[8].mxu1 }
 0x23a   : > { %v10608_v39 = vpop.f32.mrb[9].mxu0  ;;  %v10612_v41 = vpop.f32.mrb[9].mxu1 }
 0x23b   : > { %v10614_v42 = vpop.f32.mrb[10].mxu0  ;;  %v10618_v46 = vpop.f32.mrb[10].mxu1 }
 0x23c   : > { %v10620_v6 = vpop.f32.mrb[11].mxu0  ;;  %v10624_v33 = vpop.f32.mrb[11].mxu1 }
 0x23e   : > { %8477 = vmatmul.mubr.msk.bf16.gmra.mrb[36].mxu0 %vm266_vm2, %v10186_v52  ;;  %8675 = vmatmul.mubr.msk.bf16.gmra.mrb[36].mxu1 %vm266_vm2, %v10260_v28 }
 0x23f   : > { %8482 = vmatprep.mubr.msk.bf16.mxu0 %vm266_vm2, %v10189_v4  ;;  %8680 = vmatprep.mubr.msk.bf16.mxu1 %vm266_vm2, %v11045_v54  ;;  %v11046_v54 = vld [vmem:[#allocation22_spill] sm:$0xff] }
 0x241   : > { %v10636_v45 = vpop.f32.mrb[12].mxu0  ;;  %v10638_v55 = vpop.f32.mrb[12].mxu1 }
 0x242   : > { %v10640_v56 = vpop.f32.mrb[13].mxu0  ;;  %v10644_v59 = vpop.f32.mrb[13].mxu1 }
 0x243   : > { %v10646_v52 = vpop.f32.mrb[14].mxu0  ;;  %v10650_v4 = vpop.f32.mrb[14].mxu1 }
 0x244   : > { %v10652_v62 = vpop.f32.mrb[15].mxu0  ;;  %v10656_v0 = vpop.f32.mrb[15].mxu1 }
 0x246   : > { %8483 = vmatmul.mubr.msk.bf16.vlgmr.msra.gmra.mrb[20].mxu0 %vm266_vm2, %v11043_v2  ;;  %8681 = vmatmul.mubr.msk.bf16.vlgmr.msra.gmra.mrb[20].mxu1 %vm266_vm2, %v11046_v54  ;;  %v9559_v54 = vld [vmem:[%s9638_s21 + $0x1f8] sm:$0xff]  }
 0x247   : > { %8503 = vmatpush3.bf16.msra.mxu0 %v11044_v3  ;;  %8701 = vmatpush3.bf16.msra.mxu1 %v11044_v3 }
 0x248   : > { %8486 = vmatprep.mubr.msk.bf16.mxu0 %vm266_vm2, %v10203_v43  ;;  %8684 = vmatprep.mubr.msk.bf16.mxu1 %vm266_vm2, %v11047_v63 }
 0x249   : > { %v10668_v61 = vpop.f32.mrb[16].mxu0  ;;  %8524 = vmatprep.subr.bf16.mxu0 %v11048_v58  ;;  %v10673_v1 = vpop.f32.mrb[16].mxu1  ;;  %8722 = vmatprep.subr.bf16.mxu1 %v11048_v58 }
 0x24a   : > { %v10675_v2 = vpop.f32.mrb[17].mxu0  ;;  %v10680_v3 = vpop.f32.mrb[17].mxu1 }
 0x24b   : > { %v10682_v53 = vpop.f32.mrb[18].mxu0  ;;  %v3758_v43 = vmax.f32 %v10675_v2, %v10680_v3  ;;  %v10686_v12 = vpop.f32.mrb[18].mxu1 }
 0x24c   : > { %v10688_v63 = vpop.f32.mrb[19].mxu0  ;;  %v10692_v40 = vpop.f32.mrb[19].mxu1 }
 0x24d   : > { %v11063_v2 = vmax.f32 %v10688_v63, %v10692_v40 }
 0x24e   : > { %8487 = vmatmul.mubr.msk.bf16.gmra.mrb[24].mxu0 %vm266_vm2, %v10218_v16  ;;  %8685 = vmatmul.mubr.msk.bf16.gmra.mrb[24].mxu1 %vm266_vm2, %v11049_v36  ;;  %v9545_v16 = vld [vmem:[%s9638_s21 + $0x1a8] sm:$0xff]   ;;  %v9548_v36 = vld [vmem:[%s9638_s21 + $0x270] sm:$0xff]  }
 0x24f   : > { %8490 = vmatprep.mubr.msk.bf16.mxu0 %vm266_vm2, %v10221_v60  ;;  %8688 = vmatprep.mubr.msk.bf16.mxu1 %vm266_vm2, %v10295_v19  ;;  %v9537_v60 = vld [vmem:[%s9638_s21 + $0x188] sm:$0xff]  }
 0x250   : > { %v9538_v19 = vld [vmem:[%s9638_s21 + $0x248] sm:$0xff]  }
 0x256   : > { %8491 = vmatmul.mubr.msk.bf16.gmra.mrb[28].mxu0 %vm266_vm2, %v10232_v48  ;;  %8689 = vmatmul.mubr.msk.bf16.gmra.mrb[28].mxu1 %vm266_vm2, %v11050_v44  ;;  %v9541_v48 = vld [vmem:[%s9638_s21 + $0x198] sm:$0xff]  }
 0x257   : > { %8494 = vmatprep.mubr.msk.bf16.mxu0 %vm266_vm2, %v10235_v47  ;;  %8692 = vmatprep.mubr.msk.bf16.mxu1 %vm266_vm2, %v10309_v31  ;;  %v9539_v31 = vld [vmem:[%s9638_s21 + $0x190] sm:$0xff]   ;;  %v9549_v44 = vld [vmem:[%s9638_s21 + $0x1b8] sm:$0xff]  }
 0x258   : > { %v9540_v47 = vld [vmem:[%s9638_s21 + $0x250] sm:$0xff]  }
 0x25e   : > { %8495 = vmatmul.mubr.msk.bf16.gmra.mrb[32].mxu0 %vm266_vm2, %v10246_v51  ;;  %8693 = vmatmul.mubr.msk.bf16.gmra.mrb[32].mxu1 %vm266_vm2, %v10320_v57  ;;  %v9543_v51 = vld [vmem:[%s9638_s21 + $0x1a0] sm:$0xff]  }
 0x25f   : > { %8498 = vmatprep.mubr.msk.bf16.mxu0 %vm266_vm2, %v10249_v49  ;;  %8696 = vmatprep.mubr.msk.bf16.mxu1 %vm266_vm2, %v10323_v50  ;;  %v9542_v49 = vld [vmem:[%s9638_s21 + $0x258] sm:$0xff]   ;;  %v11051_v50 = vld [vmem:[#allocation6_spill] sm:$0xff] }
 0x260   : > { %v9544_v57 = vld [vmem:[%s9638_s21 + $0x260] sm:$0xff]  }
 0x266   : > { %8499 = vmatmul.mubr.msk.bf16.gmra.mrb[36].mxu0 %vm266_vm2, %v10260_v28  ;;  %8697 = vmatmul.mubr.msk.bf16.gmra.mrb[36].mxu1 %vm266_vm2, %v10334_v5  ;;  %v9546_v28 = vld [vmem:[%s9638_s21 + $0x268] sm:$0xff]   ;;  %v9547_v5 = vld [vmem:[%s9638_s21 + $0x1b0] sm:$0xff]  }
 0x267   : > { %8504 = vmatprep.mubr.msk.bf16.mxu0 %vm266_vm2, %v9537_v60  ;;  %8702 = vmatprep.mubr.msk.bf16.mxu1 %vm266_vm2, %v9538_v19  ;;  %v9551_v60 = vld [vmem:[%s9638_s21 + $0x1c0] sm:$0xff]  }
 0x26e   : > { %8505 = vmatmul.mubr.msk.bf16.vlgmr.msra.gmra.mrb[20].mxu0 %vm266_vm2, %v9539_v31  ;;  %8703 = vmatmul.mubr.msk.bf16.vlgmr.msra.gmra.mrb[20].mxu1 %vm266_vm2, %v9540_v47  ;;  %v9552_v31 = vld [vmem:[%s9638_s21 + $0x280] sm:$0xff]  }
 0x26f   : > { %8525 = vmatpush3.bf16.msra.mxu0 %v11048_v58  ;;  %8723 = vmatpush3.bf16.msra.mxu1 %v11048_v58  ;;  %v9550_v58 = vld [vmem:[%s9638_s21 + $0x278] sm:$0xff]  }
 0x270   : > { %8508 = vmatprep.mubr.msk.bf16.mxu0 %vm266_vm2, %v9541_v48  ;;  %8706 = vmatprep.mubr.msk.bf16.mxu1 %vm266_vm2, %v9542_v49  ;;  %v9553_v48 = vld [vmem:[%s9638_s21 + $0x1c8] sm:$0xff]  }
 0x271   : > { %8546 = vmatprep.subr.bf16.mxu0 %v11051_v50  ;;  %8744 = vmatprep.subr.bf16.mxu1 %v11051_v50 }
 0x276   : > { %8509 = vmatmul.mubr.msk.bf16.gmra.mrb[24].mxu0 %vm266_vm2, %v9543_v51  ;;  %8707 = vmatmul.mubr.msk.bf16.gmra.mrb[24].mxu1 %vm266_vm2, %v9544_v57  ;;  %v9554_v51 = vld [vmem:[%s9638_s21 + $0x288] sm:$0xff]  }
 0x277   : > { %8512 = vmatprep.mubr.msk.bf16.mxu0 %vm266_vm2, %v9545_v16  ;;  %8710 = vmatprep.mubr.msk.bf16.mxu1 %vm266_vm2, %v9546_v28  ;;  %v9555_v16 = vld [vmem:[%s9638_s21 + $0x1d0] sm:$0xff]  }
 0x27e   : > { %8513 = vmatmul.mubr.msk.bf16.gmra.mrb[28].mxu0 %vm266_vm2, %v9547_v5  ;;  %8711 = vmatmul.mubr.msk.bf16.gmra.mrb[28].mxu1 %vm266_vm2, %v9548_v36  ;;  %v9556_v5 = vld [vmem:[%s9638_s21 + $0x290] sm:$0xff]  }
 0x27f   : > { %8516 = vmatprep.mubr.msk.bf16.mxu0 %vm266_vm2, %v9549_v44  ;;  %8714 = vmatprep.mubr.msk.bf16.mxu1 %vm266_vm2, %v9550_v58  ;;  %v9557_v44 = vld [vmem:[%s9638_s21 + $0x1e8] sm:$0xff]  }
 0x286   : > { %8517 = vmatmul.mubr.msk.bf16.gmra.mrb[32].mxu0 %vm266_vm2, %v9551_v60  ;;  %8715 = vmatmul.mubr.msk.bf16.gmra.mrb[32].mxu1 %vm266_vm2, %v9552_v31  ;;  %v9558_v60 = vld [vmem:[%s9638_s21 + $0x1f0] sm:$0xff]  }
 0x287   : > { %8520 = vmatprep.mubr.msk.bf16.mxu0 %vm266_vm2, %v9553_v48  ;;  %8718 = vmatprep.mubr.msk.bf16.mxu1 %vm266_vm2, %v9554_v51  ;;  %v9561_v48 = vld [vmem:[%s9638_s21 + $0x208] sm:$0xff]  }
 0x28e   : > { %8521 = vmatmul.mubr.msk.bf16.gmra.mrb[36].mxu0 %vm266_vm2, %v9555_v16  ;;  %8719 = vmatmul.mubr.msk.bf16.gmra.mrb[36].mxu1 %vm266_vm2, %v9556_v5  ;;  %v9563_v16 = vld [vmem:[%s9638_s21 + $0x218] sm:$0xff]  }
 0x28f   : > { %8526 = vmatprep.mubr.msk.bf16.mxu0 %vm266_vm2, %v9538_v19  ;;  %8724 = vmatprep.mubr.msk.bf16.mxu1 %vm266_vm2, %v9557_v44  ;;  %v9560_v19 = vld [vmem:[%s9638_s21 + $0x200] sm:$0xff]  }
 0x296   : > { %8527 = vmatmul.mubr.msk.bf16.vlgmr.msra.gmra.mrb[20].mxu0 %vm266_vm2, %v9540_v47  ;;  %8725 = vmatmul.mubr.msk.bf16.vlgmr.msra.gmra.mrb[20].mxu1 %vm266_vm2, %v9558_v60  ;;  %v9562_v47 = vld [vmem:[%s9638_s21 + $0x210] sm:$0xff]  }
 0x297   : > { %8547 = vmatpush3.bf16.msra.mxu0 %v11051_v50  ;;  %8745 = vmatpush3.bf16.msra.mxu1 %v11051_v50  ;;  %v9565_v50 = vld [vmem:[%s9638_s21 + $0x228] sm:$0xff]  }
 0x298   : > { %8530 = vmatprep.mubr.msk.bf16.mxu0 %vm266_vm2, %v9542_v49  ;;  %8728 = vmatprep.mubr.msk.bf16.mxu1 %vm266_vm2, %v9559_v54  ;;  %v9564_v49 = vld [vmem:[%s9638_s21 + $0x220] sm:$0xff]  }
 0x29e   : > { %8531 = vmatmul.mubr.msk.bf16.gmra.mrb[24].mxu0 %vm266_vm2, %v9544_v57  ;;  %8729 = vmatmul.mubr.msk.bf16.gmra.mrb[24].mxu1 %vm266_vm2, %v9560_v19  ;;  %v9566_v57 = vld [vmem:[%s9638_s21 + $0x230] sm:$0xff]  }
 0x29f   : > { %8534 = vmatprep.mubr.msk.bf16.mxu0 %vm266_vm2, %v9546_v28  ;;  %8732 = vmatprep.mubr.msk.bf16.mxu1 %vm266_vm2, %v9561_v48  ;;  %v9567_v28 = vld [vmem:[%s9638_s21 + $0x2a8] sm:$0xff]  }
 0x2a6   : > { %8535 = vmatmul.mubr.msk.bf16.gmra.mrb[28].mxu0 %vm266_vm2, %v9548_v36  ;;  %8733 = vmatmul.mubr.msk.bf16.gmra.mrb[28].mxu1 %vm266_vm2, %v9562_v47  ;;  %v9568_v36 = vld [vmem:[%s9638_s21 + $0x2b0] sm:$0xff]  }
 0x2a7   : > { %8538 = vmatprep.mubr.msk.bf16.mxu0 %vm266_vm2, %v9550_v58  ;;  %8736 = vmatprep.mubr.msk.bf16.mxu1 %vm266_vm2, %v9563_v16  ;;  %v9569_v58 = vld [vmem:[%s9638_s21 + $0x2b8] sm:$0xff]  }
 0x2ae   : > { %8539 = vmatmul.mubr.msk.bf16.gmra.mrb[32].mxu0 %vm266_vm2, %v9552_v31  ;;  %8737 = vmatmul.mubr.msk.bf16.gmra.mrb[32].mxu1 %vm266_vm2, %v9564_v49  ;;  %v9570_v31 = vld [vmem:[%s9638_s21 + $0x2c0] sm:$0xff]  }
 0x2af   : > { %8542 = vmatprep.mubr.msk.bf16.mxu0 %vm266_vm2, %v9554_v51  ;;  %8740 = vmatprep.mubr.msk.bf16.mxu1 %vm266_vm2, %v9565_v50  ;;  %v9571_v51 = vld [vmem:[%s9638_s21 + $0x2c8] sm:$0xff]  }
 0x2b6   : > { %8543 = vmatmul.mubr.msk.bf16.gmra.mrb[36].mxu0 %vm266_vm2, %v9556_v5  ;;  %8741 = vmatmul.mubr.msk.bf16.gmra.mrb[36].mxu1 %vm266_vm2, %v9566_v57  ;;  %v9572_v5 = vld [vmem:[%s9638_s21 + $0x2d0] sm:$0xff]  }
 0x2b7   : > { %8548 = vmatprep.mubr.msk.bf16.mxu0 %vm266_vm2, %v9557_v44  ;;  %8746 = vmatprep.mubr.msk.bf16.mxu1 %vm266_vm2, %v9567_v28  ;;  %v9573_v44 = vld [vmem:[%s9638_s21 + $0x2d8] sm:$0xff]  }
 0x2be   : > { %8549 = vmatmul.mubr.msk.bf16.vlgmr.msra.gmra.mrb[20].mxu0 %vm266_vm2, %v9558_v60  ;;  %8747 = vmatmul.mubr.msk.bf16.vlgmr.msra.gmra.mrb[20].mxu1 %vm266_vm2, %v9568_v36  ;;  %v9575_v60 = vld [vmem:[%s9638_s21 + $0x2e8] sm:$0xff]  }
 0x2bf   : > { %8552 = vmatprep.mubr.msk.bf16.mxu0 %vm266_vm2, %v9559_v54  ;;  %8750 = vmatprep.mubr.msk.bf16.mxu1 %vm266_vm2, %v9569_v58  ;;  %v9574_v54 = vld [vmem:[%s9638_s21 + $0x2e0] sm:$0xff]  }
 0x2c6   : > { %8553 = vmatmul.mubr.msk.bf16.gmra.mrb[24].mxu0 %vm266_vm2, %v9560_v19  ;;  %8751 = vmatmul.mubr.msk.bf16.gmra.mrb[24].mxu1 %vm266_vm2, %v9570_v31  ;;  %v9576_v19 = vld [vmem:[%s9638_s21 + $0x2f0] sm:$0xff]  }
 0x2c7   : > { %8556 = vmatprep.mubr.msk.bf16.mxu0 %vm266_vm2, %v9561_v48  ;;  %8754 = vmatprep.mubr.msk.bf16.mxu1 %vm266_vm2, %v9571_v51 }
 0x2ce   : > { %8557 = vmatmul.mubr.msk.bf16.gmra.mrb[28].mxu0 %vm266_vm2, %v9562_v47  ;;  %8755 = vmatmul.mubr.msk.bf16.gmra.mrb[28].mxu1 %vm266_vm2, %v9572_v5 }
 0x2cf   : > { %8560 = vmatprep.mubr.msk.bf16.mxu0 %vm266_vm2, %v9563_v16  ;;  %8758 = vmatprep.mubr.msk.bf16.mxu1 %vm266_vm2, %v9573_v44 }
 0x2d6   : > { %8561 = vmatmul.mubr.msk.bf16.gmra.mrb[32].mxu0 %vm266_vm2, %v9564_v49  ;;  %8759 = vmatmul.mubr.msk.bf16.gmra.mrb[32].mxu1 %vm266_vm2, %v9574_v54  ;;  %v10836_v49 = vld [vmem:[%s10966_s2] ss:$0 sm:$0xff] }
 0x2d7   : > { %8564 = vmatprep.mubr.msk.bf16.mxu0 %vm266_vm2, %v9565_v50  ;;  %8762 = vmatprep.mubr.msk.bf16.mxu1 %vm266_vm2, %v9575_v60 }
 0x2de   : > { %8565 = vmatmul.mubr.msk.bf16.gmra.mrb[36].mxu0 %vm266_vm2, %v9566_v57  ;;  %8763 = vmatmul.mubr.msk.bf16.gmra.mrb[36].mxu1 %vm266_vm2, %v9576_v19 }
 0x391   : > { %v8550_v48 = vpop.f32.mrb[20].mxu0  ;;  %v8748_v16 = vpop.f32.mrb[20].mxu1 }
 0x392   : > { %v5221_v47 = vmax.f32 %v3744_v10, %v8550_v48  ;;  %v5120_v28 = vpop.f32.mrb[21].mxu0  ;;  %v6397_v36 = vpop.f32.mrb[21].mxu1 }
 0x393   : > { %v5219_v50 = vmax.f32 %v3742_v14, %v5120_v28  ;;  %v8551_v57 = vpop.f32.mrb[22].mxu0  ;;  %v8749_v7 = vpop.f32.mrb[22].mxu1 }
 0x394   : > { %v6498_v58 = vmax.f32 %v5221_v47, %v8748_v16  ;;  %v5222_v31 = vmax.f32 %v3745_v18, %v8551_v57  ;;  %v5123_v8 = vpop.f32.mrb[23].mxu0  ;;  %v6400_v5 = vpop.f32.mrb[23].mxu1 }
 0x395   : > { %v6496_v10 = vmax.f32 %v5219_v50, %v6397_v36  ;;  %v5220_v51 = vmax.f32 %v3743_v21, %v5123_v8 }
 0x396   : > { %v6525_v44 = vadd.f32 %v10836_v49, %v6498_v58  ;;  %v6499_v9 = vmax.f32 %v5222_v31, %v8749_v7 }
 0x397   : > { %v6523_v11 = vadd.f32 %v10836_v49, %v6496_v10  ;;  %v6497_v14 = vmax.f32 %v5220_v51, %v6400_v5 }
 0x398   : > { %v6545_v54 = vmax.f32 %v6525_v44, 0.0  ;;  %v6526_v60 = vadd.f32 %v10836_v49, %v6499_v9 }
 0x399   : > { %v6543_v13 = vmax.f32 %v6523_v11, 0.0  ;;  %v6524_v15 = vadd.f32 %v10836_v49, %v6497_v14  ;;  %v8554_v17 = vpop.f32.mrb[24].mxu0  ;;  %v8752_v19 = vpop.f32.mrb[24].mxu1  ;;  %v11053_v11 = vmax.f32 %v10604_v37, %v10606_v38  ;;  %v11055_v37 = vmax.f32 %v10614_v42, %v10618_v46 }
 0x39a   : > { %v7560_v18 = vpack.c.bf16 %v6545_v54, %v6545_v54  ;;  %v6546_v20 = vmax.f32 %v6526_v60, 0.0  ;;  %v5225_v21 = vmax.f32 %v3748_v25, %v8554_v17  ;;  %v5136_v48 = vpop.f32.mrb[25].mxu0  ;;  %v6413_v50 = vpop.f32.mrb[25].mxu1  ;;  %v11054_v17 = vmax.f32 %v10608_v39, %v10612_v41 }
 0x39b   : > { %v7558_v47 = vpack.c.bf16 %v6543_v13, %v6543_v13  ;;  %v6544_v16 = vmax.f32 %v6524_v15, 0.0  ;;  %v5223_v28 = vmax.f32 %v3746_v29, %v5136_v48  ;;  %v8555_v36 = vpop.f32.mrb[26].mxu0  ;;  %v8753_v23 = vpop.f32.mrb[26].mxu1  ;;  %v11056_v39 = vmax.f32 %v10620_v6, %v10624_v33 }
 0x39c   : > { %6647 = vst.msk [vmem:[%s10854_s16 + $0x8] sm:$0xf] %vm6643_vm3, %v7560_v18  ;;  %v7561_v57 = vpack.c.bf16 %v6546_v20, %v6546_v20  ;;  %v6502_v58 = vmax.f32 %v5225_v21, %v8752_v19  ;;  %v5226_v22 = vmax.f32 %v3749_v34, %v8555_v36  ;;  %v5139_v25 = vpop.f32.mrb[27].mxu0  ;;  %v6416_v29 = vpop.f32.mrb[27].mxu1 }
 0x39d   : > { %6644 = vst.msk [vmem:[%s10854_s16] sm:$0xf] %vm6643_vm3, %v7558_v47  ;;  %v7559_v31 = vpack.c.bf16 %v6544_v16, %v6544_v16  ;;  %v6500_v7 = vmax.f32 %v5223_v28, %v6413_v50  ;;  %v5224_v26 = vmax.f32 %v11052_v24, %v5139_v25  ;;  %v11057_v24 = vmax.f32 %v10636_v45, %v10638_v55 }
 0x39e   : > { %6648 = vst.msk [vmem:[%s10854_s16 + $0xc] sm:$0x3] %vm6645_vm4, %v7561_v57  ;;  %v6529_v8 = vadd.f32 %v10836_v49, %v6502_v58  ;;  %v6503_v10 = vmax.f32 %v5226_v22, %v8753_v23  ;;  %v11059_v45 = vmax.f32 %v10646_v52, %v10650_v4 }
 0x39f   : > { %6646 = vst.msk [vmem:[%s10854_s16 + $0x4] sm:$0x3] %vm6645_vm4, %v7559_v31  ;;  %v6527_v27 = vadd.f32 %v10836_v49, %v6500_v7  ;;  %v6501_v30 = vmax.f32 %v5224_v26, %v6416_v29 }
 0x3a0   : > { %v6549_v34 = vmax.f32 %v6529_v8, 0.0  ;;  %v6530_v51 = vadd.f32 %v10836_v49, %v6503_v10 }
 0x3a1   : > { %v6547_v5 = vmax.f32 %v6527_v27, 0.0  ;;  %v6528_v44 = vadd.f32 %v10836_v49, %v6501_v30  ;;  %v8558_v32 = vpop.f32.mrb[28].mxu0  ;;  %v8756_v54 = vpop.f32.mrb[28].mxu1  ;;  %v11058_v30 = vmax.f32 %v10640_v56, %v10644_v59  ;;  %v11060_v56 = vmax.f32 %v10652_v62, %v10656_v0 }
 0x3a2   : > { %v7564_v35 = vpack.c.bf16 %v6549_v34, %v6549_v34  ;;  %v6550_v9 = vmax.f32 %v6530_v51, 0.0  ;;  %v5229_v14 = vmax.f32 %v11053_v11, %v8558_v32  ;;  %v5152_v60 = vpop.f32.mrb[29].mxu0  ;;  %v6429_v20 = vpop.f32.mrb[29].mxu1 }
 0x3a3   : > { %v7562_v13 = vpack.c.bf16 %v6547_v5, %v6547_v5  ;;  %v6548_v15 = vmax.f32 %v6528_v44, 0.0  ;;  %v5227_v18 = vmax.f32 %v11054_v17, %v5152_v60  ;;  %v8559_v21 = vpop.f32.mrb[30].mxu0  ;;  %v8757_v47 = vpop.f32.mrb[30].mxu1 }
 0x3a4   : > { %6651 = vst.msk [vmem:[%s10854_s16 + $0x18] sm:$0xf] %vm6643_vm3, %v7564_v35  ;;  %v7565_v19 = vpack.c.bf16 %v6550_v9, %v6550_v9  ;;  %v6506_v48 = vmax.f32 %v5229_v14, %v8756_v54  ;;  %v5230_v38 = vmax.f32 %v11055_v37, %v8559_v21  ;;  %v5155_v16 = vpop.f32.mrb[31].mxu0  ;;  %v6432_v36 = vpop.f32.mrb[31].mxu1 }
 0x3a5   : > { %6649 = vst.msk [vmem:[%s10854_s16 + $0x10] sm:$0xf] %vm6643_vm3, %v7562_v13  ;;  %v7563_v28 = vpack.c.bf16 %v6548_v15, %v6548_v15  ;;  %v6504_v50 = vmax.f32 %v5227_v18, %v6429_v20  ;;  %v5228_v41 = vmax.f32 %v11056_v39, %v5155_v16 }
 0x3a6   : > { %6652 = vst.msk [vmem:[%s10854_s16 + $0x1c] sm:$0x3] %vm6645_vm4, %v7565_v19  ;;  %v6533_v57 = vadd.f32 %v10836_v49, %v6506_v48  ;;  %v6507_v58 = vmax.f32 %v5230_v38, %v8757_v47  ;;  %v11061_v19 = vmax.f32 %v10668_v61, %v10673_v1  ;;  %v11062_v61 = vmax.f32 %v10682_v53, %v10686_v12 }
 0x3a7   : > { %6650 = vst.msk [vmem:[%s10854_s16 + $0x14] sm:$0x3] %vm6645_vm4, %v7563_v28  ;;  %v6531_v42 = vadd.f32 %v10836_v49, %v6504_v50  ;;  %v6505_v46 = vmax.f32 %v5228_v41, %v6432_v36 }
 0x3a8   : > { %v6553_v22 = vmax.f32 %v6533_v57, 0.0  ;;  %v6534_v23 = vadd.f32 %v10836_v49, %v6507_v58 }
 0x3a9   : > { %v6551_v25 = vmax.f32 %v6531_v42, 0.0  ;;  %v6532_v31 = vadd.f32 %v10836_v49, %v6505_v46  ;;  %v8562_v6 = vpop.f32.mrb[32].mxu0  ;;  %v8760_v29 = vpop.f32.mrb[32].mxu1 }
 0x3aa   : > { %v7568_v33 = vpack.c.bf16 %v6553_v22, %v6553_v22  ;;  %v6554_v7 = vmax.f32 %v6534_v23, 0.0  ;;  %v5233_v26 = vmax.f32 %v11057_v24, %v8562_v6  ;;  %v5168_v8 = vpop.f32.mrb[33].mxu0  ;;  %v6445_v51 = vpop.f32.mrb[33].mxu1 }
 0x3ab   : > { %v7566_v10 = vpack.c.bf16 %v6551_v25, %v6551_v25  ;;  %v6552_v27 = vmax.f32 %v6532_v31, 0.0  ;;  %v5231_v34 = vmax.f32 %v11058_v30, %v5168_v8  ;;  %v8563_v5 = vpop.f32.mrb[34].mxu0  ;;  %v8761_v35 = vpop.f32.mrb[34].mxu1 }
 0x3ac   : > { %6655 = vst.msk [vmem:[%s10854_s16 + $0x28] sm:$0xf] %vm6643_vm3, %v7568_v33  ;;  %v7569_v44 = vpack.c.bf16 %v6554_v7, %v6554_v7  ;;  %v6510_v32 = vmax.f32 %v5233_v26, %v8760_v29  ;;  %v5234_v55 = vmax.f32 %v11059_v45, %v8563_v5  ;;  %v5171_v9 = vpop.f32.mrb[35].mxu0  ;;  %v6448_v54 = vpop.f32.mrb[35].mxu1 }
 0x3ad   : > { %6653 = vst.msk [vmem:[%s10854_s16 + $0x20] sm:$0xf] %vm6643_vm3, %v7566_v10  ;;  %v7567_v11 = vpack.c.bf16 %v6552_v27, %v6552_v27  ;;  %v6508_v14 = vmax.f32 %v5231_v34, %v6445_v51  ;;  %v5232_v59 = vmax.f32 %v11060_v56, %v5171_v9 }
 0x3ae   : > { %6656 = vst.msk [vmem:[%s10854_s16 + $0x2c] sm:$0x3] %vm6645_vm4, %v7569_v44  ;;  %v6537_v60 = vadd.f32 %v10836_v49, %v6510_v32  ;;  %v6511_v13 = vmax.f32 %v5234_v55, %v8761_v35 }
 0x3af   : > { %6654 = vst.msk [vmem:[%s10854_s16 + $0x24] sm:$0x3] %vm6645_vm4, %v7567_v11  ;;  %v6535_v52 = vadd.f32 %v10836_v49, %v6508_v14  ;;  %v6509_v4 = vmax.f32 %v5232_v59, %v6448_v54 }
 0x3b0   : > { %v6557_v15 = vmax.f32 %v6537_v60, 0.0  ;;  %v6538_v17 = vadd.f32 %v10836_v49, %v6511_v13 }
 0x3b1   : > { %v6555_v18 = vmax.f32 %v6535_v52, 0.0  ;;  %v6536_v20 = vadd.f32 %v10836_v49, %v6509_v4  ;;  %v8566_v62 = vpop.f32.mrb[36].mxu0  ;;  %v8764_v37 = vpop.f32.mrb[36].mxu1 }
 0x3b2   : > { %v7572_v0 = vpack.c.bf16 %v6557_v15, %v6557_v15  ;;  %v6558_v21 = vmax.f32 %v6538_v17, 0.0  ;;  %v5237_v48 = vmax.f32 %v11061_v19, %v8566_v62  ;;  %v5184_v38 = vpop.f32.mrb[37].mxu0  ;;  %v6461_v50 = vpop.f32.mrb[37].mxu1 }
 0x3b3   : > { %v7570_v47 = vpack.c.bf16 %v6555_v18, %v6555_v18  ;;  %v6556_v16 = vmax.f32 %v6536_v20, 0.0  ;;  %v5235_v28 = vmax.f32 %v3758_v43, %v5184_v38  ;;  %v8567_v39 = vpop.f32.mrb[38].mxu0  ;;  %v8765_v57 = vpop.f32.mrb[38].mxu1 }
 0x3b4   : > { %6659 = vst.msk [vmem:[%s10854_s16 + $0x38] sm:$0xf] %vm6643_vm3, %v7572_v0  ;;  %v7573_v41 = vpack.c.bf16 %v6558_v21, %v6558_v21  ;;  %v6514_v36 = vmax.f32 %v5237_v48, %v8764_v37  ;;  %v5238_v1 = vmax.f32 %v11062_v61, %v8567_v39  ;;  %v5187_v58 = vpop.f32.mrb[39].mxu0  ;;  %v6464_v43 = vpop.f32.mrb[39].mxu1 }
 0x3b5   : > { %6657 = vst.msk [vmem:[%s10854_s16 + $0x30] sm:$0xf] %vm6643_vm3, %v7570_v47  ;;  %v7571_v42 = vpack.c.bf16 %v6556_v16, %v6556_v16  ;;  %v6512_v46 = vmax.f32 %v5235_v28, %v6461_v50  ;;  %v5236_v3 = vmax.f32 %v11063_v2, %v5187_v58 }
 0x3b6   : > { %6660 = vst.msk [vmem:[%s10854_s16 + $0x3c] sm:$0x3] %vm6645_vm4, %v7573_v41  ;;  %v6541_v22 = vadd.f32 %v10836_v49, %v6514_v36  ;;  %v6515_v23 = vmax.f32 %v5238_v1, %v8765_v57 }
 0x3b7   : > { %6658 = vst.msk [vmem:[%s10854_s16 + $0x34] sm:$0x3] %vm6645_vm4, %v7571_v42  ;;  %v6539_v12 = vadd.f32 %v10836_v49, %v6512_v46  ;;  %v6513_v53 = vmax.f32 %v5236_v3, %v6464_v43 }
 0x3b8   : > { %v6561_v25 = vmax.f32 %v6541_v22, 0.0  ;;  %v6542_v31 = vadd.f32 %v10836_v49, %v6515_v23 }
 0x3b9   : > { %v6559_v40 = vmax.f32 %v6539_v12, 0.0  ;;  %v6540_v63 = vadd.f32 %v10836_v49, %v6513_v53 }
 0x3ba   : > { %v7576_v6 = vpack.c.bf16 %v6561_v25, %v6561_v25  ;;  %v6562_v33 = vmax.f32 %v6542_v31, 0.0 }
 0x3bb   : > { %v7574_v7 = vpack.c.bf16 %v6559_v40, %v6559_v40  ;;  %v6560_v24 = vmax.f32 %v6540_v63, 0.0 }
 0x3bc   : > { %6663 = vst.msk [vmem:[%s10854_s16 + $0x48] sm:$0xf] %vm6643_vm3, %v7576_v6  ;;  %v7577_v26 = vpack.c.bf16 %v6562_v33, %v6562_v33 }
 0x3bd   : > { %6661 = vst.msk [vmem:[%s10854_s16 + $0x40] sm:$0xf] %vm6643_vm3, %v7574_v7  ;;  %v7575_v29 = vpack.c.bf16 %v6560_v24, %v6560_v24 }
 0x3be   : > { %6664 = vst.msk [vmem:[%s10854_s16 + $0x4c] sm:$0x3] %vm6645_vm4, %v7577_v26 }
 0x3bf   : > { %6662 = vst.msk [vmem:[%s10854_s16 + $0x44] sm:$0x3] %vm6645_vm4, %v7575_v29 }
 0x3c0 PF: > { %s13_s12 = sadd.s32 1, %s9583_s12  }
 0x3c1   : > { %p10_p4 = scmp.ge.s32.totalorder %s13_s12, 4  }
 0x3c3   :  { %12 = sbr.rel (!%p10_p4) target bundleno = 1 (0x1), region = 77 }

// kernel: forward_pallas.4
= control target key start
LH: loop header
LB: loop body
LE: loop exit
PB: predicated region body
PF: predicated region fallthrough
CT: control target
= control target key end

     0   :  { %s4536_s12 = smov 0   ;;  %s5309_s0 = inlined_call_operand.vmem [shape: bf16[2,8,56,24], index: 0, kind: input, shape index: {}]   ;;  %s5310_s1 = inlined_call_operand.vmem [shape: bf16[9,24,48], index: 1, kind: input, shape index: {}]   ;;  %s5311_s2 = inlined_call_operand.vmem [shape: f32[1,48], index: 2, kind: input, shape index: {}]   ;;  %s5312_s3 = inlined_call_operand.vmem [shape: bf16[2,5,6,48], index: 3, kind: output, shape index: {}]  }
   0x1 LB: > { %s3010_s13 = sadd.s32 4294967295, %s4512_s12   ;;  %p3014_p0 = scmp.ge.s32.totalorder %s4512_s12, 1  ;;  %s4512_s12 = sphi %s4536_s12, %s13_s12  }
   0x2   : > { %p137_p1 = scmp.lt.s32.totalorder %s4512_s12, 3 }
   0x4   : > { %p138_p2 = pnand %p3014_p0, %p137_p1 }
   0x5   : > { %v4547_v0 = vld [vmem:[%s5310_s1 + $0xc] sm:$0xff] (!%p138_p2)   ;;  %v4514_v1 = vmov (!%p138_p2), 0.0   ;;  %v4441_v2 = vld [vmem:[%s5310_s1 + $0x14] ss:$0 sps:$4 sm:$0xff] (!%p138_p2)   ;;  %vm222_vm0 = vcmask (!%p138_p2), 1043456   ;;  %p161_p3 = scmp.lt.s32.totalorder (!%p138_p2), %s3010_s13, 1 }
   0x6   : > { %141 = sbr.rel (%p138_p2) target bundleno = 665 (0x299), region = 32  ;;  %3468 = vmatprep.subr.bf16.mxu0 (!%p138_p2), %v4514_v1  ;;  %3612 = vmatprep.subr.bf16.mxu1 (!%p138_p2), %v4514_v1  ;;  %v4559_v3 = vsel (!%p138_p2), %vm222_vm0, %v4441_v2, 0  ;;  %vm4515_vm1 = vmmov (!%p138_p2), 0   ;;  %vm212_vm2 = vcmask (!%p138_p2), 195584   ;;  %v4574_v4 = vld [vmem:[%s5310_s1] sm:$0xff] (!%p138_p2)   ;;  %v4624_v14 = vld [vmem:[%s5310_s1 + $0x18] sm:$0xff] (!%p138_p2)  }
   0x7   : > { %3469 = vmatpush3.bf16.msra.mxu0 (!%p138_p2), %v4547_v0  ;;  %3613 = vmatpush3.bf16.msra.mxu1 (!%p138_p2), %v4547_v0  ;;  %v4447_v5 = vld [vmem:[%s5310_s1 + $0x8] ss:$0 sps:$4 sm:$0xff] (!%p138_p2)   ;;  %v4453_v15 = vld [vmem:[%s5310_s1 + $0x20] ss:$0 sps:$4 sm:$0xff] (!%p138_p2)   ;;  %v4458_v21 = vld [vmem:[%s5310_s1 + $0x2c] ss:$0 sps:$4 sm:$0xff] (!%p138_p2)  }
   0x8   : > { %3470 = vmatprep.subr.bf16.mxu0 (!%p138_p2), %v4514_v1  ;;  %3614 = vmatprep.subr.bf16.mxu1 (!%p138_p2), %v4514_v1  ;;  %v4594_v8 = vsel (!%p138_p2), %vm222_vm0, %v4447_v5, 0  ;;  %v4636_v16 = vsel (!%p138_p2), %vm222_vm0, %v4453_v15, 0  ;;  %v4664_v20 = vld [vmem:[%s5310_s1 + $0x24] sm:$0xff] (!%p138_p2)   ;;  %v4676_v22 = vsel (!%p138_p2), %vm222_vm0, %v4458_v21, 0  ;;  %v4709_v27 = vld [vmem:[%s5310_s1 + $0x30] sm:$0xff] (!%p138_p2)   ;;  %v4767_v35 = vld [vmem:[%s5310_s1 + $0x3c] sm:$0xff] (!%p138_p2)  }
   0x9   : > { %3472 = vmatprep.mubr.msk.bf16.mxu0 (!%p138_p2), %vm4515_vm1, %v4514_v1  ;;  %3616 = vmatprep.mubr.msk.bf16.mxu1 (!%p138_p2), %vm4515_vm1, %v4514_v1  ;;  %v4465_v28 = vld [vmem:[%s5310_s1 + $0x38] ss:$0 sps:$4 sm:$0xff] (!%p138_p2)   ;;  %v4471_v36 = vld [vmem:[%s5310_s1 + $0x44] ss:$0 sps:$4 sm:$0xff] (!%p138_p2)   ;;  %v4819_v41 = vld [vmem:[%s5310_s1 + $0x48] sm:$0xff] (!%p138_p2)   ;;  %vm2949_vm3 = vcmask (!%p138_p2), 387072  }
   0xa   : > { %v4723_v29 = vsel (!%p138_p2), %vm222_vm0, %v4465_v28, 0  ;;  %v4781_v37 = vsel (!%p138_p2), %vm222_vm0, %v4471_v36, 0  ;;  %v4476_v42 = vld [vmem:[%s5310_s1 + $0x50] ss:$0 sps:$4 sm:$0xff] (!%p138_p2)   ;;  %v4874_v48 = vld [vmem:[%s5310_s1 + $0x54] sm:$0xff] (!%p138_p2)   ;;  %v4932_v56 = vld [vmem:[%s5310_s1 + $0x60] sm:$0xff] (!%p138_p2)  }
   0xb   : > { %3471 = vmatpush3.bf16.msra.mxu0 (!%p138_p2), %v4559_v3  ;;  %3615 = vmatpush3.bf16.msra.mxu1 (!%p138_p2), %v4559_v3  ;;  %v4833_v43 = vsel (!%p138_p2), %vm222_vm0, %v4476_v42, 0  ;;  %v4483_v49 = vld [vmem:[%s5310_s1 + $0x5c] ss:$0 sps:$4 sm:$0xff] (!%p138_p2)   ;;  %v4489_v57 = vld [vmem:[%s5310_s1 + $0x68] ss:$0 sps:$4 sm:$0xff] (!%p138_p2)  }
   0xc   : > { %3484 = vmatprep.subr.bf16.mxu0 (!%p138_p2), %v4514_v1  ;;  %3628 = vmatprep.subr.bf16.mxu1 (!%p138_p2), %v4514_v1  ;;  %v4888_v50 = vsel (!%p138_p2), %vm222_vm0, %v4483_v49, 0  ;;  %v4946_v58 = vsel (!%p138_p2), %vm222_vm0, %v4489_v57, 0 }
   0xd   : > { %s5314_s13 = smov (!%p161_p3, %s3010_s13), 1 }
   0xe   : > { %s4428_s18 = smul.u32 224, %s5314_s13 }
  0x10   : > { %s4583_s25 = scalar_lea.vmem %s5309_s0, %s4428_s18 }
  0x11   : > { %v4442_v6 = vld [vmem:[%s4583_s25 + $0x38] sm:$0xff]   ;;  %v4445_v9 = vld [vmem:[%s4583_s25 + $0x40] sm:$0xff]   ;;  %v4448_v11 = vld [vmem:[%s4583_s25 + $0x48] ss:$0 sps:$4 sm:$0xff]  }
  0x12   : > { %v4443_v7 = vld [vmem:[%s4583_s25 + $0x1c] sm:$0xff]   ;;  %3473 = vmatmul.mubr.msk.bf16.vlgmr.msra.gmra.mrb[0].mxu0 %vm212_vm2, %v4442_v6  ;;  %v4446_v10 = vld [vmem:[%s4583_s25 + $0x24] sm:$0xff]   ;;  %v4449_v12 = vld [vmem:[%s4583_s25 + $0x2c] ss:$0 sps:$4 sm:$0xff]  }
  0x13   : > { %3617 = vmatmul.mubr.msk.bf16.vlgmr.msra.gmra.mrb[0].mxu1 %vm212_vm2, %v4443_v7  ;;  %3485 = vmatpush3.bf16.msra.mxu0 %v4574_v4  ;;  %v4450_v13 = vld [vmem:[%s4583_s25] sm:$0xff]   ;;  %v4452_v17 = vld [vmem:[%s4583_s25 + $0x8] sm:$0xff]   ;;  %v4454_v18 = vld [vmem:[%s4583_s25 + $0x10] ss:$0 sps:$4 sm:$0xff]  }
  0x14   : > { %3629 = vmatpush3.bf16.msra.mxu1 %v4574_v4  ;;  %3476 = vmatprep.mubr.msk.bf16.mxu0 %vm4515_vm1, %v4514_v1  ;;  %v4455_v19 = vld [vmem:[%s4583_s25 + $0x54] sm:$0xff]   ;;  %v4457_v23 = vld [vmem:[%s4583_s25 + $0x5c] sm:$0xff]   ;;  %v4459_v24 = vld [vmem:[%s4583_s25 + $0x64] ss:$0 sps:$4 sm:$0xff]  }
  0x15   : > { %3620 = vmatprep.mubr.msk.bf16.mxu1 %vm4515_vm1, %v4514_v1  ;;  %3486 = vmatprep.subr.bf16.mxu0 %v4514_v1  ;;  %v4701_v25 = vld [vmem:[%s4583_s25 + $0x70] sm:$0xff]   ;;  %v4704_v26 = vld [vmem:[%s4583_s25 + $0xa8] sm:$0xff]   ;;  %v4729_v30 = vld [vmem:[%s4583_s25 + $0x78] sm:$0xff]  }
  0x16   : > { %3630 = vmatprep.subr.bf16.mxu1 %v4514_v1  ;;  %v4733_v31 = vld [vmem:[%s4583_s25 + $0xb0] sm:$0xff]   ;;  %v4748_v32 = vld [vmem:[%s4583_s25 + $0x80] ss:$0 sps:$4 sm:$0xff]   ;;  %v4751_v33 = vld [vmem:[%s4583_s25 + $0xb8] ss:$0 sps:$4 sm:$0xff]  }
  0x17   : > { %3487 = vmatpush3.bf16.msra.mxu0 %v4594_v8  ;;  %v4762_v34 = vld [vmem:[%s4583_s25 + $0x8c] sm:$0xff]   ;;  %v4788_v38 = vld [vmem:[%s4583_s25 + $0x94] sm:$0xff]   ;;  %v4803_v39 = vld [vmem:[%s4583_s25 + $0x9c] ss:$0 sps:$4 sm:$0xff]  }
  0x18   : > { %3631 = vmatpush3.bf16.msra.mxu1 %v4594_v8  ;;  %3500 = vmatprep.subr.bf16.mxu0 %v4514_v1  ;;  %v4814_v40 = vld [vmem:[%s4583_s25 + $0xc4] sm:$0xff]   ;;  %v4840_v44 = vld [vmem:[%s4583_s25 + $0xcc] sm:$0xff]   ;;  %v4855_v45 = vld [vmem:[%s4583_s25 + $0xd4] ss:$0 sps:$4 sm:$0xff]  }
  0x19   : > { %3644 = vmatprep.subr.bf16.mxu1 %v4514_v1  ;;  %v4866_v46 = vld [vmem:[%s4583_s25 + $0x4] sm:$0xff]   ;;  %v4869_v47 = vld [vmem:[%s4583_s25 + $0x3c] sm:$0xff]   ;;  %v4894_v51 = vld [vmem:[%s4583_s25 + $0xc] sm:$0xff]  }
  0x1a   : > { %3477 = vmatmul.mubr.msk.bf16.gmra.mrb[4].mxu0 %vm212_vm2, %v4445_v9  ;;  %v4898_v52 = vld [vmem:[%s4583_s25 + $0x44] sm:$0xff]   ;;  %v4913_v53 = vld [vmem:[%s4583_s25 + $0x14] ss:$0 sps:$4 sm:$0xff]   ;;  %v4916_v54 = vld [vmem:[%s4583_s25 + $0x4c] ss:$0 sps:$4 sm:$0xff]  }
  0x1b   : > { %3621 = vmatmul.mubr.msk.bf16.gmra.mrb[4].mxu1 %vm212_vm2, %v4446_v10  ;;  %3480 = vmatprep.mubr.msk.bf16.mxu0 %vm4515_vm1, %v4514_v1  ;;  %v4927_v55 = vld [vmem:[%s4583_s25 + $0x20] sm:$0xff]   ;;  %v4953_v59 = vld [vmem:[%s4583_s25 + $0x28] sm:$0xff]   ;;  %v4968_v60 = vld [vmem:[%s4583_s25 + $0x30] ss:$0 sps:$4 sm:$0xff]  }
  0x1c   : > { %3624 = vmatprep.mubr.msk.bf16.mxu1 %vm4515_vm1, %v4514_v1  ;;  %v4979_v61 = vld [vmem:[%s4583_s25 + $0x58] sm:$0xff]   ;;  %v4994_v62 = vld [vmem:[%s4583_s25 + $0x60] sm:$0xff]   ;;  %v5009_v63 = vld [vmem:[%s4583_s25 + $0x68] ss:$0 sps:$4 sm:$0xff]  }
  0x1d   : > { %v4495_v2 = vld [vmem:[%s4583_s25 + $0xac] sm:$0xff]   ;;  %v4498_v5 = vld [vmem:[%s4583_s25 + $0x84] ss:$0 sps:$4 sm:$0xff]  }
  0x22   : > { %3481 = vmatmul.mubr.msk.bf16.gmra.mrb[8].mxu0 %vm212_vm2, %v4448_v11 }
  0x23   : > { %3625 = vmatmul.mubr.msk.bf16.gmra.mrb[8].mxu1 %vm212_vm2, %v4449_v12  ;;  %3488 = vmatprep.mubr.msk.bf16.mxu0 %vm4515_vm1, %v4514_v1 }
  0x24   : > { %3632 = vmatprep.mubr.msk.bf16.mxu1 %vm4515_vm1, %v4514_v1 }
  0x2a   : > { %3489 = vmatmul.mubr.msk.bf16.vlgmr.msra.gmra.mrb[0].mxu0 %vm212_vm2, %v4450_v13 }
  0x2b   : > { %3633 = vmatmul.mubr.msk.bf16.vlgmr.msra.gmra.mrb[0].mxu1 %vm212_vm2, %v4442_v6  ;;  %3501 = vmatpush3.bf16.msra.mxu0 %v4624_v14  ;;  %v4499_v6 = vld [vmem:[%s4583_s25 + $0xbc] ss:$0 sps:$4 sm:$0xff]  }
  0x2c   : > { %3645 = vmatpush3.bf16.msra.mxu1 %v4624_v14  ;;  %3492 = vmatprep.mubr.msk.bf16.mxu0 %vm4515_vm1, %v4514_v1 }
  0x2d   : > { %3636 = vmatprep.mubr.msk.bf16.mxu1 %vm4515_vm1, %v4514_v1  ;;  %3502 = vmatprep.subr.bf16.mxu0 %v4514_v1 }
  0x2e   : > { %3646 = vmatprep.subr.bf16.mxu1 %v4514_v1 }
  0x2f   : > { %3503 = vmatpush3.bf16.msra.mxu0 %v4636_v16 }
  0x30   : > { %3647 = vmatpush3.bf16.msra.mxu1 %v4636_v16  ;;  %3516 = vmatprep.subr.bf16.mxu0 %v4514_v1 }
  0x31   : > { %3660 = vmatprep.subr.bf16.mxu1 %v4514_v1 }
  0x32   : > { %3493 = vmatmul.mubr.msk.bf16.gmra.mrb[4].mxu0 %vm212_vm2, %v4452_v17 }
  0x33   : > { %3637 = vmatmul.mubr.msk.bf16.gmra.mrb[4].mxu1 %vm212_vm2, %v4445_v9  ;;  %3496 = vmatprep.mubr.msk.bf16.mxu0 %vm4515_vm1, %v4514_v1  ;;  %v4502_v9 = vld [vmem:[%s4583_s25 + $0xa0] ss:$0 sps:$4 sm:$0xff]  }
  0x34   : > { %3640 = vmatprep.mubr.msk.bf16.mxu1 %vm4515_vm1, %v4514_v1 }
  0x3a   : > { %3497 = vmatmul.mubr.msk.bf16.gmra.mrb[8].mxu0 %vm212_vm2, %v4454_v18 }
  0x3b   : > { %3641 = vmatmul.mubr.msk.bf16.gmra.mrb[8].mxu1 %vm212_vm2, %v4448_v11  ;;  %3504 = vmatprep.mubr.msk.bf16.mxu0 %vm4515_vm1, %v4514_v1 }
  0x3c   : > { %3648 = vmatprep.mubr.msk.bf16.mxu1 %vm4515_vm1, %v4514_v1 }
  0x42   : > { %3505 = vmatmul.mubr.msk.bf16.vlgmr.msra.gmra.mrb[0].mxu0 %vm212_vm2, %v4443_v7  ;;  %v4500_v7 = vld [vmem:[%s4583_s25 + $0x90] sm:$0xff]  }
  0x43   : > { %3649 = vmatmul.mubr.msk.bf16.vlgmr.msra.gmra.mrb[0].mxu1 %vm212_vm2, %v4455_v19  ;;  %3517 = vmatpush3.bf16.msra.mxu0 %v4664_v20 }
  0x44   : > { %3661 = vmatpush3.bf16.msra.mxu1 %v4664_v20  ;;  %3508 = vmatprep.mubr.msk.bf16.mxu0 %vm4515_vm1, %v4514_v1 }
  0x45   : > { %3652 = vmatprep.mubr.msk.bf16.mxu1 %vm4515_vm1, %v4514_v1  ;;  %3518 = vmatprep.subr.bf16.mxu0 %v4514_v1 }
  0x46   : > { %3662 = vmatprep.subr.bf16.mxu1 %v4514_v1 }
  0x47   : > { %3519 = vmatpush3.bf16.msra.mxu0 %v4676_v22 }
  0x48   : > { %3663 = vmatpush3.bf16.msra.mxu1 %v4676_v22  ;;  %3532 = vmatprep.subr.bf16.mxu0 %v4514_v1 }
  0x49   : > { %3676 = vmatprep.subr.bf16.mxu1 %v4514_v1 }
  0x4a   : > { %3509 = vmatmul.mubr.msk.bf16.gmra.mrb[4].mxu0 %vm212_vm2, %v4446_v10 }
  0x4b   : > { %3653 = vmatmul.mubr.msk.bf16.gmra.mrb[4].mxu1 %vm212_vm2, %v4457_v23  ;;  %3512 = vmatprep.mubr.msk.bf16.mxu0 %vm4515_vm1, %v4514_v1 }
  0x4c   : > { %3656 = vmatprep.mubr.msk.bf16.mxu1 %vm4515_vm1, %v4514_v1 }
  0x52   : > { %3513 = vmatmul.mubr.msk.bf16.gmra.mrb[8].mxu0 %vm212_vm2, %v4449_v12 }
  0x53   : > { %3657 = vmatmul.mubr.msk.bf16.gmra.mrb[8].mxu1 %vm212_vm2, %v4459_v24  ;;  %3520 = vmatprep.mubr.msk.bf16.mxu0 %vm4515_vm1, %v4514_v1 }
  0x54   : > { %3664 = vmatprep.mubr.msk.bf16.mxu1 %vm4515_vm1, %v4514_v1 }
  0x5a   : > { %3521 = vmatmul.mubr.msk.bf16.vlgmr.msra.gmra.mrb[0].mxu0 %vm212_vm2, %v4701_v25 }
  0x5b   : > { %3665 = vmatmul.mubr.msk.bf16.vlgmr.msra.gmra.mrb[0].mxu1 %vm212_vm2, %v4704_v26  ;;  %3533 = vmatpush3.bf16.msra.mxu0 %v4709_v27 }
  0x5c   : > { %3677 = vmatpush3.bf16.msra.mxu1 %v4709_v27  ;;  %3524 = vmatprep.mubr.msk.bf16.mxu0 %vm4515_vm1, %v4514_v1 }
  0x5d   : > { %3668 = vmatprep.mubr.msk.bf16.mxu1 %vm4515_vm1, %v4514_v1  ;;  %3534 = vmatprep.subr.bf16.mxu0 %v4514_v1 }
  0x5e   : > { %3678 = vmatprep.subr.bf16.mxu1 %v4514_v1 }
  0x5f   : > { %3535 = vmatpush3.bf16.msra.mxu0 %v4723_v29 }
  0x60   : > { %3679 = vmatpush3.bf16.msra.mxu1 %v4723_v29  ;;  %3548 = vmatprep.subr.bf16.mxu0 %v4514_v1 }
  0x61   : > { %3692 = vmatprep.subr.bf16.mxu1 %v4514_v1 }
  0x62   : > { %3525 = vmatmul.mubr.msk.bf16.gmra.mrb[4].mxu0 %vm212_vm2, %v4729_v30 }
  0x63   : > { %3669 = vmatmul.mubr.msk.bf16.gmra.mrb[4].mxu1 %vm212_vm2, %v4733_v31  ;;  %3528 = vmatprep.mubr.msk.bf16.mxu0 %vm4515_vm1, %v4514_v1 }
  0x64   : > { %3672 = vmatprep.mubr.msk.bf16.mxu1 %vm4515_vm1, %v4514_v1 }
  0x6a   : > { %3529 = vmatmul.mubr.msk.bf16.gmra.mrb[8].mxu0 %vm212_vm2, %v4748_v32 }
  0x6b   : > { %3673 = vmatmul.mubr.msk.bf16.gmra.mrb[8].mxu1 %vm212_vm2, %v4751_v33  ;;  %3536 = vmatprep.mubr.msk.bf16.mxu0 %vm4515_vm1, %v4514_v1 }
  0x6c   : > { %3680 = vmatprep.mubr.msk.bf16.mxu1 %vm4515_vm1, %v4514_v1 }
  0x72   : > { %3537 = vmatmul.mubr.msk.bf16.vlgmr.msra.gmra.mrb[0].mxu0 %vm212_vm2, %v4704_v26 }
  0x73   : > { %3681 = vmatmul.mubr.msk.bf16.vlgmr.msra.gmra.mrb[0].mxu1 %vm212_vm2, %v4762_v34  ;;  %3549 = vmatpush3.bf16.msra.mxu0 %v4767_v35 }
  0x74   : > { %3693 = vmatpush3.bf16.msra.mxu1 %v4767_v35  ;;  %3540 = vmatprep.mubr.msk.bf16.mxu0 %vm4515_vm1, %v4514_v1 }
  0x75   : > { %3684 = vmatprep.mubr.msk.bf16.mxu1 %vm4515_vm1, %v4514_v1  ;;  %3550 = vmatprep.subr.bf16.mxu0 %v4514_v1 }
  0x76   : > { %3694 = vmatprep.subr.bf16.mxu1 %v4514_v1 }
  0x77   : > { %3551 = vmatpush3.bf16.msra.mxu0 %v4781_v37 }
  0x78   : > { %3695 = vmatpush3.bf16.msra.mxu1 %v4781_v37  ;;  %3564 = vmatprep.subr.bf16.mxu0 %v4514_v1 }
  0x79   : > { %3708 = vmatprep.subr.bf16.mxu1 %v4514_v1 }
  0x7a   : > { %3541 = vmatmul.mubr.msk.bf16.gmra.mrb[4].mxu0 %vm212_vm2, %v4733_v31 }
  0x7b   : > { %3685 = vmatmul.mubr.msk.bf16.gmra.mrb[4].mxu1 %vm212_vm2, %v4788_v38  ;;  %3544 = vmatprep.mubr.msk.bf16.mxu0 %vm4515_vm1, %v4514_v1 }
  0x7c   : > { %3688 = vmatprep.mubr.msk.bf16.mxu1 %vm4515_vm1, %v4514_v1 }
  0x82   : > { %3545 = vmatmul.mubr.msk.bf16.gmra.mrb[8].mxu0 %vm212_vm2, %v4751_v33 }
  0x83   : > { %3689 = vmatmul.mubr.msk.bf16.gmra.mrb[8].mxu1 %vm212_vm2, %v4803_v39  ;;  %3552 = vmatprep.mubr.msk.bf16.mxu0 %vm4515_vm1, %v4514_v1 }
  0x84   : > { %3696 = vmatprep.mubr.msk.bf16.mxu1 %vm4515_vm1, %v4514_v1 }
  0x8a   : > { %3553 = vmatmul.mubr.msk.bf16.vlgmr.msra.gmra.mrb[0].mxu0 %vm212_vm2, %v4762_v34 }
  0x8b   : > { %3697 = vmatmul.mubr.msk.bf16.vlgmr.msra.gmra.mrb[0].mxu1 %vm212_vm2, %v4814_v40  ;;  %3565 = vmatpush3.bf16.msra.mxu0 %v4819_v41 }
  0x8c   : > { %3709 = vmatpush3.bf16.msra.mxu1 %v4819_v41  ;;  %3556 = vmatprep.mubr.msk.bf16.mxu0 %vm4515_vm1, %v4514_v1 }
  0x8d   : > { %3700 = vmatprep.mubr.msk.bf16.mxu1 %vm4515_vm1, %v4514_v1  ;;  %3566 = vmatprep.subr.bf16.mxu0 %v4514_v1 }
  0x8e   : > { %3710 = vmatprep.subr.bf16.mxu1 %v4514_v1 }
  0x8f   : > { %3567 = vmatpush3.bf16.msra.mxu0 %v4833_v43 }
  0x90   : > { %3711 = vmatpush3.bf16.msra.mxu1 %v4833_v43  ;;  %3580 = vmatprep.subr.bf16.mxu0 %v4514_v1 }
  0x91   : > { %3724 = vmatprep.subr.bf16.mxu1 %v4514_v1 }
  0x92   : > { %3557 = vmatmul.mubr.msk.bf16.gmra.mrb[4].mxu0 %vm212_vm2, %v4788_v38 }
  0x93   : > { %3701 = vmatmul.mubr.msk.bf16.gmra.mrb[4].mxu1 %vm212_vm2, %v4840_v44  ;;  %3560 = vmatprep.mubr.msk.bf16.mxu0 %vm4515_vm1, %v4514_v1 }
  0x94   : > { %3704 = vmatprep.mubr.msk.bf16.mxu1 %vm4515_vm1, %v4514_v1 }
  0x9a   : > { %3561 = vmatmul.mubr.msk.bf16.gmra.mrb[8].mxu0 %vm212_vm2, %v4803_v39 }
  0x9b   : > { %3705 = vmatmul.mubr.msk.bf16.gmra.mrb[8].mxu1 %vm212_vm2, %v4855_v45  ;;  %3568 = vmatprep.mubr.msk.bf16.mxu0 %vm4515_vm1, %v4514_v1 }
  0x9c   : > { %3712 = vmatprep.mubr.msk.bf16.mxu1 %vm4515_vm1, %v4514_v1 }
  0xa2   : > { %3569 = vmatmul.mubr.msk.bf16.vlgmr.msra.gmra.mrb[0].mxu0 %vm212_vm2, %v4866_v46 }
  0xa3   : > { %3713 = vmatmul.mubr.msk.bf16.vlgmr.msra.gmra.mrb[0].mxu1 %vm212_vm2, %v4869_v47  ;;  %3581 = vmatpush3.bf16.msra.mxu0 %v4874_v48 }
  0xa4   : > { %3725 = vmatpush3.bf16.msra.mxu1 %v4874_v48  ;;  %3572 = vmatprep.mubr.msk.bf16.mxu0 %vm4515_vm1, %v4514_v1 }
  0xa5   : > { %3716 = vmatprep.mubr.msk.bf16.mxu1 %vm4515_vm1, %v4514_v1  ;;  %3582 = vmatprep.subr.bf16.mxu0 %v4514_v1 }
  0xa6   : > { %3726 = vmatprep.subr.bf16.mxu1 %v4514_v1 }
  0xa7   : > { %3583 = vmatpush3.bf16.msra.mxu0 %v4888_v50 }
  0xa8   : > { %3727 = vmatpush3.bf16.msra.mxu1 %v4888_v50  ;;  %3596 = vmatprep.subr.bf16.mxu0 %v4514_v1 }
  0xa9   : > { %3740 = vmatprep.subr.bf16.mxu1 %v4514_v1 }
  0xaa   : > { %3573 = vmatmul.mubr.msk.bf16.gmra.mrb[4].mxu0 %vm212_vm2, %v4894_v51 }
  0xab   : > { %3717 = vmatmul.mubr.msk.bf16.gmra.mrb[4].mxu1 %vm212_vm2, %v4898_v52  ;;  %3576 = vmatprep.mubr.msk.bf16.mxu0 %vm4515_vm1, %v4514_v1 }
  0xac   : > { %3720 = vmatprep.mubr.msk.bf16.mxu1 %vm4515_vm1, %v4514_v1 }
  0xb2   : > { %3577 = vmatmul.mubr.msk.bf16.gmra.mrb[8].mxu0 %vm212_vm2, %v4913_v53 }
  0xb3   : > { %3721 = vmatmul.mubr.msk.bf16.gmra.mrb[8].mxu1 %vm212_vm2, %v4916_v54  ;;  %3584 = vmatprep.mubr.msk.bf16.mxu0 %vm4515_vm1, %v4514_v1 }
  0xb4   : > { %3728 = vmatprep.mubr.msk.bf16.mxu1 %vm4515_vm1, %v4514_v1 }
  0xba   : > { %3585 = vmatmul.mubr.msk.bf16.vlgmr.msra.gmra.mrb[0].mxu0 %vm212_vm2, %v4869_v47 }
  0xbb   : > { %3729 = vmatmul.mubr.msk.bf16.vlgmr.msra.gmra.mrb[0].mxu1 %vm212_vm2, %v4927_v55  ;;  %3597 = vmatpush3.bf16.msra.mxu0 %v4932_v56 }
  0xbc   : > { %3741 = vmatpush3.bf16.msra.mxu1 %v4932_v56  ;;  %3588 = vmatprep.mubr.msk.bf16.mxu0 %vm4515_vm1, %v4514_v1 }
  0xbd   : > { %3732 = vmatprep.mubr.msk.bf16.mxu1 %vm4515_vm1, %v4514_v1  ;;  %3598 = vmatprep.subr.bf16.mxu0 %v4514_v1 }
  0xbe   : > { %3742 = vmatprep.subr.bf16.mxu1 %v4514_v1 }
  0xbf   : > { %3599 = vmatpush3.bf16.msra.mxu0 %v4946_v58 }
  0xc0   : > { %3743 = vmatpush3.bf16.msra.mxu1 %v4946_v58  ;;  %3756 = vmatprep.subr.bf16.mxu0 %v4514_v1 }
  0xc1   : > { %3900 = vmatprep.subr.bf16.mxu1 %v4514_v1 }
  0xc2   : > { %3589 = vmatmul.mubr.msk.bf16.gmra.mrb[4].mxu0 %vm212_vm2, %v4898_v52 }
  0xc3   : > { %3733 = vmatmul.mubr.msk.bf16.gmra.mrb[4].mxu1 %vm212_vm2, %v4953_v59  ;;  %3592 = vmatprep.mubr.msk.bf16.mxu0 %vm4515_vm1, %v4514_v1 }
  0xc4   : > { %3736 = vmatprep.mubr.msk.bf16.mxu1 %vm4515_vm1, %v4514_v1 }
  0xca   : > { %3593 = vmatmul.mubr.msk.bf16.gmra.mrb[8].mxu0 %vm212_vm2, %v4916_v54 }
  0xcb   : > { %3737 = vmatmul.mubr.msk.bf16.gmra.mrb[8].mxu1 %vm212_vm2, %v4968_v60  ;;  %3600 = vmatprep.mubr.msk.bf16.mxu0 %vm4515_vm1, %v4514_v1 }
  0xcc   : > { %3744 = vmatprep.mubr.msk.bf16.mxu1 %vm4515_vm1, %v4514_v1 }
  0xd2   : > { %3601 = vmatmul.mubr.msk.bf16.vlgmr.msra.gmra.mrb[0].mxu0 %vm212_vm2, %v4927_v55 }
  0xd3   : > { %3745 = vmatmul.mubr.msk.bf16.vlgmr.msra.gmra.mrb[0].mxu1 %vm212_vm2, %v4979_v61  ;;  %3757 = vmatpush3.bf16.msra.mxu0 %v4547_v0 }
  0xd4   : > { %3901 = vmatpush3.bf16.msra.mxu1 %v4547_v0  ;;  %3604 = vmatprep.mubr.msk.bf16.mxu0 %vm4515_vm1, %v4514_v1  ;;  %v4494_v0 = vld [vmem:[%s4583_s25 + $0x74] sm:$0xff]  }
  0xd5   : > { %3748 = vmatprep.mubr.msk.bf16.mxu1 %vm4515_vm1, %v4514_v1  ;;  %3758 = vmatprep.subr.bf16.mxu0 %v4514_v1 }
  0xd6   : > { %3902 = vmatprep.subr.bf16.mxu1 %v4514_v1 }
  0xd7   : > { %3759 = vmatpush3.bf16.msra.mxu0 %v4559_v3 }
  0xd8   : > { %3903 = vmatpush3.bf16.msra.mxu1 %v4559_v3  ;;  %3772 = vmatprep.subr.bf16.mxu0 %v4514_v1  ;;  %v4496_v3 = vld [vmem:[%s4583_s25 + $0x7c] sm:$0xff]  }
  0xd9   : > { %3916 = vmatprep.subr.bf16.mxu1 %v4514_v1 }
  0xda   : > { %3605 = vmatmul.mubr.msk.bf16.gmra.mrb[4].mxu0 %vm212_vm2, %v4953_v59 }
  0xdb   : > { %3749 = vmatmul.mubr.msk.bf16.gmra.mrb[4].mxu1 %vm212_vm2, %v4994_v62  ;;  %3608 = vmatprep.mubr.msk.bf16.mxu0 %vm4515_vm1, %v4514_v1 }
  0xdc   : > { %3752 = vmatprep.mubr.msk.bf16.mxu1 %vm4515_vm1, %v4514_v1 }
  0xe2   : > { %3609 = vmatmul.mubr.msk.bf16.gmra.mrb[8].mxu0 %vm212_vm2, %v4968_v60 }
  0xe3   : > { %3753 = vmatmul.mubr.msk.bf16.gmra.mrb[8].mxu1 %vm212_vm2, %v5009_v63  ;;  %3760 = vmatprep.mubr.msk.bf16.mxu0 %vm4515_vm1, %v4514_v1 }
  0xe4   : > { %3904 = vmatprep.mubr.msk.bf16.mxu1 %vm4515_vm1, %v4514_v1 }
  0xea   : > { %3761 = vmatmul.mubr.msk.bf16.vlgmr.msra.gmra.mrb[12].mxu0 %vm212_vm2, %v4704_v26 }
  0xeb   : > { %3905 = vmatmul.mubr.msk.bf16.vlgmr.msra.gmra.mrb[12].mxu1 %vm212_vm2, %v4762_v34  ;;  %3773 = vmatpush3.bf16.msra.mxu0 %v4574_v4 }
  0xec   : > { %3917 = vmatpush3.bf16.msra.mxu1 %v4574_v4  ;;  %3764 = vmatprep.mubr.msk.bf16.mxu0 %vm4515_vm1, %v4514_v1  ;;  %v4497_v4 = vld [vmem:[%s4583_s25 + $0xb4] sm:$0xff]  }
  0xed   : > { %3908 = vmatprep.mubr.msk.bf16.mxu1 %vm4515_vm1, %v4514_v1  ;;  %3774 = vmatprep.subr.bf16.mxu0 %v4514_v1 }
  0xee   : > { %3918 = vmatprep.subr.bf16.mxu1 %v4514_v1 }
  0xef   : > { %3775 = vmatpush3.bf16.msra.mxu0 %v4594_v8 }
  0xf0   : > { %3919 = vmatpush3.bf16.msra.mxu1 %v4594_v8  ;;  %3788 = vmatprep.subr.bf16.mxu0 %v4514_v1  ;;  %v4501_v8 = vld [vmem:[%s4583_s25 + $0x98] sm:$0xff]  }
  0xf1   : > { %3932 = vmatprep.subr.bf16.mxu1 %v4514_v1 }
  0xf2   : > { %3765 = vmatmul.mubr.msk.bf16.gmra.mrb[16].mxu0 %vm212_vm2, %v4733_v31 }
  0xf3   : > { %3909 = vmatmul.mubr.msk.bf16.gmra.mrb[16].mxu1 %vm212_vm2, %v4788_v38  ;;  %3768 = vmatprep.mubr.msk.bf16.mxu0 %vm4515_vm1, %v4514_v1 }
  0xf4   : > { %3912 = vmatprep.mubr.msk.bf16.mxu1 %vm4515_vm1, %v4514_v1 }
  0xfa   : > { %3769 = vmatmul.mubr.msk.bf16.gmra.mrb[20].mxu0 %vm212_vm2, %v4751_v33 }
  0xfb   : > { %3913 = vmatmul.mubr.msk.bf16.gmra.mrb[20].mxu1 %vm212_vm2, %v4803_v39  ;;  %3776 = vmatprep.mubr.msk.bf16.mxu0 %vm4515_vm1, %v4514_v1 }
  0xfc   : > { %3920 = vmatprep.mubr.msk.bf16.mxu1 %vm4515_vm1, %v4514_v1 }
 0x102   : > { %3777 = vmatmul.mubr.msk.bf16.vlgmr.msra.gmra.mrb[12].mxu0 %vm212_vm2, %v4701_v25 }
 0x103   : > { %3921 = vmatmul.mubr.msk.bf16.vlgmr.msra.gmra.mrb[12].mxu1 %vm212_vm2, %v4704_v26  ;;  %3789 = vmatpush3.bf16.msra.mxu0 %v4624_v14 }
 0x104   : > { %3933 = vmatpush3.bf16.msra.mxu1 %v4624_v14  ;;  %3780 = vmatprep.mubr.msk.bf16.mxu0 %vm4515_vm1, %v4514_v1 }
 0x105   : > { %3924 = vmatprep.mubr.msk.bf16.mxu1 %vm4515_vm1, %v4514_v1  ;;  %3790 = vmatprep.subr.bf16.mxu0 %v4514_v1 }
 0x106   : > { %3934 = vmatprep.subr.bf16.mxu1 %v4514_v1 }
 0x107   : > { %3791 = vmatpush3.bf16.msra.mxu0 %v4636_v16 }
 0x108   : > { %3935 = vmatpush3.bf16.msra.mxu1 %v4636_v16  ;;  %3804 = vmatprep.subr.bf16.mxu0 %v4514_v1  ;;  %v4503_v16 = vld [vmem:[%s4583_s25 + $0xc8] sm:$0xff]  }
 0x109   : > { %3948 = vmatprep.subr.bf16.mxu1 %v4514_v1 }
 0x10a   : > { %3781 = vmatmul.mubr.msk.bf16.gmra.mrb[16].mxu0 %vm212_vm2, %v4729_v30 }
 0x10b   : > { %3925 = vmatmul.mubr.msk.bf16.gmra.mrb[16].mxu1 %vm212_vm2, %v4733_v31  ;;  %3784 = vmatprep.mubr.msk.bf16.mxu0 %vm4515_vm1, %v4514_v1 }
 0x10c   : > { %3928 = vmatprep.mubr.msk.bf16.mxu1 %vm4515_vm1, %v4514_v1 }
 0x112   : > { %3785 = vmatmul.mubr.msk.bf16.gmra.mrb[20].mxu0 %vm212_vm2, %v4748_v32 }
 0x113   : > { %3929 = vmatmul.mubr.msk.bf16.gmra.mrb[20].mxu1 %vm212_vm2, %v4751_v33  ;;  %3792 = vmatprep.mubr.msk.bf16.mxu0 %vm4515_vm1, %v4514_v1 }
 0x114   : > { %3936 = vmatprep.mubr.msk.bf16.mxu1 %vm4515_vm1, %v4514_v1 }
 0x11a   : > { %3793 = vmatmul.mubr.msk.bf16.vlgmr.msra.gmra.mrb[12].mxu0 %vm212_vm2, %v4762_v34 }
 0x11b   : > { %3937 = vmatmul.mubr.msk.bf16.vlgmr.msra.gmra.mrb[12].mxu1 %vm212_vm2, %v4814_v40  ;;  %3805 = vmatpush3.bf16.msra.mxu0 %v4664_v20 }
 0x11c   : > { %3949 = vmatpush3.bf16.msra.mxu1 %v4664_v20  ;;  %3796 = vmatprep.mubr.msk.bf16.mxu0 %vm4515_vm1, %v4514_v1 }
 0x11d   : > { %3940 = vmatprep.mubr.msk.bf16.mxu1 %vm4515_vm1, %v4514_v1  ;;  %3806 = vmatprep.subr.bf16.mxu0 %v4514_v1 }
 0x11e   : > { %3950 = vmatprep.subr.bf16.mxu1 %v4514_v1 }
 0x11f   : > { %3807 = vmatpush3.bf16.msra.mxu0 %v4676_v22 }
 0x120   : > { %3951 = vmatpush3.bf16.msra.mxu1 %v4676_v22  ;;  %3820 = vmatprep.subr.bf16.mxu0 %v4514_v1 }
 0x121   : > { %3964 = vmatprep.subr.bf16.mxu1 %v4514_v1 }
 0x122   : > { %3797 = vmatmul.mubr.msk.bf16.gmra.mrb[16].mxu0 %vm212_vm2, %v4788_v38  ;;  %v4505_v38 = vld [vmem:[%s4583_s25 + $0xd8] ss:$0 sps:$4 sm:$0xff]  }
 0x123   : > { %3941 = vmatmul.mubr.msk.bf16.gmra.mrb[16].mxu1 %vm212_vm2, %v4840_v44  ;;  %3800 = vmatprep.mubr.msk.bf16.mxu0 %vm4515_vm1, %v4514_v1 }
 0x124   : > { %3944 = vmatprep.mubr.msk.bf16.mxu1 %vm4515_vm1, %v4514_v1 }
 0x12a   : > { %3801 = vmatmul.mubr.msk.bf16.gmra.mrb[20].mxu0 %vm212_vm2, %v4803_v39 }
 0x12b   : > { %3945 = vmatmul.mubr.msk.bf16.gmra.mrb[20].mxu1 %vm212_vm2, %v4855_v45  ;;  %3808 = vmatprep.mubr.msk.bf16.mxu0 %vm4515_vm1, %v4514_v1 }
 0x12c   : > { %3952 = vmatprep.mubr.msk.bf16.mxu1 %vm4515_vm1, %v4514_v1 }
 0x132   : > { %3809 = vmatmul.mubr.msk.bf16.vlgmr.msra.gmra.mrb[12].mxu0 %vm212_vm2, %v4866_v46 }
 0x133   : > { %3953 = vmatmul.mubr.msk.bf16.vlgmr.msra.gmra.mrb[12].mxu1 %vm212_vm2, %v4869_v47  ;;  %3821 = vmatpush3.bf16.msra.mxu0 %v4709_v27 }
 0x134   : > { %3965 = vmatpush3.bf16.msra.mxu1 %v4709_v27  ;;  %3812 = vmatprep.mubr.msk.bf16.mxu0 %vm4515_vm1, %v4514_v1  ;;  %v4504_v27 = vld [vmem:[%s4583_s25 + $0xd0] sm:$0xff]   ;;  %s4429_s25 = smul.u32 20, %s5314_s13 }
 0x135   : > { %3956 = vmatprep.mubr.msk.bf16.mxu1 %vm4515_vm1, %v4514_v1  ;;  %3822 = vmatprep.subr.bf16.mxu0 %v4514_v1 }
 0x136   : > { %3966 = vmatprep.subr.bf16.mxu1 %v4514_v1  ;;  %s5294_s7 = scalar_lea.vmem %s5312_s3, %s4429_s25 }
 0x137   : > { %3823 = vmatpush3.bf16.msra.mxu0 %v4723_v29 }
 0x138   : > { %3967 = vmatpush3.bf16.msra.mxu1 %v4723_v29  ;;  %3836 = vmatprep.subr.bf16.mxu0 %v4514_v1 }
 0x139   : > { %3980 = vmatprep.subr.bf16.mxu1 %v4514_v1 }
 0x13a   : > { %3813 = vmatmul.mubr.msk.bf16.gmra.mrb[16].mxu0 %vm212_vm2, %v4894_v51 }
 0x13b   : > { %3957 = vmatmul.mubr.msk.bf16.gmra.mrb[16].mxu1 %vm212_vm2, %v4898_v52  ;;  %3816 = vmatprep.mubr.msk.bf16.mxu0 %vm4515_vm1, %v4514_v1 }
 0x13c   : > { %3960 = vmatprep.mubr.msk.bf16.mxu1 %vm4515_vm1, %v4514_v1 }
 0x142   : > { %3817 = vmatmul.mubr.msk.bf16.gmra.mrb[20].mxu0 %vm212_vm2, %v4913_v53 }
 0x143   : > { %3961 = vmatmul.mubr.msk.bf16.gmra.mrb[20].mxu1 %vm212_vm2, %v4916_v54  ;;  %3824 = vmatprep.mubr.msk.bf16.mxu0 %vm4515_vm1, %v4514_v1 }
 0x144   : > { %3968 = vmatprep.mubr.msk.bf16.mxu1 %vm4515_vm1, %v4514_v1 }
 0x14a   : > { %3825 = vmatmul.mubr.msk.bf16.vlgmr.msra.gmra.mrb[12].mxu0 %vm212_vm2, %v4869_v47 }
 0x14b   : > { %3969 = vmatmul.mubr.msk.bf16.vlgmr.msra.gmra.mrb[12].mxu1 %vm212_vm2, %v4927_v55  ;;  %3837 = vmatpush3.bf16.msra.mxu0 %v4767_v35 }
 0x14c   : > { %3981 = vmatpush3.bf16.msra.mxu1 %v4767_v35  ;;  %3828 = vmatprep.mubr.msk.bf16.mxu0 %vm4515_vm1, %v4514_v1 }
 0x14d   : > { %3972 = vmatprep.mubr.msk.bf16.mxu1 %vm4515_vm1, %v4514_v1  ;;  %3838 = vmatprep.subr.bf16.mxu0 %v4514_v1 }
 0x14e   : > { %3982 = vmatprep.subr.bf16.mxu1 %v4514_v1 }
 0x14f   : > { %3839 = vmatpush3.bf16.msra.mxu0 %v4781_v37 }
 0x150   : > { %3983 = vmatpush3.bf16.msra.mxu1 %v4781_v37  ;;  %3852 = vmatprep.subr.bf16.mxu0 %v4514_v1 }
 0x151   : > { %3996 = vmatprep.subr.bf16.mxu1 %v4514_v1 }
 0x152   : > { %3829 = vmatmul.mubr.msk.bf16.gmra.mrb[16].mxu0 %vm212_vm2, %v4898_v52 }
 0x153   : > { %3973 = vmatmul.mubr.msk.bf16.gmra.mrb[16].mxu1 %vm212_vm2, %v4953_v59  ;;  %3832 = vmatprep.mubr.msk.bf16.mxu0 %vm4515_vm1, %v4514_v1 }
 0x154   : > { %3976 = vmatprep.mubr.msk.bf16.mxu1 %vm4515_vm1, %v4514_v1 }
 0x15a   : > { %3833 = vmatmul.mubr.msk.bf16.gmra.mrb[20].mxu0 %vm212_vm2, %v4916_v54 }
 0x15b   : > { %3977 = vmatmul.mubr.msk.bf16.gmra.mrb[20].mxu1 %vm212_vm2, %v4968_v60  ;;  %3840 = vmatprep.mubr.msk.bf16.mxu0 %vm4515_vm1, %v4514_v1 }
 0x15c   : > { %3984 = vmatprep.mubr.msk.bf16.mxu1 %vm4515_vm1, %v4514_v1 }
 0x162   : > { %3841 = vmatmul.mubr.msk.bf16.vlgmr.msra.gmra.mrb[12].mxu0 %vm212_vm2, %v4927_v55 }
 0x163   : > { %3985 = vmatmul.mubr.msk.bf16.vlgmr.msra.gmra.mrb[12].mxu1 %vm212_vm2, %v4979_v61  ;;  %3853 = vmatpush3.bf16.msra.mxu0 %v4819_v41 }
 0x164   : > { %3997 = vmatpush3.bf16.msra.mxu1 %v4819_v41  ;;  %3844 = vmatprep.mubr.msk.bf16.mxu0 %vm4515_vm1, %v4514_v1 }
 0x165   : > { %3988 = vmatprep.mubr.msk.bf16.mxu1 %vm4515_vm1, %v4514_v1  ;;  %3854 = vmatprep.subr.bf16.mxu0 %v4514_v1 }
 0x166   : > { %3998 = vmatprep.subr.bf16.mxu1 %v4514_v1 }
 0x167   : > { %3855 = vmatpush3.bf16.msra.mxu0 %v4833_v43 }
 0x168   : > { %3999 = vmatpush3.bf16.msra.mxu1 %v4833_v43  ;;  %3868 = vmatprep.subr.bf16.mxu0 %v4514_v1 }
 0x169   : > { %4012 = vmatprep.subr.bf16.mxu1 %v4514_v1 }
 0x16a   : > { %3845 = vmatmul.mubr.msk.bf16.gmra.mrb[16].mxu0 %vm212_vm2, %v4953_v59 }
 0x16b   : > { %3989 = vmatmul.mubr.msk.bf16.gmra.mrb[16].mxu1 %vm212_vm2, %v4994_v62  ;;  %3848 = vmatprep.mubr.msk.bf16.mxu0 %vm4515_vm1, %v4514_v1 }
 0x16c   : > { %3992 = vmatprep.mubr.msk.bf16.mxu1 %vm4515_vm1, %v4514_v1 }
 0x172   : > { %3849 = vmatmul.mubr.msk.bf16.gmra.mrb[20].mxu0 %vm212_vm2, %v4968_v60 }
 0x173   : > { %3993 = vmatmul.mubr.msk.bf16.gmra.mrb[20].mxu1 %vm212_vm2, %v5009_v63  ;;  %3856 = vmatprep.mubr.msk.bf16.mxu0 %vm4515_vm1, %v4514_v1 }
 0x174   : > { %4000 = vmatprep.mubr.msk.bf16.mxu1 %vm4515_vm1, %v4514_v1 }
 0x17a   : > { %3857 = vmatmul.mubr.msk.bf16.vlgmr.msra.gmra.mrb[12].mxu0 %vm212_vm2, %v4494_v0 }
 0x17b   : > { %4001 = vmatmul.mubr.msk.bf16.vlgmr.msra.gmra.mrb[12].mxu1 %vm212_vm2, %v4495_v2  ;;  %3869 = vmatpush3.bf16.msra.mxu0 %v4874_v48 }
 0x17c   : > { %4013 = vmatpush3.bf16.msra.mxu1 %v4874_v48  ;;  %3860 = vmatprep.mubr.msk.bf16.mxu0 %vm4515_vm1, %v4514_v1 }
 0x17d   : > { %4004 = vmatprep.mubr.msk.bf16.mxu1 %vm4515_vm1, %v4514_v1  ;;  %3870 = vmatprep.subr.bf16.mxu0 %v4514_v1 }
 0x17e   : > { %4014 = vmatprep.subr.bf16.mxu1 %v4514_v1 }
 0x17f   : > { %3871 = vmatpush3.bf16.msra.mxu0 %v4888_v50 }
 0x180   : > { %4015 = vmatpush3.bf16.msra.mxu1 %v4888_v50  ;;  %3884 = vmatprep.subr.bf16.mxu0 %v4514_v1 }
 0x181   : > { %4028 = vmatprep.subr.bf16.mxu1 %v4514_v1 }
 0x182   : > { %3861 = vmatmul.mubr.msk.bf16.gmra.mrb[16].mxu0 %vm212_vm2, %v4496_v3 }
 0x183   : > { %4005 = vmatmul.mubr.msk.bf16.gmra.mrb[16].mxu1 %vm212_vm2, %v4497_v4  ;;  %3864 = vmatprep.mubr.msk.bf16.mxu0 %vm4515_vm1, %v4514_v1 }
 0x184   : > { %4008 = vmatprep.mubr.msk.bf16.mxu1 %vm4515_vm1, %v4514_v1 }
 0x18a   : > { %3865 = vmatmul.mubr.msk.bf16.gmra.mrb[20].mxu0 %vm212_vm2, %v4498_v5 }
 0x18b   : > { %4009 = vmatmul.mubr.msk.bf16.gmra.mrb[20].mxu1 %vm212_vm2, %v4499_v6  ;;  %3872 = vmatprep.mubr.msk.bf16.mxu0 %vm4515_vm1, %v4514_v1 }
 0x18c   : > { %4016 = vmatprep.mubr.msk.bf16.mxu1 %vm4515_vm1, %v4514_v1 }
 0x192   : > { %3873 = vmatmul.mubr.msk.bf16.vlgmr.msra.gmra.mrb[12].mxu0 %vm212_vm2, %v4495_v2 }
 0x193   : > { %4017 = vmatmul.mubr.msk.bf16.vlgmr.msra.gmra.mrb[12].mxu1 %vm212_vm2, %v4500_v7  ;;  %3885 = vmatpush3.bf16.msra.mxu0 %v4932_v56 }
 0x194   : > { %4029 = vmatpush3.bf16.msra.mxu1 %v4932_v56  ;;  %3876 = vmatprep.mubr.msk.bf16.mxu0 %vm4515_vm1, %v4514_v1 }
 0x195   : > { %4020 = vmatprep.mubr.msk.bf16.mxu1 %vm4515_vm1, %v4514_v1  ;;  %3886 = vmatprep.subr.bf16.mxu0 %v4514_v1 }
 0x196   : > { %4030 = vmatprep.subr.bf16.mxu1 %v4514_v1 }
 0x197   : > { %3887 = vmatpush3.bf16.msra.mxu0 %v4946_v58 }
 0x198   : > { %4031 = vmatpush3.bf16.msra.mxu1 %v4946_v58 }
 0x19a   : > { %3877 = vmatmul.mubr.msk.bf16.gmra.mrb[16].mxu0 %vm212_vm2, %v4497_v4 }
 0x19b   : > { %4021 = vmatmul.mubr.msk.bf16.gmra.mrb[16].mxu1 %vm212_vm2, %v4501_v8  ;;  %3880 = vmatprep.mubr.msk.bf16.mxu0 %vm4515_vm1, %v4514_v1 }
 0x19c   : > { %4024 = vmatprep.mubr.msk.bf16.mxu1 %vm4515_vm1, %v4514_v1 }
 0x1a2   : > { %3881 = vmatmul.mubr.msk.bf16.gmra.mrb[20].mxu0 %vm212_vm2, %v4499_v6 }
 0x1a3   : > { %4025 = vmatmul.mubr.msk.bf16.gmra.mrb[20].mxu1 %vm212_vm2, %v4502_v9  ;;  %3888 = vmatprep.mubr.msk.bf16.mxu0 %vm4515_vm1, %v4514_v1 }
 0x1a4   : > { %4032 = vmatprep.mubr.msk.bf16.mxu1 %vm4515_vm1, %v4514_v1 }
 0x1a5   : > { %v1077_v10 = vpop.f32.mrb[0].mxu0 }
 0x1a6   : > { %v1699_v11 = vpop.f32.mrb[0].mxu1  ;;  %v3602_v12 = vpop.f32.mrb[1].mxu0 }
 0x1a7   : > { %v1726_v13 = vmax.f32 %v1077_v10, %v1699_v11  ;;  %v3746_v14 = vpop.f32.mrb[1].mxu1  ;;  %v1080_v15 = vpop.f32.mrb[2].mxu0 }
 0x1a8   : > { %v1702_v17 = vpop.f32.mrb[2].mxu1  ;;  %v3603_v18 = vpop.f32.mrb[3].mxu0 }
 0x1a9   : > { %v1727_v19 = vmax.f32 %v1080_v15, %v1702_v17  ;;  %v3747_v20 = vpop.f32.mrb[3].mxu1 }
 0x1aa   : > { %3889 = vmatmul.mubr.msk.bf16.vlgmr.msra.gmra.mrb[12].mxu0 %vm212_vm2, %v4500_v7 }
 0x1ab   : > { %4033 = vmatmul.mubr.msk.bf16.vlgmr.msra.gmra.mrb[12].mxu1 %vm212_vm2, %v4503_v16  ;;  %3892 = vmatprep.mubr.msk.bf16.mxu0 %vm4515_vm1, %v4514_v1 }
 0x1ac   : > { %4036 = vmatprep.mubr.msk.bf16.mxu1 %vm4515_vm1, %v4514_v1 }
 0x1ad   : > { %v1085_v21 = vpop.f32.mrb[4].mxu0 }
 0x1ae   : > { %v1707_v22 = vpop.f32.mrb[4].mxu1  ;;  %v3606_v23 = vpop.f32.mrb[5].mxu0 }
 0x1af   : > { %v1728_v24 = vmax.f32 %v1085_v21, %v1707_v22  ;;  %v3750_v25 = vpop.f32.mrb[5].mxu1  ;;  %v1088_v26 = vpop.f32.mrb[6].mxu0 }
 0x1b0   : > { %v1710_v28 = vpop.f32.mrb[6].mxu1  ;;  %v3607_v29 = vpop.f32.mrb[7].mxu0 }
 0x1b1   : > { %v1729_v30 = vmax.f32 %v1088_v26, %v1710_v28  ;;  %v3751_v31 = vpop.f32.mrb[7].mxu1 }
 0x1b2   : > { %3893 = vmatmul.mubr.msk.bf16.gmra.mrb[16].mxu0 %vm212_vm2, %v4501_v8 }
 0x1b3   : > { %4037 = vmatmul.mubr.msk.bf16.gmra.mrb[16].mxu1 %vm212_vm2, %v4504_v27  ;;  %3896 = vmatprep.mubr.msk.bf16.mxu0 %vm4515_vm1, %v4514_v1 }
 0x1b4   : > { %4040 = vmatprep.mubr.msk.bf16.mxu1 %vm4515_vm1, %v4514_v1  ;;  %v3285_v1 = vld [vmem:[%s5311_s2] ss:$0 sm:$0xff] }
 0x1b5   : > { %v1093_v32 = vpop.f32.mrb[8].mxu0 }
 0x1b6   : > { %v1715_v33 = vpop.f32.mrb[8].mxu1  ;;  %v3610_v34 = vpop.f32.mrb[9].mxu0 }
 0x1b7   : > { %v1730_v35 = vmax.f32 %v1093_v32, %v1715_v33  ;;  %v3754_v36 = vpop.f32.mrb[9].mxu1  ;;  %v1096_v37 = vpop.f32.mrb[10].mxu0 }
 0x1b8   : > { %v1718_v39 = vpop.f32.mrb[10].mxu1  ;;  %v3611_v40 = vpop.f32.mrb[11].mxu0 }
 0x1b9   : > { %v3755_v41 = vpop.f32.mrb[11].mxu1 }
 0x1ba   : > { %3897 = vmatmul.mubr.msk.bf16.gmra.mrb[20].mxu0 %vm212_vm2, %v4502_v9 }
 0x1bb   : > { %4041 = vmatmul.mubr.msk.bf16.gmra.mrb[20].mxu1 %vm212_vm2, %v4505_v38 }
 0x27d   : > { %v2324_v42 = vpop.f32.mrb[12].mxu0 }
 0x27e   : > { %v2351_v43 = vmax.f32 %v1726_v13, %v2324_v42  ;;  %v2895_v44 = vpop.f32.mrb[12].mxu1  ;;  %v3890_v45 = vpop.f32.mrb[13].mxu0 }
 0x27f   : > { %v4034_v46 = vpop.f32.mrb[13].mxu1  ;;  %v2327_v47 = vpop.f32.mrb[14].mxu0 }
 0x280   : > { %v2922_v48 = vmax.f32 %v2351_v43, %v2895_v44  ;;  %v2352_v49 = vmax.f32 %v1727_v19, %v2327_v47  ;;  %v2898_v50 = vpop.f32.mrb[14].mxu1  ;;  %v3891_v51 = vpop.f32.mrb[15].mxu0 }
 0x281   : > { %v4035_v52 = vpop.f32.mrb[15].mxu1 }
 0x282   : > { %v2934_v53 = vadd.f32 %v3285_v1, %v2922_v48  ;;  %v2923_v54 = vmax.f32 %v2352_v49, %v2898_v50 }
 0x284   : > { %v2939_v55 = vmax.f32 %v2934_v53, 0.0  ;;  %v2935_v56 = vadd.f32 %v3285_v1, %v2923_v54 }
 0x285   : > { %v2332_v57 = vpop.f32.mrb[16].mxu0 }
 0x286   : > { %v2944_v58 = vpack.c.bf16 %v2939_v55, %v2939_v55  ;;  %v2940_v59 = vmax.f32 %v2935_v56, 0.0  ;;  %v2353_v60 = vmax.f32 %v1728_v24, %v2332_v57  ;;  %v2903_v61 = vpop.f32.mrb[16].mxu1  ;;  %v3894_v62 = vpop.f32.mrb[17].mxu0 }
 0x287   : > { %v4038_v63 = vpop.f32.mrb[17].mxu1  ;;  %v2335_v0 = vpop.f32.mrb[18].mxu0 }
 0x288   : > { %2950 = vst.msk [vmem:[%s5294_s7] sm:$0x7] %vm2949_vm3, %v2944_v58  ;;  %v2945_v2 = vpack.c.bf16 %v2940_v59, %v2940_v59  ;;  %v2924_v3 = vmax.f32 %v2353_v60, %v2903_v61  ;;  %v2354_v4 = vmax.f32 %v1729_v30, %v2335_v0  ;;  %v2906_v5 = vpop.f32.mrb[18].mxu1  ;;  %v3895_v6 = vpop.f32.mrb[19].mxu0 }
 0x289   : > { %v4039_v7 = vpop.f32.mrb[19].mxu1 }
 0x28a   : > { %2951 = vst.msk [vmem:[%s5294_s7 + $0x4] sm:$0x7] %vm2949_vm3, %v2945_v2  ;;  %v2936_v8 = vadd.f32 %v3285_v1, %v2924_v3  ;;  %v2925_v9 = vmax.f32 %v2354_v4, %v2906_v5 }
 0x28c   : > { %v2941_v10 = vmax.f32 %v2936_v8, 0.0  ;;  %v2937_v11 = vadd.f32 %v3285_v1, %v2925_v9 }
 0x28d   : > { %v2340_v12 = vpop.f32.mrb[20].mxu0 }
 0x28e   : > { %v2946_v13 = vpack.c.bf16 %v2941_v10, %v2941_v10  ;;  %v2942_v14 = vmax.f32 %v2937_v11, 0.0  ;;  %v2355_v15 = vmax.f32 %v1730_v35, %v2340_v12  ;;  %v2911_v16 = vpop.f32.mrb[20].mxu1  ;;  %v3898_v17 = vpop.f32.mrb[21].mxu0 }
 0x28f   : > { %v4042_v18 = vpop.f32.mrb[21].mxu1  ;;  %v2343_v19 = vpop.f32.mrb[22].mxu0 }
 0x290   : > { %2952 = vst.msk [vmem:[%s5294_s7 + $0x8] sm:$0x7] %vm2949_vm3, %v2946_v13  ;;  %v2947_v20 = vpack.c.bf16 %v2942_v14, %v2942_v14  ;;  %v2926_v21 = vmax.f32 %v2355_v15, %v2911_v16  ;;  %v2914_v22 = vpop.f32.mrb[22].mxu1  ;;  %v3899_v23 = vpop.f32.mrb[23].mxu0 }
 0x291   : > { %v4043_v24 = vpop.f32.mrb[23].mxu1 }
 0x292   : > { %2953 = vst.msk [vmem:[%s5294_s7 + $0xc] sm:$0x7] %vm2949_vm3, %v2947_v20  ;;  %v2938_v25 = vadd.f32 %v3285_v1, %v2926_v21 }
 0x294   : > { %v2943_v26 = vmax.f32 %v2938_v25, 0.0 }
 0x296   : > { %v2948_v27 = vpack.c.bf16 %v2943_v26, %v2943_v26 }
 0x298   : > { %2954 = vst.msk [vmem:[%s5294_s7 + $0x10] sm:$0x7] %vm2949_vm3, %v2948_v27 }
 0x299 PF: > { %s13_s12 = sadd.s32 1, %s4512_s12  }
 0x29a   : > { %p10_p4 = scmp.ge.s32.totalorder %s13_s12, 4  }
 0x29c   :  { %12 = sbr.rel (!%p10_p4) target bundleno = 1 (0x1), region = 77 }

// kernel: forward_pallas.5
= control target key start
LH: loop header
LB: loop body
LE: loop exit
PB: predicated region body
PF: predicated region fallthrough
CT: control target
= control target key end

     0   :  { %v392_v36 = vlaneseq  ;;  %v6924_v37 = vmov 1966171168   ;;  %s9158_s0 = inlined_call_operand.vmem [shape: bf16[2,1440], index: 0, kind: input, shape index: {}]   ;;  %s9159_s1 = inlined_call_operand.vmem [shape: bf16[1440,512], index: 1, kind: input, shape index: {}]   ;;  %s9160_s2 = inlined_call_operand.vmem [shape: f32[1,512], index: 2, kind: input, shape index: {}]   ;;  %s9161_s3 = inlined_call_operand.vmem [shape: bf16[512,1024], index: 3, kind: input, shape index: {}]   ;;  %s9162_s4 = inlined_call_operand.vmem [shape: f32[1,1024], index: 4, kind: input, shape index: {}]   ;;  %s9163_s5 = inlined_call_operand.vmem [shape: bf16[1024,2], index: 5, kind: input, shape index: {}]   ;;  %s9164_s6 = inlined_call_operand.vmem [shape: f32[1,2], index: 6, kind: input, shape index: {}]   ;;  %s9165_s7 = inlined_call_operand.hbm [shape: f32[2,2], index: 7, kind: output, shape index: {}]  }
   0x1   :  { %v6267_v0 = vld [vmem:[%s9159_s1 + $0x4] ss:$16 sps:$4 sm:$0xff]   ;;  %v6269_v1 = vld [vmem:[%s9159_s1 + $0xc] ss:$16 sps:$4 sm:$0xff]   ;;  %v6271_v2 = vld [vmem:[%s9159_s1] ss:$16 sps:$4 sm:$0xff]   ;;  %v416_v38 = vunpack.c.l.s4 %v6924_v37 }
   0x2   :  { %2302 = vmatprep.subr.bf16.mxu0 %v6267_v0  ;;  %v6272_v3 = vld [vmem:[%s9159_s1 + $0x8] ss:$16 sps:$4 sm:$0xff]   ;;  %2548 = vmatprep.subr.bf16.mxu1 %v6269_v1  ;;  %v6273_v4 = vld [vmem:[%s9159_s1 + $0x24] ss:$16 sps:$4 sm:$0xff]   ;;  %v6275_v5 = vld [vmem:[%s9159_s1 + $0x2c] ss:$16 sps:$4 sm:$0xff]  }
   0x3   :  { %2303 = vmatpush1.bf16.msra.mxu0 %v6271_v2  ;;  %2549 = vmatpush1.bf16.msra.mxu1 %v6272_v3  ;;  %v6277_v6 = vld [vmem:[%s9159_s1 + $0x20] ss:$16 sps:$4 sm:$0xff]   ;;  %v6278_v7 = vld [vmem:[%s9159_s1 + $0x28] ss:$16 sps:$4 sm:$0xff]   ;;  %v6279_v8 = vld [vmem:[%s9159_s1 + $0x44] ss:$16 sps:$4 sm:$0xff]   ;;  %v417_v43 = vunpack.c.0.s8 %v416_v38 }
   0x4   :  { %2304 = vmatprep.subr.bf16.mxu0 %v6273_v4  ;;  %2550 = vmatprep.subr.bf16.mxu1 %v6275_v5  ;;  %v6281_v9 = vld [vmem:[%s9159_s1 + $0x4c] ss:$16 sps:$4 sm:$0xff]   ;;  %v6283_v10 = vld [vmem:[%s9159_s1 + $0x40] ss:$16 sps:$4 sm:$0xff]   ;;  %v6284_v11 = vld [vmem:[%s9159_s1 + $0x48] ss:$16 sps:$4 sm:$0xff]  }
   0x5   :  { %v6285_v12 = vld [vmem:[%s9159_s1 + $0x64] ss:$16 sps:$4 sm:$0xff]   ;;  %v6287_v13 = vld [vmem:[%s9159_s1 + $0x6c] ss:$16 sps:$4 sm:$0xff]   ;;  %v6289_v14 = vld [vmem:[%s9159_s1 + $0x60] ss:$16 sps:$4 sm:$0xff]  }
   0x6   :  { %v6290_v15 = vld [vmem:[%s9159_s1 + $0x68] ss:$16 sps:$4 sm:$0xff]   ;;  %v6291_v16 = vld [vmem:[%s9159_s1 + $0x84] ss:$16 sps:$4 sm:$0xff]   ;;  %v6293_v17 = vld [vmem:[%s9159_s1 + $0x8c] ss:$16 sps:$4 sm:$0xff]  }
   0x7   :  { %2305 = vmatpush1.bf16.msra.mxu0 %v6277_v6  ;;  %2551 = vmatpush1.bf16.msra.mxu1 %v6278_v7  ;;  %v6295_v18 = vld [vmem:[%s9159_s1 + $0x80] ss:$16 sps:$4 sm:$0xff]   ;;  %v6296_v19 = vld [vmem:[%s9159_s1 + $0x88] ss:$16 sps:$4 sm:$0xff]   ;;  %v6297_v20 = vld [vmem:[%s9159_s1 + $0xa4] ss:$16 sps:$4 sm:$0xff]  }
   0x8   :  { %2306 = vmatprep.subr.bf16.mxu0 %v6279_v8  ;;  %2552 = vmatprep.subr.bf16.mxu1 %v6281_v9  ;;  %v6299_v21 = vld [vmem:[%s9159_s1 + $0xac] ss:$16 sps:$4 sm:$0xff]   ;;  %v6301_v22 = vld [vmem:[%s9159_s1 + $0xa0] ss:$16 sps:$4 sm:$0xff]   ;;  %v6302_v23 = vld [vmem:[%s9159_s1 + $0xa8] ss:$16 sps:$4 sm:$0xff]  }
   0x9   :  { %v6303_v24 = vld [vmem:[%s9159_s1 + $0xc4] ss:$16 sps:$4 sm:$0xff]   ;;  %v6305_v25 = vld [vmem:[%s9159_s1 + $0xcc] ss:$16 sps:$4 sm:$0xff]   ;;  %v6307_v26 = vld [vmem:[%s9159_s1 + $0xc0] ss:$16 sps:$4 sm:$0xff]  }
   0xa   :  { %v6308_v27 = vld [vmem:[%s9159_s1 + $0xc8] ss:$16 sps:$4 sm:$0xff]   ;;  %v6309_v28 = vld [vmem:[%s9159_s1 + $0xe4] ss:$16 sps:$4 sm:$0xff]   ;;  %v6311_v29 = vld [vmem:[%s9159_s1 + $0xec] ss:$16 sps:$4 sm:$0xff]  }
   0xb   :  { %2307 = vmatpush1.bf16.msra.mxu0 %v6283_v10  ;;  %2553 = vmatpush1.bf16.msra.mxu1 %v6284_v11  ;;  %v6313_v30 = vld [vmem:[%s9159_s1 + $0xe0] ss:$16 sps:$4 sm:$0xff]   ;;  %v6314_v31 = vld [vmem:[%s9159_s1 + $0xe8] ss:$16 sps:$4 sm:$0xff]   ;;  %v6315_v32 = vld [vmem:[%s9159_s1 + $0x104] ss:$16 sps:$4 sm:$0xff]  }
   0xc   :  { %2308 = vmatprep.subr.bf16.mxu0 %v6285_v12  ;;  %2554 = vmatprep.subr.bf16.mxu1 %v6287_v13  ;;  %v6317_v33 = vld [vmem:[%s9159_s1 + $0x10c] ss:$16 sps:$4 sm:$0xff]   ;;  %v6319_v34 = vld [vmem:[%s9159_s1 + $0x100] ss:$16 sps:$4 sm:$0xff]   ;;  %v6320_v35 = vld [vmem:[%s9159_s1 + $0x108] ss:$16 sps:$4 sm:$0xff]  }
   0xd   :  { %v6321_v39 = vld [vmem:[%s9159_s1 + $0x124] ss:$16 sps:$4 sm:$0xff]   ;;  %v6323_v40 = vld [vmem:[%s9159_s1 + $0x12c] ss:$16 sps:$4 sm:$0xff]   ;;  %v6325_v41 = vld [vmem:[%s9159_s1 + $0x120] ss:$16 sps:$4 sm:$0xff]  }
   0xe   :  { %v7083_v42 = vshrl.u32 %v392_v36, 7  ;;  %v6326_v44 = vld [vmem:[%s9159_s1 + $0x128] ss:$16 sps:$4 sm:$0xff]   ;;  %v6327_v45 = vld [vmem:[%s9159_s1 + $0x144] ss:$16 sps:$4 sm:$0xff]  }
   0xf   :  { %2309 = vmatpush1.bf16.msra.mxu0 %v6289_v14  ;;  %2555 = vmatpush1.bf16.msra.mxu1 %v6290_v15  ;;  %v6329_v46 = vld [vmem:[%s9159_s1 + $0x14c] ss:$16 sps:$4 sm:$0xff]   ;;  %v6331_v47 = vld [vmem:[%s9159_s1 + $0x140] ss:$16 sps:$4 sm:$0xff]   ;;  %v6332_v48 = vld [vmem:[%s9159_s1 + $0x148] ss:$16 sps:$4 sm:$0xff]  }
  0x10   :  { %2310 = vmatprep.subr.bf16.mxu0 %v6291_v16  ;;  %2556 = vmatprep.subr.bf16.mxu1 %v6293_v17  ;;  %v7101_v49 = vsub.s32 %v417_v43, %v7083_v42  ;;  %v6333_v50 = vld [vmem:[%s9159_s1 + $0x164] ss:$16 sps:$4 sm:$0xff]   ;;  %v6335_v51 = vld [vmem:[%s9159_s1 + $0x16c] ss:$16 sps:$4 sm:$0xff]   ;;  %v6337_v53 = vld [vmem:[%s9159_s1 + $0x160] ss:$16 sps:$4 sm:$0xff]  }
  0x11   :  { %v7112_v52 = vld [vmem:[%s9158_s0] sm:$0xff]  ;;  %v6338_v55 = vld [vmem:[%s9159_s1 + $0x168] ss:$16 sps:$4 sm:$0xff]   ;;  %v6341_v57 = vld [vmem:[%s9159_s1 + $0x18c] ss:$16 sps:$4 sm:$0xff]  }
  0x12   :  { %v421_v54 = vrot.slane %v7112_v52, %v7101_v49  ;;  %v6339_v56 = vld [vmem:[%s9159_s1 + $0x184] ss:$16 sps:$4 sm:$0xff]   ;;  %v6343_v59 = vld [vmem:[%s9159_s1 + $0x180] ss:$16 sps:$4 sm:$0xff]   ;;  %v6344_v61 = vld [vmem:[%s9159_s1 + $0x188] ss:$16 sps:$4 sm:$0xff]  }
  0x13   :  { %2311 = vmatpush1.bf16.msra.mxu0 %v6295_v18  ;;  %2557 = vmatpush1.bf16.msra.mxu1 %v6296_v19  ;;  %v6345_v62 = vld [vmem:[%s9159_s1 + $0x1a4] ss:$16 sps:$4 sm:$0xff]   ;;  %v6347_v63 = vld [vmem:[%s9159_s1 + $0x1ac] ss:$16 sps:$4 sm:$0xff]   ;;  %v6349_v0 = vld [vmem:[%s9159_s1 + $0x1a0] ss:$16 sps:$4 sm:$0xff]  }
  0x14   :  { %2312 = vmatprep.subr.bf16.mxu0 %v6297_v20  ;;  %2558 = vmatprep.subr.bf16.mxu1 %v6299_v21  ;;  %v429_v58 = vcombine.high %v421_v54, %v421_v54  ;;  %v6350_v1 = vld [vmem:[%s9159_s1 + $0x1a8] ss:$16 sps:$4 sm:$0xff]   ;;  %v6351_v2 = vld [vmem:[%s9159_s1 + $0x1c4] ss:$16 sps:$4 sm:$0xff]   ;;  %v6353_v3 = vld [vmem:[%s9159_s1 + $0x1cc] ss:$16 sps:$4 sm:$0xff]   ;;  %v7181_v13 = vrot.slane %v421_v54, %v7101_v49 }
  0x15   :  { %v6355_v4 = vld [vmem:[%s9159_s1 + $0x1c0] ss:$16 sps:$4 sm:$0xff]   ;;  %v6356_v5 = vld [vmem:[%s9159_s1 + $0x1c8] ss:$16 sps:$4 sm:$0xff]   ;;  %v6357_v6 = vld [vmem:[%s9159_s1 + $0x1e4] ss:$16 sps:$4 sm:$0xff]  }
  0x16   :  { %v451_v60 = vrot.slane %v429_v58, %v7101_v49  ;;  %v6359_v7 = vld [vmem:[%s9159_s1 + $0x1ec] ss:$16 sps:$4 sm:$0xff]   ;;  %v6361_v8 = vld [vmem:[%s9159_s1 + $0x1e0] ss:$16 sps:$4 sm:$0xff]   ;;  %v6362_v9 = vld [vmem:[%s9159_s1 + $0x1e8] ss:$16 sps:$4 sm:$0xff]  }
  0x17   :  { %2313 = vmatpush1.bf16.msra.mxu0 %v6301_v22  ;;  %2559 = vmatpush1.bf16.msra.mxu1 %v6302_v23  ;;  %v6365_v10 = vld [vmem:[%s9159_s1 + $0x204] ss:$16 sps:$4 sm:$0xff]   ;;  %v6368_v11 = vld [vmem:[%s9159_s1 + $0x20c] ss:$16 sps:$4 sm:$0xff]   ;;  %v6363_v12 = vld [vmem:[%s9159_s1 + $0x200] ss:$16 sps:$4 sm:$0xff]  }
  0x18   :  { %2314 = vmatprep.subr.bf16.mxu0 %v6303_v24  ;;  %2560 = vmatprep.subr.bf16.mxu1 %v6305_v25  ;;  %v6366_v14 = vld [vmem:[%s9159_s1 + $0x208] ss:$16 sps:$4 sm:$0xff]   ;;  %v6371_v15 = vld [vmem:[%s9159_s1 + $0x224] ss:$16 sps:$4 sm:$0xff]   ;;  %v6374_v16 = vld [vmem:[%s9159_s1 + $0x22c] ss:$16 sps:$4 sm:$0xff]   ;;  %v461_v17 = vcombine.high %v451_v60, %v451_v60 }
  0x19   :  { %2334 = vmatprep.mubr.bf16.mxu0 %v451_v60  ;;  %2580 = vmatprep.mubr.bf16.mxu1 %v451_v60  ;;  %v6369_v18 = vld [vmem:[%s9159_s1 + $0x220] ss:$16 sps:$4 sm:$0xff]   ;;  %v6372_v19 = vld [vmem:[%s9159_s1 + $0x228] ss:$16 sps:$4 sm:$0xff]   ;;  %v6377_v20 = vld [vmem:[%s9159_s1 + $0x244] ss:$16 sps:$4 sm:$0xff]  }
  0x1a   :  { %v6380_v21 = vld [vmem:[%s9159_s1 + $0x24c] ss:$16 sps:$4 sm:$0xff]   ;;  %v6375_v22 = vld [vmem:[%s9159_s1 + $0x240] ss:$16 sps:$4 sm:$0xff]   ;;  %v6378_v23 = vld [vmem:[%s9159_s1 + $0x248] ss:$16 sps:$4 sm:$0xff]  }
  0x1b   :  { %2315 = vmatpush1.bf16.msra.mxu0 %v6307_v26  ;;  %2561 = vmatpush1.bf16.msra.mxu1 %v6308_v27  ;;  %v6383_v24 = vld [vmem:[%s9159_s1 + $0x264] ss:$16 sps:$4 sm:$0xff]   ;;  %v6386_v25 = vld [vmem:[%s9159_s1 + $0x26c] ss:$16 sps:$4 sm:$0xff]   ;;  %v6381_v26 = vld [vmem:[%s9159_s1 + $0x260] ss:$16 sps:$4 sm:$0xff]  }
  0x1c   :  { %2316 = vmatprep.subr.bf16.mxu0 %v6309_v28  ;;  %2562 = vmatprep.subr.bf16.mxu1 %v6311_v29  ;;  %v6384_v27 = vld [vmem:[%s9159_s1 + $0x268] ss:$16 sps:$4 sm:$0xff]   ;;  %v6389_v28 = vld [vmem:[%s9159_s1 + $0x284] ss:$16 sps:$4 sm:$0xff]   ;;  %v6392_v29 = vld [vmem:[%s9159_s1 + $0x28c] ss:$16 sps:$4 sm:$0xff]  }
  0x1d   :  { %v6401_v36 = vld [vmem:[%s9159_s1 + $0x2c4] ss:$16 sps:$4 sm:$0xff]   ;;  %v6404_v37 = vld [vmem:[%s9159_s1 + $0x2cc] ss:$16 sps:$4 sm:$0xff]   ;;  %v6399_v38 = vld [vmem:[%s9159_s1 + $0x2c0] ss:$16 sps:$4 sm:$0xff]  }
  0x1e   :  { %v6405_v43 = vld [vmem:[%s9159_s1 + $0x2e0] ss:$16 sps:$4 sm:$0xff]   ;;  %v6420_v54 = vld [vmem:[%s9159_s1 + $0x328] ss:$16 sps:$4 sm:$0xff]   ;;  %v6434_v60 = vld [vmem:[%s9159_s1 + $0x36c] ss:$16 sps:$4 sm:$0xff]  }
  0x1f   :  { %2317 = vmatpush1.bf16.msra.mxu0 %v6313_v30  ;;  %2563 = vmatpush1.bf16.msra.mxu1 %v6314_v31  ;;  %v6387_v30 = vld [vmem:[%s9159_s1 + $0x280] ss:$16 sps:$4 sm:$0xff]   ;;  %v6390_v31 = vld [vmem:[%s9159_s1 + $0x288] ss:$16 sps:$4 sm:$0xff]  }
  0x20   :  { %2318 = vmatprep.subr.bf16.mxu0 %v6315_v32  ;;  %2564 = vmatprep.subr.bf16.mxu1 %v6317_v33  ;;  %v6395_v32 = vld [vmem:[%s9159_s1 + $0x2a4] ss:$16 sps:$4 sm:$0xff]   ;;  %v6398_v33 = vld [vmem:[%s9159_s1 + $0x2ac] ss:$16 sps:$4 sm:$0xff]   ;;  %v6426_v58 = vld [vmem:[%s9159_s1 + $0x348] ss:$16 sps:$4 sm:$0xff]  }
  0x23   :  { %2319 = vmatpush1.bf16.msra.mxu0 %v6319_v34  ;;  %2565 = vmatpush1.bf16.msra.mxu1 %v6320_v35  ;;  %v6393_v34 = vld [vmem:[%s9159_s1 + $0x2a0] ss:$16 sps:$4 sm:$0xff]   ;;  %v6396_v35 = vld [vmem:[%s9159_s1 + $0x2a8] ss:$16 sps:$4 sm:$0xff]  }
  0x24   :  { %2320 = vmatprep.subr.bf16.mxu0 %v6321_v39  ;;  %2566 = vmatprep.subr.bf16.mxu1 %v6323_v40  ;;  %v6402_v39 = vld [vmem:[%s9159_s1 + $0x2c8] ss:$16 sps:$4 sm:$0xff]   ;;  %v6407_v40 = vld [vmem:[%s9159_s1 + $0x2e4] ss:$16 sps:$4 sm:$0xff]  }
  0x27   :  { %2321 = vmatpush1.bf16.msra.mxu0 %v6325_v41  ;;  %2567 = vmatpush1.bf16.msra.mxu1 %v6326_v44  ;;  %v6410_v41 = vld [vmem:[%s9159_s1 + $0x2ec] ss:$16 sps:$4 sm:$0xff]   ;;  %v6408_v44 = vld [vmem:[%s9159_s1 + $0x2e8] ss:$16 sps:$4 sm:$0xff]  }
  0x28   :  { %2322 = vmatprep.subr.bf16.mxu0 %v6327_v45  ;;  %2568 = vmatprep.subr.bf16.mxu1 %v6329_v46  ;;  %v6413_v45 = vld [vmem:[%s9159_s1 + $0x304] ss:$16 sps:$4 sm:$0xff]   ;;  %v6416_v46 = vld [vmem:[%s9159_s1 + $0x30c] ss:$16 sps:$4 sm:$0xff]  }
  0x2b   :  { %2323 = vmatpush1.bf16.msra.mxu0 %v6331_v47  ;;  %2569 = vmatpush1.bf16.msra.mxu1 %v6332_v48  ;;  %v6411_v47 = vld [vmem:[%s9159_s1 + $0x300] ss:$16 sps:$4 sm:$0xff]   ;;  %v6414_v48 = vld [vmem:[%s9159_s1 + $0x308] ss:$16 sps:$4 sm:$0xff]  }
  0x2c   :  { %2324 = vmatprep.subr.bf16.mxu0 %v6333_v50  ;;  %2570 = vmatprep.subr.bf16.mxu1 %v6335_v51  ;;  %v6419_v50 = vld [vmem:[%s9159_s1 + $0x324] ss:$16 sps:$4 sm:$0xff]   ;;  %v6422_v51 = vld [vmem:[%s9159_s1 + $0x32c] ss:$16 sps:$4 sm:$0xff]  }
  0x2f   :  { %2325 = vmatpush1.bf16.msra.mxu0 %v6337_v53  ;;  %2571 = vmatpush1.bf16.msra.mxu1 %v6338_v55  ;;  %v6417_v53 = vld [vmem:[%s9159_s1 + $0x320] ss:$16 sps:$4 sm:$0xff]   ;;  %v6425_v55 = vld [vmem:[%s9159_s1 + $0x344] ss:$16 sps:$4 sm:$0xff]  }
  0x30   :  { %2326 = vmatprep.subr.bf16.mxu0 %v6339_v56  ;;  %2572 = vmatprep.subr.bf16.mxu1 %v6341_v57  ;;  %v6428_v56 = vld [vmem:[%s9159_s1 + $0x34c] ss:$16 sps:$4 sm:$0xff]   ;;  %v6423_v57 = vld [vmem:[%s9159_s1 + $0x340] ss:$16 sps:$4 sm:$0xff]  }
  0x33   :  { %2327 = vmatpush1.bf16.msra.mxu0 %v6343_v59  ;;  %2573 = vmatpush1.bf16.msra.mxu1 %v6344_v61  ;;  %v6431_v59 = vld [vmem:[%s9159_s1 + $0x364] ss:$16 sps:$4 sm:$0xff]   ;;  %v6429_v61 = vld [vmem:[%s9159_s1 + $0x360] ss:$16 sps:$4 sm:$0xff]  }
  0x34   :  { %2328 = vmatprep.subr.bf16.mxu0 %v6345_v62  ;;  %2574 = vmatprep.subr.bf16.mxu1 %v6347_v63  ;;  %v6432_v62 = vld [vmem:[%s9159_s1 + $0x368] ss:$16 sps:$4 sm:$0xff]   ;;  %v6437_v63 = vld [vmem:[%s9159_s1 + $0x384] ss:$16 sps:$4 sm:$0xff]  }
  0x37   :  { %2329 = vmatpush1.bf16.msra.mxu0 %v6349_v0  ;;  %2575 = vmatpush1.bf16.msra.mxu1 %v6350_v1  ;;  %v6440_v0 = vld [vmem:[%s9159_s1 + $0x38c] ss:$16 sps:$4 sm:$0xff]   ;;  %v6435_v1 = vld [vmem:[%s9159_s1 + $0x380] ss:$16 sps:$4 sm:$0xff]  }
  0x38   :  { %2330 = vmatprep.subr.bf16.mxu0 %v6351_v2  ;;  %2576 = vmatprep.subr.bf16.mxu1 %v6353_v3  ;;  %v6438_v2 = vld [vmem:[%s9159_s1 + $0x388] ss:$16 sps:$4 sm:$0xff]   ;;  %v6443_v3 = vld [vmem:[%s9159_s1 + $0x3a4] ss:$16 sps:$4 sm:$0xff]  }
  0x3b   :  { %2331 = vmatpush1.bf16.msra.mxu0 %v6355_v4  ;;  %2577 = vmatpush1.bf16.msra.mxu1 %v6356_v5  ;;  %v6446_v4 = vld [vmem:[%s9159_s1 + $0x3ac] ss:$16 sps:$4 sm:$0xff]   ;;  %v6441_v5 = vld [vmem:[%s9159_s1 + $0x3a0] ss:$16 sps:$4 sm:$0xff]  }
  0x3c   :  { %2332 = vmatprep.subr.bf16.mxu0 %v6357_v6  ;;  %2578 = vmatprep.subr.bf16.mxu1 %v6359_v7  ;;  %v6444_v6 = vld [vmem:[%s9159_s1 + $0x3a8] ss:$16 sps:$4 sm:$0xff]   ;;  %v6449_v7 = vld [vmem:[%s9159_s1 + $0x3c4] ss:$16 sps:$4 sm:$0xff]  }
  0x3f   :  { %2333 = vmatpush1.bf16.msra.mxu0 %v6361_v8  ;;  %2579 = vmatpush1.bf16.msra.mxu1 %v6362_v9  ;;  %v6452_v8 = vld [vmem:[%s9159_s1 + $0x3cc] ss:$16 sps:$4 sm:$0xff]   ;;  %v414_v9 = vcombine.high %v7112_v52, %v7112_v52 }
  0x40   :  { %2343 = vmatprep.subr.bf16.mxu0 %v6365_v10  ;;  %2589 = vmatprep.subr.bf16.mxu1 %v6368_v11  ;;  %v6447_v10 = vld [vmem:[%s9159_s1 + $0x3c0] ss:$16 sps:$4 sm:$0xff]   ;;  %v6450_v11 = vld [vmem:[%s9159_s1 + $0x3c8] ss:$16 sps:$4 sm:$0xff]   ;;  %v6458_v52 = vld [vmem:[%s9159_s1 + $0x3ec] ss:$16 sps:$4 sm:$0xff]  }
  0x42   :  { %2335 = vmatmul.mubr.bf16.vlgmr.msra.gmra.mrb[0].mxu0 %v7181_v13  ;;  %2581 = vmatmul.mubr.bf16.vlgmr.msra.gmra.mrb[0].mxu1 %v7181_v13 }
  0x43   :  { %2344 = vmatpush1.bf16.msra.mxu0 %v6363_v12  ;;  %2590 = vmatpush1.bf16.msra.mxu1 %v6366_v14  ;;  %v6455_v12 = vld [vmem:[%s9159_s1 + $0x3e4] ss:$16 sps:$4 sm:$0xff]   ;;  %v7365_v14 = vrot.slane %v414_v9, %v7101_v49  ;;  %v6534_v9 = vld [vmem:[%s9159_s1 + $0x588] ss:$16 sps:$4 sm:$0xff]  }
  0x44   :  { %2345 = vmatprep.subr.bf16.mxu0 %v6371_v15  ;;  %2591 = vmatprep.subr.bf16.mxu1 %v6374_v16  ;;  %v6453_v15 = vld [vmem:[%s9159_s1 + $0x3e0] ss:$16 sps:$4 sm:$0xff]   ;;  %v6456_v16 = vld [vmem:[%s9159_s1 + $0x3e8] ss:$16 sps:$4 sm:$0xff]  }
  0x45   :  { %2375 = vmatprep.mubr.bf16.mxu0 %v461_v17  ;;  %2621 = vmatprep.mubr.bf16.mxu1 %v461_v17  ;;  %v6461_v17 = vld [vmem:[%s9159_s1 + $0x404] ss:$16 sps:$4 sm:$0xff]  }
  0x47   :  { %2346 = vmatpush1.bf16.msra.mxu0 %v6369_v18  ;;  %2592 = vmatpush1.bf16.msra.mxu1 %v6372_v19  ;;  %v6464_v18 = vld [vmem:[%s9159_s1 + $0x40c] ss:$16 sps:$4 sm:$0xff]   ;;  %v430_v19 = vcombine.high %v7365_v14, %v7365_v14 }
  0x48   :  { %2347 = vmatprep.subr.bf16.mxu0 %v6377_v20  ;;  %2593 = vmatprep.subr.bf16.mxu1 %v6380_v21  ;;  %v6459_v20 = vld [vmem:[%s9159_s1 + $0x400] ss:$16 sps:$4 sm:$0xff]   ;;  %v459_v21 = vcombine.high %v7181_v13, %v7181_v13 }
  0x49   :  { %v6465_v13 = vld [vmem:[%s9159_s1 + $0x420] ss:$16 sps:$4 sm:$0xff]  }
  0x4b   :  { %2348 = vmatpush1.bf16.msra.mxu0 %v6375_v22  ;;  %2594 = vmatpush1.bf16.msra.mxu1 %v6378_v23  ;;  %v6462_v22 = vld [vmem:[%s9159_s1 + $0x408] ss:$16 sps:$4 sm:$0xff]   ;;  %v6467_v23 = vld [vmem:[%s9159_s1 + $0x424] ss:$16 sps:$4 sm:$0xff]  }
  0x4c   :  { %2349 = vmatprep.subr.bf16.mxu0 %v6383_v24  ;;  %2595 = vmatprep.subr.bf16.mxu1 %v6386_v25  ;;  %v6470_v24 = vld [vmem:[%s9159_s1 + $0x42c] ss:$16 sps:$4 sm:$0xff]   ;;  %v7396_v25 = vrot.slane %v430_v19, %v7101_v49  ;;  %v6551_v19 = vld [vmem:[%s9159_s1 + $0x5e4] ss:$16 sps:$4 sm:$0xff]  }
  0x4f   :  { %2350 = vmatpush1.bf16.msra.mxu0 %v6381_v26  ;;  %2596 = vmatpush1.bf16.msra.mxu1 %v6384_v27  ;;  %v6468_v26 = vld [vmem:[%s9159_s1 + $0x428] ss:$16 sps:$4 sm:$0xff]   ;;  %v6473_v27 = vld [vmem:[%s9159_s1 + $0x444] ss:$16 sps:$4 sm:$0xff]  }
  0x50   :  { %2351 = vmatprep.subr.bf16.mxu0 %v6389_v28  ;;  %2597 = vmatprep.subr.bf16.mxu1 %v6392_v29  ;;  %v6476_v28 = vld [vmem:[%s9159_s1 + $0x44c] ss:$16 sps:$4 sm:$0xff]   ;;  %v6471_v29 = vld [vmem:[%s9159_s1 + $0x440] ss:$16 sps:$4 sm:$0xff]  }
  0x53   :  { %2352 = vmatpush1.bf16.msra.mxu0 %v6387_v30  ;;  %2598 = vmatpush1.bf16.msra.mxu1 %v6390_v31  ;;  %v6474_v30 = vld [vmem:[%s9159_s1 + $0x448] ss:$16 sps:$4 sm:$0xff]   ;;  %v6479_v31 = vld [vmem:[%s9159_s1 + $0x464] ss:$16 sps:$4 sm:$0xff]  }
  0x54   :  { %2353 = vmatprep.subr.bf16.mxu0 %v6395_v32  ;;  %2599 = vmatprep.subr.bf16.mxu1 %v6398_v33  ;;  %v6482_v32 = vld [vmem:[%s9159_s1 + $0x46c] ss:$16 sps:$4 sm:$0xff]   ;;  %v6477_v33 = vld [vmem:[%s9159_s1 + $0x460] ss:$16 sps:$4 sm:$0xff]  }
  0x57   :  { %2354 = vmatpush1.bf16.msra.mxu0 %v6393_v34  ;;  %2600 = vmatpush1.bf16.msra.mxu1 %v6396_v35  ;;  %v6480_v34 = vld [vmem:[%s9159_s1 + $0x468] ss:$16 sps:$4 sm:$0xff]   ;;  %v6485_v35 = vld [vmem:[%s9159_s1 + $0x484] ss:$16 sps:$4 sm:$0xff]  }
  0x58   :  { %2355 = vmatprep.subr.bf16.mxu0 %v6401_v36  ;;  %2601 = vmatprep.subr.bf16.mxu1 %v6404_v37  ;;  %v6488_v36 = vld [vmem:[%s9159_s1 + $0x48c] ss:$16 sps:$4 sm:$0xff]   ;;  %v6483_v37 = vld [vmem:[%s9159_s1 + $0x480] ss:$16 sps:$4 sm:$0xff]  }
  0x5b   :  { %2356 = vmatpush1.bf16.msra.mxu0 %v6399_v38  ;;  %2602 = vmatpush1.bf16.msra.mxu1 %v6402_v39  ;;  %v6486_v38 = vld [vmem:[%s9159_s1 + $0x488] ss:$16 sps:$4 sm:$0xff]   ;;  %v6491_v39 = vld [vmem:[%s9159_s1 + $0x4a4] ss:$16 sps:$4 sm:$0xff]  }
  0x5c   :  { %2357 = vmatprep.subr.bf16.mxu0 %v6407_v40  ;;  %2603 = vmatprep.subr.bf16.mxu1 %v6410_v41  ;;  %v6494_v40 = vld [vmem:[%s9159_s1 + $0x4ac] ss:$16 sps:$4 sm:$0xff]   ;;  %v6489_v41 = vld [vmem:[%s9159_s1 + $0x4a0] ss:$16 sps:$4 sm:$0xff]  }
  0x5f   :  { %2358 = vmatpush1.bf16.msra.mxu0 %v6405_v43  ;;  %2604 = vmatpush1.bf16.msra.mxu1 %v6408_v44  ;;  %v6492_v43 = vld [vmem:[%s9159_s1 + $0x4a8] ss:$16 sps:$4 sm:$0xff]   ;;  %v6497_v44 = vld [vmem:[%s9159_s1 + $0x4c4] ss:$16 sps:$4 sm:$0xff]  }
  0x60   :  { %2359 = vmatprep.subr.bf16.mxu0 %v6413_v45  ;;  %2605 = vmatprep.subr.bf16.mxu1 %v6416_v46  ;;  %v6500_v45 = vld [vmem:[%s9159_s1 + $0x4cc] ss:$16 sps:$4 sm:$0xff]   ;;  %v6495_v46 = vld [vmem:[%s9159_s1 + $0x4c0] ss:$16 sps:$4 sm:$0xff]  }
  0x63   :  { %2360 = vmatpush1.bf16.msra.mxu0 %v6411_v47  ;;  %2606 = vmatpush1.bf16.msra.mxu1 %v6414_v48  ;;  %v6498_v47 = vld [vmem:[%s9159_s1 + $0x4c8] ss:$16 sps:$4 sm:$0xff]   ;;  %v6503_v48 = vld [vmem:[%s9159_s1 + $0x4e4] ss:$16 sps:$4 sm:$0xff]  }
  0x64   :  { %2361 = vmatprep.subr.bf16.mxu0 %v6419_v50  ;;  %2607 = vmatprep.subr.bf16.mxu1 %v6422_v51  ;;  %v6506_v50 = vld [vmem:[%s9159_s1 + $0x4ec] ss:$16 sps:$4 sm:$0xff]   ;;  %v6501_v51 = vld [vmem:[%s9159_s1 + $0x4e0] ss:$16 sps:$4 sm:$0xff]  }
  0x67   :  { %2362 = vmatpush1.bf16.msra.mxu0 %v6417_v53  ;;  %2608 = vmatpush1.bf16.msra.mxu1 %v6420_v54  ;;  %v6504_v53 = vld [vmem:[%s9159_s1 + $0x4e8] ss:$16 sps:$4 sm:$0xff]   ;;  %v6509_v54 = vld [vmem:[%s9159_s1 + $0x504] ss:$16 sps:$4 sm:$0xff]  }
  0x68   :  { %2363 = vmatprep.subr.bf16.mxu0 %v6425_v55  ;;  %2609 = vmatprep.subr.bf16.mxu1 %v6428_v56  ;;  %v6512_v55 = vld [vmem:[%s9159_s1 + $0x50c] ss:$16 sps:$4 sm:$0xff]   ;;  %v6507_v56 = vld [vmem:[%s9159_s1 + $0x500] ss:$16 sps:$4 sm:$0xff]  }
  0x6b   :  { %2364 = vmatpush1.bf16.msra.mxu0 %v6423_v57  ;;  %2610 = vmatpush1.bf16.msra.mxu1 %v6426_v58  ;;  %v6510_v57 = vld [vmem:[%s9159_s1 + $0x508] ss:$16 sps:$4 sm:$0xff]   ;;  %v6515_v58 = vld [vmem:[%s9159_s1 + $0x524] ss:$16 sps:$4 sm:$0xff]  }
  0x6c   :  { %2365 = vmatprep.subr.bf16.mxu0 %v6431_v59  ;;  %2611 = vmatprep.subr.bf16.mxu1 %v6434_v60  ;;  %v6518_v59 = vld [vmem:[%s9159_s1 + $0x52c] ss:$16 sps:$4 sm:$0xff]   ;;  %v6513_v60 = vld [vmem:[%s9159_s1 + $0x520] ss:$16 sps:$4 sm:$0xff]  }
  0x6f   :  { %2366 = vmatpush1.bf16.msra.mxu0 %v6429_v61  ;;  %2612 = vmatpush1.bf16.msra.mxu1 %v6432_v62  ;;  %v6516_v61 = vld [vmem:[%s9159_s1 + $0x528] ss:$16 sps:$4 sm:$0xff]   ;;  %v6521_v62 = vld [vmem:[%s9159_s1 + $0x544] ss:$16 sps:$4 sm:$0xff]  }
  0x70   :  { %2367 = vmatprep.subr.bf16.mxu0 %v6437_v63  ;;  %2613 = vmatprep.subr.bf16.mxu1 %v6440_v0  ;;  %v6524_v63 = vld [vmem:[%s9159_s1 + $0x54c] ss:$16 sps:$4 sm:$0xff]   ;;  %v6519_v0 = vld [vmem:[%s9159_s1 + $0x540] ss:$16 sps:$4 sm:$0xff]  }
  0x73   :  { %2368 = vmatpush1.bf16.msra.mxu0 %v6435_v1  ;;  %2614 = vmatpush1.bf16.msra.mxu1 %v6438_v2  ;;  %v6522_v1 = vld [vmem:[%s9159_s1 + $0x548] ss:$16 sps:$4 sm:$0xff]   ;;  %v6527_v2 = vld [vmem:[%s9159_s1 + $0x564] ss:$16 sps:$4 sm:$0xff]  }
  0x74   :  { %2369 = vmatprep.subr.bf16.mxu0 %v6443_v3  ;;  %2615 = vmatprep.subr.bf16.mxu1 %v6446_v4  ;;  %v6530_v3 = vld [vmem:[%s9159_s1 + $0x56c] ss:$16 sps:$4 sm:$0xff]   ;;  %v6525_v4 = vld [vmem:[%s9159_s1 + $0x560] ss:$16 sps:$4 sm:$0xff]  }
  0x77   :  { %2370 = vmatpush1.bf16.msra.mxu0 %v6441_v5  ;;  %2616 = vmatpush1.bf16.msra.mxu1 %v6444_v6  ;;  %v6528_v5 = vld [vmem:[%s9159_s1 + $0x568] ss:$16 sps:$4 sm:$0xff]   ;;  %v6533_v6 = vld [vmem:[%s9159_s1 + $0x584] ss:$16 sps:$4 sm:$0xff]  }
  0x78   :  { %2371 = vmatprep.subr.bf16.mxu0 %v6449_v7  ;;  %2617 = vmatprep.subr.bf16.mxu1 %v6452_v8  ;;  %v6536_v7 = vld [vmem:[%s9159_s1 + $0x58c] ss:$16 sps:$4 sm:$0xff]   ;;  %v6531_v8 = vld [vmem:[%s9159_s1 + $0x580] ss:$16 sps:$4 sm:$0xff]  }
  0x7b   :  { %2372 = vmatpush1.bf16.msra.mxu0 %v6447_v10  ;;  %2618 = vmatpush1.bf16.msra.mxu1 %v6450_v11  ;;  %v6539_v10 = vld [vmem:[%s9159_s1 + $0x5a4] ss:$16 sps:$4 sm:$0xff]   ;;  %v6542_v11 = vld [vmem:[%s9159_s1 + $0x5ac] ss:$16 sps:$4 sm:$0xff]  }
  0x7c   :  { %2373 = vmatprep.subr.bf16.mxu0 %v6455_v12  ;;  %2619 = vmatprep.subr.bf16.mxu1 %v6458_v52  ;;  %v6537_v12 = vld [vmem:[%s9159_s1 + $0x5a0] ss:$16 sps:$4 sm:$0xff]   ;;  %v6540_v52 = vld [vmem:[%s9159_s1 + $0x5a8] ss:$16 sps:$4 sm:$0xff]  }
  0x7f   :  { %2374 = vmatpush1.bf16.msra.mxu0 %v6453_v15  ;;  %2620 = vmatpush1.bf16.msra.mxu1 %v6456_v16  ;;  %v6545_v15 = vld [vmem:[%s9159_s1 + $0x5c4] ss:$16 sps:$4 sm:$0xff]   ;;  %v6548_v16 = vld [vmem:[%s9159_s1 + $0x5cc] ss:$16 sps:$4 sm:$0xff]  }
  0x80   :  { %2384 = vmatprep.subr.bf16.mxu0 %v6461_v17  ;;  %2630 = vmatprep.subr.bf16.mxu1 %v6464_v18  ;;  %v6543_v17 = vld [vmem:[%s9159_s1 + $0x5c0] ss:$16 sps:$4 sm:$0xff]   ;;  %v6546_v18 = vld [vmem:[%s9159_s1 + $0x5c8] ss:$16 sps:$4 sm:$0xff]  }
  0x82   :  { %2376 = vmatmul.mubr.bf16.vlgmr.msra.gmra.mrb[0].mxu0 %v459_v21  ;;  %2622 = vmatmul.mubr.bf16.vlgmr.msra.gmra.mrb[0].mxu1 %v459_v21  ;;  %v6549_v21 = vld [vmem:[%s9159_s1 + $0x5e0] ss:$16 sps:$4 sm:$0xff]  }
  0x83   :  { %2385 = vmatpush1.bf16.msra.mxu0 %v6459_v20  ;;  %2631 = vmatpush1.bf16.msra.mxu1 %v6462_v22  ;;  %v6554_v20 = vld [vmem:[%s9159_s1 + $0x5ec] ss:$16 sps:$4 sm:$0xff]   ;;  %v6552_v22 = vld [vmem:[%s9159_s1 + $0x5e8] ss:$16 sps:$4 sm:$0xff]  }
  0x84   :  { %2386 = vmatprep.subr.bf16.mxu0 %v6467_v23  ;;  %2632 = vmatprep.subr.bf16.mxu1 %v6470_v24  ;;  %v6558_v23 = vld [vmem:[%s9159_s1 + $0x604] ss:$16 sps:$4 sm:$0xff]   ;;  %v6561_v24 = vld [vmem:[%s9159_s1 + $0x60c] ss:$16 sps:$4 sm:$0xff]  }
  0x85   :  { %2416 = vmatprep.mubr.bf16.mxu0 %v7396_v25  ;;  %2662 = vmatprep.mubr.bf16.mxu1 %v7396_v25 }
  0x87   :  { %2387 = vmatpush1.bf16.msra.mxu0 %v6465_v13  ;;  %2633 = vmatpush1.bf16.msra.mxu1 %v6468_v26  ;;  %v6556_v13 = vld [vmem:[%s9159_s1 + $0x600] ss:$16 sps:$4 sm:$0xff]   ;;  %v7585_v26 = vrot.slane %v7365_v14, %v7101_v49  ;;  %v462_v14 = vcombine.high %v7396_v25, %v7396_v25  ;;  %v6570_v25 = vld [vmem:[%s9159_s1 + $0x644] ss:$16 sps:$4 sm:$0xff]  }
  0x88   :  { %2388 = vmatprep.subr.bf16.mxu0 %v6473_v27  ;;  %2634 = vmatprep.subr.bf16.mxu1 %v6476_v28  ;;  %v6559_v27 = vld [vmem:[%s9159_s1 + $0x608] ss:$16 sps:$4 sm:$0xff]   ;;  %v6564_v28 = vld [vmem:[%s9159_s1 + $0x624] ss:$16 sps:$4 sm:$0xff]  }
  0x8b   :  { %2389 = vmatpush1.bf16.msra.mxu0 %v6471_v29  ;;  %2635 = vmatpush1.bf16.msra.mxu1 %v6474_v30  ;;  %v6567_v29 = vld [vmem:[%s9159_s1 + $0x62c] ss:$16 sps:$4 sm:$0xff]   ;;  %v6562_v30 = vld [vmem:[%s9159_s1 + $0x620] ss:$16 sps:$4 sm:$0xff]  }
  0x8c   :  { %2390 = vmatprep.subr.bf16.mxu0 %v6479_v31  ;;  %2636 = vmatprep.subr.bf16.mxu1 %v6482_v32  ;;  %v6565_v31 = vld [vmem:[%s9159_s1 + $0x628] ss:$16 sps:$4 sm:$0xff]   ;;  %v6573_v32 = vld [vmem:[%s9159_s1 + $0x64c] ss:$16 sps:$4 sm:$0xff]  }
  0x8f   :  { %2391 = vmatpush1.bf16.msra.mxu0 %v6477_v33  ;;  %2637 = vmatpush1.bf16.msra.mxu1 %v6480_v34  ;;  %v6568_v33 = vld [vmem:[%s9159_s1 + $0x640] ss:$16 sps:$4 sm:$0xff]   ;;  %v6571_v34 = vld [vmem:[%s9159_s1 + $0x648] ss:$16 sps:$4 sm:$0xff]  }
  0x90   :  { %2392 = vmatprep.subr.bf16.mxu0 %v6485_v35  ;;  %2638 = vmatprep.subr.bf16.mxu1 %v6488_v36  ;;  %v6576_v35 = vld [vmem:[%s9159_s1 + $0x664] ss:$16 sps:$4 sm:$0xff]   ;;  %v6579_v36 = vld [vmem:[%s9159_s1 + $0x66c] ss:$16 sps:$4 sm:$0xff]  }
  0x93   :  { %2393 = vmatpush1.bf16.msra.mxu0 %v6483_v37  ;;  %2639 = vmatpush1.bf16.msra.mxu1 %v6486_v38  ;;  %v6574_v37 = vld [vmem:[%s9159_s1 + $0x660] ss:$16 sps:$4 sm:$0xff]   ;;  %v6577_v38 = vld [vmem:[%s9159_s1 + $0x668] ss:$16 sps:$4 sm:$0xff]  }
  0x94   :  { %2394 = vmatprep.subr.bf16.mxu0 %v6491_v39  ;;  %2640 = vmatprep.subr.bf16.mxu1 %v6494_v40  ;;  %v6582_v39 = vld [vmem:[%s9159_s1 + $0x684] ss:$16 sps:$4 sm:$0xff]   ;;  %v6585_v40 = vld [vmem:[%s9159_s1 + $0x68c] ss:$16 sps:$4 sm:$0xff]  }
  0x97   :  { %2395 = vmatpush1.bf16.msra.mxu0 %v6489_v41  ;;  %2641 = vmatpush1.bf16.msra.mxu1 %v6492_v43  ;;  %v6580_v41 = vld [vmem:[%s9159_s1 + $0x680] ss:$16 sps:$4 sm:$0xff]   ;;  %v6583_v43 = vld [vmem:[%s9159_s1 + $0x688] ss:$16 sps:$4 sm:$0xff]  }
  0x98   :  { %2396 = vmatprep.subr.bf16.mxu0 %v6497_v44  ;;  %2642 = vmatprep.subr.bf16.mxu1 %v6500_v45  ;;  %v6588_v44 = vld [vmem:[%s9159_s1 + $0x6a4] ss:$16 sps:$4 sm:$0xff]   ;;  %v6591_v45 = vld [vmem:[%s9159_s1 + $0x6ac] ss:$16 sps:$4 sm:$0xff]  }
  0x9b   :  { %2397 = vmatpush1.bf16.msra.mxu0 %v6495_v46  ;;  %2643 = vmatpush1.bf16.msra.mxu1 %v6498_v47  ;;  %v6586_v46 = vld [vmem:[%s9159_s1 + $0x6a0] ss:$16 sps:$4 sm:$0xff]   ;;  %v6589_v47 = vld [vmem:[%s9159_s1 + $0x6a8] ss:$16 sps:$4 sm:$0xff]  }
  0x9c   :  { %2398 = vmatprep.subr.bf16.mxu0 %v6503_v48  ;;  %2644 = vmatprep.subr.bf16.mxu1 %v6506_v50  ;;  %v6594_v48 = vld [vmem:[%s9159_s1 + $0x6c4] ss:$16 sps:$4 sm:$0xff]   ;;  %v6597_v50 = vld [vmem:[%s9159_s1 + $0x6cc] ss:$16 sps:$4 sm:$0xff]  }
  0x9f   :  { %2399 = vmatpush1.bf16.msra.mxu0 %v6501_v51  ;;  %2645 = vmatpush1.bf16.msra.mxu1 %v6504_v53  ;;  %v6592_v51 = vld [vmem:[%s9159_s1 + $0x6c0] ss:$16 sps:$4 sm:$0xff]   ;;  %v6595_v53 = vld [vmem:[%s9159_s1 + $0x6c8] ss:$16 sps:$4 sm:$0xff]  }
  0xa0   :  { %2400 = vmatprep.subr.bf16.mxu0 %v6509_v54  ;;  %2646 = vmatprep.subr.bf16.mxu1 %v6512_v55  ;;  %v6600_v54 = vld [vmem:[%s9159_s1 + $0x6e4] ss:$16 sps:$4 sm:$0xff]   ;;  %v6603_v55 = vld [vmem:[%s9159_s1 + $0x6ec] ss:$16 sps:$4 sm:$0xff]  }
  0xa3   :  { %2401 = vmatpush1.bf16.msra.mxu0 %v6507_v56  ;;  %2647 = vmatpush1.bf16.msra.mxu1 %v6510_v57  ;;  %v6598_v56 = vld [vmem:[%s9159_s1 + $0x6e0] ss:$16 sps:$4 sm:$0xff]   ;;  %v6601_v57 = vld [vmem:[%s9159_s1 + $0x6e8] ss:$16 sps:$4 sm:$0xff]  }
  0xa4   :  { %2402 = vmatprep.subr.bf16.mxu0 %v6515_v58  ;;  %2648 = vmatprep.subr.bf16.mxu1 %v6518_v59  ;;  %v6606_v58 = vld [vmem:[%s9159_s1 + $0x704] ss:$16 sps:$4 sm:$0xff]   ;;  %v6609_v59 = vld [vmem:[%s9159_s1 + $0x70c] ss:$16 sps:$4 sm:$0xff]  }
  0xa7   :  { %2403 = vmatpush1.bf16.msra.mxu0 %v6513_v60  ;;  %2649 = vmatpush1.bf16.msra.mxu1 %v6516_v61  ;;  %v6604_v60 = vld [vmem:[%s9159_s1 + $0x700] ss:$16 sps:$4 sm:$0xff]   ;;  %v6607_v61 = vld [vmem:[%s9159_s1 + $0x708] ss:$16 sps:$4 sm:$0xff]  }
  0xa8   :  { %2404 = vmatprep.subr.bf16.mxu0 %v6521_v62  ;;  %2650 = vmatprep.subr.bf16.mxu1 %v6524_v63  ;;  %v6612_v62 = vld [vmem:[%s9159_s1 + $0x724] ss:$16 sps:$4 sm:$0xff]   ;;  %v6615_v63 = vld [vmem:[%s9159_s1 + $0x72c] ss:$16 sps:$4 sm:$0xff]  }
  0xab   :  { %2405 = vmatpush1.bf16.msra.mxu0 %v6519_v0  ;;  %2651 = vmatpush1.bf16.msra.mxu1 %v6522_v1  ;;  %v6610_v0 = vld [vmem:[%s9159_s1 + $0x720] ss:$16 sps:$4 sm:$0xff]   ;;  %v6613_v1 = vld [vmem:[%s9159_s1 + $0x728] ss:$16 sps:$4 sm:$0xff]  }
  0xac   :  { %2406 = vmatprep.subr.bf16.mxu0 %v6527_v2  ;;  %2652 = vmatprep.subr.bf16.mxu1 %v6530_v3  ;;  %v6618_v2 = vld [vmem:[%s9159_s1 + $0x744] ss:$16 sps:$4 sm:$0xff]   ;;  %v6621_v3 = vld [vmem:[%s9159_s1 + $0x74c] ss:$16 sps:$4 sm:$0xff]  }
  0xaf   :  { %2407 = vmatpush1.bf16.msra.mxu0 %v6525_v4  ;;  %2653 = vmatpush1.bf16.msra.mxu1 %v6528_v5  ;;  %v6616_v4 = vld [vmem:[%s9159_s1 + $0x740] ss:$16 sps:$4 sm:$0xff]   ;;  %v6619_v5 = vld [vmem:[%s9159_s1 + $0x748] ss:$16 sps:$4 sm:$0xff]  }
  0xb0   :  { %2408 = vmatprep.subr.bf16.mxu0 %v6533_v6  ;;  %2654 = vmatprep.subr.bf16.mxu1 %v6536_v7  ;;  %v6624_v6 = vld [vmem:[%s9159_s1 + $0x764] ss:$16 sps:$4 sm:$0xff]   ;;  %v6627_v7 = vld [vmem:[%s9159_s1 + $0x76c] ss:$16 sps:$4 sm:$0xff]  }
  0xb3   :  { %2409 = vmatpush1.bf16.msra.mxu0 %v6531_v8  ;;  %2655 = vmatpush1.bf16.msra.mxu1 %v6534_v9  ;;  %v6622_v8 = vld [vmem:[%s9159_s1 + $0x760] ss:$16 sps:$4 sm:$0xff]   ;;  %v6625_v9 = vld [vmem:[%s9159_s1 + $0x768] ss:$16 sps:$4 sm:$0xff]  }
  0xb4   :  { %2410 = vmatprep.subr.bf16.mxu0 %v6539_v10  ;;  %2656 = vmatprep.subr.bf16.mxu1 %v6542_v11  ;;  %v6630_v10 = vld [vmem:[%s9159_s1 + $0x784] ss:$16 sps:$4 sm:$0xff]   ;;  %v6633_v11 = vld [vmem:[%s9159_s1 + $0x78c] ss:$16 sps:$4 sm:$0xff]  }
  0xb7   :  { %2411 = vmatpush1.bf16.msra.mxu0 %v6537_v12  ;;  %2657 = vmatpush1.bf16.msra.mxu1 %v6540_v52  ;;  %v6628_v12 = vld [vmem:[%s9159_s1 + $0x780] ss:$16 sps:$4 sm:$0xff]   ;;  %v6631_v52 = vld [vmem:[%s9159_s1 + $0x788] ss:$16 sps:$4 sm:$0xff]  }
  0xb8   :  { %2412 = vmatprep.subr.bf16.mxu0 %v6545_v15  ;;  %2658 = vmatprep.subr.bf16.mxu1 %v6548_v16  ;;  %v6636_v15 = vld [vmem:[%s9159_s1 + $0x7a4] ss:$16 sps:$4 sm:$0xff]   ;;  %v6639_v16 = vld [vmem:[%s9159_s1 + $0x7ac] ss:$16 sps:$4 sm:$0xff]  }
  0xbb   :  { %2413 = vmatpush1.bf16.msra.mxu0 %v6543_v17  ;;  %2659 = vmatpush1.bf16.msra.mxu1 %v6546_v18  ;;  %v6634_v17 = vld [vmem:[%s9159_s1 + $0x7a0] ss:$16 sps:$4 sm:$0xff]   ;;  %v6637_v18 = vld [vmem:[%s9159_s1 + $0x7a8] ss:$16 sps:$4 sm:$0xff]  }
  0xbc   :  { %2414 = vmatprep.subr.bf16.mxu0 %v6551_v19  ;;  %2660 = vmatprep.subr.bf16.mxu1 %v6554_v20  ;;  %v6642_v19 = vld [vmem:[%s9159_s1 + $0x7c4] ss:$16 sps:$4 sm:$0xff]   ;;  %v6645_v20 = vld [vmem:[%s9159_s1 + $0x7cc] ss:$16 sps:$4 sm:$0xff]  }
  0xbf   :  { %2415 = vmatpush1.bf16.msra.mxu0 %v6549_v21  ;;  %2661 = vmatpush1.bf16.msra.mxu1 %v6552_v22  ;;  %v6640_v21 = vld [vmem:[%s9159_s1 + $0x7c0] ss:$16 sps:$4 sm:$0xff]   ;;  %v6643_v22 = vld [vmem:[%s9159_s1 + $0x7c8] ss:$16 sps:$4 sm:$0xff]  }
  0xc0   :  { %2425 = vmatprep.subr.bf16.mxu0 %v6558_v23  ;;  %2671 = vmatprep.subr.bf16.mxu1 %v6561_v24  ;;  %v6648_v23 = vld [vmem:[%s9159_s1 + $0x7e4] ss:$16 sps:$4 sm:$0xff]   ;;  %v6651_v24 = vld [vmem:[%s9159_s1 + $0x7ec] ss:$16 sps:$4 sm:$0xff]  }
  0xc2   :  { %2417 = vmatmul.mubr.bf16.vlgmr.msra.gmra.mrb[0].mxu0 %v7585_v26  ;;  %2663 = vmatmul.mubr.bf16.vlgmr.msra.gmra.mrb[0].mxu1 %v7585_v26 }
  0xc3   :  { %2426 = vmatpush1.bf16.msra.mxu0 %v6556_v13  ;;  %2672 = vmatpush1.bf16.msra.mxu1 %v6559_v27  ;;  %v7771_v13 = vld.sshfl [vmem:[%s9158_s0 + $0x8] sm:$0x33 pattern:$0x75316420]  ;;  %v6646_v27 = vld [vmem:[%s9159_s1 + $0x7e0] ss:$16 sps:$4 sm:$0xff]  }
  0xc4   :  { %2427 = vmatprep.subr.bf16.mxu0 %v6564_v28  ;;  %2673 = vmatprep.subr.bf16.mxu1 %v6567_v29  ;;  %v6649_v28 = vld [vmem:[%s9159_s1 + $0x7e8] ss:$16 sps:$4 sm:$0xff]   ;;  %v6654_v29 = vld [vmem:[%s9159_s1 + $0x804] ss:$16 sps:$4 sm:$0xff]  }
  0xc5   :  { %2457 = vmatprep.mubr.bf16.mxu0 %v462_v14  ;;  %2703 = vmatprep.mubr.bf16.mxu1 %v462_v14  ;;  %v6657_v14 = vld [vmem:[%s9159_s1 + $0x80c] ss:$16 sps:$4 sm:$0xff]  }
  0xc7   :  { %2428 = vmatpush1.bf16.msra.mxu0 %v6562_v30  ;;  %2674 = vmatpush1.bf16.msra.mxu1 %v6565_v31  ;;  %v470_v30 = vcombine.high %v7771_v13, %v7771_v13  ;;  %v460_v31 = vcombine.high %v7585_v26, %v7585_v26  ;;  %v6663_v26 = vld [vmem:[%s9159_s1 + $0x82c] ss:$16 sps:$4 sm:$0xff]  }
  0xc8   :  { %2429 = vmatprep.subr.bf16.mxu0 %v6570_v25  ;;  %2675 = vmatprep.subr.bf16.mxu1 %v6573_v32  ;;  %v6652_v25 = vld [vmem:[%s9159_s1 + $0x800] ss:$16 sps:$4 sm:$0xff]   ;;  %v6655_v32 = vld [vmem:[%s9159_s1 + $0x808] ss:$16 sps:$4 sm:$0xff]  }
  0xcb   :  { %2430 = vmatpush1.bf16.msra.mxu0 %v6568_v33  ;;  %2676 = vmatpush1.bf16.msra.mxu1 %v6571_v34  ;;  %v6660_v33 = vld [vmem:[%s9159_s1 + $0x824] ss:$16 sps:$4 sm:$0xff]   ;;  %v7802_v34 = vrot.slane %v470_v30, %v7101_v49 }
  0xcc   :  { %2431 = vmatprep.subr.bf16.mxu0 %v6576_v35  ;;  %2677 = vmatprep.subr.bf16.mxu1 %v6579_v36  ;;  %v6658_v35 = vld [vmem:[%s9159_s1 + $0x820] ss:$16 sps:$4 sm:$0xff]   ;;  %v6661_v36 = vld [vmem:[%s9159_s1 + $0x828] ss:$16 sps:$4 sm:$0xff]  }
  0xcf   :  { %2432 = vmatpush1.bf16.msra.mxu0 %v6574_v37  ;;  %2678 = vmatpush1.bf16.msra.mxu1 %v6577_v38  ;;  %v6666_v37 = vld [vmem:[%s9159_s1 + $0x844] ss:$16 sps:$4 sm:$0xff]   ;;  %v6669_v38 = vld [vmem:[%s9159_s1 + $0x84c] ss:$16 sps:$4 sm:$0xff]  }
  0xd0   :  { %2433 = vmatprep.subr.bf16.mxu0 %v6582_v39  ;;  %2679 = vmatprep.subr.bf16.mxu1 %v6585_v40  ;;  %v6664_v39 = vld [vmem:[%s9159_s1 + $0x840] ss:$16 sps:$4 sm:$0xff]   ;;  %v6667_v40 = vld [vmem:[%s9159_s1 + $0x848] ss:$16 sps:$4 sm:$0xff]  }
  0xd3   :  { %2434 = vmatpush1.bf16.msra.mxu0 %v6580_v41  ;;  %2680 = vmatpush1.bf16.msra.mxu1 %v6583_v43  ;;  %v6672_v41 = vld [vmem:[%s9159_s1 + $0x864] ss:$16 sps:$4 sm:$0xff]   ;;  %v6675_v43 = vld [vmem:[%s9159_s1 + $0x86c] ss:$16 sps:$4 sm:$0xff]  }
  0xd4   :  { %2435 = vmatprep.subr.bf16.mxu0 %v6588_v44  ;;  %2681 = vmatprep.subr.bf16.mxu1 %v6591_v45  ;;  %v6670_v44 = vld [vmem:[%s9159_s1 + $0x860] ss:$16 sps:$4 sm:$0xff]   ;;  %v6673_v45 = vld [vmem:[%s9159_s1 + $0x868] ss:$16 sps:$4 sm:$0xff]  }
  0xd7   :  { %2436 = vmatpush1.bf16.msra.mxu0 %v6586_v46  ;;  %2682 = vmatpush1.bf16.msra.mxu1 %v6589_v47  ;;  %v6678_v46 = vld [vmem:[%s9159_s1 + $0x884] ss:$16 sps:$4 sm:$0xff]   ;;  %v6681_v47 = vld [vmem:[%s9159_s1 + $0x88c] ss:$16 sps:$4 sm:$0xff]  }
  0xd8   :  { %2437 = vmatprep.subr.bf16.mxu0 %v6594_v48  ;;  %2683 = vmatprep.subr.bf16.mxu1 %v6597_v50  ;;  %v6676_v48 = vld [vmem:[%s9159_s1 + $0x880] ss:$16 sps:$4 sm:$0xff]   ;;  %v6679_v50 = vld [vmem:[%s9159_s1 + $0x888] ss:$16 sps:$4 sm:$0xff]  }
  0xdb   :  { %2438 = vmatpush1.bf16.msra.mxu0 %v6592_v51  ;;  %2684 = vmatpush1.bf16.msra.mxu1 %v6595_v53  ;;  %v6684_v51 = vld [vmem:[%s9159_s1 + $0x8a4] ss:$16 sps:$4 sm:$0xff]   ;;  %v6687_v53 = vld [vmem:[%s9159_s1 + $0x8ac] ss:$16 sps:$4 sm:$0xff]  }
  0xdc   :  { %2439 = vmatprep.subr.bf16.mxu0 %v6600_v54  ;;  %2685 = vmatprep.subr.bf16.mxu1 %v6603_v55  ;;  %v6682_v54 = vld [vmem:[%s9159_s1 + $0x8a0] ss:$16 sps:$4 sm:$0xff]   ;;  %v6685_v55 = vld [vmem:[%s9159_s1 + $0x8a8] ss:$16 sps:$4 sm:$0xff]  }
  0xdf   :  { %2440 = vmatpush1.bf16.msra.mxu0 %v6598_v56  ;;  %2686 = vmatpush1.bf16.msra.mxu1 %v6601_v57  ;;  %v6690_v56 = vld [vmem:[%s9159_s1 + $0x8c4] ss:$16 sps:$4 sm:$0xff]   ;;  %v6693_v57 = vld [vmem:[%s9159_s1 + $0x8cc] ss:$16 sps:$4 sm:$0xff]  }
  0xe0   :  { %2441 = vmatprep.subr.bf16.mxu0 %v6606_v58  ;;  %2687 = vmatprep.subr.bf16.mxu1 %v6609_v59  ;;  %v6688_v58 = vld [vmem:[%s9159_s1 + $0x8c0] ss:$16 sps:$4 sm:$0xff]   ;;  %v6691_v59 = vld [vmem:[%s9159_s1 + $0x8c8] ss:$16 sps:$4 sm:$0xff]  }
  0xe3   :  { %2442 = vmatpush1.bf16.msra.mxu0 %v6604_v60  ;;  %2688 = vmatpush1.bf16.msra.mxu1 %v6607_v61  ;;  %v6696_v60 = vld [vmem:[%s9159_s1 + $0x8e4] ss:$16 sps:$4 sm:$0xff]   ;;  %v6699_v61 = vld [vmem:[%s9159_s1 + $0x8ec] ss:$16 sps:$4 sm:$0xff]  }
  0xe4   :  { %2443 = vmatprep.subr.bf16.mxu0 %v6612_v62  ;;  %2689 = vmatprep.subr.bf16.mxu1 %v6615_v63  ;;  %v6694_v62 = vld [vmem:[%s9159_s1 + $0x8e0] ss:$16 sps:$4 sm:$0xff]   ;;  %v6697_v63 = vld [vmem:[%s9159_s1 + $0x8e8] ss:$16 sps:$4 sm:$0xff]  }
  0xe7   :  { %2444 = vmatpush1.bf16.msra.mxu0 %v6610_v0  ;;  %2690 = vmatpush1.bf16.msra.mxu1 %v6613_v1  ;;  %v6702_v0 = vld [vmem:[%s9159_s1 + $0x904] ss:$16 sps:$4 sm:$0xff]   ;;  %v6705_v1 = vld [vmem:[%s9159_s1 + $0x90c] ss:$16 sps:$4 sm:$0xff]  }
  0xe8   :  { %2445 = vmatprep.subr.bf16.mxu0 %v6618_v2  ;;  %2691 = vmatprep.subr.bf16.mxu1 %v6621_v3  ;;  %v6700_v2 = vld [vmem:[%s9159_s1 + $0x900] ss:$16 sps:$4 sm:$0xff]   ;;  %v6703_v3 = vld [vmem:[%s9159_s1 + $0x908] ss:$16 sps:$4 sm:$0xff]  }
  0xeb   :  { %2446 = vmatpush1.bf16.msra.mxu0 %v6616_v4  ;;  %2692 = vmatpush1.bf16.msra.mxu1 %v6619_v5  ;;  %v6708_v4 = vld [vmem:[%s9159_s1 + $0x924] ss:$16 sps:$4 sm:$0xff]   ;;  %v6711_v5 = vld [vmem:[%s9159_s1 + $0x92c] ss:$16 sps:$4 sm:$0xff]  }
  0xec   :  { %2447 = vmatprep.subr.bf16.mxu0 %v6624_v6  ;;  %2693 = vmatprep.subr.bf16.mxu1 %v6627_v7  ;;  %v6706_v6 = vld [vmem:[%s9159_s1 + $0x920] ss:$16 sps:$4 sm:$0xff]   ;;  %v6709_v7 = vld [vmem:[%s9159_s1 + $0x928] ss:$16 sps:$4 sm:$0xff]  }
  0xef   :  { %2448 = vmatpush1.bf16.msra.mxu0 %v6622_v8  ;;  %2694 = vmatpush1.bf16.msra.mxu1 %v6625_v9  ;;  %v6714_v8 = vld [vmem:[%s9159_s1 + $0x944] ss:$16 sps:$4 sm:$0xff]   ;;  %v6717_v9 = vld [vmem:[%s9159_s1 + $0x94c] ss:$16 sps:$4 sm:$0xff]  }
  0xf0   :  { %2449 = vmatprep.subr.bf16.mxu0 %v6630_v10  ;;  %2695 = vmatprep.subr.bf16.mxu1 %v6633_v11  ;;  %v6712_v10 = vld [vmem:[%s9159_s1 + $0x940] ss:$16 sps:$4 sm:$0xff]   ;;  %v6715_v11 = vld [vmem:[%s9159_s1 + $0x948] ss:$16 sps:$4 sm:$0xff]  }
  0xf3   :  { %2450 = vmatpush1.bf16.msra.mxu0 %v6628_v12  ;;  %2696 = vmatpush1.bf16.msra.mxu1 %v6631_v52  ;;  %v6720_v12 = vld [vmem:[%s9159_s1 + $0x964] ss:$16 sps:$4 sm:$0xff]   ;;  %v6723_v52 = vld [vmem:[%s9159_s1 + $0x96c] ss:$16 sps:$4 sm:$0xff]  }
  0xf4   :  { %2451 = vmatprep.subr.bf16.mxu0 %v6636_v15  ;;  %2697 = vmatprep.subr.bf16.mxu1 %v6639_v16  ;;  %v6718_v15 = vld [vmem:[%s9159_s1 + $0x960] ss:$16 sps:$4 sm:$0xff]   ;;  %v6721_v16 = vld [vmem:[%s9159_s1 + $0x968] ss:$16 sps:$4 sm:$0xff]  }
  0xf7   :  { %2452 = vmatpush1.bf16.msra.mxu0 %v6634_v17  ;;  %2698 = vmatpush1.bf16.msra.mxu1 %v6637_v18 }
  0xf8   :  { %2453 = vmatprep.subr.bf16.mxu0 %v6642_v19  ;;  %2699 = vmatprep.subr.bf16.mxu1 %v6645_v20 }
  0xfb   :  { %2454 = vmatpush1.bf16.msra.mxu0 %v6640_v21  ;;  %2700 = vmatpush1.bf16.msra.mxu1 %v6643_v22 }
  0xfc   :  { %2455 = vmatprep.subr.bf16.mxu0 %v6648_v23  ;;  %2701 = vmatprep.subr.bf16.mxu1 %v6651_v24 }
  0xff   :  { %2456 = vmatpush1.bf16.msra.mxu0 %v6646_v27  ;;  %2702 = vmatpush1.bf16.msra.mxu1 %v6649_v28 }
 0x100   :  { %2466 = vmatprep.subr.bf16.mxu0 %v6654_v29  ;;  %2712 = vmatprep.subr.bf16.mxu1 %v6657_v14 }
 0x102   :  { %2458 = vmatmul.mubr.bf16.vlgmr.msra.gmra.mrb[0].mxu0 %v460_v31  ;;  %2704 = vmatmul.mubr.bf16.vlgmr.msra.gmra.mrb[0].mxu1 %v460_v31 }
 0x103   :  { %2467 = vmatpush1.bf16.msra.mxu0 %v6652_v25  ;;  %2713 = vmatpush1.bf16.msra.mxu1 %v6655_v32 }
 0x104   :  { %2468 = vmatprep.subr.bf16.mxu0 %v6660_v33  ;;  %2714 = vmatprep.subr.bf16.mxu1 %v6663_v26 }
 0x105   :  { %2498 = vmatprep.mubr.bf16.mxu0 %v7802_v34  ;;  %2744 = vmatprep.mubr.bf16.mxu1 %v7802_v34 }
 0x107   :  { %2469 = vmatpush1.bf16.msra.mxu0 %v6658_v35  ;;  %2715 = vmatpush1.bf16.msra.mxu1 %v6661_v36 }
 0x108   :  { %2470 = vmatprep.subr.bf16.mxu0 %v6666_v37  ;;  %2716 = vmatprep.subr.bf16.mxu1 %v6669_v38 }
 0x10b   :  { %2471 = vmatpush1.bf16.msra.mxu0 %v6664_v39  ;;  %2717 = vmatpush1.bf16.msra.mxu1 %v6667_v40 }
 0x10c   :  { %2472 = vmatprep.subr.bf16.mxu0 %v6672_v41  ;;  %2718 = vmatprep.subr.bf16.mxu1 %v6675_v43 }
 0x10f   :  { %2473 = vmatpush1.bf16.msra.mxu0 %v6670_v44  ;;  %2719 = vmatpush1.bf16.msra.mxu1 %v6673_v45 }
 0x110   :  { %2474 = vmatprep.subr.bf16.mxu0 %v6678_v46  ;;  %2720 = vmatprep.subr.bf16.mxu1 %v6681_v47 }
 0x113   :  { %2475 = vmatpush1.bf16.msra.mxu0 %v6676_v48  ;;  %2721 = vmatpush1.bf16.msra.mxu1 %v6679_v50 }
 0x114   :  { %2476 = vmatprep.subr.bf16.mxu0 %v6684_v51  ;;  %2722 = vmatprep.subr.bf16.mxu1 %v6687_v53 }
 0x117   :  { %2477 = vmatpush1.bf16.msra.mxu0 %v6682_v54  ;;  %2723 = vmatpush1.bf16.msra.mxu1 %v6685_v55 }
 0x118   :  { %2478 = vmatprep.subr.bf16.mxu0 %v6690_v56  ;;  %2724 = vmatprep.subr.bf16.mxu1 %v6693_v57 }
 0x11b   :  { %2479 = vmatpush1.bf16.msra.mxu0 %v6688_v58  ;;  %2725 = vmatpush1.bf16.msra.mxu1 %v6691_v59 }
 0x11c   :  { %2480 = vmatprep.subr.bf16.mxu0 %v6696_v60  ;;  %2726 = vmatprep.subr.bf16.mxu1 %v6699_v61 }
 0x11f   :  { %2481 = vmatpush1.bf16.msra.mxu0 %v6694_v62  ;;  %2727 = vmatpush1.bf16.msra.mxu1 %v6697_v63 }
 0x120   :  { %2482 = vmatprep.subr.bf16.mxu0 %v6702_v0  ;;  %2728 = vmatprep.subr.bf16.mxu1 %v6705_v1 }
 0x123   :  { %2483 = vmatpush1.bf16.msra.mxu0 %v6700_v2  ;;  %2729 = vmatpush1.bf16.msra.mxu1 %v6703_v3 }
 0x124   :  { %2484 = vmatprep.subr.bf16.mxu0 %v6708_v4  ;;  %2730 = vmatprep.subr.bf16.mxu1 %v6711_v5 }
 0x127   :  { %2485 = vmatpush1.bf16.msra.mxu0 %v6706_v6  ;;  %2731 = vmatpush1.bf16.msra.mxu1 %v6709_v7 }
 0x128   :  { %2486 = vmatprep.subr.bf16.mxu0 %v6714_v8  ;;  %2732 = vmatprep.subr.bf16.mxu1 %v6717_v9 }
 0x12b   :  { %2487 = vmatpush1.bf16.msra.mxu0 %v6712_v10  ;;  %2733 = vmatpush1.bf16.msra.mxu1 %v6715_v11 }
 0x12c   :  { %12 = vsyncpa [#allocation3], 0  ;;  %2488 = vmatprep.subr.bf16.mxu0 %v6720_v12  ;;  %2734 = vmatprep.subr.bf16.mxu1 %v6723_v52  ;;  %v6726_v17 = vld [vmem:[%s9159_s1 + $0x984] ss:$16 sps:$4 sm:$0xff]   ;;  %v6729_v18 = vld [vmem:[%s9159_s1 + $0x98c] ss:$16 sps:$4 sm:$0xff]   ;;  %v7988_v35 = vrot.slane %v7771_v13, %v7101_v49  ;;  %v486_v13 = vcombine.high %v7802_v34, %v7802_v34 }
 0x12d   :  { %v6724_v19 = vld [vmem:[%s9159_s1 + $0x980] ss:$16 sps:$4 sm:$0xff]   ;;  %v6727_v20 = vld [vmem:[%s9159_s1 + $0x988] ss:$16 sps:$4 sm:$0xff]   ;;  %v6732_v21 = vld [vmem:[%s9159_s1 + $0x9a4] ss:$16 sps:$4 sm:$0xff]  }
 0x12e   :  { %v6735_v22 = vld [vmem:[%s9159_s1 + $0x9ac] ss:$16 sps:$4 sm:$0xff]   ;;  %v6730_v23 = vld [vmem:[%s9159_s1 + $0x9a0] ss:$16 sps:$4 sm:$0xff]   ;;  %v6733_v24 = vld [vmem:[%s9159_s1 + $0x9a8] ss:$16 sps:$4 sm:$0xff]  }
 0x12f   :  { %2489 = vmatpush1.bf16.msra.mxu0 %v6718_v15  ;;  %2735 = vmatpush1.bf16.msra.mxu1 %v6721_v16  ;;  %v6738_v27 = vld [vmem:[%s9159_s1 + $0x9c4] ss:$16 sps:$4 sm:$0xff]   ;;  %v6741_v28 = vld [vmem:[%s9159_s1 + $0x9cc] ss:$16 sps:$4 sm:$0xff]   ;;  %v6736_v29 = vld [vmem:[%s9159_s1 + $0x9c0] ss:$16 sps:$4 sm:$0xff]  }
 0x130   :  { %2490 = vmatprep.subr.bf16.mxu0 %v6726_v17  ;;  %2736 = vmatprep.subr.bf16.mxu1 %v6729_v18  ;;  %v6739_v14 = vld [vmem:[%s9159_s1 + $0x9c8] ss:$16 sps:$4 sm:$0xff]   ;;  %v6744_v30 = vld [vmem:[%s9159_s1 + $0x9e4] ss:$16 sps:$4 sm:$0xff]   ;;  %v6747_v31 = vld [vmem:[%s9159_s1 + $0x9ec] ss:$16 sps:$4 sm:$0xff]  }
 0x131   :  { %v6742_v25 = vld [vmem:[%s9159_s1 + $0x9e0] ss:$16 sps:$4 sm:$0xff]   ;;  %v6745_v32 = vld [vmem:[%s9159_s1 + $0x9e8] ss:$16 sps:$4 sm:$0xff]   ;;  %v6750_v33 = vld [vmem:[%s9159_s1 + $0xa04] ss:$16 sps:$4 sm:$0xff]  }
 0x132   :  { %v6753_v26 = vld [vmem:[%s9159_s1 + $0xa0c] ss:$16 sps:$4 sm:$0xff]   ;;  %v6748_v36 = vld [vmem:[%s9159_s1 + $0xa00] ss:$16 sps:$4 sm:$0xff]   ;;  %v6751_v37 = vld [vmem:[%s9159_s1 + $0xa08] ss:$16 sps:$4 sm:$0xff]  }
 0x133   :  { %2491 = vmatpush1.bf16.msra.mxu0 %v6724_v19  ;;  %2737 = vmatpush1.bf16.msra.mxu1 %v6727_v20  ;;  %v6756_v38 = vld [vmem:[%s9159_s1 + $0xa24] ss:$16 sps:$4 sm:$0xff]   ;;  %v6759_v49 = vld [vmem:[%s9159_s1 + $0xa2c] ss:$16 sps:$4 sm:$0xff]   ;;  %vm2298_vm0 = vcmask 261120   ;;  %vm5409_vm1 = vcmask 9216  }
 0x134   :  { %2492 = vmatprep.subr.bf16.mxu0 %v6732_v21  ;;  %2738 = vmatprep.subr.bf16.mxu1 %v6735_v22  ;;  %v6754_v39 = vld [vmem:[%s9159_s1 + $0xa20] ss:$16 sps:$4 sm:$0xff]   ;;  %v6757_v40 = vld [vmem:[%s9159_s1 + $0xa28] ss:$16 sps:$4 sm:$0xff]   ;;  %v6762_v34 = vld [vmem:[%s9159_s1 + $0xa44] ss:$16 sps:$4 sm:$0xff]   ;;  %v485_v22 = vcombine.high %v7988_v35, %v7988_v35 }
 0x135   :  { %v6765_v41 = vld [vmem:[%s9159_s1 + $0xa4c] ss:$16 sps:$4 sm:$0xff]   ;;  %v6760_v43 = vld [vmem:[%s9159_s1 + $0xa40] ss:$16 sps:$4 sm:$0xff]   ;;  %v6763_v44 = vld [vmem:[%s9159_s1 + $0xa48] ss:$16 sps:$4 sm:$0xff]  }
 0x136   :  { %v6768_v45 = vld [vmem:[%s9159_s1 + $0xa64] ss:$16 sps:$4 sm:$0xff]   ;;  %v6771_v46 = vld [vmem:[%s9159_s1 + $0xa6c] ss:$16 sps:$4 sm:$0xff]   ;;  %v6766_v47 = vld [vmem:[%s9159_s1 + $0xa60] ss:$16 sps:$4 sm:$0xff]  }
 0x137   :  { %2493 = vmatpush1.bf16.msra.mxu0 %v6730_v23  ;;  %2739 = vmatpush1.bf16.msra.mxu1 %v6733_v24  ;;  %v6769_v48 = vld [vmem:[%s9159_s1 + $0xa68] ss:$16 sps:$4 sm:$0xff]   ;;  %v6774_v50 = vld [vmem:[%s9159_s1 + $0xa84] ss:$16 sps:$4 sm:$0xff]   ;;  %v6777_v51 = vld [vmem:[%s9159_s1 + $0xa8c] ss:$16 sps:$4 sm:$0xff]  }
 0x138   :  { %2494 = vmatprep.subr.bf16.mxu0 %v6738_v27  ;;  %2740 = vmatprep.subr.bf16.mxu1 %v6741_v28  ;;  %v6772_v53 = vld [vmem:[%s9159_s1 + $0xa80] ss:$16 sps:$4 sm:$0xff]   ;;  %v6775_v54 = vld [vmem:[%s9159_s1 + $0xa88] ss:$16 sps:$4 sm:$0xff]   ;;  %v6780_v55 = vld [vmem:[%s9159_s1 + $0xaa4] ss:$16 sps:$4 sm:$0xff]  }
 0x139   :  { %v6783_v56 = vld [vmem:[%s9159_s1 + $0xaac] ss:$16 sps:$4 sm:$0xff]   ;;  %v6778_v57 = vld [vmem:[%s9159_s1 + $0xaa0] ss:$16 sps:$4 sm:$0xff]   ;;  %v6781_v58 = vld [vmem:[%s9159_s1 + $0xaa8] ss:$16 sps:$4 sm:$0xff]  }
 0x13a   :  { %v6786_v59 = vld [vmem:[%s9159_s1 + $0xac4] ss:$16 sps:$4 sm:$0xff]   ;;  %v6789_v60 = vld [vmem:[%s9159_s1 + $0xacc] ss:$16 sps:$4 sm:$0xff]   ;;  %v6784_v61 = vld [vmem:[%s9159_s1 + $0xac0] ss:$16 sps:$4 sm:$0xff]  }
 0x13b   :  { %2495 = vmatpush1.bf16.msra.mxu0 %v6736_v29  ;;  %2741 = vmatpush1.bf16.msra.mxu1 %v6739_v14  ;;  %v6787_v62 = vld [vmem:[%s9159_s1 + $0xac8] ss:$16 sps:$4 sm:$0xff]   ;;  %v6792_v63 = vld [vmem:[%s9159_s1 + $0xae4] ss:$16 sps:$4 sm:$0xff]   ;;  %v6795_v0 = vld [vmem:[%s9159_s1 + $0xaec] ss:$16 sps:$4 sm:$0xff]  }
 0x13c   :  { %2496 = vmatprep.subr.bf16.mxu0 %v6744_v30  ;;  %2742 = vmatprep.subr.bf16.mxu1 %v6747_v31  ;;  %v6790_v1 = vld [vmem:[%s9159_s1 + $0xae0] ss:$16 sps:$4 sm:$0xff]   ;;  %v6793_v2 = vld [vmem:[%s9159_s1 + $0xae8] ss:$16 sps:$4 sm:$0xff]   ;;  %v6798_v3 = vld [vmem:[%s9159_s1 + $0xb04] ss:$16 sps:$4 sm:$0xff]  }
 0x13d   :  { %v6801_v4 = vld [vmem:[%s9159_s1 + $0xb0c] ss:$16 sps:$4 sm:$0xff]   ;;  %v6796_v5 = vld [vmem:[%s9159_s1 + $0xb00] ss:$16 sps:$4 sm:$0xff]   ;;  %v6799_v6 = vld [vmem:[%s9159_s1 + $0xb08] ss:$16 sps:$4 sm:$0xff]  }
 0x13e   :  { %v6804_v7 = vld [vmem:[%s9159_s1 + $0xb24] ss:$16 sps:$4 sm:$0xff]   ;;  %v6807_v8 = vld [vmem:[%s9159_s1 + $0xb2c] ss:$16 sps:$4 sm:$0xff]   ;;  %v6802_v52 = vld [vmem:[%s9159_s1 + $0xb20] ss:$16 sps:$4 sm:$0xff]  }
 0x13f   :  { %2497 = vmatpush1.bf16.msra.mxu0 %v6742_v25  ;;  %2743 = vmatpush1.bf16.msra.mxu1 %v6745_v32  ;;  %v2802_v9 = vld [vmem:[%s9161_s3] sm:$0xff]  ;;  %v2803_v11 = vld [vmem:[%s9161_s3 + $0x8] sm:$0xff] }
 0x140   :  { %2507 = vmatprep.subr.bf16.mxu0 %v6750_v33  ;;  %2753 = vmatprep.subr.bf16.mxu1 %v6753_v26  ;;  %v2806_v10 = vld [vmem:[%s9161_s3 + $0x20] sm:$0xff]  ;;  %v2807_v12 = vld [vmem:[%s9161_s3 + $0x28] sm:$0xff] }
 0x141   :  { %v6805_v15 = vld [vmem:[%s9159_s1 + $0xb28] ss:$16 sps:$4 sm:$0xff]   ;;  %v5789_v16 = vcombine.high %v2802_v9, %v2806_v10  ;;  %v5791_v17 = vcombine.high %v2803_v11, %v2807_v12  ;;  %v2810_v18 = vld [vmem:[%s9161_s3 + $0x40] sm:$0xff]  ;;  %v5788_v23 = vcombine.low %v2802_v9, %v2806_v10  ;;  %v5790_v24 = vcombine.low %v2803_v11, %v2807_v12 }
 0x142   :  { %2499 = vmatmul.mubr.bf16.vlgmr.msra.gmra.mrb[0].mxu0 %v7988_v35  ;;  %2745 = vmatmul.mubr.bf16.vlgmr.msra.gmra.mrb[0].mxu1 %v7988_v35  ;;  %v2814_v19 = vld [vmem:[%s9161_s3 + $0x60] sm:$0xff]  ;;  %v2811_v20 = vld [vmem:[%s9161_s3 + $0x48] sm:$0xff] }
 0x143   :  { %2508 = vmatpush1.bf16.msra.mxu0 %v6748_v36  ;;  %2754 = vmatpush1.bf16.msra.mxu1 %v6751_v37  ;;  %v2815_v21 = vld [vmem:[%s9161_s3 + $0x68] sm:$0xff]  ;;  %v5797_v27 = vcombine.high %v2810_v18, %v2814_v19  ;;  %v2818_v29 = vld [vmem:[%s9161_s3 + $0x80] sm:$0xff]  ;;  %v5796_v25 = vcombine.low %v2810_v18, %v2814_v19 }
 0x144   :  { %2509 = vmatprep.subr.bf16.mxu0 %v6756_v38  ;;  %2755 = vmatprep.subr.bf16.mxu1 %v6759_v49  ;;  %v5799_v28 = vcombine.high %v2811_v20, %v2815_v21  ;;  %v2822_v14 = vld [vmem:[%s9161_s3 + $0xa0] sm:$0xff]  ;;  %v2819_v30 = vld [vmem:[%s9161_s3 + $0x88] sm:$0xff]  ;;  %v5798_v32 = vcombine.low %v2811_v20, %v2815_v21 }
 0x145   :  { %5786 = vmatprep.mubr.msk.bf16.mxu0 %vm2298_vm0, %v486_v13  ;;  %5787 = vmatprep.mubr.msk.bf16.mxu1 %vm2298_vm0, %v486_v13  ;;  %v2823_v31 = vld [vmem:[%s9161_s3 + $0xa8] sm:$0xff]  ;;  %v5805_v33 = vcombine.high %v2818_v29, %v2822_v14  ;;  %v2826_v35 = vld [vmem:[%s9161_s3 + $0xc0] sm:$0xff]  ;;  %v5804_v49 = vcombine.low %v2818_v29, %v2822_v14 }
 0x146   :  { %v5807_v26 = vcombine.high %v2819_v30, %v2823_v31  ;;  %v2830_v36 = vld [vmem:[%s9161_s3 + $0xe0] sm:$0xff]  ;;  %v2827_v37 = vld [vmem:[%s9161_s3 + $0xc8] sm:$0xff]  ;;  %v5806_v13 = vcombine.low %v2819_v30, %v2823_v31 }
 0x147   :  { %2510 = vmatpush1.bf16.msra.mxu0 %v6754_v39  ;;  %2756 = vmatpush1.bf16.msra.mxu1 %v6757_v40  ;;  %v2831_v38 = vld [vmem:[%s9161_s3 + $0xe8] sm:$0xff]  ;;  %v5813_v39 = vcombine.high %v2826_v35, %v2830_v36  ;;  %v2866_v11 = vld [vmem:[%s9161_s3 + $0x200] sm:$0xff] }
 0x148   :  { %2511 = vmatprep.subr.bf16.mxu0 %v6762_v34  ;;  %2757 = vmatprep.subr.bf16.mxu1 %v6765_v41  ;;  %v5815_v40 = vcombine.high %v2827_v37, %v2831_v38  ;;  %v2834_v34 = vld [vmem:[%s9161_s3 + $0x100] sm:$0xff]  ;;  %v2883_v31 = vld [vmem:[%s9161_s3 + $0x288] sm:$0xff] }
 0x149   :  { %v2838_v41 = vld [vmem:[%s9161_s3 + $0x120] sm:$0xff] }
 0x14a   :  { %v2870_v12 = vld [vmem:[%s9161_s3 + $0x220] sm:$0xff] }
 0x14b   :  { %2512 = vmatpush1.bf16.msra.mxu0 %v6760_v43  ;;  %2758 = vmatpush1.bf16.msra.mxu1 %v6763_v44  ;;  %v2835_v43 = vld [vmem:[%s9161_s3 + $0x108] sm:$0xff]  ;;  %v5853_v18 = vcombine.high %v2866_v11, %v2870_v12  ;;  %v2874_v20 = vld [vmem:[%s9161_s3 + $0x240] sm:$0xff] }
 0x14c   :  { %2513 = vmatprep.subr.bf16.mxu0 %v6768_v45  ;;  %2759 = vmatprep.subr.bf16.mxu1 %v6771_v46  ;;  %v2839_v44 = vld [vmem:[%s9161_s3 + $0x128] sm:$0xff]  ;;  %v5812_v45 = vcombine.low %v2826_v35, %v2830_v36  ;;  %v5814_v46 = vcombine.low %v2827_v37, %v2831_v38  ;;  %v2878_v21 = vld [vmem:[%s9161_s3 + $0x260] sm:$0xff] }
 0x14d   :  { %v2882_v14 = vld [vmem:[%s9161_s3 + $0x280] sm:$0xff]  ;;  %v2891_v38 = vld [vmem:[%s9161_s3 + $0x2c8] sm:$0xff] }
 0x14e   :  { %v2886_v30 = vld [vmem:[%s9161_s3 + $0x2a0] sm:$0xff] }
 0x14f   :  { %2514 = vmatpush1.bf16.msra.mxu0 %v6766_v47  ;;  %2760 = vmatpush1.bf16.msra.mxu1 %v6769_v48  ;;  %v5821_v47 = vcombine.high %v2834_v34, %v2838_v41  ;;  %v5823_v48 = vcombine.high %v2835_v43, %v2839_v44  ;;  %v2890_v36 = vld [vmem:[%s9161_s3 + $0x2c0] sm:$0xff] }
 0x150   :  { %2515 = vmatprep.subr.bf16.mxu0 %v6774_v50  ;;  %2761 = vmatprep.subr.bf16.mxu1 %v6777_v51  ;;  %v2842_v50 = vld [vmem:[%s9161_s3 + $0x140] sm:$0xff] }
 0x151   :  { %v2846_v51 = vld [vmem:[%s9161_s3 + $0x160] sm:$0xff] }
 0x152   :  { %v2894_v37 = vld [vmem:[%s9161_s3 + $0x2e0] sm:$0xff] }
 0x153   :  { %2516 = vmatpush1.bf16.msra.mxu0 %v6772_v53  ;;  %2762 = vmatpush1.bf16.msra.mxu1 %v6775_v54  ;;  %v2843_v53 = vld [vmem:[%s9161_s3 + $0x148] sm:$0xff] }
 0x154   :  { %2517 = vmatprep.subr.bf16.mxu0 %v6780_v55  ;;  %2763 = vmatprep.subr.bf16.mxu1 %v6783_v56  ;;  %v2847_v54 = vld [vmem:[%s9161_s3 + $0x168] sm:$0xff]  ;;  %v5820_v55 = vcombine.low %v2834_v34, %v2838_v41  ;;  %v5822_v56 = vcombine.low %v2835_v43, %v2839_v44  ;;  %v5876_v41 = vcombine.low %v2890_v36, %v2894_v37  ;;  %v2898_v44 = vld [vmem:[%s9161_s3 + $0x300] sm:$0xff] }
 0x157   :  { %2518 = vmatpush1.bf16.msra.mxu0 %v6778_v57  ;;  %2764 = vmatpush1.bf16.msra.mxu1 %v6781_v58  ;;  %v5829_v57 = vcombine.high %v2842_v50, %v2846_v51  ;;  %v5831_v58 = vcombine.high %v2843_v53, %v2847_v54 }
 0x158   :  { %2519 = vmatprep.subr.bf16.mxu0 %v6786_v59  ;;  %2765 = vmatprep.subr.bf16.mxu1 %v6789_v60  ;;  %v2850_v59 = vld [vmem:[%s9161_s3 + $0x180] sm:$0xff] }
 0x159   :  { %v2854_v60 = vld [vmem:[%s9161_s3 + $0x1a0] sm:$0xff] }
 0x15b   :  { %2520 = vmatpush1.bf16.msra.mxu0 %v6784_v61  ;;  %2766 = vmatpush1.bf16.msra.mxu1 %v6787_v62  ;;  %v2851_v61 = vld [vmem:[%s9161_s3 + $0x188] sm:$0xff] }
 0x15c   :  { %2521 = vmatprep.subr.bf16.mxu0 %v6792_v63  ;;  %2767 = vmatprep.subr.bf16.mxu1 %v6795_v0  ;;  %v2855_v62 = vld [vmem:[%s9161_s3 + $0x1a8] sm:$0xff]  ;;  %v5828_v63 = vcombine.low %v2842_v50, %v2846_v51  ;;  %v5830_v0 = vcombine.low %v2843_v53, %v2847_v54  ;;  %v2906_v54 = vld [vmem:[%s9161_s3 + $0x340] sm:$0xff] }
 0x15f   :  { %2522 = vmatpush1.bf16.msra.mxu0 %v6790_v1  ;;  %2768 = vmatpush1.bf16.msra.mxu1 %v6793_v2  ;;  %v5837_v1 = vcombine.high %v2850_v59, %v2854_v60  ;;  %v5839_v2 = vcombine.high %v2851_v61, %v2855_v62 }
 0x160   :  { %2523 = vmatprep.subr.bf16.mxu0 %v6798_v3  ;;  %2769 = vmatprep.subr.bf16.mxu1 %v6801_v4  ;;  %v2858_v3 = vld [vmem:[%s9161_s3 + $0x1c0] sm:$0xff] }
 0x161   :  { %v2862_v4 = vld [vmem:[%s9161_s3 + $0x1e0] sm:$0xff] }
 0x162   :  { %v5845_v9 = vcombine.high %v2858_v3, %v2862_v4 }
 0x163   :  { %2524 = vmatpush1.bf16.msra.mxu0 %v6796_v5  ;;  %2770 = vmatpush1.bf16.msra.mxu1 %v6799_v6  ;;  %v2859_v5 = vld [vmem:[%s9161_s3 + $0x1c8] sm:$0xff] }
 0x164   :  { %2525 = vmatprep.subr.bf16.mxu0 %v6804_v7  ;;  %2771 = vmatprep.subr.bf16.mxu1 %v6807_v8  ;;  %v2863_v6 = vld [vmem:[%s9161_s3 + $0x1e8] sm:$0xff]  ;;  %v5836_v7 = vcombine.low %v2850_v59, %v2854_v60  ;;  %v5838_v8 = vcombine.low %v2851_v61, %v2855_v62  ;;  %v2914_v62 = vld [vmem:[%s9161_s3 + $0x380] sm:$0xff] }
 0x165   :  { %v5847_v10 = vcombine.high %v2859_v5, %v2863_v6 }
 0x167   :  { %2526 = vmatpush1.bf16.msra.mxu0 %v6802_v52  ;;  %2772 = vmatpush1.bf16.msra.mxu1 %v6805_v15  ;;  %v2867_v52 = vld [vmem:[%s9161_s3 + $0x208] sm:$0xff] }
 0x168   :  { %4380 = vmatprep.subr.bf16.mxu0 %v5789_v16  ;;  %4462 = vmatprep.subr.bf16.mxu1 %v5791_v17  ;;  %v2871_v15 = vld [vmem:[%s9161_s3 + $0x228] sm:$0xff]  ;;  %v5844_v16 = vcombine.low %v2858_v3, %v2862_v4  ;;  %v5846_v17 = vcombine.low %v2859_v5, %v2863_v6  ;;  %v2922_v6 = vld [vmem:[%s9161_s3 + $0x3c0] sm:$0xff] }
 0x169   :  { %v5855_v19 = vcombine.high %v2867_v52, %v2871_v15 }
 0x16a   :  { %2540 = vmatmul.mubr.bf16.vlgmr.msra.gmra.mrb[0].mxu0 %v485_v22  ;;  %2786 = vmatmul.mubr.bf16.vlgmr.msra.gmra.mrb[0].mxu1 %v485_v22  ;;  %v2875_v22 = vld [vmem:[%s9161_s3 + $0x248] sm:$0xff] }
 0x16b   :  { %4381 = vmatpush1.bf16.msra.mxu0 %v5788_v23  ;;  %4463 = vmatpush1.bf16.msra.mxu1 %v5790_v24  ;;  %v2879_v23 = vld [vmem:[%s9161_s3 + $0x268] sm:$0xff]  ;;  %v5852_v24 = vcombine.low %v2866_v11, %v2870_v12 }
 0x16c   :  { %4382 = vmatprep.subr.bf16.mxu0 %v5797_v27  ;;  %4464 = vmatprep.subr.bf16.mxu1 %v5799_v28  ;;  %v5854_v27 = vcombine.low %v2867_v52, %v2871_v15  ;;  %v5861_v28 = vcombine.high %v2874_v20, %v2878_v21  ;;  %v5863_v29 = vcombine.high %v2875_v22, %v2879_v23  ;;  %v2930_v15 = vld [vmem:[%s9161_s3 + $0x400] sm:$0xff] }
 0x16f   :  { %4383 = vmatpush1.bf16.msra.mxu0 %v5796_v25  ;;  %4465 = vmatpush1.bf16.msra.mxu1 %v5798_v32  ;;  %v2887_v25 = vld [vmem:[%s9161_s3 + $0x2a8] sm:$0xff]  ;;  %v5860_v32 = vcombine.low %v2874_v20, %v2878_v21 }
 0x170   :  { %4384 = vmatprep.subr.bf16.mxu0 %v5805_v33  ;;  %4466 = vmatprep.subr.bf16.mxu1 %v5807_v26  ;;  %v5862_v33 = vcombine.low %v2875_v22, %v2879_v23  ;;  %v5869_v26 = vcombine.high %v2882_v14, %v2886_v30  ;;  %v5871_v35 = vcombine.high %v2883_v31, %v2887_v25  ;;  %v394_v23 = vsub.s32 0, %v7083_v42 }
 0x173   :  { %4385 = vmatpush1.bf16.msra.mxu0 %v5804_v49  ;;  %4467 = vmatpush1.bf16.msra.mxu1 %v5806_v13  ;;  %v2895_v49 = vld [vmem:[%s9161_s3 + $0x2e8] sm:$0xff]  ;;  %v5868_v13 = vcombine.low %v2882_v14, %v2886_v30 }
 0x174   :  { %4386 = vmatprep.subr.bf16.mxu0 %v5813_v39  ;;  %4468 = vmatprep.subr.bf16.mxu1 %v5815_v40  ;;  %v5870_v39 = vcombine.low %v2883_v31, %v2887_v25  ;;  %v5877_v40 = vcombine.high %v2890_v36, %v2894_v37  ;;  %v5879_v34 = vcombine.high %v2891_v38, %v2895_v49 }
 0x175   :  { %v5878_v43 = vcombine.low %v2891_v38, %v2895_v49 }
 0x177   :  { %4387 = vmatpush1.bf16.msra.mxu0 %v5812_v45  ;;  %4469 = vmatpush1.bf16.msra.mxu1 %v5814_v46  ;;  %v2902_v45 = vld [vmem:[%s9161_s3 + $0x320] sm:$0xff]  ;;  %v2899_v46 = vld [vmem:[%s9161_s3 + $0x308] sm:$0xff] }
 0x178   :  { %4388 = vmatprep.subr.bf16.mxu0 %v5821_v47  ;;  %4470 = vmatprep.subr.bf16.mxu1 %v5823_v48  ;;  %v5885_v47 = vcombine.high %v2898_v44, %v2902_v45  ;;  %v2903_v48 = vld [vmem:[%s9161_s3 + $0x328] sm:$0xff]  ;;  %v5884_v50 = vcombine.low %v2898_v44, %v2902_v45 }
 0x179   :  { %v5886_v51 = vcombine.low %v2899_v46, %v2903_v48  ;;  %v5887_v53 = vcombine.high %v2899_v46, %v2903_v48  ;;  %v2943_v44 = vld [vmem:[%s9161_s3 + $0x468] sm:$0xff]  ;;  %v2946_v48 = vld [vmem:[%s9161_s3 + $0x480] sm:$0xff] }
 0x17b   :  { %4389 = vmatpush1.bf16.msra.mxu0 %v5820_v55  ;;  %4471 = vmatpush1.bf16.msra.mxu1 %v5822_v56  ;;  %v2910_v55 = vld [vmem:[%s9161_s3 + $0x360] sm:$0xff]  ;;  %v2907_v56 = vld [vmem:[%s9161_s3 + $0x348] sm:$0xff] }
 0x17c   :  { %4390 = vmatprep.subr.bf16.mxu0 %v5829_v57  ;;  %4472 = vmatprep.subr.bf16.mxu1 %v5831_v58  ;;  %v5893_v57 = vcombine.high %v2906_v54, %v2910_v55  ;;  %v2911_v58 = vld [vmem:[%s9161_s3 + $0x368] sm:$0xff]  ;;  %v5892_v59 = vcombine.low %v2906_v54, %v2910_v55 }
 0x17d   :  { %v5894_v60 = vcombine.low %v2907_v56, %v2911_v58  ;;  %v5895_v61 = vcombine.high %v2907_v56, %v2911_v58  ;;  %v2947_v54 = vld [vmem:[%s9161_s3 + $0x488] sm:$0xff] }
 0x17e   :  { %v2951_v55 = vld [vmem:[%s9161_s3 + $0x4a8] sm:$0xff] }
 0x17f   :  { %4391 = vmatpush1.bf16.msra.mxu0 %v5828_v63  ;;  %4473 = vmatpush1.bf16.msra.mxu1 %v5830_v0  ;;  %v2918_v63 = vld [vmem:[%s9161_s3 + $0x3a0] sm:$0xff]  ;;  %v2915_v0 = vld [vmem:[%s9161_s3 + $0x388] sm:$0xff] }
 0x180   :  { %4392 = vmatprep.subr.bf16.mxu0 %v5837_v1  ;;  %4474 = vmatprep.subr.bf16.mxu1 %v5839_v2  ;;  %v5901_v1 = vcombine.high %v2914_v62, %v2918_v63  ;;  %v2919_v2 = vld [vmem:[%s9161_s3 + $0x3a8] sm:$0xff]  ;;  %v5900_v3 = vcombine.low %v2914_v62, %v2918_v63  ;;  %v2958_v62 = vld [vmem:[%s9161_s3 + $0x4e0] sm:$0xff] }
 0x181   :  { %v5902_v4 = vcombine.low %v2915_v0, %v2919_v2  ;;  %v5903_v5 = vcombine.high %v2915_v0, %v2919_v2  ;;  %v2955_v63 = vld [vmem:[%s9161_s3 + $0x4c8] sm:$0xff]  ;;  %v5934_v2 = vcombine.low %v2947_v54, %v2951_v55 }
 0x182   :  { %v2959_v0 = vld [vmem:[%s9161_s3 + $0x4e8] sm:$0xff] }
 0x183   :  { %4393 = vmatpush1.bf16.msra.mxu0 %v5836_v7  ;;  %4475 = vmatpush1.bf16.msra.mxu1 %v5838_v8  ;;  %v2926_v7 = vld [vmem:[%s9161_s3 + $0x3e0] sm:$0xff]  ;;  %v2923_v8 = vld [vmem:[%s9161_s3 + $0x3c8] sm:$0xff] }
 0x184   :  { %4394 = vmatprep.subr.bf16.mxu0 %v5845_v9  ;;  %4476 = vmatprep.subr.bf16.mxu1 %v5847_v10  ;;  %v5909_v9 = vcombine.high %v2922_v6, %v2926_v7  ;;  %v2927_v10 = vld [vmem:[%s9161_s3 + $0x3e8] sm:$0xff]  ;;  %v5908_v11 = vcombine.low %v2922_v6, %v2926_v7  ;;  %v2966_v6 = vld [vmem:[%s9161_s3 + $0x520] sm:$0xff] }
 0x185   :  { %v5910_v12 = vcombine.low %v2923_v8, %v2927_v10  ;;  %v5911_v52 = vcombine.high %v2923_v8, %v2927_v10  ;;  %v2963_v7 = vld [vmem:[%s9161_s3 + $0x508] sm:$0xff]  ;;  %v5942_v10 = vcombine.low %v2955_v63, %v2959_v0 }
 0x186   :  { %v2967_v8 = vld [vmem:[%s9161_s3 + $0x528] sm:$0xff] }
 0x187   :  { %4395 = vmatpush1.bf16.msra.mxu0 %v5844_v16  ;;  %4477 = vmatpush1.bf16.msra.mxu1 %v5846_v17  ;;  %v2934_v16 = vld [vmem:[%s9161_s3 + $0x420] sm:$0xff]  ;;  %v2931_v17 = vld [vmem:[%s9161_s3 + $0x408] sm:$0xff] }
 0x188   :  { %4396 = vmatprep.subr.bf16.mxu0 %v5853_v18  ;;  %4478 = vmatprep.subr.bf16.mxu1 %v5855_v19  ;;  %v5917_v18 = vcombine.high %v2930_v15, %v2934_v16  ;;  %v2935_v19 = vld [vmem:[%s9161_s3 + $0x428] sm:$0xff]  ;;  %v5916_v20 = vcombine.low %v2930_v15, %v2934_v16  ;;  %v2974_v15 = vld [vmem:[%s9161_s3 + $0x560] sm:$0xff] }
 0x189   :  { %v5918_v21 = vcombine.low %v2931_v17, %v2935_v19  ;;  %v5919_v22 = vcombine.high %v2931_v17, %v2935_v19  ;;  %v2971_v16 = vld [vmem:[%s9161_s3 + $0x548] sm:$0xff]  ;;  %v5950_v19 = vcombine.low %v2963_v7, %v2967_v8 }
 0x18a   :  { %v2975_v17 = vld [vmem:[%s9161_s3 + $0x568] sm:$0xff] }
 0x18b   :  { %4397 = vmatpush1.bf16.msra.mxu0 %v5852_v24  ;;  %4479 = vmatpush1.bf16.msra.mxu1 %v5854_v27  ;;  %v8318_v24 = vld [vmem:[%s9160_s2] sm:$0xf]  ;;  %v398_v27 = vsub.s32 1, %v7083_v42 }
 0x18c   :  { %4398 = vmatprep.subr.bf16.mxu0 %v5861_v28  ;;  %4480 = vmatprep.subr.bf16.mxu1 %v5863_v29  ;;  %v406_v28 = vsub.s32 3, %v7083_v42  ;;  %v395_v29 = vrot.slane %v8318_v24, %v394_v23 }
 0x18d   :  { %v399_v14 = vrot.slane %v8318_v24, %v398_v27 }
 0x18e   :  { %v407_v30 = vrot.slane %v8318_v24, %v406_v28 }
 0x18f   :  { %4399 = vmatpush1.bf16.msra.mxu0 %v5860_v32  ;;  %4481 = vmatpush1.bf16.msra.mxu1 %v5862_v33 }
 0x190   :  { %4400 = vmatprep.subr.bf16.mxu0 %v5869_v26  ;;  %4482 = vmatprep.subr.bf16.mxu1 %v5871_v35 }
 0x193   :  { %4401 = vmatpush1.bf16.msra.mxu0 %v5868_v13  ;;  %4483 = vmatpush1.bf16.msra.mxu1 %v5870_v39 }
 0x194   :  { %4402 = vmatprep.subr.bf16.mxu0 %v5877_v40  ;;  %4484 = vmatprep.subr.bf16.mxu1 %v5879_v34  ;;  %v2938_v40 = vld [vmem:[%s9161_s3 + $0x440] sm:$0xff] }
 0x197   :  { %4403 = vmatpush1.bf16.msra.mxu0 %v5876_v41  ;;  %4485 = vmatpush1.bf16.msra.mxu1 %v5878_v43  ;;  %v2942_v41 = vld [vmem:[%s9161_s3 + $0x460] sm:$0xff]  ;;  %v2939_v43 = vld [vmem:[%s9161_s3 + $0x448] sm:$0xff] }
 0x198   :  { %4404 = vmatprep.subr.bf16.mxu0 %v5885_v47  ;;  %4486 = vmatprep.subr.bf16.mxu1 %v5887_v53  ;;  %v2950_v53 = vld [vmem:[%s9161_s3 + $0x4a0] sm:$0xff]  ;;  %v5926_v58 = vcombine.low %v2939_v43, %v2943_v44 }
 0x19b   :  { %4405 = vmatpush1.bf16.msra.mxu0 %v5884_v50  ;;  %4487 = vmatpush1.bf16.msra.mxu1 %v5886_v51  ;;  %v5925_v50 = vcombine.high %v2938_v40, %v2942_v41  ;;  %v5927_v51 = vcombine.high %v2939_v43, %v2943_v44  ;;  %v2995_v43 = vld [vmem:[%s9161_s3 + $0x608] sm:$0xff] }
 0x19c   :  { %4406 = vmatprep.subr.bf16.mxu0 %v5893_v57  ;;  %4488 = vmatprep.subr.bf16.mxu1 %v5895_v61  ;;  %v5924_v57 = vcombine.low %v2938_v40, %v2942_v41  ;;  %v2954_v61 = vld [vmem:[%s9161_s3 + $0x4c0] sm:$0xff]  ;;  %v2999_v44 = vld [vmem:[%s9161_s3 + $0x628] sm:$0xff] }
 0x19d   :  { %v2998_v41 = vld [vmem:[%s9161_s3 + $0x620] sm:$0xff] }
 0x19f   :  { %4407 = vmatpush1.bf16.msra.mxu0 %v5892_v59  ;;  %4489 = vmatpush1.bf16.msra.mxu1 %v5894_v60  ;;  %v5933_v59 = vcombine.high %v2946_v48, %v2950_v53  ;;  %v5935_v60 = vcombine.high %v2947_v54, %v2951_v55  ;;  %v3006_v54 = vld [vmem:[%s9161_s3 + $0x660] sm:$0xff]  ;;  %v3003_v55 = vld [vmem:[%s9161_s3 + $0x648] sm:$0xff] }
 0x1a0   :  { %4408 = vmatprep.subr.bf16.mxu0 %v5901_v1  ;;  %4490 = vmatprep.subr.bf16.mxu1 %v5903_v5  ;;  %v5932_v1 = vcombine.low %v2946_v48, %v2950_v53  ;;  %v2962_v5 = vld [vmem:[%s9161_s3 + $0x500] sm:$0xff] }
 0x1a1   :  { %v3002_v53 = vld [vmem:[%s9161_s3 + $0x640] sm:$0xff] }
 0x1a3   :  { %4409 = vmatpush1.bf16.msra.mxu0 %v5900_v3  ;;  %4491 = vmatpush1.bf16.msra.mxu1 %v5902_v4  ;;  %v5941_v3 = vcombine.high %v2954_v61, %v2958_v62  ;;  %v5943_v4 = vcombine.high %v2955_v63, %v2959_v0  ;;  %v3014_v63 = vld [vmem:[%s9161_s3 + $0x6a0] sm:$0xff]  ;;  %v3011_v0 = vld [vmem:[%s9161_s3 + $0x688] sm:$0xff] }
 0x1a4   :  { %4410 = vmatprep.subr.bf16.mxu0 %v5909_v9  ;;  %4492 = vmatprep.subr.bf16.mxu1 %v5911_v52  ;;  %v5940_v9 = vcombine.low %v2954_v61, %v2958_v62  ;;  %v2970_v52 = vld [vmem:[%s9161_s3 + $0x540] sm:$0xff] }
 0x1a5   :  { %v3010_v62 = vld [vmem:[%s9161_s3 + $0x680] sm:$0xff] }
 0x1a7   :  { %4411 = vmatpush1.bf16.msra.mxu0 %v5908_v11  ;;  %4493 = vmatpush1.bf16.msra.mxu1 %v5910_v12  ;;  %v5949_v11 = vcombine.high %v2962_v5, %v2966_v6  ;;  %v5951_v12 = vcombine.high %v2963_v7, %v2967_v8  ;;  %v3022_v7 = vld [vmem:[%s9161_s3 + $0x6e0] sm:$0xff]  ;;  %v3019_v8 = vld [vmem:[%s9161_s3 + $0x6c8] sm:$0xff] }
 0x1a8   :  { %4421 = vmatprep.subr.bf16.mxu0 %v5917_v18  ;;  %4503 = vmatprep.subr.bf16.mxu1 %v5919_v22  ;;  %v5948_v18 = vcombine.low %v2962_v5, %v2966_v6  ;;  %v2978_v22 = vld [vmem:[%s9161_s3 + $0x580] sm:$0xff] }
 0x1a9   :  { %v3018_v6 = vld [vmem:[%s9161_s3 + $0x6c0] sm:$0xff] }
 0x23d   :  { %v2541_v31 = vpop.f32.mrb[0].mxu0  ;;  %v8331_v25 = vpop.f32.mrb[0].mxu1 }
 0x23e   :  { %v6197_v32 = vadd.f32 %v2541_v31, %v395_v29  ;;  %v2543_v33 = vpop.f32.mrb[1].mxu0  ;;  %v2789_v26 = vpop.f32.mrb[1].mxu1  ;;  %v2982_v29 = vld [vmem:[%s9161_s3 + $0x5a0] sm:$0xff]  ;;  %v5956_v31 = vcombine.low %v2970_v52, %v2974_v15 }
 0x23f   :  { %v6198_v35 = vadd.f32 %v2543_v33, %v399_v14  ;;  %v6200_v36 = vadd.f32 %v2789_v26, %v407_v30  ;;  %v2545_v37 = vpop.f32.mrb[2].mxu0  ;;  %v2791_v38 = vpop.f32.mrb[2].mxu1  ;;  %v2979_v14 = vld [vmem:[%s9161_s3 + $0x588] sm:$0xff]  ;;  %v5965_v33 = vcombine.high %v2978_v22, %v2982_v29 }
 0x240   :  { %v2546_v49 = vpop.f32.mrb[3].mxu0  ;;  %v2792_v13 = vpop.f32.mrb[3].mxu1  ;;  %6872 = vtanh.f32 %v6197_v32  ;;  %v2983_v30 = vld [vmem:[%s9161_s3 + $0x5a8] sm:$0xff]  ;;  %v5958_v32 = vcombine.low %v2971_v16, %v2975_v17 }
 0x241   :  { %6874 = vtanh.f32 %v6198_v35  ;;  %v5967_v26 = vcombine.high %v2979_v14, %v2983_v30  ;;  %v2986_v35 = vld [vmem:[%s9161_s3 + $0x5c0] sm:$0xff]  ;;  %v2987_v37 = vld [vmem:[%s9161_s3 + $0x5c8] sm:$0xff]  ;;  %v5964_v49 = vcombine.low %v2978_v22, %v2982_v29  ;;  %v5966_v13 = vcombine.low %v2979_v14, %v2983_v30 }
 0x242   :  { %6876 = vtanh.f32 %v6200_v36  ;;  %v2990_v36 = vld [vmem:[%s9161_s3 + $0x5e0] sm:$0xff]  ;;  %v2991_v38 = vld [vmem:[%s9161_s3 + $0x5e8] sm:$0xff] }
 0x243   :  { %v5975_v40 = vcombine.high %v2987_v37, %v2991_v38  ;;  %v5974_v48 = vcombine.low %v2987_v37, %v2991_v38  ;;  %v3034_v30 = vld [vmem:[%s9161_s3 + $0x740] sm:$0xff] }
 0x244   :  { %v3042_v38 = vld [vmem:[%s9161_s3 + $0x780] sm:$0xff] }
 0x24a   :  { %v6873_v39 = vpop.eup %6872 }
 0x24b   :  { %v6875_v34 = vpop.eup %6874  ;;  %v8347_v47 = vpack.c.bf16 %v6873_v39, %v6873_v39  ;;  %v5973_v39 = vcombine.high %v2986_v35, %v2990_v36 }
 0x24c   :  { %v6877_v45 = vpop.eup %6876  ;;  %v8345_v46 = vpack.c.bf16 %v6875_v34, %v6875_v34  ;;  %v2994_v34 = vld [vmem:[%s9161_s3 + $0x600] sm:$0xff] }
 0x24d   :  { %v8363_v56 = vpack.c.bf16 %v6877_v45, %v6877_v45  ;;  %v5972_v45 = vcombine.low %v2986_v35, %v2990_v36 }
 0x24e   :  { %4412 = vmatprep.mubr.bf16.mxu0 %v8345_v46  ;;  %4494 = vmatprep.mubr.bf16.mxu1 %v8345_v46 }
 0x24f   :  { %4413 = vmatmul.mubr.bf16.vlgmr.msra.gmra.mrb[4].mxu0 %v8347_v47  ;;  %4495 = vmatmul.mubr.bf16.vlgmr.msra.gmra.mrb[4].mxu1 %v8347_v47 }
 0x250   :  { %4422 = vmatpush1.bf16.msra.mxu0 %v5916_v20  ;;  %4504 = vmatpush1.bf16.msra.mxu1 %v5918_v21  ;;  %v5957_v20 = vcombine.high %v2970_v52, %v2974_v15  ;;  %v5959_v21 = vcombine.high %v2971_v16, %v2975_v17  ;;  %v6005_v52 = vcombine.high %v3018_v6, %v3022_v7  ;;  %v3026_v16 = vld [vmem:[%s9161_s3 + $0x700] sm:$0xff] }
 0x251   :  { %4453 = vmatprep.mubr.bf16.mxu0 %v8363_v56  ;;  %4535 = vmatprep.mubr.bf16.mxu1 %v8363_v56  ;;  %v3030_v17 = vld [vmem:[%s9161_s3 + $0x720] sm:$0xff] }
 0x252   :  { %4423 = vmatprep.subr.bf16.mxu0 %v5925_v50  ;;  %4505 = vmatprep.subr.bf16.mxu1 %v5927_v51  ;;  %v5981_v50 = vcombine.high %v2994_v34, %v2998_v41  ;;  %v5983_v51 = vcombine.high %v2995_v43, %v2999_v44  ;;  %v6013_v29 = vcombine.high %v3026_v16, %v3030_v17 }
 0x254   :  { %4424 = vmatpush1.bf16.msra.mxu0 %v5924_v57  ;;  %4506 = vmatpush1.bf16.msra.mxu1 %v5926_v58  ;;  %v3007_v57 = vld [vmem:[%s9161_s3 + $0x668] sm:$0xff]  ;;  %v5980_v58 = vcombine.low %v2994_v34, %v2998_v41 }
 0x255   :  { %4425 = vmatprep.subr.bf16.mxu0 %v5933_v59  ;;  %4507 = vmatprep.subr.bf16.mxu1 %v5935_v60  ;;  %v5982_v59 = vcombine.low %v2995_v43, %v2999_v44  ;;  %v5989_v60 = vcombine.high %v3002_v53, %v3006_v54  ;;  %v5991_v61 = vcombine.high %v3003_v55, %v3007_v57  ;;  %v3050_v43 = vld [vmem:[%s9161_s3 + $0x7c0] sm:$0xff] }
 0x256   :  { %v3054_v44 = vld [vmem:[%s9161_s3 + $0x7e0] sm:$0xff] }
 0x258   :  { %4426 = vmatpush1.bf16.msra.mxu0 %v5932_v1  ;;  %4508 = vmatpush1.bf16.msra.mxu1 %v5934_v2  ;;  %v3015_v1 = vld [vmem:[%s9161_s3 + $0x6a8] sm:$0xff]  ;;  %v5988_v2 = vcombine.low %v3002_v53, %v3006_v54  ;;  %v6037_v53 = vcombine.high %v3050_v43, %v3054_v44 }
 0x259   :  { %4427 = vmatprep.subr.bf16.mxu0 %v5941_v3  ;;  %4509 = vmatprep.subr.bf16.mxu1 %v5943_v4  ;;  %v5990_v3 = vcombine.low %v3003_v55, %v3007_v57  ;;  %v5997_v4 = vcombine.high %v3010_v62, %v3014_v63  ;;  %v5999_v5 = vcombine.high %v3011_v0, %v3015_v1  ;;  %v2804_v55 = vld [vmem:[%s9161_s3 + $0x10] sm:$0xff] }
 0x25a   :  { %v2808_v57 = vld [vmem:[%s9161_s3 + $0x30] sm:$0xff] }
 0x25c   :  { %4428 = vmatpush1.bf16.msra.mxu0 %v5940_v9  ;;  %4510 = vmatpush1.bf16.msra.mxu1 %v5942_v10  ;;  %v3023_v9 = vld [vmem:[%s9161_s3 + $0x6e8] sm:$0xff]  ;;  %v402_v10 = vsub.s32 2, %v7083_v42 }
 0x25d   :  { %4429 = vmatprep.subr.bf16.mxu0 %v5949_v11  ;;  %4511 = vmatprep.subr.bf16.mxu1 %v5951_v12  ;;  %v5996_v11 = vcombine.low %v3010_v62, %v3014_v63  ;;  %v5998_v12 = vcombine.low %v3011_v0, %v3015_v1  ;;  %v6007_v15 = vcombine.high %v3019_v8, %v3023_v9  ;;  %v2812_v1 = vld [vmem:[%s9161_s3 + $0x50] sm:$0xff] }
 0x25e   :  { %v6006_v22 = vcombine.low %v3019_v8, %v3023_v9  ;;  %v5793_v62 = vcombine.high %v2804_v55, %v2808_v57 }
 0x260   :  { %4430 = vmatpush1.bf16.msra.mxu0 %v5948_v18  ;;  %4512 = vmatpush1.bf16.msra.mxu1 %v5950_v19  ;;  %v3027_v18 = vld [vmem:[%s9161_s3 + $0x708] sm:$0xff] }
 0x261   :  { %4431 = vmatprep.subr.bf16.mxu0 %v5957_v20  ;;  %4513 = vmatprep.subr.bf16.mxu1 %v5959_v21  ;;  %v3031_v19 = vld [vmem:[%s9161_s3 + $0x728] sm:$0xff]  ;;  %v403_v20 = vrot.slane %v8318_v24, %v402_v10  ;;  %v6004_v21 = vcombine.low %v3018_v6, %v3022_v7 }
 0x262   :  { %v6015_v14 = vcombine.high %v3027_v18, %v3031_v19  ;;  %v3035_v24 = vld [vmem:[%s9161_s3 + $0x748] sm:$0xff]  ;;  %v6014_v35 = vcombine.low %v3027_v18, %v3031_v19 }
 0x264   :  { %4432 = vmatpush1.bf16.msra.mxu0 %v5956_v31  ;;  %4514 = vmatpush1.bf16.msra.mxu1 %v5958_v32  ;;  %v3038_v31 = vld [vmem:[%s9161_s3 + $0x760] sm:$0xff]  ;;  %v3039_v32 = vld [vmem:[%s9161_s3 + $0x768] sm:$0xff] }
 0x265   :  { %4433 = vmatprep.subr.bf16.mxu0 %v5965_v33  ;;  %4515 = vmatprep.subr.bf16.mxu1 %v5967_v26  ;;  %v6199_v33 = vadd.f32 %v8331_v25, %v403_v20  ;;  %v6012_v26 = vcombine.low %v3026_v16, %v3030_v17  ;;  %v6021_v36 = vcombine.high %v3034_v30, %v3038_v31  ;;  %v3043_v25 = vld [vmem:[%s9161_s3 + $0x788] sm:$0xff]  ;;  %v2828_v20 = vld [vmem:[%s9161_s3 + $0xd0] sm:$0xff] }
 0x266   :  { %v6023_v37 = vcombine.high %v3035_v24, %v3039_v32 }
 0x267   :  { %6878 = vtanh.f32 %v6199_v33  ;;  %v2837_v33 = vld [vmem:[%s9161_s3 + $0x118] sm:$0xff] }
 0x268   :  { %4434 = vmatpush1.bf16.msra.mxu0 %v5964_v49  ;;  %4516 = vmatpush1.bf16.msra.mxu1 %v5966_v13  ;;  %v3046_v49 = vld [vmem:[%s9161_s3 + $0x7a0] sm:$0xff]  ;;  %v3047_v13 = vld [vmem:[%s9161_s3 + $0x7a8] sm:$0xff] }
 0x269   :  { %4435 = vmatprep.subr.bf16.mxu0 %v5973_v39  ;;  %4517 = vmatprep.subr.bf16.mxu1 %v5975_v40  ;;  %v6020_v39 = vcombine.low %v3034_v30, %v3038_v31  ;;  %v6022_v40 = vcombine.low %v3035_v24, %v3039_v32  ;;  %v6029_v34 = vcombine.high %v3042_v38, %v3046_v49  ;;  %v2836_v24 = vld [vmem:[%s9161_s3 + $0x110] sm:$0xff] }
 0x26a   :  { %v6031_v41 = vcombine.high %v3043_v25, %v3047_v13  ;;  %v2840_v32 = vld [vmem:[%s9161_s3 + $0x130] sm:$0xff] }
 0x26c   :  { %4436 = vmatpush1.bf16.msra.mxu0 %v5972_v45  ;;  %4518 = vmatpush1.bf16.msra.mxu1 %v5974_v48  ;;  %v3051_v45 = vld [vmem:[%s9161_s3 + $0x7c8] sm:$0xff] }
 0x26d   :  { %4437 = vmatprep.subr.bf16.mxu0 %v5981_v50  ;;  %4519 = vmatprep.subr.bf16.mxu1 %v5983_v51  ;;  %v3055_v48 = vld [vmem:[%s9161_s3 + $0x7e8] sm:$0xff]  ;;  %v6028_v50 = vcombine.low %v3042_v38, %v3046_v49  ;;  %v6030_v51 = vcombine.low %v3043_v25, %v3047_v13  ;;  %v2844_v49 = vld [vmem:[%s9161_s3 + $0x150] sm:$0xff]  ;;  %v2845_v13 = vld [vmem:[%s9161_s3 + $0x158] sm:$0xff] }
 0x26e   :  { %v6039_v54 = vcombine.high %v3051_v45, %v3055_v48  ;;  %v2848_v25 = vld [vmem:[%s9161_s3 + $0x170] sm:$0xff] }
 0x270   :  { %4438 = vmatpush1.bf16.msra.mxu0 %v5980_v58  ;;  %4520 = vmatpush1.bf16.msra.mxu1 %v5982_v59  ;;  %v2805_v58 = vld [vmem:[%s9161_s3 + $0x18] sm:$0xff] }
 0x271   :  { %4439 = vmatprep.subr.bf16.mxu0 %v5989_v60  ;;  %4521 = vmatprep.subr.bf16.mxu1 %v5991_v61  ;;  %v2809_v59 = vld [vmem:[%s9161_s3 + $0x38] sm:$0xff]  ;;  %v6036_v60 = vcombine.low %v3050_v43, %v3054_v44  ;;  %v6038_v61 = vcombine.low %v3051_v45, %v3055_v48  ;;  %v6879_v0 = vpop.eup %6878  ;;  %v2852_v44 = vld [vmem:[%s9161_s3 + $0x190] sm:$0xff] }
 0x272   :  { %v5795_v63 = vcombine.high %v2805_v58, %v2809_v59  ;;  %v8554_v6 = vpack.c.bf16 %v6879_v0, %v6879_v0  ;;  %v5794_v7 = vcombine.low %v2805_v58, %v2809_v59  ;;  %v2856_v45 = vld [vmem:[%s9161_s3 + $0x1b0] sm:$0xff]  ;;  %v2853_v48 = vld [vmem:[%s9161_s3 + $0x198] sm:$0xff] }
 0x273   :  { %v2864_v58 = vld [vmem:[%s9161_s3 + $0x1f0] sm:$0xff]  ;;  %v2861_v59 = vld [vmem:[%s9161_s3 + $0x1d8] sm:$0xff] }
 0x274   :  { %4440 = vmatpush1.bf16.msra.mxu0 %v5988_v2  ;;  %4522 = vmatpush1.bf16.msra.mxu1 %v5990_v3  ;;  %v2816_v2 = vld [vmem:[%s9161_s3 + $0x70] sm:$0xff]  ;;  %v2813_v3 = vld [vmem:[%s9161_s3 + $0x58] sm:$0xff] }
 0x275   :  { %4441 = vmatprep.subr.bf16.mxu0 %v5997_v4  ;;  %4523 = vmatprep.subr.bf16.mxu1 %v5999_v5  ;;  %v2817_v4 = vld [vmem:[%s9161_s3 + $0x78] sm:$0xff]  ;;  %v5792_v5 = vcombine.low %v2804_v55, %v2808_v57  ;;  %v5801_v8 = vcombine.high %v2812_v1, %v2816_v2  ;;  %v5800_v16 = vcombine.low %v2812_v1, %v2816_v2  ;;  %v2860_v57 = vld [vmem:[%s9161_s3 + $0x1d0] sm:$0xff] }
 0x276   :  { %v5803_v9 = vcombine.high %v2813_v3, %v2817_v4  ;;  %v5802_v17 = vcombine.low %v2813_v3, %v2817_v4  ;;  %v2868_v1 = vld [vmem:[%s9161_s3 + $0x210] sm:$0xff]  ;;  %v2869_v3 = vld [vmem:[%s9161_s3 + $0x218] sm:$0xff] }
 0x277   :  { %v2872_v2 = vld [vmem:[%s9161_s3 + $0x230] sm:$0xff]  ;;  %v2873_v4 = vld [vmem:[%s9161_s3 + $0x238] sm:$0xff] }
 0x278   :  { %4442 = vmatpush1.bf16.msra.mxu0 %v5996_v11  ;;  %4524 = vmatpush1.bf16.msra.mxu1 %v5998_v12  ;;  %v2820_v11 = vld [vmem:[%s9161_s3 + $0x90] sm:$0xff] }
 0x279   :  { %4443 = vmatprep.subr.bf16.mxu0 %v6005_v52  ;;  %4525 = vmatprep.subr.bf16.mxu1 %v6007_v15  ;;  %v2824_v12 = vld [vmem:[%s9161_s3 + $0xb0] sm:$0xff]  ;;  %v2821_v52 = vld [vmem:[%s9161_s3 + $0x98] sm:$0xff] }
 0x27a   :  { %v2825_v15 = vld [vmem:[%s9161_s3 + $0xb8] sm:$0xff]  ;;  %v5809_v18 = vcombine.high %v2820_v11, %v2824_v12 }
 0x27b   :  { %v5811_v19 = vcombine.high %v2821_v52, %v2825_v15 }
 0x27c   :  { %4444 = vmatpush1.bf16.msra.mxu0 %v6004_v21  ;;  %4526 = vmatpush1.bf16.msra.mxu1 %v6006_v22  ;;  %v2832_v21 = vld [vmem:[%s9161_s3 + $0xf0] sm:$0xff]  ;;  %v2829_v22 = vld [vmem:[%s9161_s3 + $0xd8] sm:$0xff] }
 0x27d   :  { %4445 = vmatprep.subr.bf16.mxu0 %v6013_v29  ;;  %4527 = vmatprep.subr.bf16.mxu1 %v6015_v14  ;;  %v5808_v29 = vcombine.low %v2820_v11, %v2824_v12  ;;  %v5810_v14 = vcombine.low %v2821_v52, %v2825_v15  ;;  %v5817_v30 = vcombine.high %v2828_v20, %v2832_v21  ;;  %v2876_v11 = vld [vmem:[%s9161_s3 + $0x250] sm:$0xff]  ;;  %v2877_v52 = vld [vmem:[%s9161_s3 + $0x258] sm:$0xff] }
 0x27e   :  { %v2880_v12 = vld [vmem:[%s9161_s3 + $0x270] sm:$0xff]  ;;  %v2881_v15 = vld [vmem:[%s9161_s3 + $0x278] sm:$0xff] }
 0x280   :  { %4446 = vmatpush1.bf16.msra.mxu0 %v6012_v26  ;;  %4528 = vmatpush1.bf16.msra.mxu1 %v6014_v35  ;;  %v2841_v26 = vld [vmem:[%s9161_s3 + $0x138] sm:$0xff]  ;;  %v5816_v35 = vcombine.low %v2828_v20, %v2832_v21  ;;  %v2884_v20 = vld [vmem:[%s9161_s3 + $0x290] sm:$0xff] }
 0x281   :  { %4447 = vmatprep.subr.bf16.mxu0 %v6021_v36  ;;  %4529 = vmatprep.subr.bf16.mxu1 %v6023_v37  ;;  %v5825_v37 = vcombine.high %v2836_v24, %v2840_v32  ;;  %v5827_v38 = vcombine.high %v2837_v33, %v2841_v26  ;;  %v2888_v21 = vld [vmem:[%s9161_s3 + $0x2b0] sm:$0xff] }
 0x284   :  { %4448 = vmatpush1.bf16.msra.mxu0 %v6020_v39  ;;  %4530 = vmatpush1.bf16.msra.mxu1 %v6022_v40  ;;  %v2849_v39 = vld [vmem:[%s9161_s3 + $0x178] sm:$0xff]  ;;  %v5824_v40 = vcombine.low %v2836_v24, %v2840_v32  ;;  %v2892_v24 = vld [vmem:[%s9161_s3 + $0x2d0] sm:$0xff] }
 0x285   :  { %4449 = vmatprep.subr.bf16.mxu0 %v6029_v34  ;;  %4531 = vmatprep.subr.bf16.mxu1 %v6031_v41  ;;  %v5826_v34 = vcombine.low %v2837_v33, %v2841_v26  ;;  %v5833_v41 = vcombine.high %v2844_v49, %v2848_v25  ;;  %v5835_v43 = vcombine.high %v2845_v13, %v2849_v39  ;;  %v2896_v32 = vld [vmem:[%s9161_s3 + $0x2f0] sm:$0xff]  ;;  %v2893_v33 = vld [vmem:[%s9161_s3 + $0x2d8] sm:$0xff] }
 0x286   :  { %v2897_v26 = vld [vmem:[%s9161_s3 + $0x2f8] sm:$0xff] }
 0x288   :  { %4450 = vmatpush1.bf16.msra.mxu0 %v6028_v50  ;;  %4532 = vmatpush1.bf16.msra.mxu1 %v6030_v51  ;;  %v2857_v50 = vld [vmem:[%s9161_s3 + $0x1b8] sm:$0xff]  ;;  %v5832_v51 = vcombine.low %v2844_v49, %v2848_v25  ;;  %v2900_v49 = vld [vmem:[%s9161_s3 + $0x310] sm:$0xff] }
 0x289   :  { %4451 = vmatprep.subr.bf16.mxu0 %v6037_v53  ;;  %4533 = vmatprep.subr.bf16.mxu1 %v6039_v54  ;;  %v5834_v53 = vcombine.low %v2845_v13, %v2849_v39  ;;  %v5841_v54 = vcombine.high %v2852_v44, %v2856_v45  ;;  %v5843_v55 = vcombine.high %v2853_v48, %v2857_v50  ;;  %v2904_v25 = vld [vmem:[%s9161_s3 + $0x330] sm:$0xff]  ;;  %v2901_v13 = vld [vmem:[%s9161_s3 + $0x318] sm:$0xff] }
 0x28a   :  { %v2905_v39 = vld [vmem:[%s9161_s3 + $0x338] sm:$0xff] }
 0x28c   :  { %4452 = vmatpush1.bf16.msra.mxu0 %v6036_v60  ;;  %4534 = vmatpush1.bf16.msra.mxu1 %v6038_v61  ;;  %v2865_v60 = vld [vmem:[%s9161_s3 + $0x1f8] sm:$0xff]  ;;  %v5840_v61 = vcombine.low %v2852_v44, %v2856_v45  ;;  %v2908_v44 = vld [vmem:[%s9161_s3 + $0x350] sm:$0xff] }
 0x28d   :  { %4544 = vmatprep.subr.bf16.mxu0 %v5793_v62  ;;  %4626 = vmatprep.subr.bf16.mxu1 %v5795_v63  ;;  %v5842_v62 = vcombine.low %v2853_v48, %v2857_v50  ;;  %v5849_v63 = vcombine.high %v2860_v57, %v2864_v58  ;;  %v5851_v0 = vcombine.high %v2861_v59, %v2865_v60  ;;  %v2912_v45 = vld [vmem:[%s9161_s3 + $0x370] sm:$0xff]  ;;  %v2909_v48 = vld [vmem:[%s9161_s3 + $0x358] sm:$0xff] }
 0x28e   :  { %v2913_v50 = vld [vmem:[%s9161_s3 + $0x378] sm:$0xff] }
 0x28f   :  { %4454 = vmatmul.mubr.bf16.vlgmr.msra.gmra.mrb[4].mxu0 %v8554_v6  ;;  %4536 = vmatmul.mubr.bf16.vlgmr.msra.gmra.mrb[4].mxu1 %v8554_v6 }
 0x290   :  { %4545 = vmatpush1.bf16.msra.mxu0 %v5792_v5  ;;  %4576 = vmatprep.mubr.bf16.mxu0 %v8345_v46  ;;  %v5848_v5 = vcombine.low %v2860_v57, %v2864_v58  ;;  %v2916_v57 = vld [vmem:[%s9161_s3 + $0x390] sm:$0xff] }
 0x291   :  { %4627 = vmatpush1.bf16.msra.mxu1 %v5794_v7  ;;  %4658 = vmatprep.mubr.bf16.mxu1 %v8345_v46  ;;  %v2833_v46 = vld [vmem:[%s9161_s3 + $0xf8] sm:$0xff]  ;;  %v5850_v7 = vcombine.low %v2861_v59, %v2865_v60  ;;  %v2920_v58 = vld [vmem:[%s9161_s3 + $0x3b0] sm:$0xff] }
 0x292   :  { %4546 = vmatprep.subr.bf16.mxu0 %v5801_v8  ;;  %4628 = vmatprep.subr.bf16.mxu1 %v5803_v9  ;;  %v5819_v31 = vcombine.high %v2829_v22, %v2833_v46  ;;  %v5818_v36 = vcombine.low %v2829_v22, %v2833_v46  ;;  %v5857_v8 = vcombine.high %v2868_v1, %v2872_v2  ;;  %v2885_v22 = vld [vmem:[%s9161_s3 + $0x298] sm:$0xff] }
 0x293   :  { %v5859_v9 = vcombine.high %v2869_v3, %v2873_v4  ;;  %v2889_v46 = vld [vmem:[%s9161_s3 + $0x2b8] sm:$0xff] }
 0x294   :  { %4547 = vmatpush1.bf16.msra.mxu0 %v5800_v16  ;;  %v5856_v16 = vcombine.low %v2868_v1, %v2872_v2  ;;  %v2917_v59 = vld [vmem:[%s9161_s3 + $0x398] sm:$0xff]  ;;  %v2924_v1 = vld [vmem:[%s9161_s3 + $0x3d0] sm:$0xff] }
 0x295   :  { %4629 = vmatpush1.bf16.msra.mxu1 %v5802_v17  ;;  %4548 = vmatprep.subr.bf16.mxu0 %v5809_v18  ;;  %v5858_v17 = vcombine.low %v2869_v3, %v2873_v4  ;;  %v5865_v18 = vcombine.high %v2876_v11, %v2880_v12  ;;  %v2921_v60 = vld [vmem:[%s9161_s3 + $0x3b8] sm:$0xff]  ;;  %v2928_v2 = vld [vmem:[%s9161_s3 + $0x3f0] sm:$0xff] }
 0x296   :  { %4630 = vmatprep.subr.bf16.mxu1 %v5811_v19  ;;  %v5867_v19 = vcombine.high %v2877_v52, %v2881_v15  ;;  %v2925_v3 = vld [vmem:[%s9161_s3 + $0x3d8] sm:$0xff] }
 0x297   :  { %v2929_v4 = vld [vmem:[%s9161_s3 + $0x3f8] sm:$0xff] }
 0x298   :  { %4549 = vmatpush1.bf16.msra.mxu0 %v5808_v29  ;;  %v5864_v29 = vcombine.low %v2876_v11, %v2880_v12  ;;  %v2932_v11 = vld [vmem:[%s9161_s3 + $0x410] sm:$0xff] }
 0x299   :  { %4631 = vmatpush1.bf16.msra.mxu1 %v5810_v14  ;;  %4550 = vmatprep.subr.bf16.mxu0 %v5817_v30  ;;  %v5866_v14 = vcombine.low %v2877_v52, %v2881_v15  ;;  %v5873_v30 = vcombine.high %v2884_v20, %v2888_v21  ;;  %v2936_v12 = vld [vmem:[%s9161_s3 + $0x430] sm:$0xff]  ;;  %v2933_v52 = vld [vmem:[%s9161_s3 + $0x418] sm:$0xff] }
 0x29a   :  { %4632 = vmatprep.subr.bf16.mxu1 %v5819_v31  ;;  %v5875_v31 = vcombine.high %v2885_v22, %v2889_v46  ;;  %v2937_v15 = vld [vmem:[%s9161_s3 + $0x438] sm:$0xff] }
 0x29c   :  { %4551 = vmatpush1.bf16.msra.mxu0 %v5816_v35  ;;  %v5872_v35 = vcombine.low %v2884_v20, %v2888_v21  ;;  %v2940_v20 = vld [vmem:[%s9161_s3 + $0x450] sm:$0xff] }
 0x29d   :  { %4633 = vmatpush1.bf16.msra.mxu1 %v5818_v36  ;;  %4552 = vmatprep.subr.bf16.mxu0 %v5825_v37  ;;  %v5874_v36 = vcombine.low %v2885_v22, %v2889_v46  ;;  %v5881_v37 = vcombine.high %v2892_v24, %v2896_v32  ;;  %v2944_v21 = vld [vmem:[%s9161_s3 + $0x470] sm:$0xff]  ;;  %v5920_v22 = vcombine.low %v2932_v11, %v2936_v12  ;;  %v2941_v46 = vld [vmem:[%s9161_s3 + $0x458] sm:$0xff] }
 0x29e   :  { %4634 = vmatprep.subr.bf16.mxu1 %v5827_v38  ;;  %v5883_v38 = vcombine.high %v2893_v33, %v2897_v26 }
 0x2a0   :  { %4553 = vmatpush1.bf16.msra.mxu0 %v5824_v40  ;;  %v5880_v40 = vcombine.low %v2892_v24, %v2896_v32  ;;  %v2952_v24 = vld [vmem:[%s9161_s3 + $0x4b0] sm:$0xff] }
 0x2a1   :  { %4635 = vmatpush1.bf16.msra.mxu1 %v5826_v34  ;;  %4554 = vmatprep.subr.bf16.mxu0 %v5833_v41  ;;  %v5882_v34 = vcombine.low %v2893_v33, %v2897_v26  ;;  %v5889_v41 = vcombine.high %v2900_v49, %v2904_v25  ;;  %v2949_v33 = vld [vmem:[%s9161_s3 + $0x498] sm:$0xff] }
 0x2a2   :  { %4636 = vmatprep.subr.bf16.mxu1 %v5835_v43  ;;  %v5891_v43 = vcombine.high %v2901_v13, %v2905_v39  ;;  %v2953_v26 = vld [vmem:[%s9161_s3 + $0x4b8] sm:$0xff] }
 0x2a4   :  { %4555 = vmatpush1.bf16.msra.mxu0 %v5832_v51  ;;  %v5888_v51 = vcombine.low %v2900_v49, %v2904_v25  ;;  %v2956_v49 = vld [vmem:[%s9161_s3 + $0x4d0] sm:$0xff] }
 0x2a5   :  { %4637 = vmatpush1.bf16.msra.mxu1 %v5834_v53  ;;  %4556 = vmatprep.subr.bf16.mxu0 %v5841_v54  ;;  %v5890_v53 = vcombine.low %v2901_v13, %v2905_v39  ;;  %v5897_v54 = vcombine.high %v2908_v44, %v2912_v45  ;;  %v2960_v25 = vld [vmem:[%s9161_s3 + $0x4f0] sm:$0xff]  ;;  %v2961_v13 = vld [vmem:[%s9161_s3 + $0x4f8] sm:$0xff]  ;;  %v5938_v39 = vcombine.low %v2949_v33, %v2953_v26 }
 0x2a6   :  { %4638 = vmatprep.subr.bf16.mxu1 %v5843_v55  ;;  %v5899_v55 = vcombine.high %v2909_v48, %v2913_v50 }
 0x2a8   :  { %4557 = vmatpush1.bf16.msra.mxu0 %v5840_v61  ;;  %v5896_v61 = vcombine.low %v2908_v44, %v2912_v45  ;;  %v2965_v44 = vld [vmem:[%s9161_s3 + $0x518] sm:$0xff] }
 0x2a9   :  { %4639 = vmatpush1.bf16.msra.mxu1 %v5842_v62  ;;  %4558 = vmatprep.subr.bf16.mxu0 %v5849_v63  ;;  %v5898_v62 = vcombine.low %v2909_v48, %v2913_v50  ;;  %v5905_v63 = vcombine.high %v2916_v57, %v2920_v58  ;;  %v2969_v45 = vld [vmem:[%s9161_s3 + $0x538] sm:$0xff]  ;;  %v5944_v48 = vcombine.low %v2956_v49, %v2960_v25 }
 0x2aa   :  { %4640 = vmatprep.subr.bf16.mxu1 %v5851_v0  ;;  %v5907_v0 = vcombine.high %v2917_v59, %v2921_v60 }
 0x2ac   :  { %4559 = vmatpush1.bf16.msra.mxu0 %v5848_v5  ;;  %v5904_v5 = vcombine.low %v2916_v57, %v2920_v58  ;;  %v2973_v57 = vld [vmem:[%s9161_s3 + $0x558] sm:$0xff] }
 0x2ad   :  { %4641 = vmatpush1.bf16.msra.mxu1 %v5850_v7  ;;  %4560 = vmatprep.subr.bf16.mxu0 %v5857_v8  ;;  %v5906_v7 = vcombine.low %v2917_v59, %v2921_v60  ;;  %v5913_v8 = vcombine.high %v2924_v1, %v2928_v2  ;;  %v2977_v58 = vld [vmem:[%s9161_s3 + $0x578] sm:$0xff]  ;;  %v5954_v60 = vcombine.low %v2965_v44, %v2969_v45 }
 0x2ae   :  { %4642 = vmatprep.subr.bf16.mxu1 %v5859_v9  ;;  %v5915_v9 = vcombine.high %v2925_v3, %v2929_v4 }
 0x2b0   :  { %4561 = vmatpush1.bf16.msra.mxu0 %v5856_v16  ;;  %v5912_v16 = vcombine.low %v2924_v1, %v2928_v2  ;;  %v2981_v1 = vld [vmem:[%s9161_s3 + $0x598] sm:$0xff] }
 0x2b1   :  { %4643 = vmatpush1.bf16.msra.mxu1 %v5858_v17  ;;  %4562 = vmatprep.subr.bf16.mxu0 %v5865_v18  ;;  %v5914_v17 = vcombine.low %v2925_v3, %v2929_v4  ;;  %v5921_v18 = vcombine.high %v2932_v11, %v2936_v12  ;;  %v2985_v2 = vld [vmem:[%s9161_s3 + $0x5b8] sm:$0xff]  ;;  %v5962_v4 = vcombine.low %v2973_v57, %v2977_v58 }
 0x2b2   :  { %4644 = vmatprep.subr.bf16.mxu1 %v5867_v19  ;;  %v5923_v19 = vcombine.high %v2933_v52, %v2937_v15  ;;  %v2989_v11 = vld [vmem:[%s9161_s3 + $0x5d8] sm:$0xff] }
 0x2b3   :  { %v2993_v12 = vld [vmem:[%s9161_s3 + $0x5f8] sm:$0xff] }
 0x2b4   :  { %4563 = vmatpush1.bf16.msra.mxu0 %v5864_v29  ;;  %v2945_v29 = vld [vmem:[%s9161_s3 + $0x478] sm:$0xff] }
 0x2b5   :  { %4645 = vmatpush1.bf16.msra.mxu1 %v5866_v14  ;;  %4564 = vmatprep.subr.bf16.mxu0 %v5873_v30  ;;  %v5922_v14 = vcombine.low %v2933_v52, %v2937_v15  ;;  %v5929_v30 = vcombine.high %v2940_v20, %v2944_v21  ;;  %v5931_v32 = vcombine.high %v2941_v46, %v2945_v29 }
 0x2b6   :  { %4646 = vmatprep.subr.bf16.mxu1 %v5875_v31  ;;  %v2948_v31 = vld [vmem:[%s9161_s3 + $0x490] sm:$0xff]  ;;  %v5970_v15 = vcombine.low %v2981_v1, %v2985_v2 }
 0x2b8   :  { %4565 = vmatpush1.bf16.msra.mxu0 %v5872_v35  ;;  %v5928_v35 = vcombine.low %v2940_v20, %v2944_v21  ;;  %v2997_v20 = vld [vmem:[%s9161_s3 + $0x618] sm:$0xff] }
 0x2b9   :  { %4647 = vmatpush1.bf16.msra.mxu1 %v5874_v36  ;;  %4566 = vmatprep.subr.bf16.mxu0 %v5881_v37  ;;  %v5930_v36 = vcombine.low %v2941_v46, %v2945_v29  ;;  %v5937_v37 = vcombine.high %v2948_v31, %v2952_v24  ;;  %v3001_v21 = vld [vmem:[%s9161_s3 + $0x638] sm:$0xff]  ;;  %v5978_v46 = vcombine.low %v2989_v11, %v2993_v12 }
 0x2ba   :  { %4648 = vmatprep.subr.bf16.mxu1 %v5883_v38  ;;  %v5939_v38 = vcombine.high %v2949_v33, %v2953_v26  ;;  %v5986_v26 = vcombine.low %v2997_v20, %v3001_v21 }
 0x2bc   :  { %4567 = vmatpush1.bf16.msra.mxu0 %v5880_v40  ;;  %v5945_v40 = vcombine.high %v2956_v49, %v2960_v25  ;;  %v3013_v49 = vld [vmem:[%s9161_s3 + $0x698] sm:$0xff] }
 0x2bd   :  { %4649 = vmatpush1.bf16.msra.mxu1 %v5882_v34  ;;  %4568 = vmatprep.subr.bf16.mxu0 %v5889_v41  ;;  %v2964_v41 = vld [vmem:[%s9161_s3 + $0x510] sm:$0xff]  ;;  %v3017_v25 = vld [vmem:[%s9161_s3 + $0x6b8] sm:$0xff] }
 0x2be   :  { %4650 = vmatprep.subr.bf16.mxu1 %v5891_v43  ;;  %v2968_v43 = vld [vmem:[%s9161_s3 + $0x530] sm:$0xff] }
 0x2bf   :  { %v5952_v59 = vcombine.low %v2964_v41, %v2968_v43 }
 0x2c0   :  { %4569 = vmatpush1.bf16.msra.mxu0 %v5888_v51  ;;  %v5953_v51 = vcombine.high %v2964_v41, %v2968_v43  ;;  %v3021_v41 = vld [vmem:[%s9161_s3 + $0x6d8] sm:$0xff] }
 0x2c1   :  { %4651 = vmatpush1.bf16.msra.mxu1 %v5890_v53  ;;  %4570 = vmatprep.subr.bf16.mxu0 %v5897_v54  ;;  %v5955_v53 = vcombine.high %v2965_v44, %v2969_v45  ;;  %v2972_v54 = vld [vmem:[%s9161_s3 + $0x550] sm:$0xff]  ;;  %v3025_v43 = vld [vmem:[%s9161_s3 + $0x6f8] sm:$0xff]  ;;  %v6002_v45 = vcombine.low %v3013_v49, %v3017_v25 }
 0x2c2   :  { %4652 = vmatprep.subr.bf16.mxu1 %v5899_v55  ;;  %v2976_v55 = vld [vmem:[%s9161_s3 + $0x570] sm:$0xff] }
 0x2c3   :  { %v5960_v3 = vcombine.low %v2972_v54, %v2976_v55 }
 0x2c4   :  { %4571 = vmatpush1.bf16.msra.mxu0 %v5896_v61  ;;  %v5961_v61 = vcombine.high %v2972_v54, %v2976_v55  ;;  %v3029_v54 = vld [vmem:[%s9161_s3 + $0x718] sm:$0xff] }
 0x2c5   :  { %4653 = vmatpush1.bf16.msra.mxu1 %v5898_v62  ;;  %4572 = vmatprep.subr.bf16.mxu0 %v5905_v63  ;;  %v5963_v62 = vcombine.high %v2973_v57, %v2977_v58  ;;  %v2980_v63 = vld [vmem:[%s9161_s3 + $0x590] sm:$0xff]  ;;  %v3033_v55 = vld [vmem:[%s9161_s3 + $0x738] sm:$0xff]  ;;  %v6010_v58 = vcombine.low %v3021_v41, %v3025_v43 }
 0x2c6   :  { %4654 = vmatprep.subr.bf16.mxu1 %v5907_v0  ;;  %v2984_v0 = vld [vmem:[%s9161_s3 + $0x5b0] sm:$0xff] }
 0x2c7   :  { %v5968_v52 = vcombine.low %v2980_v63, %v2984_v0 }
 0x2c8   :  { %4573 = vmatpush1.bf16.msra.mxu0 %v5904_v5  ;;  %v5969_v5 = vcombine.high %v2980_v63, %v2984_v0  ;;  %v3037_v63 = vld [vmem:[%s9161_s3 + $0x758] sm:$0xff] }
 0x2c9   :  { %4655 = vmatpush1.bf16.msra.mxu1 %v5906_v7  ;;  %4574 = vmatprep.subr.bf16.mxu0 %v5913_v8  ;;  %v5971_v7 = vcombine.high %v2981_v1, %v2985_v2  ;;  %v2988_v8 = vld [vmem:[%s9161_s3 + $0x5d0] sm:$0xff]  ;;  %v3041_v0 = vld [vmem:[%s9161_s3 + $0x778] sm:$0xff]  ;;  %v6018_v2 = vcombine.low %v3029_v54, %v3033_v55 }
 0x2ca   :  { %4656 = vmatprep.subr.bf16.mxu1 %v5915_v9  ;;  %v2992_v9 = vld [vmem:[%s9161_s3 + $0x5f0] sm:$0xff] }
 0x2cc   :  { %4575 = vmatpush1.bf16.msra.mxu0 %v5912_v16  ;;  %v5977_v16 = vcombine.high %v2988_v8, %v2992_v9 }
 0x2cd   :  { %4657 = vmatpush1.bf16.msra.mxu1 %v5914_v17  ;;  %4585 = vmatprep.subr.bf16.mxu0 %v5921_v18  ;;  %v5979_v17 = vcombine.high %v2989_v11, %v2993_v12  ;;  %v2996_v18 = vld [vmem:[%s9161_s3 + $0x610] sm:$0xff]  ;;  %v6026_v12 = vcombine.low %v3037_v63, %v3041_v0 }
 0x2ce   :  { %4667 = vmatprep.subr.bf16.mxu1 %v5923_v19  ;;  %v3000_v19 = vld [vmem:[%s9161_s3 + $0x630] sm:$0xff] }
 0x2cf   :  { %4577 = vmatmul.mubr.bf16.vlgmr.msra.gmra.mrb[8].mxu0 %v8347_v47  ;;  %v5985_v29 = vcombine.high %v2996_v18, %v3000_v19  ;;  %v5984_v33 = vcombine.low %v2996_v18, %v3000_v19  ;;  %v3053_v18 = vld [vmem:[%s9161_s3 + $0x7d8] sm:$0xff] }
 0x2d0   :  { %4659 = vmatmul.mubr.bf16.vlgmr.msra.gmra.mrb[8].mxu1 %v8347_v47  ;;  %4586 = vmatpush1.bf16.msra.mxu0 %v5920_v22  ;;  %v2957_v47 = vld [vmem:[%s9161_s3 + $0x4d8] sm:$0xff]  ;;  %v5976_v22 = vcombine.low %v2988_v8, %v2992_v9 }
 0x2d1   :  { %4617 = vmatprep.mubr.bf16.mxu0 %v8363_v56  ;;  %4668 = vmatpush1.bf16.msra.mxu1 %v5922_v14  ;;  %v5947_v34 = vcombine.high %v2957_v47, %v2961_v13  ;;  %v5946_v50 = vcombine.low %v2957_v47, %v2961_v13  ;;  %v5987_v14 = vcombine.high %v2997_v20, %v3001_v21  ;;  %v3045_v8 = vld [vmem:[%s9161_s3 + $0x798] sm:$0xff] }
 0x2d2   :  { %4699 = vmatprep.mubr.bf16.mxu1 %v8363_v56  ;;  %4587 = vmatprep.subr.bf16.mxu0 %v5929_v30  ;;  %v5936_v56 = vcombine.low %v2948_v31, %v2952_v24  ;;  %v3004_v30 = vld [vmem:[%s9161_s3 + $0x650] sm:$0xff]  ;;  %v3005_v24 = vld [vmem:[%s9161_s3 + $0x658] sm:$0xff] }
 0x2d3   :  { %4669 = vmatprep.subr.bf16.mxu1 %v5931_v32  ;;  %v3008_v31 = vld [vmem:[%s9161_s3 + $0x670] sm:$0xff]  ;;  %v3009_v32 = vld [vmem:[%s9161_s3 + $0x678] sm:$0xff] }
 0x2d4   :  { %4588 = vmatpush1.bf16.msra.mxu0 %v5928_v35  ;;  %v5993_v35 = vcombine.high %v3004_v30, %v3008_v31  ;;  %v5992_v47 = vcombine.low %v3004_v30, %v3008_v31  ;;  %v5994_v13 = vcombine.low %v3005_v24, %v3009_v32  ;;  %v3049_v9 = vld [vmem:[%s9161_s3 + $0x7b8] sm:$0xff]  ;;  %v6808_v30 = vld [vmem:[%s9163_s5 + $0x40] sm:$0xff]  }
 0x2d5   :  { %4670 = vmatpush1.bf16.msra.mxu1 %v5930_v36  ;;  %4589 = vmatprep.subr.bf16.mxu0 %v5937_v37  ;;  %v5995_v36 = vcombine.high %v3005_v24, %v3009_v32  ;;  %v3012_v37 = vld [vmem:[%s9161_s3 + $0x690] sm:$0xff]  ;;  %v3057_v19 = vld [vmem:[%s9161_s3 + $0x7f8] sm:$0xff]  ;;  %v6034_v21 = vcombine.low %v3045_v8, %v3049_v9  ;;  %v6809_v31 = vld [vmem:[%s9163_s5 + $0xc0] sm:$0xff]  }
 0x2d6   :  { %4671 = vmatprep.subr.bf16.mxu1 %v5939_v38  ;;  %v3016_v38 = vld [vmem:[%s9161_s3 + $0x6b0] sm:$0xff]  ;;  %v6810_v24 = vld [vmem:[%s9163_s5] sm:$0xff]  }
 0x2d7   :  { %v6000_v44 = vcombine.low %v3012_v37, %v3016_v38  ;;  %v6811_v32 = vld [vmem:[%s9163_s5 + $0x80] sm:$0xff]  }
 0x2d8   :  { %4590 = vmatpush1.bf16.msra.mxu0 %v5936_v56  ;;  %v6001_v56 = vcombine.high %v3012_v37, %v3016_v38  ;;  %v6816_v37 = vld [vmem:[%s9163_s5 + $0x50] sm:$0xff]  }
 0x2d9   :  { %4672 = vmatpush1.bf16.msra.mxu1 %v5938_v39  ;;  %4591 = vmatprep.subr.bf16.mxu0 %v5945_v40  ;;  %v6003_v39 = vcombine.high %v3013_v49, %v3017_v25  ;;  %v3020_v40 = vld [vmem:[%s9161_s3 + $0x6d0] sm:$0xff]  ;;  %v6820_v25 = vld [vmem:[%s9163_s5 + $0x58] sm:$0xff]  }
 0x2da   :  { %4673 = vmatprep.subr.bf16.mxu1 %v5947_v34  ;;  %v3024_v34 = vld [vmem:[%s9161_s3 + $0x6f0] sm:$0xff] }
 0x2db   :  { %v6008_v57 = vcombine.low %v3020_v40, %v3024_v34  ;;  %v6818_v38 = vld [vmem:[%s9163_s5 + $0x10] sm:$0xff]  }
 0x2dc   :  { %4592 = vmatpush1.bf16.msra.mxu0 %v5944_v48  ;;  %v6009_v48 = vcombine.high %v3020_v40, %v3024_v34  ;;  %v6819_v49 = vld [vmem:[%s9163_s5 + $0x90] sm:$0xff]   ;;  %v6825_v40 = vld [vmem:[%s9163_s5 + $0xe0] sm:$0xff]  }
 0x2dd   :  { %4674 = vmatpush1.bf16.msra.mxu1 %v5946_v50  ;;  %4593 = vmatprep.subr.bf16.mxu0 %v5953_v51  ;;  %v6011_v50 = vcombine.high %v3021_v41, %v3025_v43  ;;  %v3028_v51 = vld [vmem:[%s9161_s3 + $0x710] sm:$0xff]  ;;  %v6826_v34 = vld [vmem:[%s9163_s5 + $0x20] sm:$0xff]   ;;  %v6828_v43 = vld [vmem:[%s9163_s5 + $0x68] sm:$0xff]  }
 0x2de   :  { %4675 = vmatprep.subr.bf16.mxu1 %v5955_v53  ;;  %v3032_v53 = vld [vmem:[%s9161_s3 + $0x730] sm:$0xff]  ;;  %v6827_v41 = vld [vmem:[%s9163_s5 + $0xa0] sm:$0xff]  }
 0x2df   :  { %v6016_v1 = vcombine.low %v3028_v51, %v3032_v53 }
 0x2e0   :  { %4594 = vmatpush1.bf16.msra.mxu0 %v5952_v59  ;;  %v6017_v59 = vcombine.high %v3028_v51, %v3032_v53  ;;  %v6833_v51 = vld [vmem:[%s9163_s5 + $0xf0] sm:$0xff]  }
 0x2e1   :  { %4676 = vmatpush1.bf16.msra.mxu1 %v5954_v60  ;;  %4595 = vmatprep.subr.bf16.mxu0 %v5961_v61  ;;  %v6019_v60 = vcombine.high %v3029_v54, %v3033_v55  ;;  %v3036_v61 = vld [vmem:[%s9161_s3 + $0x750] sm:$0xff]  ;;  %v6836_v55 = vld [vmem:[%s9163_s5 + $0x78] sm:$0xff]  }
 0x2e2   :  { %4677 = vmatprep.subr.bf16.mxu1 %v5963_v62  ;;  %v3040_v62 = vld [vmem:[%s9161_s3 + $0x770] sm:$0xff] }
 0x2e3   :  { %v6024_v11 = vcombine.low %v3036_v61, %v3040_v62  ;;  %v6834_v53 = vld [vmem:[%s9163_s5 + $0x30] sm:$0xff]  }
 0x2e4   :  { %4596 = vmatpush1.bf16.msra.mxu0 %v5960_v3  ;;  %v6025_v3 = vcombine.high %v3036_v61, %v3040_v62  ;;  %v6835_v54 = vld [vmem:[%s9163_s5 + $0xb0] sm:$0xff]   ;;  %v6841_v61 = vld [vmem:[%s9163_s5 + $0x1c0] sm:$0xff]  }
 0x2e5   :  { %4678 = vmatpush1.bf16.msra.mxu1 %v5962_v4  ;;  %4597 = vmatprep.subr.bf16.mxu0 %v5969_v5  ;;  %v6027_v4 = vcombine.high %v3037_v63, %v3041_v0  ;;  %v3044_v5 = vld [vmem:[%s9161_s3 + $0x790] sm:$0xff]  ;;  %v9031_v62 = vld [vmem:[%s9162_s4] sm:$0xff] }
 0x2e6   :  { %4679 = vmatprep.subr.bf16.mxu1 %v5971_v7  ;;  %v3048_v7 = vld [vmem:[%s9161_s3 + $0x7b0] sm:$0xff]  ;;  %v3063_v63 = vrot.slane %v9031_v62, %v394_v23  ;;  %v3071_v0 = vrot.slane %v9031_v62, %v402_v10 }
 0x2e7   :  { %v6032_v20 = vcombine.low %v3044_v5, %v3048_v7 }
 0x2e8   :  { %4598 = vmatpush1.bf16.msra.mxu0 %v5968_v52  ;;  %v6033_v52 = vcombine.high %v3044_v5, %v3048_v7 }
 0x2e9   :  { %4680 = vmatpush1.bf16.msra.mxu1 %v5970_v15  ;;  %4599 = vmatprep.subr.bf16.mxu0 %v5977_v16  ;;  %v6035_v15 = vcombine.high %v3045_v8, %v3049_v9  ;;  %v3052_v16 = vld [vmem:[%s9161_s3 + $0x7d0] sm:$0xff] }
 0x2ea   :  { %4681 = vmatprep.subr.bf16.mxu1 %v5979_v17  ;;  %v3056_v17 = vld [vmem:[%s9161_s3 + $0x7f0] sm:$0xff] }
 0x2ec   :  { %4600 = vmatpush1.bf16.msra.mxu0 %v5976_v22  ;;  %v6041_v22 = vcombine.high %v3052_v16, %v3056_v17 }
 0x2ed   :  { %4682 = vmatpush1.bf16.msra.mxu1 %v5978_v46  ;;  %4601 = vmatprep.subr.bf16.mxu0 %v5985_v29  ;;  %v6043_v46 = vcombine.high %v3053_v18, %v3057_v19  ;;  %v6040_v29 = vcombine.low %v3052_v16, %v3056_v17 }
 0x2ee   :  { %4683 = vmatprep.subr.bf16.mxu1 %v5987_v14  ;;  %v6042_v14 = vcombine.low %v3053_v18, %v3057_v19  ;;  %v6842_v19 = vld [vmem:[%s9163_s5 + $0x100] sm:$0xff]  }
 0x2f0   :  { %4602 = vmatpush1.bf16.msra.mxu0 %v5984_v33  ;;  %v6812_v33 = vld [vmem:[%s9163_s5 + $0x48] sm:$0xff]  }
 0x2f1   :  { %4684 = vmatpush1.bf16.msra.mxu1 %v5986_v26  ;;  %4603 = vmatprep.subr.bf16.mxu0 %v5993_v35  ;;  %v6813_v26 = vld [vmem:[%s9163_s5 + $0xc8] sm:$0xff]  }
 0x2f2   :  { %4685 = vmatprep.subr.bf16.mxu1 %v5995_v36  ;;  %v6814_v35 = vld [vmem:[%s9163_s5 + $0x8] sm:$0xff]  }
 0x2f3   :  { %v6815_v36 = vld [vmem:[%s9163_s5 + $0x88] sm:$0xff]  }
 0x2f4   :  { %4604 = vmatpush1.bf16.msra.mxu0 %v5992_v47  ;;  %v6821_v47 = vld [vmem:[%s9163_s5 + $0xd8] sm:$0xff]  }
 0x2f5   :  { %4686 = vmatpush1.bf16.msra.mxu1 %v5994_v13  ;;  %4605 = vmatprep.subr.bf16.mxu0 %v6001_v56  ;;  %v6822_v13 = vld [vmem:[%s9163_s5 + $0x18] sm:$0xff]  }
 0x2f6   :  { %4687 = vmatprep.subr.bf16.mxu1 %v6003_v39  ;;  %v6823_v56 = vld [vmem:[%s9163_s5 + $0x98] sm:$0xff]   ;;  %v6824_v39 = vld [vmem:[%s9163_s5 + $0x60] sm:$0xff]  }
 0x2f8   :  { %4606 = vmatpush1.bf16.msra.mxu0 %v6000_v44  ;;  %v6829_v44 = vld [vmem:[%s9163_s5 + $0xe8] sm:$0xff]  }
 0x2f9   :  { %4688 = vmatpush1.bf16.msra.mxu1 %v6002_v45  ;;  %4607 = vmatprep.subr.bf16.mxu0 %v6009_v48  ;;  %v6830_v45 = vld [vmem:[%s9163_s5 + $0x28] sm:$0xff]  }
 0x2fa   :  { %4689 = vmatprep.subr.bf16.mxu1 %v6011_v50  ;;  %v6831_v48 = vld [vmem:[%s9163_s5 + $0xa8] sm:$0xff]   ;;  %v6832_v50 = vld [vmem:[%s9163_s5 + $0x70] sm:$0xff]  }
 0x2fc   :  { %4608 = vmatpush1.bf16.msra.mxu0 %v6008_v57  ;;  %v6837_v57 = vld [vmem:[%s9163_s5 + $0xf8] sm:$0xff]  }
 0x2fd   :  { %4690 = vmatpush1.bf16.msra.mxu1 %v6010_v58  ;;  %4609 = vmatprep.subr.bf16.mxu0 %v6017_v59  ;;  %v6838_v58 = vld [vmem:[%s9163_s5 + $0x38] sm:$0xff]  }
 0x2fe   :  { %4691 = vmatprep.subr.bf16.mxu1 %v6019_v60  ;;  %v6839_v59 = vld [vmem:[%s9163_s5 + $0xb8] sm:$0xff]   ;;  %v6840_v60 = vld [vmem:[%s9163_s5 + $0x140] sm:$0xff]  }
 0x300   :  { %4610 = vmatpush1.bf16.msra.mxu0 %v6016_v1  ;;  %v3067_v1 = vrot.slane %v9031_v62, %v398_v27 }
 0x301   :  { %4692 = vmatpush1.bf16.msra.mxu1 %v6018_v2  ;;  %4611 = vmatprep.subr.bf16.mxu0 %v6025_v3  ;;  %v3075_v2 = vrot.slane %v9031_v62, %v406_v28 }
 0x302   :  { %4693 = vmatprep.subr.bf16.mxu1 %v6027_v4 }
 0x304   :  { %4612 = vmatpush1.bf16.msra.mxu0 %v6024_v11 }
 0x305   :  { %4694 = vmatpush1.bf16.msra.mxu1 %v6026_v12  ;;  %4613 = vmatprep.subr.bf16.mxu0 %v6033_v52 }
 0x306   :  { %4695 = vmatprep.subr.bf16.mxu1 %v6035_v15 }
 0x308   :  { %4614 = vmatpush1.bf16.msra.mxu0 %v6032_v20 }
 0x309   :  { %4696 = vmatpush1.bf16.msra.mxu1 %v6034_v21  ;;  %4615 = vmatprep.subr.bf16.mxu0 %v6041_v22  ;;  %v6843_v22 = vld [vmem:[%s9163_s5 + $0x180] sm:$0xff]  }
 0x30a   :  { %4697 = vmatprep.subr.bf16.mxu1 %v6043_v46  ;;  %v6844_v46 = vld [vmem:[%s9163_s5 + $0x148] sm:$0xff]  }
 0x30c   :  { %4616 = vmatpush1.bf16.msra.mxu0 %v6040_v29 }
 0x30d   :  { %4698 = vmatpush1.bf16.msra.mxu1 %v6042_v14  ;;  %6109 = vmatprep.subr.bf16.mxu0 %v6808_v30  ;;  %v6845_v14 = vld [vmem:[%s9163_s5 + $0x1c8] sm:$0xff]  }
 0x30e   :  { %6131 = vmatprep.subr.bf16.mxu1 %v6809_v31  ;;  %v6846_v30 = vld [vmem:[%s9163_s5 + $0x108] sm:$0xff]  }
 0x30f   :  { %4618 = vmatmul.mubr.bf16.vlgmr.msra.gmra.mrb[8].mxu0 %v8554_v6  ;;  %v6847_v31 = vld [vmem:[%s9163_s5 + $0x188] sm:$0xff]  }
 0x310   :  { %4700 = vmatmul.mubr.bf16.vlgmr.msra.gmra.mrb[8].mxu1 %v8554_v6  ;;  %6110 = vmatpush3.bf16.msra.mxu0 %v6810_v24  ;;  %v6817_v6 = vld [vmem:[%s9163_s5 + $0xd0] sm:$0xff]  }
 0x311   :  { %6132 = vmatpush3.bf16.msra.mxu1 %v6811_v32  ;;  %6111 = vmatprep.subr.bf16.mxu0 %v6812_v33  ;;  %v6848_v24 = vld [vmem:[%s9163_s5 + $0x150] sm:$0xff]  }
 0x312   :  { %6133 = vmatprep.subr.bf16.mxu1 %v6813_v26  ;;  %v6849_v32 = vld [vmem:[%s9163_s5 + $0x1d0] sm:$0xff]  }
 0x313   :  { %v6850_v33 = vld [vmem:[%s9163_s5 + $0x110] sm:$0xff]  }
 0x314   :  { %6112 = vmatpush3.bf16.msra.mxu0 %v6814_v35  ;;  %v6851_v26 = vld [vmem:[%s9163_s5 + $0x190] sm:$0xff]   ;;  %v6852_v35 = vld [vmem:[%s9163_s5 + $0x158] sm:$0xff]  }
 0x315   :  { %6134 = vmatpush3.bf16.msra.mxu1 %v6815_v36  ;;  %6113 = vmatprep.subr.bf16.mxu0 %v6816_v37  ;;  %v6853_v36 = vld [vmem:[%s9163_s5 + $0x1d8] sm:$0xff]  }
 0x316   :  { %6135 = vmatprep.subr.bf16.mxu1 %v6817_v6  ;;  %v6854_v37 = vld [vmem:[%s9163_s5 + $0x118] sm:$0xff]  }
 0x317   :  { %v6855_v6 = vld [vmem:[%s9163_s5 + $0x198] sm:$0xff]  }
 0x318   :  { %6114 = vmatpush3.bf16.msra.mxu0 %v6818_v38  ;;  %v6856_v38 = vld [vmem:[%s9163_s5 + $0x160] sm:$0xff]  }
 0x319   :  { %6136 = vmatpush3.bf16.msra.mxu1 %v6819_v49  ;;  %6115 = vmatprep.subr.bf16.mxu0 %v6820_v25  ;;  %v6857_v49 = vld [vmem:[%s9163_s5 + $0x1e0] sm:$0xff]  }
 0x31a   :  { %6137 = vmatprep.subr.bf16.mxu1 %v6821_v47  ;;  %v6858_v25 = vld [vmem:[%s9163_s5 + $0x120] sm:$0xff]  }
 0x31b   :  { %v6859_v47 = vld [vmem:[%s9163_s5 + $0x1a0] sm:$0xff]  }
 0x31c   :  { %6116 = vmatpush3.bf16.msra.mxu0 %v6822_v13  ;;  %v6860_v13 = vld [vmem:[%s9163_s5 + $0x168] sm:$0xff]  }
 0x31d   :  { %6138 = vmatpush3.bf16.msra.mxu1 %v6823_v56  ;;  %6117 = vmatprep.subr.bf16.mxu0 %v6824_v39  ;;  %v6861_v56 = vld [vmem:[%s9163_s5 + $0x1e8] sm:$0xff]  }
 0x31e   :  { %6139 = vmatprep.subr.bf16.mxu1 %v6825_v40  ;;  %v6862_v39 = vld [vmem:[%s9163_s5 + $0x128] sm:$0xff]  }
 0x31f   :  { %v6863_v40 = vld [vmem:[%s9163_s5 + $0x1a8] sm:$0xff]  }
 0x320   :  { %6118 = vmatpush3.bf16.msra.mxu0 %v6826_v34  ;;  %v6864_v34 = vld [vmem:[%s9163_s5 + $0x170] sm:$0xff]  }
 0x321   :  { %6140 = vmatpush3.bf16.msra.mxu1 %v6827_v41  ;;  %6119 = vmatprep.subr.bf16.mxu0 %v6828_v43  ;;  %v6865_v41 = vld [vmem:[%s9163_s5 + $0x1f0] sm:$0xff]  }
 0x322   :  { %6141 = vmatprep.subr.bf16.mxu1 %v6829_v44  ;;  %v6866_v43 = vld [vmem:[%s9163_s5 + $0x130] sm:$0xff]  }
 0x323   :  { %v6867_v44 = vld [vmem:[%s9163_s5 + $0x1b0] sm:$0xff]  }
 0x324   :  { %6120 = vmatpush3.bf16.msra.mxu0 %v6830_v45  ;;  %v6868_v45 = vld [vmem:[%s9163_s5 + $0x178] sm:$0xff]  }
 0x325   :  { %6142 = vmatpush3.bf16.msra.mxu1 %v6831_v48  ;;  %6121 = vmatprep.subr.bf16.mxu0 %v6832_v50  ;;  %v6869_v48 = vld [vmem:[%s9163_s5 + $0x1f8] sm:$0xff]  }
 0x326   :  { %6143 = vmatprep.subr.bf16.mxu1 %v6833_v51  ;;  %v6870_v50 = vld [vmem:[%s9163_s5 + $0x138] sm:$0xff]  }
 0x327   :  { %v6871_v51 = vld [vmem:[%s9163_s5 + $0x1b8] sm:$0xff]  }
 0x328   :  { %6122 = vmatpush3.bf16.msra.mxu0 %v6834_v53  ;;  %v3078_v53 = vsub.s32 4, %v7083_v42 }
 0x329   :  { %6144 = vmatpush3.bf16.msra.mxu1 %v6835_v54  ;;  %6123 = vmatprep.subr.bf16.mxu0 %v6836_v55  ;;  %v3086_v54 = vsub.s32 6, %v7083_v42  ;;  %v3082_v55 = vsub.s32 5, %v7083_v42 }
 0x32a   :  { %6145 = vmatprep.subr.bf16.mxu1 %v6837_v57  ;;  %v3090_v57 = vsub.s32 7, %v7083_v42 }
 0x32c   :  { %6124 = vmatpush3.bf16.msra.mxu0 %v6838_v58  ;;  %v3079_v58 = vrot.slane %v9031_v62, %v3078_v53 }
 0x32d   :  { %6146 = vmatpush3.bf16.msra.mxu1 %v6839_v59  ;;  %6153 = vmatprep.subr.bf16.mxu0 %v6840_v60  ;;  %v3087_v59 = vrot.slane %v9031_v62, %v3086_v54  ;;  %v3083_v60 = vrot.slane %v9031_v62, %v3082_v55 }
 0x32e   :  { %6175 = vmatprep.subr.bf16.mxu1 %v6841_v61  ;;  %v3091_v61 = vrot.slane %v9031_v62, %v3090_v57 }
 0x362   :  { %v4455_v3 = vpop.f32.mrb[4].mxu0  ;;  %v4537_v4 = vpop.f32.mrb[4].mxu1 }
 0x363   :  { %v6201_v5 = vadd.f32 %v4455_v3, %v3063_v63  ;;  %v6203_v7 = vadd.f32 %v4537_v4, %v3071_v0  ;;  %v4457_v8 = vpop.f32.mrb[5].mxu0  ;;  %v4539_v9 = vpop.f32.mrb[5].mxu1 }
 0x364   :  { %v6202_v11 = vadd.f32 %v4457_v8, %v3067_v1  ;;  %v6204_v23 = vadd.f32 %v4539_v9, %v3075_v2  ;;  %v4459_v12 = vpop.f32.mrb[6].mxu0  ;;  %v4541_v52 = vpop.f32.mrb[6].mxu1 }
 0x365   :  { %6880 = vtanh.f32 %v6201_v5  ;;  %v4460_v10 = vpop.f32.mrb[7].mxu0  ;;  %v4542_v15 = vpop.f32.mrb[7].mxu1 }
 0x366   :  { %6882 = vtanh.f32 %v6203_v7 }
 0x367   :  { %6884 = vtanh.f32 %v6202_v11 }
 0x368   :  { %6886 = vtanh.f32 %v6204_v23 }
 0x36f   :  { %v6881_v27 = vpop.eup %6880 }
 0x370   :  { %v6883_v16 = vpop.eup %6882  ;;  %v4716_v20 = vpack.c.bf16 %v6881_v27, %v6881_v27 }
 0x371   :  { %v6885_v17 = vpop.eup %6884  ;;  %v4718_v29 = vpack.c.bf16 %v6883_v16, %v6883_v16 }
 0x372   :  { %v6887_v28 = vpop.eup %6886  ;;  %v4717_v18 = vpack.c.bf16 %v6885_v17, %v6885_v17 }
 0x373   :  { %v4719_v21 = vpack.c.bf16 %v6887_v28, %v6887_v28 }
 0x374   :  { %5275 = vmatprep.mubr.bf16.mxu0 %v4717_v18  ;;  %v6044_v18 = vld [vmem:[%s9164_s6] ss:$0 sm:$0xff]  ;;  %s6925_s6 = smov [#allocation2]  }
 0x375   :  { %5315 = vmatprep.mubr.bf16.mxu1 %v4719_v21  ;;  %5276 = vmatmul.mubr.bf16.vlgmr.msra.gmra.mrb[12].mxu0 %v4716_v20  ;;  %s5417_s18 = sshll.u32 %s6925_s6, 4  ;;  %s5418_s18 = int_to_ptr.vmem [resolvable:$true] %s5417_s18 }
 0x376   :  { %5316 = vmatmul.mubr.bf16.vlgmr.msra.gmra.mrb[12].mxu1 %v4718_v29  ;;  %6154 = vmatpush3.bf16.msra.mxu0 %v6842_v19  ;;  %s6900_s19 = scalar_lea.vmem %s5418_s18, 32  ;;  %p6905_p1 = scmp.lt.s32.totalorder %s5418_s18, %s5418_s18 }
 0x377   :  { %6176 = vmatpush3.bf16.msra.mxu1 %v6843_v22  ;;  %6155 = vmatprep.subr.bf16.mxu0 %v6844_v46  ;;  %p6901_p0 = scmp.ne.s32.totalorder %s5418_s18, %s6900_s19  ;;  %p6906_p2 = scmp.lt.s32.totalorder %s6900_s19, %s6900_s19 }
 0x378   :  { %6177 = vmatprep.subr.bf16.mxu1 %v6845_v14 }
 0x379   :  { %p6907_p3 = por %p6906_p2, %p6905_p1 }
 0x37a   :  { %6156 = vmatpush3.bf16.msra.mxu0 %v6846_v30 }
 0x37b   :  { %6178 = vmatpush3.bf16.msra.mxu1 %v6847_v31  ;;  %6157 = vmatprep.subr.bf16.mxu0 %v6848_v24  ;;  %p6908_p4 = pnand %p6907_p3, %p6901_p0 }
 0x37c   :  { %6179 = vmatprep.subr.bf16.mxu1 %v6849_v32 }
 0x37e   :  { %6158 = vmatpush3.bf16.msra.mxu0 %v6850_v33 }
 0x37f   :  { %6180 = vmatpush3.bf16.msra.mxu1 %v6851_v26  ;;  %6159 = vmatprep.subr.bf16.mxu0 %v6852_v35 }
 0x380   :  { %6181 = vmatprep.subr.bf16.mxu1 %v6853_v36 }
 0x382   :  { %6160 = vmatpush3.bf16.msra.mxu0 %v6854_v37 }
 0x383   :  { %6182 = vmatpush3.bf16.msra.mxu1 %v6855_v6  ;;  %6161 = vmatprep.subr.bf16.mxu0 %v6856_v38 }
 0x384   :  { %6183 = vmatprep.subr.bf16.mxu1 %v6857_v49 }
 0x386   :  { %6162 = vmatpush3.bf16.msra.mxu0 %v6858_v25 }
 0x387   :  { %6184 = vmatpush3.bf16.msra.mxu1 %v6859_v47  ;;  %6163 = vmatprep.subr.bf16.mxu0 %v6860_v13 }
 0x388   :  { %6185 = vmatprep.subr.bf16.mxu1 %v6861_v56 }
 0x38a   :  { %6164 = vmatpush3.bf16.msra.mxu0 %v6862_v39 }
 0x38b   :  { %6186 = vmatpush3.bf16.msra.mxu1 %v6863_v40  ;;  %6165 = vmatprep.subr.bf16.mxu0 %v6864_v34 }
 0x38c   :  { %6187 = vmatprep.subr.bf16.mxu1 %v6865_v41 }
 0x38e   :  { %6166 = vmatpush3.bf16.msra.mxu0 %v6866_v43 }
 0x38f   :  { %6188 = vmatpush3.bf16.msra.mxu1 %v6867_v44  ;;  %6167 = vmatprep.subr.bf16.mxu0 %v6868_v45 }
 0x390   :  { %6189 = vmatprep.subr.bf16.mxu1 %v6869_v48 }
 0x392   :  { %6168 = vmatpush3.bf16.msra.mxu0 %v6870_v50 }
 0x393   :  { %6190 = vmatpush3.bf16.msra.mxu1 %v6871_v51 }
 0x3e2   :  { %v4619_v63 = vpop.f32.mrb[8].mxu0 }
 0x3e3   :  { %v6205_v0 = vadd.f32 %v4619_v63, %v3079_v58  ;;  %v4701_v1 = vpop.f32.mrb[8].mxu1  ;;  %v4621_v2 = vpop.f32.mrb[9].mxu0 }
 0x3e4   :  { %v6207_v3 = vadd.f32 %v4701_v1, %v3087_v59  ;;  %v6206_v4 = vadd.f32 %v4621_v2, %v3083_v60  ;;  %v4703_v5 = vpop.f32.mrb[9].mxu1  ;;  %v4623_v7 = vpop.f32.mrb[10].mxu0 }
 0x3e5   :  { %6888 = vtanh.f32 %v6205_v0  ;;  %v6208_v8 = vadd.f32 %v4703_v5, %v3091_v61  ;;  %v4705_v9 = vpop.f32.mrb[10].mxu1  ;;  %v4624_v42 = vpop.f32.mrb[11].mxu0 }
 0x3e6   :  { %6890 = vtanh.f32 %v6207_v3  ;;  %v4706_v11 = vpop.f32.mrb[11].mxu1 }
 0x3e7   :  { %6892 = vtanh.f32 %v6206_v4 }
 0x3e8   :  { %6894 = vtanh.f32 %v6208_v8 }
 0x3ef   :  { %v6889_v23 = vpop.eup %6888 }
 0x3f0   :  { %v6891_v12 = vpop.eup %6890  ;;  %v4720_v15 = vpack.c.bf16 %v6889_v23, %v6889_v23 }
 0x3f1   :  { %v6893_v52 = vpop.eup %6892  ;;  %v4722_v16 = vpack.c.bf16 %v6891_v12, %v6891_v12 }
 0x3f2   :  { %v6895_v62 = vpop.eup %6894  ;;  %v4721_v10 = vpack.c.bf16 %v6893_v52, %v6893_v52 }
 0x3f3   :  { %v4723_v27 = vpack.c.bf16 %v6895_v62, %v6895_v62 }
 0x3f4   :  { %5355 = vmatprep.mubr.bf16.mxu0 %v4721_v10 }
 0x3f5   :  { %5395 = vmatprep.mubr.bf16.mxu1 %v4723_v27  ;;  %5356 = vmatmul.mubr.bf16.vlgmr.msra.gmra.mrb[16].mxu0 %v4720_v15 }
 0x3f6   :  { %5396 = vmatmul.mubr.bf16.vlgmr.msra.gmra.mrb[16].mxu1 %v4722_v16 }
 0x448   :  { %v6125_v17 = vpop.f32.mrb[12].mxu0 }
 0x449   :  { %v6147_v28 = vpop.f32.mrb[12].mxu1  ;;  %v6126_v19 = vpop.f32.mrb[13].mxu0 }
 0x44a   :  { %v6127_v20 = vadd.f32 %v6126_v19, %v6125_v17  ;;  %v6148_v21 = vpop.f32.mrb[13].mxu1  ;;  %v6128_v22 = vpop.f32.mrb[14].mxu0 }
 0x44b   :  { %v6149_v46 = vadd.f32 %v6148_v21, %v6147_v28  ;;  %v6150_v29 = vpop.f32.mrb[14].mxu1  ;;  %v6129_v14 = vpop.f32.mrb[15].mxu0 }
 0x44c   :  { %v5278_v30 = vadd.f32 %v6127_v20, %v6044_v18  ;;  %v6151_v31 = vpop.f32.mrb[15].mxu1 }
 0x44e   :  { %v5318_v24 = vadd.f32 %v6149_v46, %v5278_v30 }
 0x4c8   :  { %v6169_v32 = vpop.f32.mrb[16].mxu0 }
 0x4c9   :  { %v6191_v33 = vpop.f32.mrb[16].mxu1  ;;  %v6170_v26 = vpop.f32.mrb[17].mxu0 }
 0x4ca   :  { %v6171_v35 = vadd.f32 %v6170_v26, %v6169_v32  ;;  %v6192_v36 = vpop.f32.mrb[17].mxu1  ;;  %v6172_v37 = vpop.f32.mrb[18].mxu0 }
 0x4cb   :  { %v6193_v6 = vadd.f32 %v6192_v36, %v6191_v33  ;;  %v6194_v38 = vpop.f32.mrb[18].mxu1  ;;  %v6173_v49 = vpop.f32.mrb[19].mxu0 }
 0x4cc   :  { %v5358_v25 = vadd.f32 %v6171_v35, %v5318_v24  ;;  %v6195_v47 = vpop.f32.mrb[19].mxu1 }
 0x4ce   :  { %v5398_v13 = vadd.f32 %v6193_v6, %v5358_v25 }
 0x4d0   :  { %v5403_v56 = vsub.f32 0.0, %v5398_v13 }
 0x4d2   :  { %v5404_v39 = vmul.f32 1.442695, %v5403_v56 }
 0x4d4   :  { %6896 = vpow2.f32 %v5404_v39 }
 0x4de   :  { %v6897_v40 = vpop.eup %6896 }
 0x4df   :  { %v5406_v34 = vadd.f32 1.0, %v6897_v40 }
 0x4e1   :  { %6898 = vrcp.f32 %v5406_v34 }
 0x4eb   :  { %v6899_v41 = vpop.eup %6898 }
 0x4ec   :  { %5410 = vst.msk [vmem:[#allocation2] sm:$0x3] %vm5409_vm1, %v6899_v41 }
 0x4ed   :  { %6911 = shalt.err (!%p6908_p4)
}
 0x4ee   :  { %s6912_s22 = scalar_lea.hbm %s9165_s7, 32 }
 0x4ef   :  { %p6913_p5 = scmp.ne.s32.totalorder %s9165_s7, %s6912_s22  ;;  %p6916_p6 = scmp.lt.u32.totalorder %s6912_s22, %s9165_s7 }
 0x4f1   :  { %p6918_p7 = pnand %p6916_p6, %p6913_p5 }
 0x4f3   :  { %6921 = shalt.err (!%p6918_p7)
}
 0x4f4   :  { %5420 = dma.vmem_to_hbm [thread:$0]  %s5418_s18, 32, %s9165_s7, [#allocation3]  }
 0x4f5   :  { %6922 = dma.done.wait [#allocation3], 32  }
 0x4f6   :  { %6923 = vsyncadd [#allocation3], 4294967264 }
 0x4f7   :  { %5424 = vsyncpa [#allocation3], 1 }

</bundles_post_ra>
